<compile_context>
chip_gen: v7x
topology: tpu7x:2x2x1
jax: 0.10.0
libtpu: 0.0.40
codegen_flags: <defaults>
</compile_context>

<pallas_src>
import jax
import jax.numpy as jnp
from jax import lax
from jax.experimental import pallas as pl
from jax.experimental.pallas import tpu as pltpu  # noqa: F401  (TPU backend)

# -------------------- net_params (small, deterministic) --------------------
IN_DIM     = 16          # in_dim (node feature dim)
M_FREQS    = 8           # net_params['m']
LPE_LAYERS = 1
LPE_DIM    = 8
LPE_HEADS  = 2
GT_LAYERS  = 2
GT_HIDDEN  = 32
GT_OUT     = 32
GT_HEADS   = 4
PE_FF_DIM  = 2048        # nn.TransformerEncoderLayer default dim_feedforward
N_NODES    = 12
N_CLASSES  = 11          # MLPReadout(GT_out_dim, 11)

NEG_MASK = -1e30         # finite "minus infinity" for masked attention scores


# -------------------- helpers used on traced values *inside* the kernel --------------------

def _mm(a, b):
    return jnp.dot(a, b, preferred_element_type=jnp.float32)


def _mm_nt(a, b):
    # a @ b.T  (contract the last dim of both operands) — same form as the official
    # Pallas TPU flash-attention kernel.
    return lax.dot_general(a, b, (((1,), (1,)), ((), ())),
                           preferred_element_type=jnp.float32)


def _layernorm(x, g, b, eps=1e-5):
    mu = jnp.mean(x, axis=-1, keepdims=True)
    var = jnp.mean((x - mu) ** 2, axis=-1, keepdims=True)
    return (x - mu) * lax.rsqrt(var + eps) * g + b


# ============================ fused forward ============================

def san_forward(params, h, EigVals, EigVecs, adj):
    f32 = jnp.float32
    N = h.shape[0]
    m = M_FREQS
    NM = N * m
    demb = GT_HIDDEN - LPE_DIM

    # ---------- input preparation (plain JAX, tiny, once per call) ----------
    ev = EigVals[:m]                                   # (m,)   may contain NaN
    EV = EigVecs[:, :m]                                # (N, m) may contain NaN

    # flattened LPE tokens, index = node*m + freq, features = [eigvec, eigval]
    vec_flat = EV.reshape(NM, 1).astype(f32)
    val_flat = jnp.broadcast_to(ev[None, :], (N, m)).reshape(NM, 1).astype(f32)
    feat = jnp.concatenate([vec_flat, val_flat], axis=1)              # (NM, 2)

    pad_tok = jnp.isnan(EV).reshape(NM)                               # key padding (channel 0)
    tok_node = jnp.arange(NM, dtype=jnp.int32) // m
    same_node = tok_node[:, None] == tok_node[None, :]
    allowed = (same_node & (~pad_tok)[None, :]).astype(f32)           # (NM, NM) attention mask
    keep_tok = (~pad_tok).astype(f32).reshape(NM, 1)                  # (NM, 1)  for the nansum
    pool = (jnp.arange(N, dtype=jnp.int32)[:, None]
            == tok_node[None, :]).astype(f32)                         # (N, NM)  freq -> node sum

    # fused / zero-padded weights so the kernel needs no concatenation ops
    emb_w_pad = jnp.zeros((IN_DIM, GT_HIDDEN), f32).at[:, :demb].set(params['emb_w'])
    emb_b_pad = jnp.zeros((1, GT_HIDDEN), f32).at[:, :demb].set(params['emb_b'])
    pe_sel = jnp.zeros((LPE_DIM, GT_HIDDEN), f32).at[:, demb:].set(jnp.eye(LPE_DIM, dtype=f32))

    kp = {
        'emb_w': emb_w_pad, 'emb_b': emb_b_pad, 'pe_sel': pe_sel,
        'A_w': params['A_w'], 'A_b': params['A_b'].reshape(1, LPE_DIM),
        'pe': [], 'gt': [], 'mlp': [],
    }
    for lp in params['pe_layers']:
        kp['pe'].append({
            'qkv_w': lp['in_proj_w'], 'qkv_b': lp['in_proj_b'].reshape(1, -1),
            'out_w': lp['out_w'],     'out_b': lp['out_b'].reshape(1, -1),
            'ln1_g': lp['ln1_g'].reshape(1, -1), 'ln1_b': lp['ln1_b'].reshape(1, -1),
            'ff1_w': lp['ff1_w'], 'ff1_b': lp['ff1_b'].reshape(1, -1),
            'ff2_w': lp['ff2_w'], 'ff2_b': lp['ff2_b'].reshape(1, -1),
            'ln2_g': lp['ln2_g'].reshape(1, -1), 'ln2_b': lp['ln2_b'].reshape(1, -1),
        })
    for lp in params['gt_layers']:
        kp['gt'].append({
            'qkv_w': jnp.concatenate([lp['Q_w'], lp['K_w'], lp['V_w']], axis=1),  # fused QKV
            'O_w': lp['O_w'], 'O_b': lp['O_b'].reshape(1, -1),
            'ln1_g': lp['ln1_g'].reshape(1, -1), 'ln1_b': lp['ln1_b'].reshape(1, -1),
            'ffn1_w': lp['ffn1_w'], 'ffn1_b': lp['ffn1_b'].reshape(1, -1),
            'ffn2_w': lp['ffn2_w'], 'ffn2_b': lp['ffn2_b'].reshape(1, -1),
            'ln2_g': lp['ln2_g'].reshape(1, -1), 'ln2_b': lp['ln2_b'].reshape(1, -1),
        })
    for mp in params['mlp']:
        kp['mlp'].append({'w': mp['w'], 'b': mp['b'].reshape(1, -1)})

    w_leaves, w_treedef = jax.tree_util.tree_flatten(kp)
    data = [h.astype(f32), feat, allowed, keep_tok, pool, adj.astype(f32)]
    n_data = len(data)

    # ---------- the single fused kernel ----------
    def kernel(*refs):
        o_ref = refs[-1]
        h_ref, feat_ref, allow_ref, keep_ref, pool_ref, adj_ref = refs[:n_data]
        wp = jax.tree_util.tree_unflatten(w_treedef, refs[n_data:-1])

        # ---- linear_A on [eigvec, eigval] with NaN -> 0 (VPU broadcast form, K=2) ----
        feat_v = feat_ref[...]
        clean = jnp.where(jnp.isnan(feat_v), 0.0, feat_v)                 # (NM, 2)
        a_w = wp['A_w'][...]
        pe = (clean[:, 0:1] * a_w[0:1, :] + clean[:, 1:2] * a_w[1:2, :]
              + wp['A_b'][...])                                           # (NM, LPE_DIM)

        allow = allow_ref[...]

        # ---- LPE TransformerEncoder layers (post-norm, ReLU), flattened-token form ----
        dh = LPE_DIM // LPE_HEADS
        scale = 1.0 / (dh ** 0.5)
        for lp in wp['pe']:
            x = pe
            qkv = _mm(x, lp['qkv_w'][...]) + lp['qkv_b'][...]             # fused QKV (NM, 3D)
            out_w = lp['out_w'][...]
            attn = None
            for hd in range(LPE_HEADS):
                q = qkv[:, hd * dh:(hd + 1) * dh]
                k = qkv[:, LPE_DIM + hd * dh:LPE_DIM + (hd + 1) * dh]
                v = qkv[:, 2 * LPE_DIM + hd * dh:2 * LPE_DIM + (hd + 1) * dh]
                s = _mm_nt(q, k) * scale                                  # (NM, NM)
                s = jnp.where(allow > 0.5, s, NEG_MASK)
                p = jnp.exp(s - jnp.max(s, axis=-1, keepdims=True))
                inv = pl.reciprocal(jnp.sum(p, axis=-1, keepdims=True), approx=True)
                ctx = _mm(p, v) * inv                                     # (NM, dh)
                part = _mm(ctx, out_w[hd * dh:(hd + 1) * dh, :])          # head-wise out-proj
                attn = part if attn is None else attn + part
            x = _layernorm(x + attn + lp['out_b'][...], lp['ln1_g'][...], lp['ln1_b'][...])
            # FFN: the (NM, 2048) intermediate never leaves VMEM
            ff = jnp.maximum(_mm(x, lp['ff1_w'][...]) + lp['ff1_b'][...], 0.0)
            ff = _mm(ff, lp['ff2_w'][...]) + lp['ff2_b'][...]
            pe = _layernorm(x + ff, lp['ln2_g'][...], lp['ln2_b'][...])

        # ---- set-NaN + nansum over frequencies == zero padded tokens, pool to nodes ----
        node_pe = _mm(pool_ref[...], pe * keep_ref[...])                  # (N, LPE_DIM)

        # ---- h = [embedding_h(h) || PosEnc] via zero-padded weights (no concat) ----
        hN = (_mm(h_ref[...], wp['emb_w'][...]) + wp['emb_b'][...]
              + _mm(node_pe, wp['pe_sel'][...]))                          # (N, GT_HIDDEN)

        # ---- GraphTransformer layers (dense masked SAN attention) ----
        adjm = adj_ref[...]
        for lp in wp['gt']:
            dout = lp['O_w'].shape[0]
            dgh = dout // GT_HEADS
            gscale = 1.0 / (dgh ** 0.5)
            hin = hN
            qkv = _mm(hin, lp['qkv_w'][...])                              # fused QKV, no bias
            O_w = lp['O_w'][...]
            attn = None
            for hd in range(GT_HEADS):
                q = qkv[:, hd * dgh:(hd + 1) * dgh]
                k = qkv[:, dout + hd * dgh:dout + (hd + 1) * dgh]
                v = qkv[:, 2 * dout + hd * dgh:2 * dout + (hd + 1) * dgh]
                s = _mm_nt(q, k) * gscale                                 # (N, N)
                e = jnp.exp(jnp.clip(s, -5.0, 5.0)) * adjm
                inv = pl.reciprocal(jnp.sum(e, axis=-1, keepdims=True) + 1e-6, approx=True)
                ctx = _mm(e, v) * inv                                     # (N, dgh)
                part = _mm(ctx, O_w[hd * dgh:(hd + 1) * dgh, :])
                attn = part if attn is None else attn + part
            hN = _layernorm(hin + attn + lp['O_b'][...], lp['ln1_g'][...], lp['ln1_b'][...])
            ff = jnp.maximum(_mm(hN, lp['ffn1_w'][...]) + lp['ffn1_b'][...], 0.0)
            ff = _mm(ff, lp['ffn2_w'][...]) + lp['ffn2_b'][...]
            hN = _layernorm(hN + ff, lp['ln2_g'][...], lp['ln2_b'][...])

        # ---- mean readout + MLPReadout(GT_out, 11) ----
        hg = jnp.mean(hN, axis=0, keepdims=True)                          # (1, GT_OUT)
        y = jnp.maximum(_mm(hg, wp['mlp'][0]['w'][...]) + wp['mlp'][0]['b'][...], 0.0)
        y = jnp.maximum(_mm(y, wp['mlp'][1]['w'][...]) + wp['mlp'][1]['b'][...], 0.0)
        y = _mm(y, wp['mlp'][2]['w'][...]) + wp['mlp'][2]['b'][...]
        o_ref[...] = y

    # whole working set < 2 MiB -> whole-array VMEM blocks, no grid needed.
    return pl.pallas_call(
        kernel,
        out_shape=jax.ShapeDtypeStruct((1, N_CLASSES), jnp.float32),
    )(*data, *w_leaves)


# ============================ deterministic parameter init ============================

def init_params(key):
    def nrm(k, shape, scale=0.1):
        return scale * jax.random.normal(k, shape, dtype=jnp.float32)

    keys = iter(jax.random.split(key, 256))
    p = {}
    p['emb_w'] = nrm(next(keys), (IN_DIM, GT_HIDDEN - LPE_DIM))
    p['emb_b'] = nrm(next(keys), (GT_HIDDEN - LPE_DIM,))
    p['A_w'] = nrm(next(keys), (2, LPE_DIM))
    p['A_b'] = nrm(next(keys), (LPE_DIM,))

    p['pe_layers'] = []
    for _ in range(LPE_LAYERS):
        p['pe_layers'].append({
            'in_proj_w': nrm(next(keys), (LPE_DIM, 3 * LPE_DIM)),
            'in_proj_b': nrm(next(keys), (3 * LPE_DIM,)),
            'out_w': nrm(next(keys), (LPE_DIM, LPE_DIM)),
            'out_b': nrm(next(keys), (LPE_DIM,)),
            'ln1_g': jnp.ones((LPE_DIM,), jnp.float32),
            'ln1_b': jnp.zeros((LPE_DIM,), jnp.float32),
            'ff1_w': nrm(next(keys), (LPE_DIM, PE_FF_DIM)),
            'ff1_b': nrm(next(keys), (PE_FF_DIM,)),
            'ff2_w': nrm(next(keys), (PE_FF_DIM, LPE_DIM)),
            'ff2_b': nrm(next(keys), (LPE_DIM,)),
            'ln2_g': jnp.ones((LPE_DIM,), jnp.float32),
            'ln2_b': jnp.zeros((LPE_DIM,), jnp.float32),
        })

    p['gt_layers'] = []
    dims = [(GT_HIDDEN, GT_HIDDEN)] * (GT_LAYERS - 1) + [(GT_HIDDEN, GT_OUT)]
    for din, dout in dims:
        p['gt_layers'].append({
            'Q_w': nrm(next(keys), (din, dout)),      # use_bias=False for Q/K/V (reference layer)
            'K_w': nrm(next(keys), (din, dout)),
            'V_w': nrm(next(keys), (din, dout)),
            'O_w': nrm(next(keys), (dout, dout)),
            'O_b': nrm(next(keys), (dout,)),
            'ln1_g': jnp.ones((dout,), jnp.float32),
            'ln1_b': jnp.zeros((dout,), jnp.float32),
            'ffn1_w': nrm(next(keys), (dout, 2 * dout)),
            'ffn1_b': nrm(next(keys), (2 * dout,)),
            'ffn2_w': nrm(next(keys), (2 * dout, dout)),
            'ffn2_b': nrm(next(keys), (dout,)),
            'ln2_g': jnp.ones((dout,), jnp.float32),
            'ln2_b': jnp.zeros((dout,), jnp.float32),
        })

    mlp, d = [], GT_OUT
    for _ in range(2):
        mlp.append({'w': nrm(next(keys), (d, d // 2)), 'b': nrm(next(keys), (d // 2,))})
        d //= 2
    mlp.append({'w': nrm(next(keys), (d, N_CLASSES)), 'b': nrm(next(keys), (N_CLASSES,))})
    p['mlp'] = mlp
    return p


# ============================ main ============================

if __name__ == "__main__":
    key = jax.random.PRNGKey(0)
    k_h, k_ev, k_evec, k_adj, k_p = jax.random.split(key, 5)

    # single graph with N_NODES nodes
    h = jax.random.normal(k_h, (N_NODES, IN_DIM), jnp.float32)
    EigVecs = jax.random.normal(k_evec, (N_NODES, M_FREQS), jnp.float32)
    EigVals = jax.random.normal(k_ev, (N_NODES,), jnp.float32)
    # pad the last two spectral slots with NaN (as the SAN eigen-decomposition pipeline does)
    EigVecs = EigVecs.at[:, M_FREQS - 2:].set(jnp.nan)
    EigVals = EigVals.at[M_FREQS - 2:M_FREQS].set(jnp.nan)

    # deterministic symmetric adjacency with self loops (stand-in for the DGL graph edges)
    # TODO(synk): a batched/sparse DGL edge list would need a scalar-prefetch gather kernel.
    A = (jax.random.uniform(k_adj, (N_NODES, N_NODES)) < 0.4).astype(jnp.float32)
    adj = jnp.maximum(jnp.maximum(A, A.T), jnp.eye(N_NODES, dtype=jnp.float32))

    params = init_params(k_p)

    out = jax.jit(san_forward)(params, h, EigVals, EigVecs, adj)
    out = jax.block_until_ready(out)

    assert out.shape == (1, N_CLASSES), out.shape
    assert bool(jnp.all(jnp.isfinite(out)))
    print("KERNEL_OK")
</pallas_src>

<mosaic_0001>
module attributes {stable_mosaic.version = 11 : i64} {
  func.func @kernel(%arg0: memref<12x16xf32, #tpu.memory_space<vmem>>, %arg1: memref<96x2xf32, #tpu.memory_space<vmem>>, %arg2: memref<96x96xf32, #tpu.memory_space<vmem>>, %arg3: memref<96x1xf32, #tpu.memory_space<vmem>>, %arg4: memref<12x96xf32, #tpu.memory_space<vmem>>, %arg5: memref<12x12xf32, #tpu.memory_space<vmem>>, %arg6: memref<1x8xf32, #tpu.memory_space<vmem>>, %arg7: memref<2x8xf32, #tpu.memory_space<vmem>>, %arg8: memref<1x32xf32, #tpu.memory_space<vmem>>, %arg9: memref<16x32xf32, #tpu.memory_space<vmem>>, %arg10: memref<1x32xf32, #tpu.memory_space<vmem>>, %arg11: memref<32x32xf32, #tpu.memory_space<vmem>>, %arg12: memref<1x64xf32, #tpu.memory_space<vmem>>, %arg13: memref<32x64xf32, #tpu.memory_space<vmem>>, %arg14: memref<1x32xf32, #tpu.memory_space<vmem>>, %arg15: memref<64x32xf32, #tpu.memory_space<vmem>>, %arg16: memref<1x32xf32, #tpu.memory_space<vmem>>, %arg17: memref<1x32xf32, #tpu.memory_space<vmem>>, %arg18: memref<1x32xf32, #tpu.memory_space<vmem>>, %arg19: memref<1x32xf32, #tpu.memory_space<vmem>>, %arg20: memref<32x96xf32, #tpu.memory_space<vmem>>, %arg21: memref<1x32xf32, #tpu.memory_space<vmem>>, %arg22: memref<32x32xf32, #tpu.memory_space<vmem>>, %arg23: memref<1x64xf32, #tpu.memory_space<vmem>>, %arg24: memref<32x64xf32, #tpu.memory_space<vmem>>, %arg25: memref<1x32xf32, #tpu.memory_space<vmem>>, %arg26: memref<64x32xf32, #tpu.memory_space<vmem>>, %arg27: memref<1x32xf32, #tpu.memory_space<vmem>>, %arg28: memref<1x32xf32, #tpu.memory_space<vmem>>, %arg29: memref<1x32xf32, #tpu.memory_space<vmem>>, %arg30: memref<1x32xf32, #tpu.memory_space<vmem>>, %arg31: memref<32x96xf32, #tpu.memory_space<vmem>>, %arg32: memref<1x16xf32, #tpu.memory_space<vmem>>, %arg33: memref<32x16xf32, #tpu.memory_space<vmem>>, %arg34: memref<1x8xf32, #tpu.memory_space<vmem>>, %arg35: memref<16x8xf32, #tpu.memory_space<vmem>>, %arg36: memref<1x11xf32, #tpu.memory_space<vmem>>, %arg37: memref<8x11xf32, #tpu.memory_space<vmem>>, %arg38: memref<1x2048xf32, #tpu.memory_space<vmem>>, %arg39: memref<8x2048xf32, #tpu.memory_space<vmem>>, %arg40: memref<1x8xf32, #tpu.memory_space<vmem>>, %arg41: memref<2048x8xf32, #tpu.memory_space<vmem>>, %arg42: memref<1x8xf32, #tpu.memory_space<vmem>>, %arg43: memref<1x8xf32, #tpu.memory_space<vmem>>, %arg44: memref<1x8xf32, #tpu.memory_space<vmem>>, %arg45: memref<1x8xf32, #tpu.memory_space<vmem>>, %arg46: memref<1x8xf32, #tpu.memory_space<vmem>>, %arg47: memref<8x8xf32, #tpu.memory_space<vmem>>, %arg48: memref<1x24xf32, #tpu.memory_space<vmem>>, %arg49: memref<8x24xf32, #tpu.memory_space<vmem>>, %arg50: memref<8x32xf32, #tpu.memory_space<vmem>>, %arg51: memref<1x11xf32, #tpu.memory_space<vmem>>) attributes {dimension_semantics = [], scalar_prefetch = 0 : i64, scratch_operands = 0 : i64, tpu.core_type = #tpu.core_type<tc>} {
    %c0 = arith.constant 0 : index
    %c0_0 = arith.constant 0 : index
    %0 = vector.load %arg1[%c0, %c0_0] : memref<96x2xf32, #tpu.memory_space<vmem>>, vector<96x2xf32>
    %1 = arith.cmpf one, %0, %0 : vector<96x2xf32>
    %cst = arith.constant 0.000000e+00 : f32
    %2 = vector.broadcast %cst : f32 to vector<96x2xf32>
    %3 = arith.select %1, %2, %0 : vector<96x2xi1>, vector<96x2xf32>
    %c0_1 = arith.constant 0 : index
    %c0_2 = arith.constant 0 : index
    %4 = vector.load %arg7[%c0_1, %c0_2] : memref<2x8xf32, #tpu.memory_space<vmem>>, vector<2x8xf32>
    %5 = vector.extract_strided_slice %3 {offsets = [0, 0], sizes = [96, 1], strides = [1, 1]} : vector<96x2xf32> to vector<96x1xf32>
    %6 = vector.extract_strided_slice %4 {offsets = [0, 0], sizes = [1, 8], strides = [1, 1]} : vector<2x8xf32> to vector<1x8xf32>
    %7 = vector.broadcast %5 : vector<96x1xf32> to vector<96x8xf32>
    %8 = vector.broadcast %6 : vector<1x8xf32> to vector<96x8xf32>
    %9 = arith.mulf %7, %8 : vector<96x8xf32>
    %10 = vector.extract_strided_slice %3 {offsets = [0, 1], sizes = [96, 1], strides = [1, 1]} : vector<96x2xf32> to vector<96x1xf32>
    %11 = vector.extract_strided_slice %4 {offsets = [1, 0], sizes = [1, 8], strides = [1, 1]} : vector<2x8xf32> to vector<1x8xf32>
    %12 = vector.broadcast %10 : vector<96x1xf32> to vector<96x8xf32>
    %13 = vector.broadcast %11 : vector<1x8xf32> to vector<96x8xf32>
    %14 = arith.mulf %12, %13 : vector<96x8xf32>
    %15 = arith.addf %9, %14 : vector<96x8xf32>
    %c0_3 = arith.constant 0 : index
    %c0_4 = arith.constant 0 : index
    %16 = vector.load %arg6[%c0_3, %c0_4] : memref<1x8xf32, #tpu.memory_space<vmem>>, vector<1x8xf32>
    %17 = vector.broadcast %16 : vector<1x8xf32> to vector<96x8xf32>
    %18 = arith.addf %15, %17 : vector<96x8xf32>
    %c0_5 = arith.constant 0 : index
    %c0_6 = arith.constant 0 : index
    %19 = vector.load %arg2[%c0_5, %c0_6] : memref<96x96xf32, #tpu.memory_space<vmem>>, vector<96x96xf32>
    %c0_7 = arith.constant 0 : index
    %c0_8 = arith.constant 0 : index
    %20 = vector.load %arg49[%c0_7, %c0_8] : memref<8x24xf32, #tpu.memory_space<vmem>>, vector<8x24xf32>
    %cst_9 = arith.constant dense<0.000000e+00> : vector<96x24xf32>
    %21 = tpu.matmul %18, %20, %cst_9 {dimension_numbers = #tpu.dot_dimension_numbers<[1], [0], [0], [1], [0, 0, 1, 1], [], []>} : vector<96x8xf32>, vector<8x24xf32>, vector<96x24xf32> -> vector<96x24xf32>
    %c0_10 = arith.constant 0 : index
    %c0_11 = arith.constant 0 : index
    %22 = vector.load %arg48[%c0_10, %c0_11] : memref<1x24xf32, #tpu.memory_space<vmem>>, vector<1x24xf32>
    %23 = vector.broadcast %22 : vector<1x24xf32> to vector<96x24xf32>
    %24 = arith.addf %21, %23 : vector<96x24xf32>
    %c0_12 = arith.constant 0 : index
    %c0_13 = arith.constant 0 : index
    %25 = vector.load %arg47[%c0_12, %c0_13] : memref<8x8xf32, #tpu.memory_space<vmem>>, vector<8x8xf32>
    %26 = vector.extract_strided_slice %24 {offsets = [0, 0], sizes = [96, 4], strides = [1, 1]} : vector<96x24xf32> to vector<96x4xf32>
    %27 = vector.extract_strided_slice %24 {offsets = [0, 8], sizes = [96, 4], strides = [1, 1]} : vector<96x24xf32> to vector<96x4xf32>
    %28 = vector.extract_strided_slice %24 {offsets = [0, 16], sizes = [96, 4], strides = [1, 1]} : vector<96x24xf32> to vector<96x4xf32>
    %cst_14 = arith.constant dense<0.000000e+00> : vector<96x96xf32>
    %29 = tpu.matmul %26, %27, %cst_14 {dimension_numbers = #tpu.dot_dimension_numbers<[1], [1], [0], [0], [0, 0, 1, 0], [], []>} : vector<96x4xf32>, vector<96x4xf32>, vector<96x96xf32> -> vector<96x96xf32>
    %cst_15 = arith.constant 5.000000e-01 : f32
    %30 = vector.broadcast %cst_15 : f32 to vector<96x96xf32>
    %31 = arith.mulf %29, %30 : vector<96x96xf32>
    %cst_16 = arith.constant 5.000000e-01 : f32
    %32 = vector.broadcast %cst_16 : f32 to vector<96x96xf32>
    %33 = arith.cmpf ogt, %19, %32 : vector<96x96xf32>
    %cst_17 = arith.constant -1.000000e+30 : f32
    %34 = vector.broadcast %cst_17 : f32 to vector<96x96xf32>
    %35 = arith.select %33, %31, %34 : vector<96x96xi1>, vector<96x96xf32>
    %cst_18 = arith.constant dense<0xFF800000> : vector<96xf32>
    %36 = vector.multi_reduction <maximumf>, %35, %cst_18 [1] : vector<96x96xf32> to vector<96xf32>
    %37 = vector.shape_cast %36 : vector<96xf32> to vector<96x1xf32>
    %38 = vector.broadcast %37 : vector<96x1xf32> to vector<96x96xf32>
    %39 = arith.subf %35, %38 : vector<96x96xf32>
    %40 = math.exp %39 : vector<96x96xf32>
    %cst_19 = arith.constant dense<0.000000e+00> : vector<96xf32>
    %41 = vector.multi_reduction <add>, %40, %cst_19 [1] : vector<96x96xf32> to vector<96xf32>
    %42 = vector.shape_cast %41 : vector<96xf32> to vector<96x1xf32>
    %43 = tpu.reciprocal %42 {approx = true} : vector<96x1xf32> -> vector<96x1xf32>
    %cst_20 = arith.constant dense<0.000000e+00> : vector<96x4xf32>
    %44 = tpu.matmul %40, %28, %cst_20 {dimension_numbers = #tpu.dot_dimension_numbers<[1], [0], [0], [1], [0, 0, 1, 1], [], []>} : vector<96x96xf32>, vector<96x4xf32>, vector<96x4xf32> -> vector<96x4xf32>
    %45 = vector.broadcast %43 : vector<96x1xf32> to vector<96x4xf32>
    %46 = arith.mulf %44, %45 : vector<96x4xf32>
    %47 = vector.extract_strided_slice %25 {offsets = [0, 0], sizes = [4, 8], strides = [1, 1]} : vector<8x8xf32> to vector<4x8xf32>
    %cst_21 = arith.constant dense<0.000000e+00> : vector<96x8xf32>
    %48 = tpu.matmul %46, %47, %cst_21 {dimension_numbers = #tpu.dot_dimension_numbers<[1], [0], [0], [1], [0, 0, 1, 1], [], []>} : vector<96x4xf32>, vector<4x8xf32>, vector<96x8xf32> -> vector<96x8xf32>
    %49 = vector.extract_strided_slice %24 {offsets = [0, 4], sizes = [96, 4], strides = [1, 1]} : vector<96x24xf32> to vector<96x4xf32>
    %50 = vector.extract_strided_slice %24 {offsets = [0, 12], sizes = [96, 4], strides = [1, 1]} : vector<96x24xf32> to vector<96x4xf32>
    %51 = vector.extract_strided_slice %24 {offsets = [0, 20], sizes = [96, 4], strides = [1, 1]} : vector<96x24xf32> to vector<96x4xf32>
    %cst_22 = arith.constant dense<0.000000e+00> : vector<96x96xf32>
    %52 = tpu.matmul %49, %50, %cst_22 {dimension_numbers = #tpu.dot_dimension_numbers<[1], [1], [0], [0], [0, 0, 1, 0], [], []>} : vector<96x4xf32>, vector<96x4xf32>, vector<96x96xf32> -> vector<96x96xf32>
    %cst_23 = arith.constant 5.000000e-01 : f32
    %53 = vector.broadcast %cst_23 : f32 to vector<96x96xf32>
    %54 = arith.mulf %52, %53 : vector<96x96xf32>
    %cst_24 = arith.constant 5.000000e-01 : f32
    %55 = vector.broadcast %cst_24 : f32 to vector<96x96xf32>
    %56 = arith.cmpf ogt, %19, %55 : vector<96x96xf32>
    %cst_25 = arith.constant -1.000000e+30 : f32
    %57 = vector.broadcast %cst_25 : f32 to vector<96x96xf32>
    %58 = arith.select %56, %54, %57 : vector<96x96xi1>, vector<96x96xf32>
    %cst_26 = arith.constant dense<0xFF800000> : vector<96xf32>
    %59 = vector.multi_reduction <maximumf>, %58, %cst_26 [1] : vector<96x96xf32> to vector<96xf32>
    %60 = vector.shape_cast %59 : vector<96xf32> to vector<96x1xf32>
    %61 = vector.broadcast %60 : vector<96x1xf32> to vector<96x96xf32>
    %62 = arith.subf %58, %61 : vector<96x96xf32>
    %63 = math.exp %62 : vector<96x96xf32>
    %cst_27 = arith.constant dense<0.000000e+00> : vector<96xf32>
    %64 = vector.multi_reduction <add>, %63, %cst_27 [1] : vector<96x96xf32> to vector<96xf32>
    %65 = vector.shape_cast %64 : vector<96xf32> to vector<96x1xf32>
    %66 = tpu.reciprocal %65 {approx = true} : vector<96x1xf32> -> vector<96x1xf32>
    %cst_28 = arith.constant dense<0.000000e+00> : vector<96x4xf32>
    %67 = tpu.matmul %63, %51, %cst_28 {dimension_numbers = #tpu.dot_dimension_numbers<[1], [0], [0], [1], [0, 0, 1, 1], [], []>} : vector<96x96xf32>, vector<96x4xf32>, vector<96x4xf32> -> vector<96x4xf32>
    %68 = vector.broadcast %66 : vector<96x1xf32> to vector<96x4xf32>
    %69 = arith.mulf %67, %68 : vector<96x4xf32>
    %70 = vector.extract_strided_slice %25 {offsets = [4, 0], sizes = [4, 8], strides = [1, 1]} : vector<8x8xf32> to vector<4x8xf32>
    %cst_29 = arith.constant dense<0.000000e+00> : vector<96x8xf32>
    %71 = tpu.matmul %69, %70, %cst_29 {dimension_numbers = #tpu.dot_dimension_numbers<[1], [0], [0], [1], [0, 0, 1, 1], [], []>} : vector<96x4xf32>, vector<4x8xf32>, vector<96x8xf32> -> vector<96x8xf32>
    %72 = arith.addf %48, %71 : vector<96x8xf32>
    %73 = arith.addf %18, %72 : vector<96x8xf32>
    %c0_30 = arith.constant 0 : index
    %c0_31 = arith.constant 0 : index
    %74 = vector.load %arg46[%c0_30, %c0_31] : memref<1x8xf32, #tpu.memory_space<vmem>>, vector<1x8xf32>
    %75 = vector.broadcast %74 : vector<1x8xf32> to vector<96x8xf32>
    %76 = arith.addf %73, %75 : vector<96x8xf32>
    %c0_32 = arith.constant 0 : index
    %c0_33 = arith.constant 0 : index
    %77 = vector.load %arg43[%c0_32, %c0_33] : memref<1x8xf32, #tpu.memory_space<vmem>>, vector<1x8xf32>
    %c0_34 = arith.constant 0 : index
    %c0_35 = arith.constant 0 : index
    %78 = vector.load %arg42[%c0_34, %c0_35] : memref<1x8xf32, #tpu.memory_space<vmem>>, vector<1x8xf32>
    %cst_36 = arith.constant dense<0.000000e+00> : vector<96xf32>
    %79 = vector.multi_reduction <add>, %76, %cst_36 [1] : vector<96x8xf32> to vector<96xf32>
    %80 = vector.shape_cast %79 : vector<96xf32> to vector<96x1xf32>
    %cst_37 = arith.constant 8.000000e+00 : f32
    %81 = vector.broadcast %cst_37 : f32 to vector<96x1xf32>
    %82 = arith.divf %80, %81 : vector<96x1xf32>
    %83 = vector.broadcast %82 : vector<96x1xf32> to vector<96x8xf32>
    %84 = arith.subf %76, %83 : vector<96x8xf32>
    %85 = arith.mulf %84, %84 : vector<96x8xf32>
    %cst_38 = arith.constant dense<0.000000e+00> : vector<96xf32>
    %86 = vector.multi_reduction <add>, %85, %cst_38 [1] : vector<96x8xf32> to vector<96xf32>
    %87 = vector.shape_cast %86 : vector<96xf32> to vector<96x1xf32>
    %cst_39 = arith.constant 8.000000e+00 : f32
    %88 = vector.broadcast %cst_39 : f32 to vector<96x1xf32>
    %89 = arith.divf %87, %88 : vector<96x1xf32>
    %90 = vector.broadcast %82 : vector<96x1xf32> to vector<96x8xf32>
    %91 = arith.subf %76, %90 : vector<96x8xf32>
    %cst_40 = arith.constant 9.99999974E-6 : f32
    %92 = vector.broadcast %cst_40 : f32 to vector<96x1xf32>
    %93 = arith.addf %89, %92 : vector<96x1xf32>
    %94 = math.rsqrt %93 : vector<96x1xf32>
    %95 = vector.broadcast %94 : vector<96x1xf32> to vector<96x8xf32>
    %96 = arith.mulf %91, %95 : vector<96x8xf32>
    %97 = vector.broadcast %77 : vector<1x8xf32> to vector<96x8xf32>
    %98 = arith.mulf %96, %97 : vector<96x8xf32>
    %99 = vector.broadcast %78 : vector<1x8xf32> to vector<96x8xf32>
    %100 = arith.addf %98, %99 : vector<96x8xf32>
    %c0_41 = arith.constant 0 : index
    %c0_42 = arith.constant 0 : index
    %101 = vector.load %arg39[%c0_41, %c0_42] : memref<8x2048xf32, #tpu.memory_space<vmem>>, vector<8x2048xf32>
    %cst_43 = arith.constant dense<0.000000e+00> : vector<96x2048xf32>
    %102 = tpu.matmul %100, %101, %cst_43 {dimension_numbers = #tpu.dot_dimension_numbers<[1], [0], [0], [1], [0, 0, 1, 1], [], []>} : vector<96x8xf32>, vector<8x2048xf32>, vector<96x2048xf32> -> vector<96x2048xf32>
    %c0_44 = arith.constant 0 : index
    %c0_45 = arith.constant 0 : index
    %103 = vector.load %arg38[%c0_44, %c0_45] : memref<1x2048xf32, #tpu.memory_space<vmem>>, vector<1x2048xf32>
    %104 = vector.broadcast %103 : vector<1x2048xf32> to vector<96x2048xf32>
    %105 = arith.addf %102, %104 : vector<96x2048xf32>
    %cst_46 = arith.constant 0.000000e+00 : f32
    %106 = vector.broadcast %cst_46 : f32 to vector<96x2048xf32>
    %107 = arith.maximumf %105, %106 : vector<96x2048xf32>
    %c0_47 = arith.constant 0 : index
    %c0_48 = arith.constant 0 : index
    %108 = vector.load %arg41[%c0_47, %c0_48] : memref<2048x8xf32, #tpu.memory_space<vmem>>, vector<2048x8xf32>
    %cst_49 = arith.constant dense<0.000000e+00> : vector<96x8xf32>
    %109 = tpu.matmul %107, %108, %cst_49 {dimension_numbers = #tpu.dot_dimension_numbers<[1], [0], [0], [1], [0, 0, 1, 1], [], []>} : vector<96x2048xf32>, vector<2048x8xf32>, vector<96x8xf32> -> vector<96x8xf32>
    %c0_50 = arith.constant 0 : index
    %c0_51 = arith.constant 0 : index
    %110 = vector.load %arg40[%c0_50, %c0_51] : memref<1x8xf32, #tpu.memory_space<vmem>>, vector<1x8xf32>
    %111 = vector.broadcast %110 : vector<1x8xf32> to vector<96x8xf32>
    %112 = arith.addf %109, %111 : vector<96x8xf32>
    %113 = arith.addf %100, %112 : vector<96x8xf32>
    %c0_52 = arith.constant 0 : index
    %c0_53 = arith.constant 0 : index
    %114 = vector.load %arg45[%c0_52, %c0_53] : memref<1x8xf32, #tpu.memory_space<vmem>>, vector<1x8xf32>
    %c0_54 = arith.constant 0 : index
    %c0_55 = arith.constant 0 : index
    %115 = vector.load %arg44[%c0_54, %c0_55] : memref<1x8xf32, #tpu.memory_space<vmem>>, vector<1x8xf32>
    %cst_56 = arith.constant dense<0.000000e+00> : vector<96xf32>
    %116 = vector.multi_reduction <add>, %113, %cst_56 [1] : vector<96x8xf32> to vector<96xf32>
    %117 = vector.shape_cast %116 : vector<96xf32> to vector<96x1xf32>
    %cst_57 = arith.constant 8.000000e+00 : f32
    %118 = vector.broadcast %cst_57 : f32 to vector<96x1xf32>
    %119 = arith.divf %117, %118 : vector<96x1xf32>
    %120 = vector.broadcast %119 : vector<96x1xf32> to vector<96x8xf32>
    %121 = arith.subf %113, %120 : vector<96x8xf32>
    %122 = arith.mulf %121, %121 : vector<96x8xf32>
    %cst_58 = arith.constant dense<0.000000e+00> : vector<96xf32>
    %123 = vector.multi_reduction <add>, %122, %cst_58 [1] : vector<96x8xf32> to vector<96xf32>
    %124 = vector.shape_cast %123 : vector<96xf32> to vector<96x1xf32>
    %cst_59 = arith.constant 8.000000e+00 : f32
    %125 = vector.broadcast %cst_59 : f32 to vector<96x1xf32>
    %126 = arith.divf %124, %125 : vector<96x1xf32>
    %127 = vector.broadcast %119 : vector<96x1xf32> to vector<96x8xf32>
    %128 = arith.subf %113, %127 : vector<96x8xf32>
    %cst_60 = arith.constant 9.99999974E-6 : f32
    %129 = vector.broadcast %cst_60 : f32 to vector<96x1xf32>
    %130 = arith.addf %126, %129 : vector<96x1xf32>
    %131 = math.rsqrt %130 : vector<96x1xf32>
    %132 = vector.broadcast %131 : vector<96x1xf32> to vector<96x8xf32>
    %133 = arith.mulf %128, %132 : vector<96x8xf32>
    %134 = vector.broadcast %114 : vector<1x8xf32> to vector<96x8xf32>
    %135 = arith.mulf %133, %134 : vector<96x8xf32>
    %136 = vector.broadcast %115 : vector<1x8xf32> to vector<96x8xf32>
    %137 = arith.addf %135, %136 : vector<96x8xf32>
    %c0_61 = arith.constant 0 : index
    %c0_62 = arith.constant 0 : index
    %138 = vector.load %arg4[%c0_61, %c0_62] : memref<12x96xf32, #tpu.memory_space<vmem>>, vector<12x96xf32>
    %c0_63 = arith.constant 0 : index
    %c0_64 = arith.constant 0 : index
    %139 = vector.load %arg3[%c0_63, %c0_64] : memref<96x1xf32, #tpu.memory_space<vmem>>, vector<96x1xf32>
    %140 = vector.broadcast %139 : vector<96x1xf32> to vector<96x8xf32>
    %141 = arith.mulf %137, %140 : vector<96x8xf32>
    %cst_65 = arith.constant dense<0.000000e+00> : vector<12x8xf32>
    %142 = tpu.matmul %138, %141, %cst_65 {dimension_numbers = #tpu.dot_dimension_numbers<[1], [0], [0], [1], [0, 0, 1, 1], [], []>} : vector<12x96xf32>, vector<96x8xf32>, vector<12x8xf32> -> vector<12x8xf32>
    %c0_66 = arith.constant 0 : index
    %c0_67 = arith.constant 0 : index
    %143 = vector.load %arg0[%c0_66, %c0_67] : memref<12x16xf32, #tpu.memory_space<vmem>>, vector<12x16xf32>
    %c0_68 = arith.constant 0 : index
    %c0_69 = arith.constant 0 : index
    %144 = vector.load %arg9[%c0_68, %c0_69] : memref<16x32xf32, #tpu.memory_space<vmem>>, vector<16x32xf32>
    %cst_70 = arith.constant dense<0.000000e+00> : vector<12x32xf32>
    %145 = tpu.matmul %143, %144, %cst_70 {dimension_numbers = #tpu.dot_dimension_numbers<[1], [0], [0], [1], [0, 0, 1, 1], [], []>} : vector<12x16xf32>, vector<16x32xf32>, vector<12x32xf32> -> vector<12x32xf32>
    %c0_71 = arith.constant 0 : index
    %c0_72 = arith.constant 0 : index
    %146 = vector.load %arg8[%c0_71, %c0_72] : memref<1x32xf32, #tpu.memory_space<vmem>>, vector<1x32xf32>
    %147 = vector.broadcast %146 : vector<1x32xf32> to vector<12x32xf32>
    %148 = arith.addf %145, %147 : vector<12x32xf32>
    %c0_73 = arith.constant 0 : index
    %c0_74 = arith.constant 0 : index
    %149 = vector.load %arg50[%c0_73, %c0_74] : memref<8x32xf32, #tpu.memory_space<vmem>>, vector<8x32xf32>
    %cst_75 = arith.constant dense<0.000000e+00> : vector<12x32xf32>
    %150 = tpu.matmul %142, %149, %cst_75 {dimension_numbers = #tpu.dot_dimension_numbers<[1], [0], [0], [1], [0, 0, 1, 1], [], []>} : vector<12x8xf32>, vector<8x32xf32>, vector<12x32xf32> -> vector<12x32xf32>
    %151 = arith.addf %148, %150 : vector<12x32xf32>
    %c0_76 = arith.constant 0 : index
    %c0_77 = arith.constant 0 : index
    %152 = vector.load %arg5[%c0_76, %c0_77] : memref<12x12xf32, #tpu.memory_space<vmem>>, vector<12x12xf32>
    %c0_78 = arith.constant 0 : index
    %c0_79 = arith.constant 0 : index
    %153 = vector.load %arg20[%c0_78, %c0_79] : memref<32x96xf32, #tpu.memory_space<vmem>>, vector<32x96xf32>
    %cst_80 = arith.constant dense<0.000000e+00> : vector<12x96xf32>
    %154 = tpu.matmul %151, %153, %cst_80 {dimension_numbers = #tpu.dot_dimension_numbers<[1], [0], [0], [1], [0, 0, 1, 1], [], []>} : vector<12x32xf32>, vector<32x96xf32>, vector<12x96xf32> -> vector<12x96xf32>
    %c0_81 = arith.constant 0 : index
    %c0_82 = arith.constant 0 : index
    %155 = vector.load %arg11[%c0_81, %c0_82] : memref<32x32xf32, #tpu.memory_space<vmem>>, vector<32x32xf32>
    %156 = vector.extract_strided_slice %154 {offsets = [0, 0], sizes = [12, 8], strides = [1, 1]} : vector<12x96xf32> to vector<12x8xf32>
    %157 = vector.extract_strided_slice %154 {offsets = [0, 32], sizes = [12, 8], strides = [1, 1]} : vector<12x96xf32> to vector<12x8xf32>
    %158 = vector.extract_strided_slice %154 {offsets = [0, 64], sizes = [12, 8], strides = [1, 1]} : vector<12x96xf32> to vector<12x8xf32>
    %cst_83 = arith.constant dense<0.000000e+00> : vector<12x12xf32>
    %159 = tpu.matmul %156, %157, %cst_83 {dimension_numbers = #tpu.dot_dimension_numbers<[1], [1], [0], [0], [0, 0, 1, 0], [], []>} : vector<12x8xf32>, vector<12x8xf32>, vector<12x12xf32> -> vector<12x12xf32>
    %cst_84 = arith.constant 0.353553385 : f32
    %160 = vector.broadcast %cst_84 : f32 to vector<12x12xf32>
    %161 = arith.mulf %159, %160 : vector<12x12xf32>
    %cst_85 = arith.constant -5.000000e+00 : f32
    %cst_86 = arith.constant 5.000000e+00 : f32
    %162 = vector.broadcast %cst_85 : f32 to vector<12x12xf32>
    %163 = arith.maximumf %162, %161 : vector<12x12xf32>
    %164 = vector.broadcast %cst_86 : f32 to vector<12x12xf32>
    %165 = arith.minimumf %164, %163 : vector<12x12xf32>
    %166 = math.exp %165 : vector<12x12xf32>
    %167 = arith.mulf %166, %152 : vector<12x12xf32>
    %cst_87 = arith.constant dense<0.000000e+00> : vector<12xf32>
    %168 = vector.multi_reduction <add>, %167, %cst_87 [1] : vector<12x12xf32> to vector<12xf32>
    %169 = vector.shape_cast %168 : vector<12xf32> to vector<12x1xf32>
    %cst_88 = arith.constant 9.99999997E-7 : f32
    %170 = vector.broadcast %cst_88 : f32 to vector<12x1xf32>
    %171 = arith.addf %169, %170 : vector<12x1xf32>
    %172 = tpu.reciprocal %171 {approx = true} : vector<12x1xf32> -> vector<12x1xf32>
    %cst_89 = arith.constant dense<0.000000e+00> : vector<12x8xf32>
    %173 = tpu.matmul %167, %158, %cst_89 {dimension_numbers = #tpu.dot_dimension_numbers<[1], [0], [0], [1], [0, 0, 1, 1], [], []>} : vector<12x12xf32>, vector<12x8xf32>, vector<12x8xf32> -> vector<12x8xf32>
    %174 = vector.broadcast %172 : vector<12x1xf32> to vector<12x8xf32>
    %175 = arith.mulf %173, %174 : vector<12x8xf32>
    %176 = vector.extract_strided_slice %155 {offsets = [0, 0], sizes = [8, 32], strides = [1, 1]} : vector<32x32xf32> to vector<8x32xf32>
    %cst_90 = arith.constant dense<0.000000e+00> : vector<12x32xf32>
    %177 = tpu.matmul %175, %176, %cst_90 {dimension_numbers = #tpu.dot_dimension_numbers<[1], [0], [0], [1], [0, 0, 1, 1], [], []>} : vector<12x8xf32>, vector<8x32xf32>, vector<12x32xf32> -> vector<12x32xf32>
    %178 = vector.extract_strided_slice %154 {offsets = [0, 8], sizes = [12, 8], strides = [1, 1]} : vector<12x96xf32> to vector<12x8xf32>
    %179 = vector.extract_strided_slice %154 {offsets = [0, 40], sizes = [12, 8], strides = [1, 1]} : vector<12x96xf32> to vector<12x8xf32>
    %180 = vector.extract_strided_slice %154 {offsets = [0, 72], sizes = [12, 8], strides = [1, 1]} : vector<12x96xf32> to vector<12x8xf32>
    %cst_91 = arith.constant dense<0.000000e+00> : vector<12x12xf32>
    %181 = tpu.matmul %178, %179, %cst_91 {dimension_numbers = #tpu.dot_dimension_numbers<[1], [1], [0], [0], [0, 0, 1, 0], [], []>} : vector<12x8xf32>, vector<12x8xf32>, vector<12x12xf32> -> vector<12x12xf32>
    %cst_92 = arith.constant 0.353553385 : f32
    %182 = vector.broadcast %cst_92 : f32 to vector<12x12xf32>
    %183 = arith.mulf %181, %182 : vector<12x12xf32>
    %cst_93 = arith.constant -5.000000e+00 : f32
    %cst_94 = arith.constant 5.000000e+00 : f32
    %184 = vector.broadcast %cst_93 : f32 to vector<12x12xf32>
    %185 = arith.maximumf %184, %183 : vector<12x12xf32>
    %186 = vector.broadcast %cst_94 : f32 to vector<12x12xf32>
    %187 = arith.minimumf %186, %185 : vector<12x12xf32>
    %188 = math.exp %187 : vector<12x12xf32>
    %189 = arith.mulf %188, %152 : vector<12x12xf32>
    %cst_95 = arith.constant dense<0.000000e+00> : vector<12xf32>
    %190 = vector.multi_reduction <add>, %189, %cst_95 [1] : vector<12x12xf32> to vector<12xf32>
    %191 = vector.shape_cast %190 : vector<12xf32> to vector<12x1xf32>
    %cst_96 = arith.constant 9.99999997E-7 : f32
    %192 = vector.broadcast %cst_96 : f32 to vector<12x1xf32>
    %193 = arith.addf %191, %192 : vector<12x1xf32>
    %194 = tpu.reciprocal %193 {approx = true} : vector<12x1xf32> -> vector<12x1xf32>
    %cst_97 = arith.constant dense<0.000000e+00> : vector<12x8xf32>
    %195 = tpu.matmul %189, %180, %cst_97 {dimension_numbers = #tpu.dot_dimension_numbers<[1], [0], [0], [1], [0, 0, 1, 1], [], []>} : vector<12x12xf32>, vector<12x8xf32>, vector<12x8xf32> -> vector<12x8xf32>
    %196 = vector.broadcast %194 : vector<12x1xf32> to vector<12x8xf32>
    %197 = arith.mulf %195, %196 : vector<12x8xf32>
    %198 = vector.extract_strided_slice %155 {offsets = [8, 0], sizes = [8, 32], strides = [1, 1]} : vector<32x32xf32> to vector<8x32xf32>
    %cst_98 = arith.constant dense<0.000000e+00> : vector<12x32xf32>
    %199 = tpu.matmul %197, %198, %cst_98 {dimension_numbers = #tpu.dot_dimension_numbers<[1], [0], [0], [1], [0, 0, 1, 1], [], []>} : vector<12x8xf32>, vector<8x32xf32>, vector<12x32xf32> -> vector<12x32xf32>
    %200 = arith.addf %177, %199 : vector<12x32xf32>
    %201 = vector.extract_strided_slice %154 {offsets = [0, 16], sizes = [12, 8], strides = [1, 1]} : vector<12x96xf32> to vector<12x8xf32>
    %202 = vector.extract_strided_slice %154 {offsets = [0, 48], sizes = [12, 8], strides = [1, 1]} : vector<12x96xf32> to vector<12x8xf32>
    %203 = vector.extract_strided_slice %154 {offsets = [0, 80], sizes = [12, 8], strides = [1, 1]} : vector<12x96xf32> to vector<12x8xf32>
    %cst_99 = arith.constant dense<0.000000e+00> : vector<12x12xf32>
    %204 = tpu.matmul %201, %202, %cst_99 {dimension_numbers = #tpu.dot_dimension_numbers<[1], [1], [0], [0], [0, 0, 1, 0], [], []>} : vector<12x8xf32>, vector<12x8xf32>, vector<12x12xf32> -> vector<12x12xf32>
    %cst_100 = arith.constant 0.353553385 : f32
    %205 = vector.broadcast %cst_100 : f32 to vector<12x12xf32>
    %206 = arith.mulf %204, %205 : vector<12x12xf32>
    %cst_101 = arith.constant -5.000000e+00 : f32
    %cst_102 = arith.constant 5.000000e+00 : f32
    %207 = vector.broadcast %cst_101 : f32 to vector<12x12xf32>
    %208 = arith.maximumf %207, %206 : vector<12x12xf32>
    %209 = vector.broadcast %cst_102 : f32 to vector<12x12xf32>
    %210 = arith.minimumf %209, %208 : vector<12x12xf32>
    %211 = math.exp %210 : vector<12x12xf32>
    %212 = arith.mulf %211, %152 : vector<12x12xf32>
    %cst_103 = arith.constant dense<0.000000e+00> : vector<12xf32>
    %213 = vector.multi_reduction <add>, %212, %cst_103 [1] : vector<12x12xf32> to vector<12xf32>
    %214 = vector.shape_cast %213 : vector<12xf32> to vector<12x1xf32>
    %cst_104 = arith.constant 9.99999997E-7 : f32
    %215 = vector.broadcast %cst_104 : f32 to vector<12x1xf32>
    %216 = arith.addf %214, %215 : vector<12x1xf32>
    %217 = tpu.reciprocal %216 {approx = true} : vector<12x1xf32> -> vector<12x1xf32>
    %cst_105 = arith.constant dense<0.000000e+00> : vector<12x8xf32>
    %218 = tpu.matmul %212, %203, %cst_105 {dimension_numbers = #tpu.dot_dimension_numbers<[1], [0], [0], [1], [0, 0, 1, 1], [], []>} : vector<12x12xf32>, vector<12x8xf32>, vector<12x8xf32> -> vector<12x8xf32>
    %219 = vector.broadcast %217 : vector<12x1xf32> to vector<12x8xf32>
    %220 = arith.mulf %218, %219 : vector<12x8xf32>
    %221 = vector.extract_strided_slice %155 {offsets = [16, 0], sizes = [8, 32], strides = [1, 1]} : vector<32x32xf32> to vector<8x32xf32>
    %cst_106 = arith.constant dense<0.000000e+00> : vector<12x32xf32>
    %222 = tpu.matmul %220, %221, %cst_106 {dimension_numbers = #tpu.dot_dimension_numbers<[1], [0], [0], [1], [0, 0, 1, 1], [], []>} : vector<12x8xf32>, vector<8x32xf32>, vector<12x32xf32> -> vector<12x32xf32>
    %223 = arith.addf %200, %222 : vector<12x32xf32>
    %224 = vector.extract_strided_slice %154 {offsets = [0, 24], sizes = [12, 8], strides = [1, 1]} : vector<12x96xf32> to vector<12x8xf32>
    %225 = vector.extract_strided_slice %154 {offsets = [0, 56], sizes = [12, 8], strides = [1, 1]} : vector<12x96xf32> to vector<12x8xf32>
    %226 = vector.extract_strided_slice %154 {offsets = [0, 88], sizes = [12, 8], strides = [1, 1]} : vector<12x96xf32> to vector<12x8xf32>
    %cst_107 = arith.constant dense<0.000000e+00> : vector<12x12xf32>
    %227 = tpu.matmul %224, %225, %cst_107 {dimension_numbers = #tpu.dot_dimension_numbers<[1], [1], [0], [0], [0, 0, 1, 0], [], []>} : vector<12x8xf32>, vector<12x8xf32>, vector<12x12xf32> -> vector<12x12xf32>
    %cst_108 = arith.constant 0.353553385 : f32
    %228 = vector.broadcast %cst_108 : f32 to vector<12x12xf32>
    %229 = arith.mulf %227, %228 : vector<12x12xf32>
    %cst_109 = arith.constant -5.000000e+00 : f32
    %cst_110 = arith.constant 5.000000e+00 : f32
    %230 = vector.broadcast %cst_109 : f32 to vector<12x12xf32>
    %231 = arith.maximumf %230, %229 : vector<12x12xf32>
    %232 = vector.broadcast %cst_110 : f32 to vector<12x12xf32>
    %233 = arith.minimumf %232, %231 : vector<12x12xf32>
    %234 = math.exp %233 : vector<12x12xf32>
    %235 = arith.mulf %234, %152 : vector<12x12xf32>
    %cst_111 = arith.constant dense<0.000000e+00> : vector<12xf32>
    %236 = vector.multi_reduction <add>, %235, %cst_111 [1] : vector<12x12xf32> to vector<12xf32>
    %237 = vector.shape_cast %236 : vector<12xf32> to vector<12x1xf32>
    %cst_112 = arith.constant 9.99999997E-7 : f32
    %238 = vector.broadcast %cst_112 : f32 to vector<12x1xf32>
    %239 = arith.addf %237, %238 : vector<12x1xf32>
    %240 = tpu.reciprocal %239 {approx = true} : vector<12x1xf32> -> vector<12x1xf32>
    %cst_113 = arith.constant dense<0.000000e+00> : vector<12x8xf32>
    %241 = tpu.matmul %235, %226, %cst_113 {dimension_numbers = #tpu.dot_dimension_numbers<[1], [0], [0], [1], [0, 0, 1, 1], [], []>} : vector<12x12xf32>, vector<12x8xf32>, vector<12x8xf32> -> vector<12x8xf32>
    %242 = vector.broadcast %240 : vector<12x1xf32> to vector<12x8xf32>
    %243 = arith.mulf %241, %242 : vector<12x8xf32>
    %244 = vector.extract_strided_slice %155 {offsets = [24, 0], sizes = [8, 32], strides = [1, 1]} : vector<32x32xf32> to vector<8x32xf32>
    %cst_114 = arith.constant dense<0.000000e+00> : vector<12x32xf32>
    %245 = tpu.matmul %243, %244, %cst_114 {dimension_numbers = #tpu.dot_dimension_numbers<[1], [0], [0], [1], [0, 0, 1, 1], [], []>} : vector<12x8xf32>, vector<8x32xf32>, vector<12x32xf32> -> vector<12x32xf32>
    %246 = arith.addf %223, %245 : vector<12x32xf32>
    %247 = arith.addf %151, %246 : vector<12x32xf32>
    %c0_115 = arith.constant 0 : index
    %c0_116 = arith.constant 0 : index
    %248 = vector.load %arg10[%c0_115, %c0_116] : memref<1x32xf32, #tpu.memory_space<vmem>>, vector<1x32xf32>
    %249 = vector.broadcast %248 : vector<1x32xf32> to vector<12x32xf32>
    %250 = arith.addf %247, %249 : vector<12x32xf32>
    %c0_117 = arith.constant 0 : index
    %c0_118 = arith.constant 0 : index
    %251 = vector.load %arg17[%c0_117, %c0_118] : memref<1x32xf32, #tpu.memory_space<vmem>>, vector<1x32xf32>
    %c0_119 = arith.constant 0 : index
    %c0_120 = arith.constant 0 : index
    %252 = vector.load %arg16[%c0_119, %c0_120] : memref<1x32xf32, #tpu.memory_space<vmem>>, vector<1x32xf32>
    %cst_121 = arith.constant dense<0.000000e+00> : vector<12xf32>
    %253 = vector.multi_reduction <add>, %250, %cst_121 [1] : vector<12x32xf32> to vector<12xf32>
    %254 = vector.shape_cast %253 : vector<12xf32> to vector<12x1xf32>
    %cst_122 = arith.constant 3.200000e+01 : f32
    %255 = vector.broadcast %cst_122 : f32 to vector<12x1xf32>
    %256 = arith.divf %254, %255 : vector<12x1xf32>
    %257 = vector.broadcast %256 : vector<12x1xf32> to vector<12x32xf32>
    %258 = arith.subf %250, %257 : vector<12x32xf32>
    %259 = arith.mulf %258, %258 : vector<12x32xf32>
    %cst_123 = arith.constant dense<0.000000e+00> : vector<12xf32>
    %260 = vector.multi_reduction <add>, %259, %cst_123 [1] : vector<12x32xf32> to vector<12xf32>
    %261 = vector.shape_cast %260 : vector<12xf32> to vector<12x1xf32>
    %cst_124 = arith.constant 3.200000e+01 : f32
    %262 = vector.broadcast %cst_124 : f32 to vector<12x1xf32>
    %263 = arith.divf %261, %262 : vector<12x1xf32>
    %264 = vector.broadcast %256 : vector<12x1xf32> to vector<12x32xf32>
    %265 = arith.subf %250, %264 : vector<12x32xf32>
    %cst_125 = arith.constant 9.99999974E-6 : f32
    %266 = vector.broadcast %cst_125 : f32 to vector<12x1xf32>
    %267 = arith.addf %263, %266 : vector<12x1xf32>
    %268 = math.rsqrt %267 : vector<12x1xf32>
    %269 = vector.broadcast %268 : vector<12x1xf32> to vector<12x32xf32>
    %270 = arith.mulf %265, %269 : vector<12x32xf32>
    %271 = vector.broadcast %251 : vector<1x32xf32> to vector<12x32xf32>
    %272 = arith.mulf %270, %271 : vector<12x32xf32>
    %273 = vector.broadcast %252 : vector<1x32xf32> to vector<12x32xf32>
    %274 = arith.addf %272, %273 : vector<12x32xf32>
    %c0_126 = arith.constant 0 : index
    %c0_127 = arith.constant 0 : index
    %275 = vector.load %arg13[%c0_126, %c0_127] : memref<32x64xf32, #tpu.memory_space<vmem>>, vector<32x64xf32>
    %cst_128 = arith.constant dense<0.000000e+00> : vector<12x64xf32>
    %276 = tpu.matmul %274, %275, %cst_128 {dimension_numbers = #tpu.dot_dimension_numbers<[1], [0], [0], [1], [0, 0, 1, 1], [], []>} : vector<12x32xf32>, vector<32x64xf32>, vector<12x64xf32> -> vector<12x64xf32>
    %c0_129 = arith.constant 0 : index
    %c0_130 = arith.constant 0 : index
    %277 = vector.load %arg12[%c0_129, %c0_130] : memref<1x64xf32, #tpu.memory_space<vmem>>, vector<1x64xf32>
    %278 = vector.broadcast %277 : vector<1x64xf32> to vector<12x64xf32>
    %279 = arith.addf %276, %278 : vector<12x64xf32>
    %cst_131 = arith.constant 0.000000e+00 : f32
    %280 = vector.broadcast %cst_131 : f32 to vector<12x64xf32>
    %281 = arith.maximumf %279, %280 : vector<12x64xf32>
    %c0_132 = arith.constant 0 : index
    %c0_133 = arith.constant 0 : index
    %282 = vector.load %arg15[%c0_132, %c0_133] : memref<64x32xf32, #tpu.memory_space<vmem>>, vector<64x32xf32>
    %cst_134 = arith.constant dense<0.000000e+00> : vector<12x32xf32>
    %283 = tpu.matmul %281, %282, %cst_134 {dimension_numbers = #tpu.dot_dimension_numbers<[1], [0], [0], [1], [0, 0, 1, 1], [], []>} : vector<12x64xf32>, vector<64x32xf32>, vector<12x32xf32> -> vector<12x32xf32>
    %c0_135 = arith.constant 0 : index
    %c0_136 = arith.constant 0 : index
    %284 = vector.load %arg14[%c0_135, %c0_136] : memref<1x32xf32, #tpu.memory_space<vmem>>, vector<1x32xf32>
    %285 = vector.broadcast %284 : vector<1x32xf32> to vector<12x32xf32>
    %286 = arith.addf %283, %285 : vector<12x32xf32>
    %287 = arith.addf %274, %286 : vector<12x32xf32>
    %c0_137 = arith.constant 0 : index
    %c0_138 = arith.constant 0 : index
    %288 = vector.load %arg19[%c0_137, %c0_138] : memref<1x32xf32, #tpu.memory_space<vmem>>, vector<1x32xf32>
    %c0_139 = arith.constant 0 : index
    %c0_140 = arith.constant 0 : index
    %289 = vector.load %arg18[%c0_139, %c0_140] : memref<1x32xf32, #tpu.memory_space<vmem>>, vector<1x32xf32>
    %cst_141 = arith.constant dense<0.000000e+00> : vector<12xf32>
    %290 = vector.multi_reduction <add>, %287, %cst_141 [1] : vector<12x32xf32> to vector<12xf32>
    %291 = vector.shape_cast %290 : vector<12xf32> to vector<12x1xf32>
    %cst_142 = arith.constant 3.200000e+01 : f32
    %292 = vector.broadcast %cst_142 : f32 to vector<12x1xf32>
    %293 = arith.divf %291, %292 : vector<12x1xf32>
    %294 = vector.broadcast %293 : vector<12x1xf32> to vector<12x32xf32>
    %295 = arith.subf %287, %294 : vector<12x32xf32>
    %296 = arith.mulf %295, %295 : vector<12x32xf32>
    %cst_143 = arith.constant dense<0.000000e+00> : vector<12xf32>
    %297 = vector.multi_reduction <add>, %296, %cst_143 [1] : vector<12x32xf32> to vector<12xf32>
    %298 = vector.shape_cast %297 : vector<12xf32> to vector<12x1xf32>
    %cst_144 = arith.constant 3.200000e+01 : f32
    %299 = vector.broadcast %cst_144 : f32 to vector<12x1xf32>
    %300 = arith.divf %298, %299 : vector<12x1xf32>
    %301 = vector.broadcast %293 : vector<12x1xf32> to vector<12x32xf32>
    %302 = arith.subf %287, %301 : vector<12x32xf32>
    %cst_145 = arith.constant 9.99999974E-6 : f32
    %303 = vector.broadcast %cst_145 : f32 to vector<12x1xf32>
    %304 = arith.addf %300, %303 : vector<12x1xf32>
    %305 = math.rsqrt %304 : vector<12x1xf32>
    %306 = vector.broadcast %305 : vector<12x1xf32> to vector<12x32xf32>
    %307 = arith.mulf %302, %306 : vector<12x32xf32>
    %308 = vector.broadcast %288 : vector<1x32xf32> to vector<12x32xf32>
    %309 = arith.mulf %307, %308 : vector<12x32xf32>
    %310 = vector.broadcast %289 : vector<1x32xf32> to vector<12x32xf32>
    %311 = arith.addf %309, %310 : vector<12x32xf32>
    %c0_146 = arith.constant 0 : index
    %c0_147 = arith.constant 0 : index
    %312 = vector.load %arg31[%c0_146, %c0_147] : memref<32x96xf32, #tpu.memory_space<vmem>>, vector<32x96xf32>
    %cst_148 = arith.constant dense<0.000000e+00> : vector<12x96xf32>
    %313 = tpu.matmul %311, %312, %cst_148 {dimension_numbers = #tpu.dot_dimension_numbers<[1], [0], [0], [1], [0, 0, 1, 1], [], []>} : vector<12x32xf32>, vector<32x96xf32>, vector<12x96xf32> -> vector<12x96xf32>
    %c0_149 = arith.constant 0 : index
    %c0_150 = arith.constant 0 : index
    %314 = vector.load %arg22[%c0_149, %c0_150] : memref<32x32xf32, #tpu.memory_space<vmem>>, vector<32x32xf32>
    %315 = vector.extract_strided_slice %313 {offsets = [0, 0], sizes = [12, 8], strides = [1, 1]} : vector<12x96xf32> to vector<12x8xf32>
    %316 = vector.extract_strided_slice %313 {offsets = [0, 32], sizes = [12, 8], strides = [1, 1]} : vector<12x96xf32> to vector<12x8xf32>
    %317 = vector.extract_strided_slice %313 {offsets = [0, 64], sizes = [12, 8], strides = [1, 1]} : vector<12x96xf32> to vector<12x8xf32>
    %cst_151 = arith.constant dense<0.000000e+00> : vector<12x12xf32>
    %318 = tpu.matmul %315, %316, %cst_151 {dimension_numbers = #tpu.dot_dimension_numbers<[1], [1], [0], [0], [0, 0, 1, 0], [], []>} : vector<12x8xf32>, vector<12x8xf32>, vector<12x12xf32> -> vector<12x12xf32>
    %cst_152 = arith.constant 0.353553385 : f32
    %319 = vector.broadcast %cst_152 : f32 to vector<12x12xf32>
    %320 = arith.mulf %318, %319 : vector<12x12xf32>
    %cst_153 = arith.constant -5.000000e+00 : f32
    %cst_154 = arith.constant 5.000000e+00 : f32
    %321 = vector.broadcast %cst_153 : f32 to vector<12x12xf32>
    %322 = arith.maximumf %321, %320 : vector<12x12xf32>
    %323 = vector.broadcast %cst_154 : f32 to vector<12x12xf32>
    %324 = arith.minimumf %323, %322 : vector<12x12xf32>
    %325 = math.exp %324 : vector<12x12xf32>
    %326 = arith.mulf %325, %152 : vector<12x12xf32>
    %cst_155 = arith.constant dense<0.000000e+00> : vector<12xf32>
    %327 = vector.multi_reduction <add>, %326, %cst_155 [1] : vector<12x12xf32> to vector<12xf32>
    %328 = vector.shape_cast %327 : vector<12xf32> to vector<12x1xf32>
    %cst_156 = arith.constant 9.99999997E-7 : f32
    %329 = vector.broadcast %cst_156 : f32 to vector<12x1xf32>
    %330 = arith.addf %328, %329 : vector<12x1xf32>
    %331 = tpu.reciprocal %330 {approx = true} : vector<12x1xf32> -> vector<12x1xf32>
    %cst_157 = arith.constant dense<0.000000e+00> : vector<12x8xf32>
    %332 = tpu.matmul %326, %317, %cst_157 {dimension_numbers = #tpu.dot_dimension_numbers<[1], [0], [0], [1], [0, 0, 1, 1], [], []>} : vector<12x12xf32>, vector<12x8xf32>, vector<12x8xf32> -> vector<12x8xf32>
    %333 = vector.broadcast %331 : vector<12x1xf32> to vector<12x8xf32>
    %334 = arith.mulf %332, %333 : vector<12x8xf32>
    %335 = vector.extract_strided_slice %314 {offsets = [0, 0], sizes = [8, 32], strides = [1, 1]} : vector<32x32xf32> to vector<8x32xf32>
    %cst_158 = arith.constant dense<0.000000e+00> : vector<12x32xf32>
    %336 = tpu.matmul %334, %335, %cst_158 {dimension_numbers = #tpu.dot_dimension_numbers<[1], [0], [0], [1], [0, 0, 1, 1], [], []>} : vector<12x8xf32>, vector<8x32xf32>, vector<12x32xf32> -> vector<12x32xf32>
    %337 = vector.extract_strided_slice %313 {offsets = [0, 8], sizes = [12, 8], strides = [1, 1]} : vector<12x96xf32> to vector<12x8xf32>
    %338 = vector.extract_strided_slice %313 {offsets = [0, 40], sizes = [12, 8], strides = [1, 1]} : vector<12x96xf32> to vector<12x8xf32>
    %339 = vector.extract_strided_slice %313 {offsets = [0, 72], sizes = [12, 8], strides = [1, 1]} : vector<12x96xf32> to vector<12x8xf32>
    %cst_159 = arith.constant dense<0.000000e+00> : vector<12x12xf32>
    %340 = tpu.matmul %337, %338, %cst_159 {dimension_numbers = #tpu.dot_dimension_numbers<[1], [1], [0], [0], [0, 0, 1, 0], [], []>} : vector<12x8xf32>, vector<12x8xf32>, vector<12x12xf32> -> vector<12x12xf32>
    %cst_160 = arith.constant 0.353553385 : f32
    %341 = vector.broadcast %cst_160 : f32 to vector<12x12xf32>
    %342 = arith.mulf %340, %341 : vector<12x12xf32>
    %cst_161 = arith.constant -5.000000e+00 : f32
    %cst_162 = arith.constant 5.000000e+00 : f32
    %343 = vector.broadcast %cst_161 : f32 to vector<12x12xf32>
    %344 = arith.maximumf %343, %342 : vector<12x12xf32>
    %345 = vector.broadcast %cst_162 : f32 to vector<12x12xf32>
    %346 = arith.minimumf %345, %344 : vector<12x12xf32>
    %347 = math.exp %346 : vector<12x12xf32>
    %348 = arith.mulf %347, %152 : vector<12x12xf32>
    %cst_163 = arith.constant dense<0.000000e+00> : vector<12xf32>
    %349 = vector.multi_reduction <add>, %348, %cst_163 [1] : vector<12x12xf32> to vector<12xf32>
    %350 = vector.shape_cast %349 : vector<12xf32> to vector<12x1xf32>
    %cst_164 = arith.constant 9.99999997E-7 : f32
    %351 = vector.broadcast %cst_164 : f32 to vector<12x1xf32>
    %352 = arith.addf %350, %351 : vector<12x1xf32>
    %353 = tpu.reciprocal %352 {approx = true} : vector<12x1xf32> -> vector<12x1xf32>
    %cst_165 = arith.constant dense<0.000000e+00> : vector<12x8xf32>
    %354 = tpu.matmul %348, %339, %cst_165 {dimension_numbers = #tpu.dot_dimension_numbers<[1], [0], [0], [1], [0, 0, 1, 1], [], []>} : vector<12x12xf32>, vector<12x8xf32>, vector<12x8xf32> -> vector<12x8xf32>
    %355 = vector.broadcast %353 : vector<12x1xf32> to vector<12x8xf32>
    %356 = arith.mulf %354, %355 : vector<12x8xf32>
    %357 = vector.extract_strided_slice %314 {offsets = [8, 0], sizes = [8, 32], strides = [1, 1]} : vector<32x32xf32> to vector<8x32xf32>
    %cst_166 = arith.constant dense<0.000000e+00> : vector<12x32xf32>
    %358 = tpu.matmul %356, %357, %cst_166 {dimension_numbers = #tpu.dot_dimension_numbers<[1], [0], [0], [1], [0, 0, 1, 1], [], []>} : vector<12x8xf32>, vector<8x32xf32>, vector<12x32xf32> -> vector<12x32xf32>
    %359 = arith.addf %336, %358 : vector<12x32xf32>
    %360 = vector.extract_strided_slice %313 {offsets = [0, 16], sizes = [12, 8], strides = [1, 1]} : vector<12x96xf32> to vector<12x8xf32>
    %361 = vector.extract_strided_slice %313 {offsets = [0, 48], sizes = [12, 8], strides = [1, 1]} : vector<12x96xf32> to vector<12x8xf32>
    %362 = vector.extract_strided_slice %313 {offsets = [0, 80], sizes = [12, 8], strides = [1, 1]} : vector<12x96xf32> to vector<12x8xf32>
    %cst_167 = arith.constant dense<0.000000e+00> : vector<12x12xf32>
    %363 = tpu.matmul %360, %361, %cst_167 {dimension_numbers = #tpu.dot_dimension_numbers<[1], [1], [0], [0], [0, 0, 1, 0], [], []>} : vector<12x8xf32>, vector<12x8xf32>, vector<12x12xf32> -> vector<12x12xf32>
    %cst_168 = arith.constant 0.353553385 : f32
    %364 = vector.broadcast %cst_168 : f32 to vector<12x12xf32>
    %365 = arith.mulf %363, %364 : vector<12x12xf32>
    %cst_169 = arith.constant -5.000000e+00 : f32
    %cst_170 = arith.constant 5.000000e+00 : f32
    %366 = vector.broadcast %cst_169 : f32 to vector<12x12xf32>
    %367 = arith.maximumf %366, %365 : vector<12x12xf32>
    %368 = vector.broadcast %cst_170 : f32 to vector<12x12xf32>
    %369 = arith.minimumf %368, %367 : vector<12x12xf32>
    %370 = math.exp %369 : vector<12x12xf32>
    %371 = arith.mulf %370, %152 : vector<12x12xf32>
    %cst_171 = arith.constant dense<0.000000e+00> : vector<12xf32>
    %372 = vector.multi_reduction <add>, %371, %cst_171 [1] : vector<12x12xf32> to vector<12xf32>
    %373 = vector.shape_cast %372 : vector<12xf32> to vector<12x1xf32>
    %cst_172 = arith.constant 9.99999997E-7 : f32
    %374 = vector.broadcast %cst_172 : f32 to vector<12x1xf32>
    %375 = arith.addf %373, %374 : vector<12x1xf32>
    %376 = tpu.reciprocal %375 {approx = true} : vector<12x1xf32> -> vector<12x1xf32>
    %cst_173 = arith.constant dense<0.000000e+00> : vector<12x8xf32>
    %377 = tpu.matmul %371, %362, %cst_173 {dimension_numbers = #tpu.dot_dimension_numbers<[1], [0], [0], [1], [0, 0, 1, 1], [], []>} : vector<12x12xf32>, vector<12x8xf32>, vector<12x8xf32> -> vector<12x8xf32>
    %378 = vector.broadcast %376 : vector<12x1xf32> to vector<12x8xf32>
    %379 = arith.mulf %377, %378 : vector<12x8xf32>
    %380 = vector.extract_strided_slice %314 {offsets = [16, 0], sizes = [8, 32], strides = [1, 1]} : vector<32x32xf32> to vector<8x32xf32>
    %cst_174 = arith.constant dense<0.000000e+00> : vector<12x32xf32>
    %381 = tpu.matmul %379, %380, %cst_174 {dimension_numbers = #tpu.dot_dimension_numbers<[1], [0], [0], [1], [0, 0, 1, 1], [], []>} : vector<12x8xf32>, vector<8x32xf32>, vector<12x32xf32> -> vector<12x32xf32>
    %382 = arith.addf %359, %381 : vector<12x32xf32>
    %383 = vector.extract_strided_slice %313 {offsets = [0, 24], sizes = [12, 8], strides = [1, 1]} : vector<12x96xf32> to vector<12x8xf32>
    %384 = vector.extract_strided_slice %313 {offsets = [0, 56], sizes = [12, 8], strides = [1, 1]} : vector<12x96xf32> to vector<12x8xf32>
    %385 = vector.extract_strided_slice %313 {offsets = [0, 88], sizes = [12, 8], strides = [1, 1]} : vector<12x96xf32> to vector<12x8xf32>
    %cst_175 = arith.constant dense<0.000000e+00> : vector<12x12xf32>
    %386 = tpu.matmul %383, %384, %cst_175 {dimension_numbers = #tpu.dot_dimension_numbers<[1], [1], [0], [0], [0, 0, 1, 0], [], []>} : vector<12x8xf32>, vector<12x8xf32>, vector<12x12xf32> -> vector<12x12xf32>
    %cst_176 = arith.constant 0.353553385 : f32
    %387 = vector.broadcast %cst_176 : f32 to vector<12x12xf32>
    %388 = arith.mulf %386, %387 : vector<12x12xf32>
    %cst_177 = arith.constant -5.000000e+00 : f32
    %cst_178 = arith.constant 5.000000e+00 : f32
    %389 = vector.broadcast %cst_177 : f32 to vector<12x12xf32>
    %390 = arith.maximumf %389, %388 : vector<12x12xf32>
    %391 = vector.broadcast %cst_178 : f32 to vector<12x12xf32>
    %392 = arith.minimumf %391, %390 : vector<12x12xf32>
    %393 = math.exp %392 : vector<12x12xf32>
    %394 = arith.mulf %393, %152 : vector<12x12xf32>
    %cst_179 = arith.constant dense<0.000000e+00> : vector<12xf32>
    %395 = vector.multi_reduction <add>, %394, %cst_179 [1] : vector<12x12xf32> to vector<12xf32>
    %396 = vector.shape_cast %395 : vector<12xf32> to vector<12x1xf32>
    %cst_180 = arith.constant 9.99999997E-7 : f32
    %397 = vector.broadcast %cst_180 : f32 to vector<12x1xf32>
    %398 = arith.addf %396, %397 : vector<12x1xf32>
    %399 = tpu.reciprocal %398 {approx = true} : vector<12x1xf32> -> vector<12x1xf32>
    %cst_181 = arith.constant dense<0.000000e+00> : vector<12x8xf32>
    %400 = tpu.matmul %394, %385, %cst_181 {dimension_numbers = #tpu.dot_dimension_numbers<[1], [0], [0], [1], [0, 0, 1, 1], [], []>} : vector<12x12xf32>, vector<12x8xf32>, vector<12x8xf32> -> vector<12x8xf32>
    %401 = vector.broadcast %399 : vector<12x1xf32> to vector<12x8xf32>
    %402 = arith.mulf %400, %401 : vector<12x8xf32>
    %403 = vector.extract_strided_slice %314 {offsets = [24, 0], sizes = [8, 32], strides = [1, 1]} : vector<32x32xf32> to vector<8x32xf32>
    %cst_182 = arith.constant dense<0.000000e+00> : vector<12x32xf32>
    %404 = tpu.matmul %402, %403, %cst_182 {dimension_numbers = #tpu.dot_dimension_numbers<[1], [0], [0], [1], [0, 0, 1, 1], [], []>} : vector<12x8xf32>, vector<8x32xf32>, vector<12x32xf32> -> vector<12x32xf32>
    %405 = arith.addf %382, %404 : vector<12x32xf32>
    %406 = arith.addf %311, %405 : vector<12x32xf32>
    %c0_183 = arith.constant 0 : index
    %c0_184 = arith.constant 0 : index
    %407 = vector.load %arg21[%c0_183, %c0_184] : memref<1x32xf32, #tpu.memory_space<vmem>>, vector<1x32xf32>
    %408 = vector.broadcast %407 : vector<1x32xf32> to vector<12x32xf32>
    %409 = arith.addf %406, %408 : vector<12x32xf32>
    %c0_185 = arith.constant 0 : index
    %c0_186 = arith.constant 0 : index
    %410 = vector.load %arg28[%c0_185, %c0_186] : memref<1x32xf32, #tpu.memory_space<vmem>>, vector<1x32xf32>
    %c0_187 = arith.constant 0 : index
    %c0_188 = arith.constant 0 : index
    %411 = vector.load %arg27[%c0_187, %c0_188] : memref<1x32xf32, #tpu.memory_space<vmem>>, vector<1x32xf32>
    %cst_189 = arith.constant dense<0.000000e+00> : vector<12xf32>
    %412 = vector.multi_reduction <add>, %409, %cst_189 [1] : vector<12x32xf32> to vector<12xf32>
    %413 = vector.shape_cast %412 : vector<12xf32> to vector<12x1xf32>
    %cst_190 = arith.constant 3.200000e+01 : f32
    %414 = vector.broadcast %cst_190 : f32 to vector<12x1xf32>
    %415 = arith.divf %413, %414 : vector<12x1xf32>
    %416 = vector.broadcast %415 : vector<12x1xf32> to vector<12x32xf32>
    %417 = arith.subf %409, %416 : vector<12x32xf32>
    %418 = arith.mulf %417, %417 : vector<12x32xf32>
    %cst_191 = arith.constant dense<0.000000e+00> : vector<12xf32>
    %419 = vector.multi_reduction <add>, %418, %cst_191 [1] : vector<12x32xf32> to vector<12xf32>
    %420 = vector.shape_cast %419 : vector<12xf32> to vector<12x1xf32>
    %cst_192 = arith.constant 3.200000e+01 : f32
    %421 = vector.broadcast %cst_192 : f32 to vector<12x1xf32>
    %422 = arith.divf %420, %421 : vector<12x1xf32>
    %423 = vector.broadcast %415 : vector<12x1xf32> to vector<12x32xf32>
    %424 = arith.subf %409, %423 : vector<12x32xf32>
    %cst_193 = arith.constant 9.99999974E-6 : f32
    %425 = vector.broadcast %cst_193 : f32 to vector<12x1xf32>
    %426 = arith.addf %422, %425 : vector<12x1xf32>
    %427 = math.rsqrt %426 : vector<12x1xf32>
    %428 = vector.broadcast %427 : vector<12x1xf32> to vector<12x32xf32>
    %429 = arith.mulf %424, %428 : vector<12x32xf32>
    %430 = vector.broadcast %410 : vector<1x32xf32> to vector<12x32xf32>
    %431 = arith.mulf %429, %430 : vector<12x32xf32>
    %432 = vector.broadcast %411 : vector<1x32xf32> to vector<12x32xf32>
    %433 = arith.addf %431, %432 : vector<12x32xf32>
    %c0_194 = arith.constant 0 : index
    %c0_195 = arith.constant 0 : index
    %434 = vector.load %arg24[%c0_194, %c0_195] : memref<32x64xf32, #tpu.memory_space<vmem>>, vector<32x64xf32>
    %cst_196 = arith.constant dense<0.000000e+00> : vector<12x64xf32>
    %435 = tpu.matmul %433, %434, %cst_196 {dimension_numbers = #tpu.dot_dimension_numbers<[1], [0], [0], [1], [0, 0, 1, 1], [], []>} : vector<12x32xf32>, vector<32x64xf32>, vector<12x64xf32> -> vector<12x64xf32>
    %c0_197 = arith.constant 0 : index
    %c0_198 = arith.constant 0 : index
    %436 = vector.load %arg23[%c0_197, %c0_198] : memref<1x64xf32, #tpu.memory_space<vmem>>, vector<1x64xf32>
    %437 = vector.broadcast %436 : vector<1x64xf32> to vector<12x64xf32>
    %438 = arith.addf %435, %437 : vector<12x64xf32>
    %cst_199 = arith.constant 0.000000e+00 : f32
    %439 = vector.broadcast %cst_199 : f32 to vector<12x64xf32>
    %440 = arith.maximumf %438, %439 : vector<12x64xf32>
    %c0_200 = arith.constant 0 : index
    %c0_201 = arith.constant 0 : index
    %441 = vector.load %arg26[%c0_200, %c0_201] : memref<64x32xf32, #tpu.memory_space<vmem>>, vector<64x32xf32>
    %cst_202 = arith.constant dense<0.000000e+00> : vector<12x32xf32>
    %442 = tpu.matmul %440, %441, %cst_202 {dimension_numbers = #tpu.dot_dimension_numbers<[1], [0], [0], [1], [0, 0, 1, 1], [], []>} : vector<12x64xf32>, vector<64x32xf32>, vector<12x32xf32> -> vector<12x32xf32>
    %c0_203 = arith.constant 0 : index
    %c0_204 = arith.constant 0 : index
    %443 = vector.load %arg25[%c0_203, %c0_204] : memref<1x32xf32, #tpu.memory_space<vmem>>, vector<1x32xf32>
    %444 = vector.broadcast %443 : vector<1x32xf32> to vector<12x32xf32>
    %445 = arith.addf %442, %444 : vector<12x32xf32>
    %446 = arith.addf %433, %445 : vector<12x32xf32>
    %c0_205 = arith.constant 0 : index
    %c0_206 = arith.constant 0 : index
    %447 = vector.load %arg30[%c0_205, %c0_206] : memref<1x32xf32, #tpu.memory_space<vmem>>, vector<1x32xf32>
    %c0_207 = arith.constant 0 : index
    %c0_208 = arith.constant 0 : index
    %448 = vector.load %arg29[%c0_207, %c0_208] : memref<1x32xf32, #tpu.memory_space<vmem>>, vector<1x32xf32>
    %cst_209 = arith.constant dense<0.000000e+00> : vector<12xf32>
    %449 = vector.multi_reduction <add>, %446, %cst_209 [1] : vector<12x32xf32> to vector<12xf32>
    %450 = vector.shape_cast %449 : vector<12xf32> to vector<12x1xf32>
    %cst_210 = arith.constant 3.200000e+01 : f32
    %451 = vector.broadcast %cst_210 : f32 to vector<12x1xf32>
    %452 = arith.divf %450, %451 : vector<12x1xf32>
    %453 = vector.broadcast %452 : vector<12x1xf32> to vector<12x32xf32>
    %454 = arith.subf %446, %453 : vector<12x32xf32>
    %455 = arith.mulf %454, %454 : vector<12x32xf32>
    %cst_211 = arith.constant dense<0.000000e+00> : vector<12xf32>
    %456 = vector.multi_reduction <add>, %455, %cst_211 [1] : vector<12x32xf32> to vector<12xf32>
    %457 = vector.shape_cast %456 : vector<12xf32> to vector<12x1xf32>
    %cst_212 = arith.constant 3.200000e+01 : f32
    %458 = vector.broadcast %cst_212 : f32 to vector<12x1xf32>
    %459 = arith.divf %457, %458 : vector<12x1xf32>
    %460 = vector.broadcast %452 : vector<12x1xf32> to vector<12x32xf32>
    %461 = arith.subf %446, %460 : vector<12x32xf32>
    %cst_213 = arith.constant 9.99999974E-6 : f32
    %462 = vector.broadcast %cst_213 : f32 to vector<12x1xf32>
    %463 = arith.addf %459, %462 : vector<12x1xf32>
    %464 = math.rsqrt %463 : vector<12x1xf32>
    %465 = vector.broadcast %464 : vector<12x1xf32> to vector<12x32xf32>
    %466 = arith.mulf %461, %465 : vector<12x32xf32>
    %467 = vector.broadcast %447 : vector<1x32xf32> to vector<12x32xf32>
    %468 = arith.mulf %466, %467 : vector<12x32xf32>
    %469 = vector.broadcast %448 : vector<1x32xf32> to vector<12x32xf32>
    %470 = arith.addf %468, %469 : vector<12x32xf32>
    %cst_214 = arith.constant dense<0.000000e+00> : vector<32xf32>
    %471 = vector.multi_reduction <add>, %470, %cst_214 [0] : vector<12x32xf32> to vector<32xf32>
    %472 = vector.shape_cast %471 : vector<32xf32> to vector<1x32xf32>
    %cst_215 = arith.constant 1.200000e+01 : f32
    %473 = vector.broadcast %cst_215 : f32 to vector<1x32xf32>
    %474 = arith.divf %472, %473 : vector<1x32xf32>
    %c0_216 = arith.constant 0 : index
    %c0_217 = arith.constant 0 : index
    %475 = vector.load %arg33[%c0_216, %c0_217] : memref<32x16xf32, #tpu.memory_space<vmem>>, vector<32x16xf32>
    %cst_218 = arith.constant dense<0.000000e+00> : vector<1x16xf32>
    %476 = tpu.matmul %474, %475, %cst_218 {dimension_numbers = #tpu.dot_dimension_numbers<[1], [0], [0], [1], [0, 0, 1, 1], [], []>} : vector<1x32xf32>, vector<32x16xf32>, vector<1x16xf32> -> vector<1x16xf32>
    %c0_219 = arith.constant 0 : index
    %c0_220 = arith.constant 0 : index
    %477 = vector.load %arg32[%c0_219, %c0_220] : memref<1x16xf32, #tpu.memory_space<vmem>>, vector<1x16xf32>
    %478 = arith.addf %476, %477 : vector<1x16xf32>
    %cst_221 = arith.constant 0.000000e+00 : f32
    %479 = vector.broadcast %cst_221 : f32 to vector<1x16xf32>
    %480 = arith.maximumf %478, %479 : vector<1x16xf32>
    %c0_222 = arith.constant 0 : index
    %c0_223 = arith.constant 0 : index
    %481 = vector.load %arg35[%c0_222, %c0_223] : memref<16x8xf32, #tpu.memory_space<vmem>>, vector<16x8xf32>
    %cst_224 = arith.constant dense<0.000000e+00> : vector<1x8xf32>
    %482 = tpu.matmul %480, %481, %cst_224 {dimension_numbers = #tpu.dot_dimension_numbers<[1], [0], [0], [1], [0, 0, 1, 1], [], []>} : vector<1x16xf32>, vector<16x8xf32>, vector<1x8xf32> -> vector<1x8xf32>
    %c0_225 = arith.constant 0 : index
    %c0_226 = arith.constant 0 : index
    %483 = vector.load %arg34[%c0_225, %c0_226] : memref<1x8xf32, #tpu.memory_space<vmem>>, vector<1x8xf32>
    %484 = arith.addf %482, %483 : vector<1x8xf32>
    %cst_227 = arith.constant 0.000000e+00 : f32
    %485 = vector.broadcast %cst_227 : f32 to vector<1x8xf32>
    %486 = arith.maximumf %484, %485 : vector<1x8xf32>
    %c0_228 = arith.constant 0 : index
    %c0_229 = arith.constant 0 : index
    %487 = vector.load %arg37[%c0_228, %c0_229] : memref<8x11xf32, #tpu.memory_space<vmem>>, vector<8x11xf32>
    %cst_230 = arith.constant dense<0.000000e+00> : vector<1x11xf32>
    %488 = tpu.matmul %486, %487, %cst_230 {dimension_numbers = #tpu.dot_dimension_numbers<[1], [0], [0], [1], [0, 0, 1, 1], [], []>} : vector<1x8xf32>, vector<8x11xf32>, vector<1x11xf32> -> vector<1x11xf32>
    %c0_231 = arith.constant 0 : index
    %c0_232 = arith.constant 0 : index
    %489 = vector.load %arg36[%c0_231, %c0_232] : memref<1x11xf32, #tpu.memory_space<vmem>>, vector<1x11xf32>
    %490 = arith.addf %488, %489 : vector<1x11xf32>
    %c0_233 = arith.constant 0 : index
    %c0_234 = arith.constant 0 : index
    %491 = vector.load %arg51[%c0_233, %c0_234] : memref<1x11xf32, #tpu.memory_space<vmem>>, vector<1x11xf32>
    tpu.vector_store %arg51[%c0_233, %c0_234], %490 {strides = array<i32>} : memref<1x11xf32, #tpu.memory_space<vmem>>, vector<1x11xf32>,
    return
  }
}

</mosaic_0001>

<bundles_post_ra>
// kernel: san_forward.1
= control target key start
LH: loop header
LB: loop body
LE: loop exit
PB: predicated region body
PF: predicated region fallthrough
CT: control target
= control target key end

     0   :  { %s11728_s6 = smov 1   ;;  %s11729_s10 = smov 2   ;;  %s14860_s0 = inlined_call_operand.smem [shape: u32[52], index: -1, kind: input, shape index: {}] }
   0x1   :  { %s11808_s5 = sld [smem:[%s14860_s0]]   ;;  %s11730_s14 = smov 3  }
   0x2   :  { %s11813_s9 = sld [smem:[%s14860_s0 + %s11728_s6]]   ;;  %s11731_s18 = smov 4  }
   0x3   :  { %s11818_s13 = sld [smem:[%s14860_s0 + %s11729_s10]]   ;;  %s11732_s22 = smov 5  }
   0x4   :  { %s11823_s17 = sld [smem:[%s14860_s0 + %s11730_s14]]   ;;  %s11733_s26 = smov 6  }
   0x5   :  { %s11828_s21 = sld [smem:[%s14860_s0 + %s11731_s18]]   ;;  %s11734_s30 = smov 7  }
   0x6   :  { %s11833_s25 = sld [smem:[%s14860_s0 + %s11732_s22]]   ;;  %s11735_s4 = smov 8  }
   0x7   :  { %14881 = sst [smem:[#allocation5_spill]] %s11808_s5  ;;  %s11736_s10 = smov 9  }
   0x8   :  { %s11838_s29 = sld [smem:[%s14860_s0 + %s11733_s26]]   ;;  %s11737_s15 = smov 10  }
   0x9   :  { %s11843_s3 = sld [smem:[%s14860_s0 + %s11734_s30]]   ;;  %s11738_s20 = smov 11  }
   0xa   :  { %s11848_s8 = sld [smem:[%s14860_s0 + %s11735_s4]]   ;;  %s11739_s26 = smov 12  }
   0xb   :  { %s11853_s14 = sld [smem:[%s14860_s0 + %s11736_s10]]   ;;  %s11740_s1 = smov 13  }
   0xc   :  { %14882 = sst [smem:[#allocation6_spill]] %s11833_s25  ;;  %s11741_s7 = smov 14  }
   0xd   :  { %s11858_s19 = sld [smem:[%s14860_s0 + %s11737_s15]]   ;;  %s11742_s15 = smov 15  }
   0xe   :  { %s11863_s24 = sld [smem:[%s14860_s0 + %s11738_s20]]   ;;  %s11743_s22 = smov 16  }
   0xf   :  { %s11868_s30 = sld [smem:[%s14860_s0 + %s11739_s26]]   ;;  %s11744_s28 = smov 17  }
  0x10   :  { %14883 = sst [smem:[#allocation7_spill]] %s11848_s8  ;;  %s11777_s10 = smov 50  }
  0x11   :  { %14884 = sst [smem:[#allocation8_spill]] %s11853_s14  ;;  %s11778_s16 = smov 51  }
  0x12   :  { %s11873_s6 = sld [smem:[%s14860_s0 + %s11740_s1]]  }
  0x13   :  { %14885 = sst [smem:[#allocation9_spill]] %s11858_s19 }
  0x14   :  { %14886 = sst [smem:[#allocation10_spill]] %s11863_s24 }
  0x15   :  { %14887 = sst [smem:[#allocation11_spill]] %s11868_s30 }
  0x16   :  { %s11878_s12 = sld [smem:[%s14860_s0 + %s11741_s7]]   ;;  %s11745_s7 = smov 18  }
  0x17   :  { %s11883_s20 = sld [smem:[%s14860_s0 + %s11742_s15]]   ;;  %s11746_s15 = smov 19  }
  0x18   :  { %14888 = sst [smem:[#allocation12_spill]] %s11873_s6 }
  0x19   :  { %s11888_s27 = sld [smem:[%s14860_s0 + %s11743_s22]]   ;;  %s11747_s22 = smov 20  }
  0x1a   :  { %s11893_s4 = sld [smem:[%s14860_s0 + %s11744_s28]]   ;;  %s11748_s28 = smov 21  }
  0x1b   :  { %s11903_s30 = sld [smem:[%s14860_s0 + %s11746_s15]]   ;;  %s11750_s15 = smov 23  }
  0x1c   :  { %14889 = sst [smem:[#allocation13_spill]] %s11878_s12 }
  0x1d   :  { %14890 = sst [smem:[#allocation14_spill]] %s11883_s20 }
  0x1e   :  { %s11898_s12 = sld [smem:[%s14860_s0 + %s11745_s7]]   ;;  %s11749_s7 = smov 22  }
  0x1f   :  { %14891 = sst [smem:[#allocation15_spill]] %s11888_s27 }
  0x20   :  { %14892 = sst [smem:[#allocation16_spill]] %s11893_s4 }
  0x21   :  { %14894 = sst [smem:[#allocation18_spill]] %s11903_s30 }
  0x22   :  { %s11908_s27 = sld [smem:[%s14860_s0 + %s11747_s22]]   ;;  %s11751_s22 = smov 24  }
  0x23   :  { %s11913_s4 = sld [smem:[%s14860_s0 + %s11748_s28]]   ;;  %s11752_s28 = smov 25  }
  0x24   :  { %14893 = sst [smem:[#allocation17_spill]] %s11898_s12 }
  0x25   :  { %s11918_s12 = sld [smem:[%s14860_s0 + %s11749_s7]]   ;;  %s11753_s7 = smov 26  }
  0x26   :  { %s11923_s30 = sld [smem:[%s14860_s0 + %s11750_s15]]   ;;  %s11754_s15 = smov 27  }
  0x27   :  { %s11928_s20 = sld [smem:[%s14860_s0 + %s11751_s22]]   ;;  %s11755_s22 = smov 28  }
  0x28   :  { %14895 = sst [smem:[#allocation19_spill]] %s11908_s27 }
  0x29   :  { %14896 = sst [smem:[#allocation20_spill]] %s11913_s4 }
  0x2a   :  { %s11933_s4 = sld [smem:[%s14860_s0 + %s11752_s28]]   ;;  %s11756_s28 = smov 29  }
  0x2b   :  { %14897 = sst [smem:[#allocation21_spill]] %s11918_s12 }
  0x2c   :  { %14898 = sst [smem:[#allocation22_spill]] %s11923_s30 }
  0x2d   :  { %14899 = sst [smem:[#allocation23_spill]] %s11928_s20 }
  0x2e   :  { %s11938_s12 = sld [smem:[%s14860_s0 + %s11753_s7]]   ;;  %s11757_s7 = smov 30  }
  0x2f   :  { %s11943_s30 = sld [smem:[%s14860_s0 + %s11754_s15]]   ;;  %s11758_s15 = smov 31  }
  0x30   :  { %14900 = sst [smem:[#allocation24_spill]] %s11933_s4 }
  0x31   :  { %s11948_s20 = sld [smem:[%s14860_s0 + %s11755_s22]]   ;;  %s11759_s22 = smov 32  }
  0x32   :  { %s11953_s4 = sld [smem:[%s14860_s0 + %s11756_s28]]   ;;  %s11760_s28 = smov 33  }
  0x34   :  { %14901 = sst [smem:[#allocation25_spill]] %s11938_s12 }
  0x35   :  { %14902 = sst [smem:[#allocation26_spill]] %s11943_s30 }
  0x36   :  { %s11958_s12 = sld [smem:[%s14860_s0 + %s11757_s7]]   ;;  %s11761_s7 = smov 34  }
  0x37   :  { %14903 = sst [smem:[#allocation27_spill]] %s11948_s20 }
  0x38   :  { %14904 = sst [smem:[#allocation28_spill]] %s11953_s4 }
  0x39   :  { %s11963_s30 = sld [smem:[%s14860_s0 + %s11758_s15]]   ;;  %s11762_s15 = smov 35  }
  0x3a   :  { %s11968_s20 = sld [smem:[%s14860_s0 + %s11759_s22]]   ;;  %s11763_s22 = smov 36  }
  0x3b   :  { %s11973_s4 = sld [smem:[%s14860_s0 + %s11760_s28]]   ;;  %s11764_s28 = smov 37  }
  0x3c   :  { %14905 = sst [smem:[#allocation29_spill]] %s11958_s12 }
  0x3d   :  { %s11978_s12 = sld [smem:[%s14860_s0 + %s11761_s7]]   ;;  %s11765_s7 = smov 38  }
  0x3f   :  { %14906 = sst [smem:[#allocation30_spill]] %s11963_s30 }
  0x40   :  { %14907 = sst [smem:[#allocation31_spill]] %s11968_s20 }
  0x41   :  { %14908 = sst [smem:[#allocation32_spill]] %s11973_s4 }
  0x42   :  { %s11983_s30 = sld [smem:[%s14860_s0 + %s11762_s15]]   ;;  %s11766_s15 = smov 39  }
  0x43   :  { %14909 = sst [smem:[#allocation33_spill]] %s11978_s12 }
  0x44   :  { %s11988_s20 = sld [smem:[%s14860_s0 + %s11763_s22]]   ;;  %s11767_s22 = smov 40  }
  0x45   :  { %s11993_s4 = sld [smem:[%s14860_s0 + %s11764_s28]]   ;;  %s11768_s28 = smov 41  }
  0x46   :  { %s11998_s12 = sld [smem:[%s14860_s0 + %s11765_s7]]   ;;  %s11769_s7 = smov 42  }
  0x47   :  { %s12018_s6 = sld [smem:[%s14860_s0 + %s11769_s7]]   ;;  %s11773_s7 = smov 46  }
  0x48   :  { %14910 = sst [smem:[#allocation34_spill]] %s11983_s30 }
  0x49   :  { %s12003_s30 = sld [smem:[%s14860_s0 + %s11766_s15]]   ;;  %s11770_s15 = smov 43  }
  0x4a   :  { %14911 = sst [smem:[#allocation35_spill]] %s11988_s20 }
  0x4b   :  { %14912 = sst [smem:[#allocation36_spill]] %s11993_s4 }
  0x4c   :  { %s12008_s20 = sld [smem:[%s14860_s0 + %s11767_s22]]   ;;  %s11771_s22 = smov 44  }
  0x4d   :  { %s12013_s4 = sld [smem:[%s14860_s0 + %s11768_s28]]   ;;  %s11772_s28 = smov 45  }
  0x4e   :  { %s12023_s19 = sld [smem:[%s14860_s0 + %s11770_s15]]   ;;  %s11774_s15 = smov 47  }
  0x4f   :  { %s12028_s24 = sld [smem:[%s14860_s0 + %s11771_s22]]   ;;  %s11775_s22 = smov 48  }
  0x50   :  { %s12033_s25 = sld [smem:[%s14860_s0 + %s11772_s28]]   ;;  %s11776_s28 = smov 49  }
  0x51   :  { %s12038_s8 = sld [smem:[%s14860_s0 + %s11773_s7]]  }
  0x52   :  { %s12043_s27 = sld [smem:[%s14860_s0 + %s11774_s15]]  }
  0x53   :  { %s12048_s5 = sld [smem:[%s14860_s0 + %s11775_s22]]  }
  0x54   :  { %s8894_s14 = sld [smem:[%s14860_s0 + %s11776_s28]]  }
  0x55   :  { %14913 = sst [smem:[#allocation37_spill]] %s12028_s24 }
  0x56   :  { %14914 = sst [smem:[#allocation38_spill]] %s12033_s25 }
  0x57   :  { %s12056_s24 = sld [smem:[%s14860_s0 + %s11777_s10]]  }
  0x58   :  { %s12061_s25 = sld [smem:[%s14860_s0 + %s11778_s16]]  }
  0x59   :  { %v212_v0 = vld [vmem:[%s11813_s9 + $0x8] sm:$0xff]  ;;  %v211_v1 = vld [vmem:[%s11813_s9] sm:$0xff]  ;;  %v11779_v2 = vmov 0   ;;  %v213_v5 = vld [vmem:[%s11813_s9 + $0x10] sm:$0xff] }
  0x5a   :  { %11276 = vset.pattern.permute.xlu1 %v11779_v2  ;;  %11274 = vset.pattern.permute.xlu0 %v11779_v2  ;;  %vm224_vm0 = vcmp.ne.f32.partialorder %v212_v0, %v212_v0  ;;  %vm223_vm1 = vcmp.ne.f32.partialorder %v211_v1, %v211_v1 }
  0x5b   :  { %v236_v3 = vsel %vm224_vm0, 0.0, %v212_v0  ;;  %v235_v4 = vsel %vm223_vm1, 0.0, %v211_v1 }
  0x5c   :  { %255 = vperm.xlu1 %11276, %v236_v3   ;;  %250 = vperm.xlu0 %11274, %v235_v4  }
  0x5d   :  { %108 = vsyncpa [#allocation3], 0  ;;  %vm225_vm2 = vcmp.ne.f32.partialorder %v213_v5, %v213_v5  ;;  %v11780_v6 = vmov 1   ;;  %v214_v7 = vld [vmem:[%s11813_s9 + $0x18] sm:$0xff]  ;;  %v215_v9 = vld [vmem:[%s11813_s9 + $0x20] sm:$0xff]  ;;  %v308_v27 = vlaneseq  ;;  %vm439_vm12 = vcmask 64512  }
  0x5e   :  { %v237_v8 = vsel %vm225_vm2, 0.0, %v213_v5  ;;  %vm226_vm3 = vcmp.ne.f32.partialorder %v214_v7, %v214_v7  ;;  %v431_v10 = vld [vmem:[%s8894_s14] sm:$0xff]  ;;  %vm227_vm4 = vcmp.ne.f32.partialorder %v215_v9, %v215_v9  ;;  %v216_v12 = vld [vmem:[%s11813_s9 + $0x28] sm:$0xff]  ;;  %v217_v14 = vld [vmem:[%s11813_s9 + $0x30] sm:$0xff]  ;;  %vm638_vm13 = vcmask 31744   ;;  %s11781_s0 = smov 120  }
  0x5f   :  { %v238_v11 = vsel %vm226_vm3, 0.0, %v214_v7  ;;  %10077 = vmatprep.subr.mxu0 %v431_v10  ;;  %v239_v13 = vsel %vm227_vm4, 0.0, %v215_v9  ;;  %vm228_vm5 = vcmp.ne.f32.partialorder %v216_v12, %v216_v12  ;;  %vm229_vm6 = vcmp.ne.f32.partialorder %v217_v14, %v217_v14  ;;  %v218_v16 = vld [vmem:[%s11813_s9 + $0x38] sm:$0xff]  ;;  %v219_v18 = vld [vmem:[%s11813_s9 + $0x40] sm:$0xff]  ;;  %v220_v20 = vld [vmem:[%s11813_s9 + $0x48] sm:$0xff]  ;;  %s14928_s14 = sld [smem:[#allocation5_spill]] }
  0x60   :  { %11277 = vset.pattern.permute.xlu1 %v11780_v6  ;;  %11275 = vset.pattern.permute.xlu0 %v11780_v6  ;;  %v240_v15 = vsel %vm228_vm5, 0.0, %v216_v12  ;;  %v241_v17 = vsel %vm229_vm6, 0.0, %v217_v14  ;;  %vm230_vm7 = vcmp.ne.f32.partialorder %v218_v16, %v218_v16  ;;  %vm231_vm8 = vcmp.ne.f32.partialorder %v219_v18, %v219_v18  ;;  %v221_v22 = vld [vmem:[%s11813_s9 + $0x50] sm:$0xff]  ;;  %v222_v24 = vld [vmem:[%s11813_s9 + $0x58] sm:$0xff]  ;;  %v247_v31 = vld [vmem:[%s11843_s3] sm:$0x3] }
  0x61   :  { %329 = vperm.xlu1 %11277, %v236_v3   ;;  %325 = vperm.xlu0 %11275, %v235_v4   ;;  %v242_v19 = vsel %vm230_vm7, 0.0, %v218_v16  ;;  %v243_v21 = vsel %vm231_vm8, 0.0, %v219_v18  ;;  %vm232_vm9 = vcmp.ne.f32.partialorder %v220_v20, %v220_v20  ;;  %vm233_vm10 = vcmp.ne.f32.partialorder %v221_v22, %v221_v22  ;;  %v12099_v42 = vld [vmem:[%s11838_s29] ss:$0 sm:$0xff]  ;;  %s11783_s9 = smov 116   ;;  %vm12260_vm14 = vmpackc.low %vm638_vm13, %vm638_vm13  ;;  %s11784_s29 = smov 124  }
  0x62   :  { %10078 = vmatpush3.msra.mxu0 %v431_v10  ;;  %v244_v23 = vsel %vm232_vm9, 0.0, %v220_v20  ;;  %v245_v25 = vsel %vm233_vm10, 0.0, %v221_v22  ;;  %vm234_vm11 = vcmp.ne.f32.partialorder %v222_v24, %v222_v24  ;;  %v12079_v28 = vshrl.u32 %v308_v27, 7  ;;  %s11785_s3 = smov 108   ;;  %s11794_s22 = smov 56  }
  0x63   :  { %v246_v26 = vsel %vm234_vm11, 0.0, %v222_v24  ;;  %vm848_vm0 = vcmask 785408   ;;  %s14935_s23 = sld [smem:[#allocation6_spill]]  ;;  %s14936_s26 = sld [smem:[#allocation10_spill]] }
  0x64   :  { %14915 = vst [vmem:[#allocation39_spill] sm:$0xff] %v12079_v28  ;;  %v12082_v29 = vsub.s32 0, %v12079_v28  ;;  %v12085_v30 = vsub.s32 1, %v12079_v28  ;;  %s11796_s28 = smov 40   ;;  %s14937_s1 = sld [smem:[#allocation9_spill]] }
  0x65   :  { %11278 = vset.pattern.permute.xlu1 %v11779_v2  ;;  %333 = vperm.xlu0 %11275, %v237_v8   ;;  %s14938_s2 = sld [smem:[#allocation12_spill]]  ;;  %s14939_s10 = sld [smem:[#allocation14_spill]] }
  0x66   :  { %260 = vperm.xlu1 %11278, %v237_v8   ;;  %14916 = vst [vmem:[#allocation40_spill] sm:$0xff] %v12082_v29  ;;  %14917 = vst [vmem:[#allocation41_spill] sm:$0xff] %v12085_v30  ;;  %v12089_v34 = vrot.slane %v247_v31, %v12082_v29  ;;  %v12092_v35 = vrot.slane %v247_v31, %v12085_v30  ;;  %s14940_s7 = sld [smem:[#allocation16_spill]]  ;;  %s14941_s11 = sld [smem:[#allocation15_spill]] }
  0x67   :  { %s14942_s16 = sld [smem:[#allocation11_spill]]  ;;  %s14943_s15 = sld [smem:[#allocation13_spill]] }
  0x68   :  { %s14944_s18 = sld [smem:[#allocation30_spill]] }
  0x69   :  { %337 = vperm.xlu0 %11275, %v238_v11  }
  0x6a   :  { %265 = vperm.xlu1 %11278, %v238_v11  }
  0x6d   :  { %341 = vperm.xlu0 %11275, %v239_v13  }
  0x6e   :  { %270 = vperm.xlu1 %11278, %v239_v13  }
  0x71   :  { %345 = vperm.xlu0 %11275, %v240_v15  }
  0x72   :  { %275 = vperm.xlu1 %11278, %v240_v15  }
  0x75   :  { %349 = vperm.xlu0 %11275, %v241_v17  }
  0x76   :  { %280 = vperm.xlu1 %11278, %v241_v17  }
  0x79   :  { %353 = vperm.xlu0 %11275, %v242_v19  }
  0x7a   :  { %285 = vperm.xlu1 %11278, %v242_v19  }
  0x7d   :  { %357 = vperm.xlu0 %11275, %v243_v21  }
  0x7e   :  { %290 = vperm.xlu1 %11278, %v243_v21  }
  0x81   :  { %361 = vperm.xlu0 %11275, %v244_v23  }
  0x82   :  { %295 = vperm.xlu1 %11278, %v244_v23  }
  0x85   :  { %365 = vperm.xlu0 %11275, %v245_v25  }
  0x86   :  { %300 = vperm.xlu1 %11278, %v245_v25  }
  0x89   :  { %369 = vperm.xlu0 %11275, %v246_v26  }
  0x8a   :  { %305 = vperm.xlu1 %11278, %v246_v26  }
  0x8d   :  { %11399 = vset.pattern.permute.xlu0 %v11779_v2 }
  0xdb   :  { %v256_v32 = vpop.permute.xlu1 %255  ;;  %v251_v33 = vpop.permute.xlu0 %250 }
  0xdc   :  { %v313_v38 = vmul.f32 %v12089_v34, %v256_v32  ;;  %v312_v39 = vmul.f32 %v12089_v34, %v251_v33 }
  0xe0   :  { %v330_v36 = vpop.permute.xlu1 %329  ;;  %v326_v37 = vpop.permute.xlu0 %325 }
  0xe1   :  { %v377_v40 = vmul.f32 %v12092_v35, %v330_v36  ;;  %v376_v41 = vmul.f32 %v12092_v35, %v326_v37 }
  0xe3   :  { %v389_v43 = vadd.f32 %v377_v40, %v313_v38  ;;  %v388_v44 = vadd.f32 %v376_v41, %v312_v39 }
  0xe4   :  { %v334_v45 = vpop.permute.xlu0 %333 }
  0xe5   :  { %v12102_v46 = vadd.f32 %v12099_v42, %v389_v43  ;;  %v378_v47 = vmul.f32 %v12092_v35, %v334_v45  ;;  %v261_v48 = vpop.permute.xlu1 %260  ;;  %v12106_v49 = vadd.f32 %v12099_v42, %v388_v44 }
  0xe6   :  { %v314_v50 = vmul.f32 %v12089_v34, %v261_v48 }
  0xe7   :  { %10079 = vmatprep.mubr.msk.f32.mxu0 %vm439_vm12, %v12106_v49 }
  0xe8   :  { %v390_v51 = vadd.f32 %v378_v47, %v314_v50  ;;  %10080 = vmatmul.mubr.msk.f32.vlgmr.msra.gmra.mrb[0].mxu0 %vm439_vm12, %v12102_v46  ;;  %v338_v52 = vpop.permute.xlu0 %337 }
  0xe9   :  { %v379_v53 = vmul.f32 %v12092_v35, %v338_v52  ;;  %v266_v54 = vpop.permute.xlu1 %265 }
  0xea   :  { %v12115_v55 = vadd.f32 %v12099_v42, %v390_v51  ;;  %v315_v56 = vmul.f32 %v12089_v34, %v266_v54  ;;  %v8898_v51 = vld [vmem:[%s12048_s5] ss:$0 sm:$0xff]  ;;  %s11782_s5 = smov 112  }
  0xec   :  { %v391_v57 = vadd.f32 %v379_v53, %v315_v56  ;;  %10082 = vmatprep.mubr.msk.f32.mxu0 %vm439_vm12, %v12115_v55  ;;  %v342_v58 = vpop.permute.xlu0 %341 }
  0xed   :  { %v380_v59 = vmul.f32 %v12092_v35, %v342_v58  ;;  %v271_v60 = vpop.permute.xlu1 %270 }
  0xee   :  { %v12122_v61 = vadd.f32 %v12099_v42, %v391_v57  ;;  %v316_v62 = vmul.f32 %v12089_v34, %v271_v60 }
  0xf0   :  { %v392_v63 = vadd.f32 %v380_v59, %v316_v62  ;;  %10083 = vmatmul.mubr.msk.f32.gmra.mrb[2].mxu0 %vm439_vm12, %v12122_v61  ;;  %v346_v0 = vpop.permute.xlu0 %345 }
  0xf1   :  { %v381_v1 = vmul.f32 %v12092_v35, %v346_v0  ;;  %v276_v2 = vpop.permute.xlu1 %275 }
  0xf2   :  { %v12129_v3 = vadd.f32 %v12099_v42, %v392_v63  ;;  %v317_v4 = vmul.f32 %v12089_v34, %v276_v2 }
  0xf4   :  { %v393_v5 = vadd.f32 %v381_v1, %v317_v4  ;;  %10085 = vmatprep.mubr.msk.f32.mxu0 %vm439_vm12, %v12129_v3  ;;  %v350_v6 = vpop.permute.xlu0 %349 }
  0xf5   :  { %v382_v7 = vmul.f32 %v12092_v35, %v350_v6  ;;  %v281_v8 = vpop.permute.xlu1 %280 }
  0xf6   :  { %v12136_v9 = vadd.f32 %v12099_v42, %v393_v5  ;;  %v318_v10 = vmul.f32 %v12089_v34, %v281_v8 }
  0xf8   :  { %v394_v11 = vadd.f32 %v382_v7, %v318_v10  ;;  %10086 = vmatmul.mubr.msk.f32.gmra.mrb[4].mxu0 %vm439_vm12, %v12136_v9  ;;  %v354_v12 = vpop.permute.xlu0 %353 }
  0xf9   :  { %v383_v13 = vmul.f32 %v12092_v35, %v354_v12  ;;  %v286_v14 = vpop.permute.xlu1 %285 }
  0xfa   :  { %v12143_v15 = vadd.f32 %v12099_v42, %v394_v11  ;;  %v319_v16 = vmul.f32 %v12089_v34, %v286_v14 }
  0xfc   :  { %v395_v17 = vadd.f32 %v383_v13, %v319_v16  ;;  %10088 = vmatprep.mubr.msk.f32.mxu0 %vm439_vm12, %v12143_v15  ;;  %v358_v18 = vpop.permute.xlu0 %357 }
  0xfd   :  { %v384_v19 = vmul.f32 %v12092_v35, %v358_v18  ;;  %v291_v20 = vpop.permute.xlu1 %290 }
  0xfe   :  { %v12150_v21 = vadd.f32 %v12099_v42, %v395_v17  ;;  %v320_v22 = vmul.f32 %v12089_v34, %v291_v20 }
 0x100   :  { %v396_v23 = vadd.f32 %v384_v19, %v320_v22  ;;  %10089 = vmatmul.mubr.msk.f32.gmra.mrb[6].mxu0 %vm439_vm12, %v12150_v21  ;;  %v362_v24 = vpop.permute.xlu0 %361 }
 0x101   :  { %v385_v25 = vmul.f32 %v12092_v35, %v362_v24  ;;  %v296_v26 = vpop.permute.xlu1 %295 }
 0x102   :  { %v12157_v27 = vadd.f32 %v12099_v42, %v396_v23  ;;  %v321_v31 = vmul.f32 %v12089_v34, %v296_v26 }
 0x104   :  { %v397_v32 = vadd.f32 %v385_v25, %v321_v31  ;;  %10091 = vmatprep.mubr.msk.f32.mxu0 %vm439_vm12, %v12157_v27  ;;  %v366_v33 = vpop.permute.xlu0 %365 }
 0x105   :  { %v386_v36 = vmul.f32 %v12092_v35, %v366_v33  ;;  %v301_v37 = vpop.permute.xlu1 %300 }
 0x106   :  { %v12164_v38 = vadd.f32 %v12099_v42, %v397_v32  ;;  %v322_v39 = vmul.f32 %v12089_v34, %v301_v37 }
 0x108   :  { %v398_v40 = vadd.f32 %v386_v36, %v322_v39  ;;  %10092 = vmatmul.mubr.msk.f32.gmra.mrb[8].mxu0 %vm439_vm12, %v12164_v38  ;;  %v370_v41 = vpop.permute.xlu0 %369 }
 0x109   :  { %v387_v43 = vmul.f32 %v12092_v35, %v370_v41  ;;  %v306_v44 = vpop.permute.xlu1 %305 }
 0x10a   :  { %v12171_v45 = vadd.f32 %v12099_v42, %v398_v40  ;;  %v323_v47 = vmul.f32 %v12089_v34, %v306_v44 }
 0x10c   :  { %14918 = vst [vmem:[#allocation42_spill] sm:$0xff] %v12171_v45  ;;  %v399_v48 = vadd.f32 %v387_v43, %v323_v47  ;;  %10094 = vmatprep.mubr.msk.f32.mxu0 %vm439_vm12, %v12171_v45 }
 0x10e   :  { %v12177_v50 = vadd.f32 %v12099_v42, %v399_v48 }
 0x110   :  { %10095 = vmatmul.mubr.msk.f32.gmra.mrb[10].mxu0 %vm439_vm12, %v12177_v50 }
 0x1bb   :  { %v10081_v52 = vpop.f32.mrb[0].mxu0 }
 0x1bc   :  { %v12182_v53 = vadd.f32 %v10081_v52, %v8898_v51  ;;  %v542_v35 = vpop.f32.mrb[1].mxu0 }
 0x1bd   :  { %v12184_v54 = vadd.f32 %v8898_v51, %v542_v35 }
 0x1bf   :  { %10121 = vmatprep.mubr.msk.f32.mxu1 %vm638_vm13, %v12184_v54  ;;  %v12190_v34 = vpack.i.bf16 %v12182_v53, %v12184_v54 }
 0x1c1   :  { %11280 = vrot.lane.b32.xlu1 %v12190_v34, %s11781_s0 }
 0x1c3   :  { %v10084_v42 = vpop.f32.mrb[2].mxu0 }
 0x1c4   :  { %v12194_v56 = vadd.f32 %v10084_v42, %v8898_v51  ;;  %v552_v57 = vpop.f32.mrb[3].mxu0 }
 0x1c5   :  { %v12196_v58 = vadd.f32 %v8898_v51, %v552_v57 }
 0x1c7   :  { %v12200_v59 = vpack.i.bf16 %v12194_v56, %v12196_v58 }
 0x1c9   :  { %11285 = vrot.lane.b32.xlu0 %v12200_v59, %s11781_s0 }
 0x1cb   :  { %v10087_v60 = vpop.f32.mrb[4].mxu0 }
 0x1cc   :  { %v12204_v62 = vadd.f32 %v10087_v60, %v8898_v51  ;;  %v562_v63 = vpop.f32.mrb[5].mxu0 }
 0x1cd   :  { %v12206_v0 = vadd.f32 %v8898_v51, %v562_v63 }
 0x1cf   :  { %v12210_v1 = vpack.i.bf16 %v12204_v62, %v12206_v0 }
 0x1d1   :  { %11290 = vrot.lane.b32.xlu1 %v12210_v1, %s11781_s0 }
 0x1d3   :  { %v10090_v2 = vpop.f32.mrb[6].mxu0 }
 0x1d4   :  { %v12214_v4 = vadd.f32 %v10090_v2, %v8898_v51  ;;  %v572_v5 = vpop.f32.mrb[7].mxu0 }
 0x1d5   :  { %v12216_v6 = vadd.f32 %v8898_v51, %v572_v5 }
 0x1d7   :  { %v12220_v7 = vpack.i.bf16 %v12214_v4, %v12216_v6 }
 0x1d9   :  { %11295 = vrot.lane.b32.xlu0 %v12220_v7, %s11781_s0 }
 0x1db   :  { %v10093_v8 = vpop.f32.mrb[8].mxu0 }
 0x1dc   :  { %v12224_v10 = vadd.f32 %v10093_v8, %v8898_v51  ;;  %v582_v11 = vpop.f32.mrb[9].mxu0 }
 0x1dd   :  { %v12226_v12 = vadd.f32 %v8898_v51, %v582_v11 }
 0x1df   :  { %v12230_v13 = vpack.i.bf16 %v12224_v10, %v12226_v12 }
 0x1e1   :  { %11300 = vrot.lane.b32.xlu1 %v12230_v13, %s11781_s0 }
 0x1e3   :  { %v10096_v14 = vpop.f32.mrb[10].mxu0 }
 0x1e4   :  { %v12234_v16 = vadd.f32 %v10096_v14, %v8898_v51  ;;  %v592_v17 = vpop.f32.mrb[11].mxu0 }
 0x1e5   :  { %v12236_v18 = vadd.f32 %v8898_v51, %v592_v17  ;;  %11310 = vrot.lane.b32.xlu1 %v12190_v34, %s11782_s5 }
 0x1e7   :  { %v12242_v19 = vpack.i.bf16 %v12234_v16, %v12236_v18 }
 0x1e9   :  { %11320 = vrot.lane.b32.xlu1 %v12210_v1, %s11782_s5  ;;  %11305 = vrot.lane.b32.xlu0 %v12242_v19, %s11781_s0 }
 0x1ed   :  { %11330 = vrot.lane.b32.xlu1 %v12230_v13, %s11782_s5  ;;  %11315 = vrot.lane.b32.xlu0 %v12200_v59, %s11782_s5 }
 0x1f1   :  { %11325 = vrot.lane.b32.xlu0 %v12220_v7, %s11782_s5 }
 0x1f5   :  { %11335 = vrot.lane.b32.xlu0 %v12190_v34, %s11783_s9 }
 0x1f9   :  { %11340 = vrot.lane.b32.xlu0 %v12242_v19, %s11782_s5 }
 0x233   :  { %v11281_v20 = vpop.permute.xlu1 %11280 }
 0x234   :  { %v11283_v22 = vunpack.i.h.bf16 %v11281_v20  ;;  %v11282_v23 = vunpack.i.l.bf16 %v11281_v20 }
 0x236   :  { %v10601_v25 = vpack.c.bf16 %v11283_v22, %v11282_v23 }
 0x238   :  { %10603 = vmatprep.subr.msk.bf16.mxu1 %vm12260_vm14, %v10601_v25 }
 0x239   :  { %10606 = vmatpush3.bf16.xpose.msk.msra.mxu1 %vm12260_vm14, %v10601_v25 }
 0x23b   :  { %v11286_v26 = vpop.permute.xlu0 %11285 }
 0x23c   :  { %v11288_v31 = vunpack.i.h.bf16 %v11286_v26  ;;  %v11287_v32 = vunpack.i.l.bf16 %v11286_v26 }
 0x23e   :  { %v10607_v33 = vpack.c.bf16 %v11288_v31, %v11287_v32 }
 0x240   :  { %10609 = vmatprep.subr.msk.bf16.mxu1 %vm12260_vm14, %v10607_v33 }
 0x241   :  { %10612 = vmatpush3.bf16.xpose.msk.msra.mxu1 %vm12260_vm14, %v10607_v33 }
 0x243   :  { %v11291_v36 = vpop.permute.xlu1 %11290 }
 0x244   :  { %v11293_v37 = vunpack.i.h.bf16 %v11291_v36  ;;  %v11292_v39 = vunpack.i.l.bf16 %v11291_v36 }
 0x246   :  { %v10613_v40 = vpack.c.bf16 %v11293_v37, %v11292_v39 }
 0x248   :  { %10615 = vmatprep.subr.msk.bf16.mxu1 %vm12260_vm14, %v10613_v40 }
 0x249   :  { %10618 = vmatpush3.bf16.xpose.msk.msra.mxu1 %vm12260_vm14, %v10613_v40 }
 0x24b   :  { %v11296_v41 = vpop.permute.xlu0 %11295 }
 0x24c   :  { %v11298_v43 = vunpack.i.h.bf16 %v11296_v41  ;;  %v11297_v44 = vunpack.i.l.bf16 %v11296_v41 }
 0x24e   :  { %v10619_v47 = vpack.c.bf16 %v11298_v43, %v11297_v44 }
 0x250   :  { %10621 = vmatprep.subr.msk.bf16.mxu1 %vm12260_vm14, %v10619_v47 }
 0x251   :  { %10624 = vmatpush3.bf16.xpose.msk.msra.mxu1 %vm12260_vm14, %v10619_v47 }
 0x253   :  { %v11301_v48 = vpop.permute.xlu1 %11300 }
 0x254   :  { %v11303_v51 = vunpack.i.h.bf16 %v11301_v48  ;;  %v11302_v52 = vunpack.i.l.bf16 %v11301_v48 }
 0x256   :  { %v10625_v35 = vpack.c.bf16 %v11303_v51, %v11302_v52 }
 0x257   :  { %v11311_v42 = vpop.permute.xlu1 %11310 }
 0x258   :  { %v11313_v57 = vunpack.i.h.bf16 %v11311_v42  ;;  %v11312_v60 = vunpack.i.l.bf16 %v11311_v42  ;;  %10627 = vmatprep.subr.msk.bf16.mxu1 %vm12260_vm14, %v10625_v35 }
 0x259   :  { %10630 = vmatpush3.bf16.xpose.msk.msra.mxu1 %vm12260_vm14, %v10625_v35 }
 0x25a   :  { %v10637_v63 = vpack.c.bf16 %v11313_v57, %v11312_v60  ;;  %v12316_v60 = vld [vmem:[%s11818_s13 + $0x8] sm:$0xff] }
 0x25b   :  { %v11306_v2 = vpop.permute.xlu0 %11305  ;;  %v11321_v11 = vpop.permute.xlu1 %11320  ;;  %vm825_vm15 = vcmp.gt.f32.partialorder %v12316_v60, 0.5 }
 0x25c   :  { %v11308_v5 = vunpack.i.h.bf16 %v11306_v2  ;;  %v11307_v8 = vunpack.i.l.bf16 %v11306_v2  ;;  %10638 = vmatprep.subr.bf16.mxu0 %v10637_v63  ;;  %v11323_v20 = vunpack.i.h.bf16 %v11321_v11  ;;  %v11322_v22 = vunpack.i.l.bf16 %v11321_v11  ;;  %v12324_v11 = vld [vmem:[%s11818_s13 + $0x18] sm:$0xff] }
 0x25d   :  { %10640 = vmatpush3.bf16.msra.mxu0 %v10637_v63  ;;  %v12319_v63 = vld [vmem:[%s11818_s13] sm:$0xff]  ;;  %vm827_vm2 = vcmp.gt.f32.partialorder %v12324_v11, 0.5 }
 0x25e   :  { %v10631_v14 = vpack.c.bf16 %v11308_v5, %v11307_v8  ;;  %v10645_v36 = vpack.c.bf16 %v11323_v20, %v11322_v22  ;;  %vm824_vm1 = vcmp.gt.f32.partialorder %v12319_v63, 0.5 }
 0x25f   :  { %v11316_v17 = vpop.permute.xlu0 %11315  ;;  %v11331_v37 = vpop.permute.xlu1 %11330 }
 0x260   :  { %v11318_v23 = vunpack.i.h.bf16 %v11316_v17  ;;  %v11317_v25 = vunpack.i.l.bf16 %v11316_v17  ;;  %10633 = vmatprep.subr.msk.bf16.mxu1 %vm12260_vm14, %v10631_v14  ;;  %v11333_v40 = vunpack.i.h.bf16 %v11331_v37  ;;  %v11332_v41 = vunpack.i.l.bf16 %v11331_v37  ;;  %v12327_v17 = vld [vmem:[%s11818_s13 + $0x10] sm:$0xff] }
 0x261   :  { %10636 = vmatpush3.bf16.xpose.msk.msra.mxu1 %vm12260_vm14, %v10631_v14  ;;  %vm826_vm3 = vcmp.gt.f32.partialorder %v12327_v17, 0.5 }
 0x262   :  { %v10641_v26 = vpack.c.bf16 %v11318_v23, %v11317_v25  ;;  %v10653_v51 = vpack.c.bf16 %v11333_v40, %v11332_v41 }
 0x263   :  { %v11326_v31 = vpop.permute.xlu0 %11325 }
 0x264   :  { %v11328_v32 = vunpack.i.h.bf16 %v11326_v31  ;;  %v11327_v33 = vunpack.i.l.bf16 %v11326_v31  ;;  %10642 = vmatprep.subr.bf16.mxu0 %v10641_v26 }
 0x265   :  { %10644 = vmatpush3.bf16.msra.mxu0 %v10641_v26 }
 0x266   :  { %10646 = vmatprep.subr.bf16.mxu0 %v10645_v36  ;;  %v10649_v43 = vpack.c.bf16 %v11328_v32, %v11327_v33  ;;  %v12344_v33 = vld [vmem:[%s11818_s13 + $0x28] sm:$0xff] }
 0x267   :  { %v11336_v39 = vpop.permute.xlu0 %11335  ;;  %vm829_vm4 = vcmp.gt.f32.partialorder %v12344_v33, 0.5 }
 0x268   :  { %10122 = vmatmul.mubr.msk.f32.vlgmr.msra.gmra.mrb[0].mxu1 %vm638_vm13, %v12182_v53  ;;  %v11338_v52 = vunpack.i.h.bf16 %v11336_v39  ;;  %v11337_v35 = vunpack.i.l.bf16 %v11336_v39 }
 0x269   :  { %10124 = vmatprep.mubr.msk.f32.mxu1 %vm638_vm13, %v12196_v58  ;;  %10648 = vmatpush3.bf16.msra.mxu0 %v10645_v36 }
 0x26a   :  { %10650 = vmatprep.subr.bf16.mxu0 %v10649_v43  ;;  %v12300_v57 = vpack.c.bf16 %v11338_v52, %v11337_v35 }
 0x26b   :  { %v11341_v44 = vpop.permute.xlu0 %11340 }
 0x26c   :  { %v11343_v47 = vunpack.i.h.bf16 %v11341_v44  ;;  %v11342_v48 = vunpack.i.l.bf16 %v11341_v44  ;;  %10125 = vmatmul.mubr.msk.f32.gmra.mrb[2].mxu1 %vm638_vm13, %v12194_v56 }
 0x26d   :  { %10127 = vmatprep.mubr.msk.f32.mxu1 %vm638_vm13, %v12206_v0  ;;  %10652 = vmatpush3.bf16.msra.mxu0 %v10649_v43 }
 0x26e   :  { %10654 = vmatprep.subr.bf16.mxu0 %v10653_v51  ;;  %v10657_v42 = vpack.c.bf16 %v11343_v47, %v11342_v48 }
 0x270   :  { %10128 = vmatmul.mubr.msk.f32.gmra.mrb[4].mxu1 %vm638_vm13, %v12204_v62 }
 0x271   :  { %10130 = vmatprep.mubr.msk.f32.mxu1 %vm638_vm13, %v12216_v6  ;;  %10656 = vmatpush3.bf16.msra.mxu0 %v10653_v51 }
 0x272   :  { %10658 = vmatprep.subr.bf16.mxu0 %v10657_v42 }
 0x274   :  { %10131 = vmatmul.mubr.msk.f32.gmra.mrb[6].mxu1 %vm638_vm13, %v12214_v4 }
 0x275   :  { %10133 = vmatprep.mubr.msk.f32.mxu1 %vm638_vm13, %v12226_v12  ;;  %10660 = vmatpush3.bf16.msra.mxu0 %v10657_v42 }
 0x276   :  { %10663 = vmatprep.subr.msk.bf16.mxu0 %vm12260_vm14, %v12300_v57 }
 0x278   :  { %10134 = vmatmul.mubr.msk.f32.gmra.mrb[8].mxu1 %vm638_vm13, %v12224_v10 }
 0x279   :  { %10136 = vmatprep.mubr.msk.f32.mxu1 %vm638_vm13, %v12236_v18 }
 0x27c   :  { %10137 = vmatmul.mubr.msk.f32.gmra.mrb[10].mxu1 %vm638_vm13, %v12234_v16 }
 0x33b   :  { %v10123_v2 = vpop.f32.mrb[0].mxu1 }
 0x33c   :  { %v813_v5 = vmul.f32 0.5, %v10123_v2  ;;  %v753_v8 = vpop.f32.mrb[1].mxu1 }
 0x33d   :  { %v812_v14 = vmul.f32 0.5, %v753_v8 }
 0x33e   :  { %v12331_v20 = vsel %vm825_vm15, %v813_v5, -1e+30 }
 0x33f   :  { %v10126_v22 = vpop.f32.mrb[2].mxu1  ;;  %v852_v23 = vsel %vm848_vm0, %v12331_v20, -inf  ;;  %v12337_v25 = vsel %vm824_vm1, %v812_v14, -1e+30  ;;  %v12370_v14 = vld [vmem:[%s11818_s13 + $0x20] sm:$0xff] }
 0x340   :  { %v815_v26 = vmul.f32 0.5, %v10126_v22  ;;  %853 = vmax.xlane.f32.xlu1 %v852_v23  ;;  %v763_v31 = vpop.f32.mrb[3].mxu1  ;;  %v849_v32 = vsel %vm848_vm0, %v12337_v25, -inf  ;;  %vm828_vm5 = vcmp.gt.f32.partialorder %v12370_v14, 0.5  ;;  %v12374_v23 = vld [vmem:[%s11818_s13 + $0x38] sm:$0xff] }
 0x341   :  { %v814_v36 = vmul.f32 0.5, %v763_v31  ;;  %850 = vmax.xlane.f32.xlu0 %v849_v32  ;;  %vm831_vm6 = vcmp.gt.f32.partialorder %v12374_v23, 0.5 }
 0x342   :  { %v12348_v37 = vsel %vm827_vm2, %v815_v26, -1e+30  ;;  %v12377_v26 = vld [vmem:[%s11818_s13 + $0x58] sm:$0xff] }
 0x343   :  { %v10129_v39 = vpop.f32.mrb[4].mxu1  ;;  %v858_v40 = vsel %vm848_vm0, %v12348_v37, -inf  ;;  %v12354_v41 = vsel %vm826_vm3, %v814_v36, -1e+30  ;;  %vm835_vm7 = vcmp.gt.f32.partialorder %v12377_v26, 0.5 }
 0x344   :  { %v817_v43 = vmul.f32 0.5, %v10129_v39  ;;  %v773_v44 = vpop.f32.mrb[5].mxu1  ;;  %v855_v47 = vsel %vm848_vm0, %v12354_v41, -inf  ;;  %v12386_v39 = vld [vmem:[%s11818_s13 + $0x30] sm:$0xff] }
 0x345   :  { %859 = vmax.xlane.f32.xlu0 %v858_v40  ;;  %856 = vmax.xlane.f32.xlu1 %v855_v47  ;;  %v816_v22 = vmul.f32 0.5, %v773_v44  ;;  %vm830_vm8 = vcmp.gt.f32.partialorder %v12386_v39, 0.5 }
 0x346   :  { %v12361_v48 = vsel %vm829_vm4, %v817_v43, -1e+30 }
 0x347   :  { %v10132_v51 = vpop.f32.mrb[6].mxu1  ;;  %v864_v52 = vsel %vm848_vm0, %v12361_v48, -inf  ;;  %v12381_v36 = vsel %vm828_vm5, %v816_v22, -1e+30 }
 0x348   :  { %v783_v35 = vpop.f32.mrb[7].mxu1  ;;  %v819_v31 = vmul.f32 0.5, %v10132_v51  ;;  %v861_v40 = vsel %vm848_vm0, %v12381_v36, -inf  ;;  %v12400_v51 = vld [vmem:[%s11818_s13 + $0x48] sm:$0xff] }
 0x349   :  { %865 = vmax.xlane.f32.xlu0 %v864_v52  ;;  %v818_v43 = vmul.f32 0.5, %v783_v35  ;;  %vm833_vm9 = vcmp.gt.f32.partialorder %v12400_v51, 0.5 }
 0x34a   :  { %v12392_v44 = vsel %vm831_vm6, %v819_v31, -1e+30  ;;  %v12412_v31 = vld [vmem:[%s11818_s13 + $0x40] sm:$0xff] }
 0x34b   :  { %v10135_v42 = vpop.f32.mrb[8].mxu1  ;;  %v870_v52 = vsel %vm848_vm0, %v12392_v44, -inf  ;;  %v12408_v22 = vsel %vm830_vm8, %v818_v43, -1e+30  ;;  %vm832_vm10 = vcmp.gt.f32.partialorder %v12412_v31, 0.5 }
 0x34c   :  { %v793_v2 = vpop.f32.mrb[9].mxu1  ;;  %v821_v35 = vmul.f32 0.5, %v10135_v42 }
 0x34e   :  { %v12418_v30 = vsel %vm833_vm9, %v821_v35, -1e+30 }
 0x34f   :  { %v10138_v5 = vpop.f32.mrb[10].mxu1  ;;  %v876_v42 = vsel %vm848_vm0, %v12418_v30, -inf }
 0x350   :  { %v803_v8 = vpop.f32.mrb[11].mxu1  ;;  %v823_v32 = vmul.f32 0.5, %v10138_v5 }
 0x352   :  { %v12396_v47 = vsel %vm835_vm7, %v823_v32, -1e+30  ;;  %v867_v32 = vsel %vm848_vm0, %v12408_v22, -inf }
 0x353   :  { %v882_v5 = vsel %vm848_vm0, %v12396_v47, -inf }
 0x356   :  { %11350 = vrot.lane.b32.xlu1 %v12210_v1, %s11783_s9 }
 0x35f   :  { %11345 = vrot.lane.b32.xlu0 %v12200_v59, %s11783_s9 }
 0x37a   :  { %862 = vmax.xlane.f32.xlu1 %v861_v40  ;;  %v820_v40 = vmul.f32 0.5, %v793_v2 }
 0x37c   :  { %v12425_v43 = vsel %vm832_vm10, %v820_v40, -1e+30 }
 0x37e   :  { %871 = vmax.xlane.f32.xlu1 %v870_v52  ;;  %883 = vmax.xlane.f32.xlu0 %v882_v5  ;;  %v873_v52 = vsel %vm848_vm0, %v12425_v43, -inf }
 0x382   :  { %868 = vmax.xlane.f32.xlu1 %v867_v32 }
 0x386   :  { %877 = vmax.xlane.f32.xlu1 %v876_v42 }
 0x38a   :  { %874 = vmax.xlane.f32.xlu1 %v873_v52 }
 0x394   :  { %1182 = vrot.lane.b32.xlu0 %v12196_v58, %s11784_s29  ;;  %v12452_v58 = vld [vmem:[%s11818_s13 + $0x50] sm:$0xff]  ;;  %s14925_s13 = sld [smem:[#allocation38_spill]] }
 0x395   :  { %vm834_vm11 = vcmp.gt.f32.partialorder %v12452_v58, 0.5 }
 0x398   :  { %1196 = vrot.lane.b32.xlu0 %v12224_v10, %s11784_s29  ;;  %v822_v10 = vmul.f32 0.5, %v803_v8 }
 0x39b   :  { %11355 = vrot.lane.b32.xlu1 %v12220_v7, %s11783_s9 }
 0x39c   :  { %1200 = vrot.lane.b32.xlu0 %v12234_v16, %s11784_s29 }
 0x39f   :  { %11360 = vrot.lane.b32.xlu1 %v12230_v13, %s11783_s9 }
 0x3a0   :  { %11370 = vrot.lane.b32.xlu0 %v12190_v34, %s11785_s3 }
 0x3a3   :  { %11365 = vrot.lane.b32.xlu1 %v12242_v19, %s11783_s9  ;;  %s14945_s9 = sld [smem:[#allocation18_spill]] }
 0x3a4   :  { %11380 = vrot.lane.b32.xlu0 %v12210_v1, %s11785_s3 }
 0x3a7   :  { %1178 = vrot.lane.b32.xlu1 %v12184_v54, %s11784_s29  ;;  %v12459_v54 = vsel %vm834_vm11, %v822_v10, -1e+30 }
 0x3ab   :  { %1180 = vrot.lane.b32.xlu1 %v12182_v53, %s11784_s29 }
 0x3af   :  { %1184 = vrot.lane.b32.xlu1 %v12194_v56, %s11784_s29  ;;  %v879_v56 = vsel %vm848_vm0, %v12459_v54, -inf }
 0x3cd   :  { %v854_v34 = vpop.xlane.xlu1 %853 }
 0x3ce   :  { %v886_v16 = vsub.f32 %v12331_v20, %v854_v34  ;;  %v851_v2 = vpop.xlane.xlu0 %850 }
 0x3cf   :  { %v885_v1 = vsub.f32 %v12337_v25, %v851_v2 }
 0x3d0   :  { %v899_v5 = vmul.f32 1.442695, %v886_v16 }
 0x3d1   :  { %v897_v53 = vmul.f32 1.442695, %v885_v1 }
 0x3d2   :  { %v860_v35 = vpop.xlane.xlu0 %859  ;;  %v857_v32 = vpop.xlane.xlu1 %856 }
 0x3d3   :  { %11480 = vpow2.f32 %v897_v53  ;;  %v888_v8 = vsub.f32 %v12348_v37, %v860_v35  ;;  %v887_v40 = vsub.f32 %v12354_v41, %v857_v32  ;;  %880 = vmax.xlane.f32.xlu1 %v879_v56 }
 0x3d4   :  { %11482 = vpow2.f32 %v899_v5 }
 0x3d5   :  { %v903_v20 = vmul.f32 1.442695, %v888_v8  ;;  %v901_v25 = vmul.f32 1.442695, %v887_v40 }
 0x3d6   :  { %v866_v42 = vpop.xlane.xlu0 %865  ;;  %v11351_v37 = vpop.permute.xlu1 %11350 }
 0x3d7   :  { %11484 = vpow2.f32 %v903_v20  ;;  %v11353_v53 = vunpack.i.h.bf16 %v11351_v37  ;;  %v11352_v35 = vunpack.i.l.bf16 %v11351_v37 }
 0x3d8   :  { %11486 = vpow2.f32 %v901_v25 }
 0x3d9   :  { %v10673_v32 = vpack.c.bf16 %v11353_v53, %v11352_v35 }
 0x3da   :  { %v11346_v52 = vpop.permute.xlu0 %11345 }
 0x3db   :  { %v11348_v10 = vunpack.i.h.bf16 %v11346_v52  ;;  %v11347_v34 = vunpack.i.l.bf16 %v11346_v52 }
 0x3dd   :  { %v12465_v16 = vpop.eup %11480  ;;  %v10667_v2 = vpack.c.bf16 %v11348_v10, %v11347_v34 }
 0x3de   :  { %v12467_v1 = vpop.eup %11482  ;;  %10163 = vmatprep.mubr.msk.f32.mxu0 %vm848_vm0, %v12465_v16 }
 0x3df   :  { %10164 = vmatmul.mubr.msk.f32.vlgmr.msra.gmra.mrb[12].mxu0 %vm848_vm0, %v12467_v1 }
 0x3e0   :  { %10666 = vmatpush3.bf16.xpose.msk.msra.mxu0 %vm12260_vm14, %v12300_v57 }
 0x3e1   :  { %v12476_v41 = vpop.eup %11484  ;;  %10669 = vmatprep.subr.msk.bf16.mxu0 %vm12260_vm14, %v10667_v2 }
 0x3e2   :  { %v12480_v5 = vpop.eup %11486 }
 0x3e3   :  { %10166 = vmatprep.mubr.msk.f32.mxu0 %vm848_vm0, %v12480_v5 }
 0x3e4   :  { %10167 = vmatmul.mubr.msk.f32.gmra.mrb[14].mxu0 %vm848_vm0, %v12476_v41  ;;  %1186 = vrot.lane.b32.xlu1 %v12206_v0, %s11784_s29 }
 0x3e8   :  { %10672 = vmatpush3.bf16.xpose.msk.msra.mxu0 %vm12260_vm14, %v10667_v2  ;;  %1188 = vrot.lane.b32.xlu1 %v12204_v62, %s11784_s29  ;;  %v890_v62 = vsub.f32 %v12361_v48, %v866_v42 }
 0x3e9   :  { %10675 = vmatprep.subr.msk.bf16.mxu0 %vm12260_vm14, %v10673_v32 }
 0x3ea   :  { %v907_v57 = vmul.f32 1.442695, %v890_v62 }
 0x3ec   :  { %1190 = vrot.lane.b32.xlu1 %v12216_v6, %s11784_s29 }
 0x3f0   :  { %10678 = vmatpush3.bf16.xpose.msk.msra.mxu0 %vm12260_vm14, %v10673_v32  ;;  %1192 = vrot.lane.b32.xlu1 %v12214_v4, %s11784_s29 }
 0x3f4   :  { %1194 = vrot.lane.b32.xlu1 %v12226_v12, %s11784_s29 }
 0x3f8   :  { %1198 = vrot.lane.b32.xlu1 %v12236_v18, %s11784_s29  ;;  %s14946_s29 = sld [smem:[#allocation17_spill]] }
 0x3fc   :  { %11375 = vrot.lane.b32.xlu1 %v12200_v59, %s11785_s3 }
 0x400   :  { %11385 = vrot.lane.b32.xlu1 %v12220_v7, %s11785_s3 }
 0x407   :  { %v863_v0 = vpop.xlane.xlu1 %862 }
 0x408   :  { %v889_v6 = vsub.f32 %v12381_v36, %v863_v0 }
 0x40a   :  { %v905_v56 = vmul.f32 1.442695, %v889_v6 }
 0x40b   :  { %v872_v4 = vpop.xlane.xlu1 %871  ;;  %v12510_v8 = vpop.xlane.xlu0 %883 }
 0x40c   :  { %11488 = vpow2.f32 %v905_v56  ;;  %v892_v12 = vsub.f32 %v12392_v44, %v872_v4 }
 0x40d   :  { %11490 = vpow2.f32 %v907_v57 }
 0x40e   :  { %v911_v7 = vmul.f32 1.442695, %v892_v12 }
 0x40f   :  { %v869_v18 = vpop.xlane.xlu1 %868  ;;  %v12513_v40 = vpop.permute.xlu0 %1182 }
 0x410   :  { %v891_v59 = vsub.f32 %v12408_v22, %v869_v18 }
 0x412   :  { %v909_v20 = vmul.f32 1.442695, %v891_v59 }
 0x413   :  { %v878_v48 = vpop.xlane.xlu1 %877  ;;  %v12516_v25 = vpop.permute.xlu0 %1196 }
 0x414   :  { %11492 = vpow2.f32 %v909_v20  ;;  %v894_v36 = vsub.f32 %v12418_v30, %v878_v48 }
 0x415   :  { %11494 = vpow2.f32 %v911_v7 }
 0x416   :  { %v12519_v42 = vpop.eup %11488  ;;  %v915_v34 = vmul.f32 1.442695, %v894_v36 }
 0x417   :  { %v12521_v52 = vpop.eup %11490  ;;  %10169 = vmatprep.mubr.msk.f32.mxu0 %vm848_vm0, %v12519_v42  ;;  %v875_v44 = vpop.xlane.xlu1 %874 }
 0x418   :  { %v12525_v10 = vpop.permute.xlu0 %1200  ;;  %v893_v22 = vsub.f32 %v12425_v43, %v875_v44  ;;  %10170 = vmatmul.mubr.msk.f32.gmra.mrb[16].mxu0 %vm848_vm0, %v12521_v52 }
 0x41a   :  { %v913_v2 = vmul.f32 1.442695, %v893_v22 }
 0x41b   :  { %v11356_v37 = vpop.permute.xlu1 %11355 }
 0x41c   :  { %v11371_v53 = vpop.permute.xlu0 %11370  ;;  %11496 = vpow2.f32 %v913_v2  ;;  %v11358_v30 = vunpack.i.h.bf16 %v11356_v37  ;;  %v11357_v35 = vunpack.i.l.bf16 %v11356_v37  ;;  %v896_v37 = vsub.f32 %v12396_v47, %v12510_v8 }
 0x41d   :  { %v11373_v32 = vunpack.i.h.bf16 %v11371_v53  ;;  %11498 = vpow2.f32 %v915_v34  ;;  %v11372_v62 = vunpack.i.l.bf16 %v11371_v53 }
 0x41e   :  { %v12530_v0 = vpop.eup %11492  ;;  %v10679_v6 = vpack.c.bf16 %v11358_v30, %v11357_v35  ;;  %v919_v35 = vmul.f32 1.442695, %v896_v37 }
 0x41f   :  { %v12532_v57 = vpop.eup %11494  ;;  %10172 = vmatprep.mubr.msk.f32.mxu0 %vm848_vm0, %v12530_v0  ;;  %v11361_v43 = vpop.permute.xlu1 %11360  ;;  %v10697_v56 = vpack.c.bf16 %v11373_v32, %v11372_v62 }
 0x420   :  { %v11363_v4 = vunpack.i.h.bf16 %v11361_v43  ;;  %v11362_v12 = vunpack.i.l.bf16 %v11361_v43  ;;  %10173 = vmatmul.mubr.msk.f32.gmra.mrb[18].mxu0 %vm848_vm0, %v12532_v57  ;;  %10681 = vmatprep.subr.msk.bf16.mxu0 %vm12260_vm14, %v10679_v6  ;;  %v11381_v8 = vpop.permute.xlu0 %11380 }
 0x421   :  { %10698 = vmatprep.subr.bf16.mxu1 %v10697_v56  ;;  %10684 = vmatpush3.bf16.xpose.msk.msra.mxu0 %vm12260_vm14, %v10679_v6 }
 0x422   :  { %v10685_v18 = vpack.c.bf16 %v11363_v4, %v11362_v12  ;;  %10700 = vmatpush3.bf16.msra.mxu1 %v10697_v56 }
 0x423   :  { %v11366_v59 = vpop.permute.xlu1 %11365 }
 0x424   :  { %v11368_v7 = vunpack.i.h.bf16 %v11366_v59  ;;  %v11367_v20 = vunpack.i.l.bf16 %v11366_v59  ;;  %10687 = vmatprep.subr.msk.bf16.mxu0 %vm12260_vm14, %v10685_v18  ;;  %v11382_v59 = vunpack.i.l.bf16 %v11381_v8 }
 0x426   :  { %v12544_v48 = vpop.eup %11496  ;;  %v10691_v44 = vpack.c.bf16 %v11368_v7, %v11367_v20 }
 0x427   :  { %v12546_v36 = vpop.eup %11498  ;;  %10175 = vmatprep.mubr.msk.f32.mxu0 %vm848_vm0, %v12544_v48  ;;  %v1179_v22 = vpop.permute.xlu1 %1178 }
 0x428   :  { %10176 = vmatmul.mubr.msk.f32.gmra.mrb[20].mxu0 %vm848_vm0, %v12546_v36 }
 0x429   :  { %10690 = vmatpush3.bf16.xpose.msk.msra.mxu0 %vm12260_vm14, %v10685_v18  ;;  %v11383_v18 = vunpack.i.h.bf16 %v11381_v8 }
 0x42a   :  { %10693 = vmatprep.subr.msk.bf16.mxu0 %vm12260_vm14, %v10691_v44 }
 0x42b   :  { %v1181_v34 = vpop.permute.xlu1 %1180 }
 0x42f   :  { %v1185_v2 = vpop.permute.xlu1 %1184 }
 0x431   :  { %10696 = vmatpush3.bf16.xpose.msk.msra.mxu0 %vm12260_vm14, %v10691_v44  ;;  %vm1790_vm14 = vcmask 1043456  }
 0x460   :  { %v881_v53 = vpop.xlane.xlu1 %880 }
 0x461   :  { %v895_v30 = vsub.f32 %v12459_v54, %v881_v53 }
 0x463   :  { %v917_v32 = vmul.f32 1.442695, %v895_v30 }
 0x464   :  { %v1187_v62 = vpop.permute.xlu1 %1186 }
 0x465   :  { %11500 = vpow2.f32 %v917_v32 }
 0x466   :  { %11502 = vpow2.f32 %v919_v35 }
 0x468   :  { %v1189_v6 = vpop.permute.xlu1 %1188 }
 0x46c   :  { %v1191_v43 = vpop.permute.xlu1 %1190 }
 0x46f   :  { %v12561_v56 = vpop.eup %11500 }
 0x470   :  { %v12563_v24 = vpop.eup %11502  ;;  %10178 = vmatprep.mubr.msk.f32.mxu0 %vm848_vm0, %v12561_v56  ;;  %v1193_v4 = vpop.permute.xlu1 %1192 }
 0x471   :  { %10179 = vmatmul.mubr.msk.f32.gmra.mrb[22].mxu0 %vm848_vm0, %v12563_v24 }
 0x472   :  { %10205 = vmatprep.mubr.msk.f32.mxu0 %vm638_vm13, %v1179_v22 }
 0x474   :  { %v1195_v47 = vpop.permute.xlu1 %1194 }
 0x475   :  { %10206 = vmatmul.mubr.msk.f32.vlgmr.msra.gmra.mrb[24].mxu0 %vm638_vm13, %v1181_v34 }
 0x476   :  { %10208 = vmatprep.mubr.msk.f32.mxu0 %vm638_vm13, %v12513_v40  ;;  %v10705_v40 = vpack.c.bf16 %v11383_v18, %v11382_v59 }
 0x478   :  { %v1199_v54 = vpop.permute.xlu1 %1198 }
 0x479   :  { %10209 = vmatmul.mubr.msk.f32.gmra.mrb[26].mxu0 %vm638_vm13, %v1185_v2 }
 0x47a   :  { %10211 = vmatprep.mubr.msk.f32.mxu0 %vm638_vm13, %v1187_v62 }
 0x47c   :  { %v11376_v12 = vpop.permute.xlu1 %11375 }
 0x47d   :  { %v11378_v7 = vunpack.i.h.bf16 %v11376_v12  ;;  %v11377_v20 = vunpack.i.l.bf16 %v11376_v12  ;;  %10212 = vmatmul.mubr.msk.f32.gmra.mrb[28].mxu0 %vm638_vm13, %v1189_v6 }
 0x47e   :  { %10214 = vmatprep.mubr.msk.f32.mxu0 %vm638_vm13, %v1191_v43 }
 0x47f   :  { %v10701_v44 = vpack.c.bf16 %v11378_v7, %v11377_v20 }
 0x480   :  { %v11386_v22 = vpop.permute.xlu1 %11385 }
 0x481   :  { %v11388_v34 = vunpack.i.h.bf16 %v11386_v22  ;;  %v11387_v37 = vunpack.i.l.bf16 %v11386_v22  ;;  %10215 = vmatmul.mubr.msk.f32.gmra.mrb[30].mxu0 %vm638_vm13, %v1193_v4  ;;  %10702 = vmatprep.subr.bf16.mxu1 %v10701_v44 }
 0x482   :  { %10217 = vmatprep.mubr.msk.f32.mxu0 %vm638_vm13, %v1195_v47  ;;  %10704 = vmatpush3.bf16.msra.mxu1 %v10701_v44 }
 0x483   :  { %10706 = vmatprep.subr.bf16.mxu1 %v10705_v40  ;;  %v10709_v2 = vpack.c.bf16 %v11388_v34, %v11387_v37 }
 0x485   :  { %10218 = vmatmul.mubr.msk.f32.gmra.mrb[32].mxu0 %vm638_vm13, %v12516_v25 }
 0x486   :  { %10220 = vmatprep.mubr.msk.f32.mxu0 %vm638_vm13, %v1199_v54  ;;  %10708 = vmatpush3.bf16.msra.mxu1 %v10705_v40 }
 0x487   :  { %10710 = vmatprep.subr.bf16.mxu1 %v10709_v2 }
 0x489   :  { %10221 = vmatmul.mubr.msk.f32.gmra.mrb[34].mxu0 %vm638_vm13, %v12525_v10 }
 0x48a   :  { %10712 = vmatpush3.bf16.msra.mxu1 %v10709_v2 }
 0x4b2   :  { %v12584_v53 = vpop.f32.mrb[12].mxu0 }
 0x4b3   :  { %v12586_v30 = vpop.f32.mrb[13].mxu0 }
 0x4b7   :  { %v12588_v35 = vpop.f32.mrb[14].mxu0 }
 0x4b8   :  { %v12590_v32 = vpop.f32.mrb[15].mxu0 }
 0x4eb   :  { %v12592_v62 = vpop.f32.mrb[16].mxu0 }
 0x4ec   :  { %v12594_v25 = vpop.f32.mrb[17].mxu0 }
 0x4f3   :  { %v12596_v6 = vpop.f32.mrb[18].mxu0 }
 0x4f4   :  { %v12598_v43 = vpop.f32.mrb[19].mxu0 }
 0x4fb   :  { %v12600_v4 = vpop.f32.mrb[20].mxu0 }
 0x4fc   :  { %v12602_v10 = vpop.f32.mrb[21].mxu0 }
 0x544   :  { %v12604_v47 = vpop.f32.mrb[22].mxu0 }
 0x545   :  { %v12606_v54 = vpop.f32.mrb[23].mxu0 }
 0x548   :  { %v10207_v8 = vpop.f32.mrb[24].mxu0 }
 0x549   :  { %v1400_v12 = vmul.f32 0.5, %v10207_v8  ;;  %v1340_v18 = vpop.f32.mrb[25].mxu0 }
 0x54a   :  { %v1399_v59 = vmul.f32 0.5, %v1340_v18 }
 0x54b   :  { %v1412_v7 = vsel %vm825_vm15, %v1400_v12, -1e+30  ;;  %vm5550_vm15 = vcmask 261120  }
 0x54c   :  { %v10210_v20 = vpop.f32.mrb[26].mxu0  ;;  %v1426_v44 = vsel %vm848_vm0, %v1412_v7, -inf  ;;  %v1411_v22 = vsel %vm824_vm1, %v1399_v59, -1e+30  ;;  %vm11795_vm1 = vmmov 1  }
 0x54d   :  { %v1402_v34 = vmul.f32 0.5, %v10210_v20  ;;  %1427 = vmax.xlane.f32.xlu0 %v1426_v44  ;;  %v1350_v37 = vpop.f32.mrb[27].mxu0  ;;  %v1423_v40 = vsel %vm848_vm0, %v1411_v22, -inf }
 0x54e   :  { %v1401_v2 = vmul.f32 0.5, %v1350_v37  ;;  %1424 = vmax.xlane.f32.xlu1 %v1423_v40 }
 0x54f   :  { %v1414_v8 = vsel %vm827_vm2, %v1402_v34, -1e+30  ;;  %vm14530_vm2 = vmpackc.low %vm1790_vm14, %vm11795_vm1 }
 0x550   :  { %v10213_v18 = vpop.f32.mrb[28].mxu0  ;;  %v1432_v60 = vsel %vm848_vm0, %v1414_v8, -inf  ;;  %v1413_v12 = vsel %vm826_vm3, %v1401_v2, -1e+30  ;;  %vm5737_vm3 = vcmask 97280  }
 0x551   :  { %v1404_v29 = vmul.f32 0.5, %v10213_v18  ;;  %v1360_v28 = vpop.f32.mrb[29].mxu0  ;;  %v1429_v63 = vsel %vm848_vm0, %v1413_v12, -inf }
 0x552   :  { %v1403_v59 = vmul.f32 0.5, %v1360_v28  ;;  %1433 = vmax.xlane.f32.xlu1 %v1432_v60  ;;  %1430 = vmax.xlane.f32.xlu0 %v1429_v63 }
 0x553   :  { %v1416_v20 = vsel %vm829_vm4, %v1404_v29, -1e+30  ;;  %vm5741_vm4 = vcmask 93184  }
 0x554   :  { %v10216_v44 = vpop.f32.mrb[30].mxu0  ;;  %v1438_v11 = vsel %vm848_vm0, %v1416_v20, -inf  ;;  %v1415_v34 = vsel %vm828_vm5, %v1403_v59, -1e+30  ;;  %vm6792_vm5 = vcmask 257024  }
 0x555   :  { %v1406_v37 = vmul.f32 0.5, %v10216_v44  ;;  %v1370_v40 = vpop.f32.mrb[31].mxu0  ;;  %v1435_v17 = vsel %vm848_vm0, %v1415_v34, -inf }
 0x556   :  { %v1405_v2 = vmul.f32 0.5, %v1370_v40  ;;  %1439 = vmax.xlane.f32.xlu0 %v1438_v11  ;;  %1436 = vmax.xlane.f32.xlu1 %v1435_v17 }
 0x557   :  { %v12628_v28 = vsel %vm831_vm6, %v1406_v37, -1e+30  ;;  %vm6942_vm6 = vcmask 523264  }
 0x558   :  { %v10219_v18 = vpop.f32.mrb[32].mxu0  ;;  %v1444_v29 = vsel %vm848_vm0, %v12628_v28, -inf  ;;  %v1417_v14 = vsel %vm830_vm8, %v1405_v2, -1e+30  ;;  %vm8830_vm8 = vcmask 81920  }
 0x559   :  { %v1408_v33 = vmul.f32 0.5, %v10219_v18  ;;  %v1380_v60 = vpop.f32.mrb[33].mxu0  ;;  %v1441_v37 = vsel %vm848_vm0, %v1417_v14, -inf }
 0x55a   :  { %v1407_v63 = vmul.f32 0.5, %v1380_v60  ;;  %1445 = vmax.xlane.f32.xlu1 %v1444_v29 }
 0x55b   :  { %v12636_v59 = vsel %vm833_vm9, %v1408_v33, -1e+30 }
 0x55c   :  { %v10222_v44 = vpop.f32.mrb[34].mxu0  ;;  %v1450_v23 = vsel %vm848_vm0, %v12636_v59, -inf  ;;  %v1419_v17 = vsel %vm832_vm10, %v1407_v63, -1e+30 }
 0x55d   :  { %1451 = vmax.xlane.f32.xlu0 %v1450_v23  ;;  %v1390_v11 = vpop.f32.mrb[35].mxu0  ;;  %v1410_v40 = vmul.f32 0.5, %v10222_v44  ;;  %v1447_v39 = vsel %vm848_vm0, %v1419_v17, -inf }
 0x55e   :  { %1442 = vmax.xlane.f32.xlu1 %v1441_v37  ;;  %v1409_v2 = vmul.f32 0.5, %v1390_v11 }
 0x55f   :  { %v12646_v51 = vsel %vm835_vm7, %v1410_v40, -1e+30  ;;  %vm11798_vm7 = vmmov 0  }
 0x560   :  { %v1456_v18 = vsel %vm848_vm0, %v12646_v51, -inf  ;;  %v12652_v29 = vsel %vm834_vm11, %v1409_v2, -1e+30 }
 0x561   :  { %v1453_v31 = vsel %vm848_vm0, %v12652_v29, -inf }
 0x562   :  { %1448 = vmax.xlane.f32.xlu1 %v1447_v39 }
 0x566   :  { %1457 = vmax.xlane.f32.xlu1 %v1456_v18 }
 0x56a   :  { %1454 = vmax.xlane.f32.xlu1 %v1453_v31 }
 0x573   :  { %11390 = vrot.lane.b32.xlu0 %v12230_v13, %s11785_s3 }
 0x57b   :  { %11395 = vrot.lane.b32.xlu1 %v12242_v19, %s11785_s3  ;;  %s14949_s3 = sld [smem:[#allocation23_spill]] }
 0x5da   :  { %v1428_v26 = vpop.xlane.xlu0 %1427 }
 0x5db   :  { %v1460_v33 = vsub.f32 %v1412_v7, %v1428_v26  ;;  %v1425_v60 = vpop.xlane.xlu1 %1424 }
 0x5dc   :  { %v1459_v63 = vsub.f32 %v1411_v22, %v1425_v60 }
 0x5dd   :  { %v1473_v44 = vmul.f32 1.442695, %v1460_v33 }
 0x5de   :  { %v1471_v23 = vmul.f32 1.442695, %v1459_v63 }
 0x5df   :  { %11504 = vpow2.f32 %v1473_v44  ;;  %v1431_v58 = vpop.xlane.xlu0 %1430  ;;  %v1434_v11 = vpop.xlane.xlu1 %1433 }
 0x5e0   :  { %11506 = vpow2.f32 %v1471_v23  ;;  %v1461_v37 = vsub.f32 %v1413_v12, %v1431_v58  ;;  %v1462_v40 = vsub.f32 %v1414_v8, %v1434_v11 }
 0x5e2   :  { %v1477_v39 = vmul.f32 1.442695, %v1462_v40  ;;  %v1475_v2 = vmul.f32 1.442695, %v1461_v37 }
 0x5e3   :  { %v1440_v18 = vpop.xlane.xlu0 %1439  ;;  %v1437_v31 = vpop.xlane.xlu1 %1436 }
 0x5e4   :  { %v1464_v13 = vsub.f32 %v1416_v20, %v1440_v18  ;;  %11508 = vpow2.f32 %v1477_v39  ;;  %v1463_v45 = vsub.f32 %v1415_v34, %v1437_v31 }
 0x5e5   :  { %11510 = vpow2.f32 %v1475_v2 }
 0x5e6   :  { %v1481_v19 = vmul.f32 1.442695, %v1464_v13  ;;  %v1479_v12 = vmul.f32 1.442695, %v1463_v45 }
 0x5e7   :  { %v1446_v7 = vpop.xlane.xlu1 %1445 }
 0x5e8   :  { %11512 = vpow2.f32 %v1481_v19  ;;  %v1466_v34 = vsub.f32 %v12628_v28, %v1446_v7 }
 0x5e9   :  { %v12660_v26 = vpop.eup %11504  ;;  %11514 = vpow2.f32 %v1479_v12 }
 0x5ea   :  { %v11507_v22 = vpop.eup %11506  ;;  %v1452_v33 = vpop.xlane.xlu0 %1451  ;;  %v1498_v60 = vsel %vm848_vm0, %v12660_v26, 0.0  ;;  %v1485_v13 = vmul.f32 1.442695, %v1466_v34 }
 0x5eb   :  { %1499 = vadd.xlane.f32.xlu1 %v1498_v60  ;;  %10247 = vmatprep.mubr.msk.f32.mxu1 %vm848_vm0, %v11507_v22  ;;  %v1443_v8 = vpop.xlane.xlu1 %1442  ;;  %v1495_v20 = vsel %vm848_vm0, %v11507_v22, 0.0 }
 0x5ec   :  { %v1465_v63 = vsub.f32 %v1417_v14, %v1443_v8  ;;  %1496 = vadd.xlane.f32.xlu0 %v1495_v20  ;;  %v1468_v14 = vsub.f32 %v12636_v59, %v1452_v33 }
 0x5ee   :  { %v11391_v44 = vpop.permute.xlu0 %11390  ;;  %v11509_v23 = vpop.eup %11508  ;;  %v1483_v58 = vmul.f32 1.442695, %v1465_v63 }
 0x5ef   :  { %v11393_v11 = vunpack.i.h.bf16 %v11391_v44  ;;  %v11392_v37 = vunpack.i.l.bf16 %v11391_v44  ;;  %v1449_v40 = vpop.xlane.xlu1 %1448  ;;  %v1504_v45 = vsel %vm848_vm0, %v11509_v23, 0.0  ;;  %v11511_v2 = vpop.eup %11510 }
 0x5f0   :  { %v1467_v39 = vsub.f32 %v1419_v17, %v1449_v40  ;;  %1505 = vadd.xlane.f32.xlu0 %v1504_v45  ;;  %11516 = vpow2.f32 %v1483_v58  ;;  %v1501_v28 = vsel %vm848_vm0, %v11511_v2, 0.0  ;;  %v1489_v17 = vmul.f32 1.442695, %v1468_v14 }
 0x5f1   :  { %v10713_v18 = vpack.c.bf16 %v11393_v11, %v11392_v37 }
 0x5f2   :  { %v1487_v31 = vmul.f32 1.442695, %v1467_v39  ;;  %v11513_v7 = vpop.eup %11512 }
 0x5f3   :  { %v1458_v19 = vpop.xlane.xlu1 %1457  ;;  %10714 = vmatprep.subr.bf16.mxu1 %v10713_v18  ;;  %v1510_v8 = vsel %vm848_vm0, %v11513_v7, 0.0  ;;  %v11515_v20 = vpop.eup %11514 }
 0x5f4   :  { %11518 = vpow2.f32 %v1487_v31  ;;  %10716 = vmatpush3.bf16.msra.mxu1 %v10713_v18  ;;  %1502 = vadd.xlane.f32.xlu0 %v1501_v28  ;;  %v1470_v22 = vsub.f32 %v12646_v51, %v1458_v19  ;;  %v1507_v58 = vsel %vm848_vm0, %v11515_v20, 0.0  ;;  %v921_v28 = vsel %vm848_vm0, %v12465_v16, 0.0 }
 0x5f5   :  { %11520 = vpow2.f32 %v1485_v13  ;;  %v933_v16 = vsel %vm848_vm0, %v12519_v42, 0.0  ;;  %v942_v42 = vsel %vm848_vm0, %v12532_v57, 0.0 }
 0x5f6   :  { %11522 = vpow2.f32 %v1489_v17  ;;  %v1493_v33 = vmul.f32 1.442695, %v1470_v22  ;;  %v951_v17 = vsel %vm848_vm0, %v12561_v56, 0.0  ;;  %v601_v22 = vld [vmem:[%s12043_s27] sm:$0xff]  ;;  %s11792_s27 = smov 48  }
 0x5f7   :  { %v1455_v60 = vpop.xlane.xlu1 %1454 }
 0x5f8   :  { %v1469_v12 = vsub.f32 %v12652_v29, %v1455_v60  ;;  %1511 = vadd.xlane.f32.xlu0 %v1510_v8 }
 0x5fa   :  { %v1491_v59 = vmul.f32 1.442695, %v1469_v12  ;;  %v11517_v11 = vpop.eup %11516 }
 0x5fb   :  { %v11396_v63 = vpop.permute.xlu1 %11395  ;;  %v1513_v40 = vsel %vm848_vm0, %v11517_v11, 0.0 }
 0x5fc   :  { %11524 = vpow2.f32 %v1491_v59  ;;  %v11398_v34 = vunpack.i.h.bf16 %v11396_v63  ;;  %v11397_v44 = vunpack.i.l.bf16 %v11396_v63  ;;  %1508 = vadd.xlane.f32.xlu0 %v1507_v58 }
 0x5fd   :  { %11526 = vpow2.f32 %v1493_v33 }
 0x5fe   :  { %v11519_v37 = vpop.eup %11518  ;;  %v10717_v51 = vpack.c.bf16 %v11398_v34, %v11397_v44 }
 0x5ff   :  { %v1519_v29 = vsel %vm848_vm0, %v11519_v37, 0.0  ;;  %v11521_v39 = vpop.eup %11520 }
 0x600   :  { %1520 = vadd.xlane.f32.xlu1 %v1519_v29  ;;  %10718 = vmatprep.subr.bf16.mxu1 %v10717_v51  ;;  %v1516_v45 = vsel %vm848_vm0, %v11521_v39, 0.0  ;;  %v11523_v18 = vpop.eup %11522 }
 0x601   :  { %1514 = vadd.xlane.f32.xlu0 %v1513_v40  ;;  %10720 = vmatpush3.bf16.msra.mxu1 %v10717_v51  ;;  %v1522_v14 = vsel %vm848_vm0, %v11523_v18, 0.0 }
 0x604   :  { %10248 = vmatmul.mubr.msk.f32.vlgmr.msra.gmra.mrb[12].mxu1 %vm848_vm0, %v12660_v26 }
 0x605   :  { %1517 = vadd.xlane.f32.xlu0 %v1516_v45  ;;  %10250 = vmatprep.mubr.msk.f32.mxu1 %vm848_vm0, %v11511_v2  ;;  %v927_v2 = vsel %vm848_vm0, %v12480_v5, 0.0  ;;  %v936_v5 = vsel %vm848_vm0, %v12521_v52, 0.0  ;;  %v954_v52 = vsel %vm848_vm0, %v12563_v24, 0.0 }
 0x606   :  { %v11525_v31 = vpop.eup %11524 }
 0x607   :  { %v1525_v13 = vsel %vm848_vm0, %v11525_v31, 0.0  ;;  %v11527_v19 = vpop.eup %11526 }
 0x608   :  { %1526 = vadd.xlane.f32.xlu1 %v1525_v13  ;;  %10251 = vmatmul.mubr.msk.f32.gmra.mrb[14].mxu1 %vm848_vm0, %v11509_v23  ;;  %v1528_v26 = vsel %vm848_vm0, %v11527_v19, 0.0  ;;  %v924_v23 = vsel %vm848_vm0, %v12467_v1, 0.0  ;;  %v939_v1 = vsel %vm848_vm0, %v12530_v0, 0.0  ;;  %v948_v0 = vsel %vm848_vm0, %v12546_v36, 0.0 }
 0x609   :  { %1523 = vadd.xlane.f32.xlu0 %v1522_v14  ;;  %10253 = vmatprep.mubr.msk.f32.mxu1 %vm848_vm0, %v11515_v20 }
 0x60c   :  { %922 = vadd.xlane.f32.xlu1 %v921_v28  ;;  %10254 = vmatmul.mubr.msk.f32.gmra.mrb[16].mxu1 %vm848_vm0, %v11513_v7  ;;  %v930_v7 = vsel %vm848_vm0, %v12476_v41, 0.0  ;;  %v945_v41 = vsel %vm848_vm0, %v12544_v48, 0.0  ;;  %v1753_v48 = vrot.slane %v601_v22, 4 }
 0x60d   :  { %1529 = vadd.xlane.f32.xlu0 %v1528_v26  ;;  %10256 = vmatprep.mubr.msk.f32.mxu1 %vm848_vm0, %v11517_v11 }
 0x60e   :  { %10265 = vmatprep.subr.msk.mxu1 %vm1790_vm14, %v1753_v48 }
 0x60f   :  { %10266 = vmatpush3.msk.msra.mxu1 %vm1790_vm14, %v1753_v48 }
 0x610   :  { %928 = vadd.xlane.f32.xlu1 %v927_v2  ;;  %10257 = vmatmul.mubr.msk.f32.gmra.mrb[18].mxu1 %vm848_vm0, %v11521_v39 }
 0x611   :  { %925 = vadd.xlane.f32.xlu0 %v924_v23  ;;  %10259 = vmatprep.mubr.msk.f32.mxu1 %vm848_vm0, %v11519_v37 }
 0x612   :  { %10285 = vmatprep.subr.msk.mxu1 %vm1790_vm14, %v601_v22 }
 0x614   :  { %934 = vadd.xlane.f32.xlu1 %v933_v16  ;;  %10260 = vmatmul.mubr.msk.f32.gmra.mrb[20].mxu1 %vm848_vm0, %v11523_v18 }
 0x615   :  { %931 = vadd.xlane.f32.xlu0 %v930_v7  ;;  %10262 = vmatprep.mubr.msk.f32.mxu1 %vm848_vm0, %v11525_v31 }
 0x618   :  { %940 = vadd.xlane.f32.xlu1 %v939_v1  ;;  %10263 = vmatmul.mubr.msk.f32.gmra.mrb[22].mxu1 %vm848_vm0, %v11527_v19 }
 0x619   :  { %937 = vadd.xlane.f32.xlu0 %v936_v5 }
 0x61c   :  { %946 = vadd.xlane.f32.xlu1 %v945_v41 }
 0x61d   :  { %943 = vadd.xlane.f32.xlu0 %v942_v42 }
 0x620   :  { %952 = vadd.xlane.f32.xlu1 %v951_v17 }
 0x621   :  { %949 = vadd.xlane.f32.xlu0 %v948_v0 }
 0x625   :  { %955 = vadd.xlane.f32.xlu0 %v954_v52 }
 0x678   :  { %v1500_v59 = vpop.xlane.xlu1 %1499 }
 0x679   :  { %v1497_v57 = vpop.xlane.xlu0 %1496 }
 0x67a   :  { %11528 = vrcp.f32 %v1497_v57 }
 0x67b   :  { %11530 = vrcp.f32 %v1500_v59 }
 0x67d   :  { %v1506_v56 = vpop.xlane.xlu0 %1505 }
 0x681   :  { %v1503_v60 = vpop.xlane.xlu0 %1502 }
 0x682   :  { %11532 = vrcp.f32 %v1503_v60 }
 0x683   :  { %11534 = vrcp.f32 %v1506_v56 }
 0x684   :  { %v11529_v11 = vpop.eup %11528 }
 0x685   :  { %v1512_v12 = vpop.xlane.xlu0 %1511  ;;  %v11531_v29 = vpop.eup %11530 }
 0x689   :  { %v1509_v36 = vpop.xlane.xlu0 %1508 }
 0x68a   :  { %11536 = vrcp.f32 %v1509_v36 }
 0x68b   :  { %11538 = vrcp.f32 %v1512_v12 }
 0x68c   :  { %v11533_v31 = vpop.eup %11532 }
 0x68d   :  { %v1521_v33 = vpop.xlane.xlu1 %1520  ;;  %v11535_v14 = vpop.eup %11534 }
 0x68e   :  { %v1515_v8 = vpop.xlane.xlu0 %1514 }
 0x68f   :  { %11540 = vrcp.f32 %v1515_v8 }
 0x692   :  { %v1518_v20 = vpop.xlane.xlu0 %1517 }
 0x693   :  { %11542 = vrcp.f32 %v1518_v20 }
 0x694   :  { %11544 = vrcp.f32 %v1521_v33  ;;  %v11537_v23 = vpop.eup %11536 }
 0x695   :  { %v1527_v63 = vpop.xlane.xlu1 %1526  ;;  %v11539_v7 = vpop.eup %11538 }
 0x696   :  { %v1524_v24 = vpop.xlane.xlu0 %1523 }
 0x697   :  { %11546 = vrcp.f32 %v1524_v24 }
 0x698   :  { %11548 = vrcp.f32 %v1527_v63 }
 0x699   :  { %v923_v44 = vpop.xlane.xlu1 %922  ;;  %v11541_v17 = vpop.eup %11540 }
 0x69a   :  { %v1530_v34 = vpop.xlane.xlu0 %1529  ;;  %11550 = vrcp.f32 %v923_v44 }
 0x69b   :  { %11552 = vrcp.f32 %v1530_v34 }
 0x69d   :  { %v929_v45 = vpop.xlane.xlu1 %928 }
 0x69e   :  { %v926_v37 = vpop.xlane.xlu0 %925 }
 0x69f   :  { %11554 = vrcp.f32 %v926_v37 }
 0x6a0   :  { %11556 = vrcp.f32 %v929_v45 }
 0x6a1   :  { %v935_v1 = vpop.xlane.xlu1 %934 }
 0x6a2   :  { %v932_v28 = vpop.xlane.xlu0 %931 }
 0x6a3   :  { %11558 = vrcp.f32 %v932_v28 }
 0x6a4   :  { %11560 = vrcp.f32 %v935_v1 }
 0x6a5   :  { %v941_v56 = vpop.xlane.xlu1 %940 }
 0x6a6   :  { %v938_v0 = vpop.xlane.xlu0 %937 }
 0x6a7   :  { %11562 = vrcp.f32 %v938_v0 }
 0x6a8   :  { %11564 = vrcp.f32 %v941_v56 }
 0x6aa   :  { %v944_v59 = vpop.xlane.xlu0 %943 }
 0x6ab   :  { %11566 = vrcp.f32 %v944_v59 }
 0x6ae   :  { %v950_v45 = vpop.xlane.xlu0 %949 }
 0x6d7   :  { %v10249_v58 = vpop.f32.mrb[12].mxu1 }
 0x6d8   :  { %v1681_v51 = vpop.f32.mrb[13].mxu1  ;;  %v1741_v39 = vmul.f32 %v11531_v29, %v10249_v58 }
 0x6d9   :  { %v1740_v40 = vmul.f32 %v11529_v11, %v1681_v51  ;;  %v947_v11 = vpop.xlane.xlu1 %946 }
 0x6da   :  { %11568 = vrcp.f32 %v947_v11 }
 0x6db   :  { %v10252_v18 = vpop.f32.mrb[14].mxu1  ;;  %10267 = vmatprep.mubr.msk.f32.mxu1 %vm638_vm13, %v1740_v40  ;;  %11570 = vrcp.f32 %v950_v45 }
 0x6dc   :  { %v1691_v13 = vpop.f32.mrb[15].mxu1  ;;  %10268 = vmatmul.mubr.msk.f32.vlgmr.msra.gmra.mrb[24].mxu1 %vm638_vm13, %v1741_v39  ;;  %v1743_v26 = vmul.f32 %v11535_v14, %v10252_v18 }
 0x6dd   :  { %v1742_v19 = vmul.f32 %v11533_v31, %v1691_v13  ;;  %10286 = vmatpush3.msk.msra.mxu1 %vm1790_vm14, %v601_v22  ;;  %v11543_v22 = vpop.eup %11542  ;;  %v953_v13 = vpop.xlane.xlu1 %952 }
 0x6de   :  { %v11545_v12 = vpop.eup %11544  ;;  %11572 = vrcp.f32 %v953_v13 }
 0x6df   :  { %v10255_v2 = vpop.f32.mrb[16].mxu1  ;;  %10270 = vmatprep.mubr.msk.f32.mxu1 %vm638_vm13, %v1742_v19  ;;  %v11547_v8 = vpop.eup %11546 }
 0x6e0   :  { %v1701_v16 = vpop.f32.mrb[17].mxu1  ;;  %10271 = vmatmul.mubr.msk.f32.gmra.mrb[26].mxu1 %vm638_vm13, %v1743_v26  ;;  %v1745_v41 = vmul.f32 %v11539_v7, %v10255_v2  ;;  %v11549_v24 = vpop.eup %11548 }
 0x6e1   :  { %v1744_v5 = vmul.f32 %v11537_v23, %v1701_v16  ;;  %v11551_v34 = vpop.eup %11550 }
 0x6e2   :  { %v11553_v58 = vpop.eup %11552  ;;  %v1166_v40 = vmul.f32 %v11551_v34, %v12586_v30  ;;  %v956_v30 = vpop.xlane.xlu0 %955 }
 0x6e3   :  { %v10258_v42 = vpop.f32.mrb[18].mxu1  ;;  %10273 = vmatprep.mubr.msk.f32.mxu1 %vm638_vm13, %v1744_v5  ;;  %v11555_v29 = vpop.eup %11554  ;;  %11574 = vrcp.f32 %v956_v30 }
 0x6e4   :  { %v1711_v52 = vpop.f32.mrb[19].mxu1  ;;  %10274 = vmatmul.mubr.msk.f32.gmra.mrb[28].mxu1 %vm638_vm13, %v1745_v41  ;;  %v1747_v57 = vmul.f32 %v11543_v22, %v10258_v42  ;;  %v11557_v39 = vpop.eup %11556  ;;  %v1167_v18 = vmul.f32 %v11555_v29, %v12584_v53 }
 0x6e5   :  { %v1746_v48 = vmul.f32 %v11541_v17, %v1711_v52  ;;  %v11559_v31 = vpop.eup %11558  ;;  %v1168_v14 = vmul.f32 %v11557_v39, %v12590_v32 }
 0x6e6   :  { %v11561_v19 = vpop.eup %11560  ;;  %v1169_v28 = vmul.f32 %v11559_v31, %v12588_v35 }
 0x6e7   :  { %v10261_v60 = vpop.f32.mrb[20].mxu1  ;;  %10276 = vmatprep.mubr.msk.f32.mxu1 %vm638_vm13, %v1746_v48  ;;  %v11563_v26 = vpop.eup %11562  ;;  %v1170_v2 = vmul.f32 %v11561_v19, %v12594_v25 }
 0x6e8   :  { %v1721_v36 = vpop.f32.mrb[21].mxu1  ;;  %10277 = vmatmul.mubr.msk.f32.gmra.mrb[30].mxu1 %vm638_vm13, %v1747_v57  ;;  %v1749_v33 = vmul.f32 %v11547_v8, %v10261_v60  ;;  %v11565_v23 = vpop.eup %11564  ;;  %v1171_v53 = vmul.f32 %v11563_v26, %v12592_v62 }
 0x6e9   :  { %v1748_v20 = vmul.f32 %v11545_v12, %v1721_v36  ;;  %v11567_v32 = vpop.eup %11566  ;;  %v1172_v16 = vmul.f32 %v11565_v23, %v12598_v43 }
 0x6ea   :  { %v11569_v7 = vpop.eup %11568  ;;  %v1173_v35 = vmul.f32 %v11567_v32, %v12596_v6 }
 0x6eb   :  { %v10264_v63 = vpop.f32.mrb[22].mxu1  ;;  %10279 = vmatprep.mubr.msk.f32.mxu1 %vm638_vm13, %v1748_v20  ;;  %v11571_v25 = vpop.eup %11570  ;;  %v1174_v1 = vmul.f32 %v11569_v7, %v12602_v10  ;;  %v9009_v10 = vld [vmem:[%s12038_s8] ss:$0 sm:$0xff]  ;;  %s14927_s8 = sld [smem:[#allocation8_spill]] }
 0x6ec   :  { %v1731_v44 = vpop.f32.mrb[23].mxu1  ;;  %10280 = vmatmul.mubr.msk.f32.gmra.mrb[32].mxu1 %vm638_vm13, %v1749_v33  ;;  %v1751_v51 = vmul.f32 %v11553_v58, %v10264_v63  ;;  %v11573_v5 = vpop.eup %11572  ;;  %v1175_v62 = vmul.f32 %v11571_v25, %v12600_v4 }
 0x6ed   :  { %v1750_v37 = vmul.f32 %v11549_v24, %v1731_v44  ;;  %v11575_v41 = vpop.eup %11574  ;;  %v1176_v43 = vmul.f32 %v11573_v5, %v12606_v54 }
 0x6ee   :  { %v1177_v42 = vmul.f32 %v11575_v41, %v12604_v47 }
 0x6ef   :  { %10282 = vmatprep.mubr.msk.f32.mxu1 %vm638_vm13, %v1750_v37 }
 0x6f0   :  { %10283 = vmatmul.mubr.msk.f32.gmra.mrb[34].mxu1 %vm638_vm13, %v1751_v51 }
 0x6f1   :  { %10287 = vmatprep.mubr.msk.f32.mxu1 %vm638_vm13, %v1166_v40 }
 0x6f4   :  { %10288 = vmatmul.mubr.msk.f32.vlgmr.msra.gmra.mrb[24].mxu1 %vm638_vm13, %v1167_v18 }
 0x6f5   :  { %10290 = vmatprep.mubr.msk.f32.mxu1 %vm638_vm13, %v1168_v14  ;;  %v14921_v14 = vld [vmem:[#allocation42_spill] sm:$0xff] }
 0x6f8   :  { %10291 = vmatmul.mubr.msk.f32.gmra.mrb[26].mxu1 %vm638_vm13, %v1169_v28 }
 0x6f9   :  { %10293 = vmatprep.mubr.msk.f32.mxu1 %vm638_vm13, %v1170_v2 }
 0x6fc   :  { %10294 = vmatmul.mubr.msk.f32.gmra.mrb[28].mxu1 %vm638_vm13, %v1171_v53 }
 0x6fd   :  { %10296 = vmatprep.mubr.msk.f32.mxu1 %vm638_vm13, %v1172_v16 }
 0x700   :  { %10297 = vmatmul.mubr.msk.f32.gmra.mrb[30].mxu1 %vm638_vm13, %v1173_v35 }
 0x701   :  { %10299 = vmatprep.mubr.msk.f32.mxu1 %vm638_vm13, %v1174_v1 }
 0x704   :  { %10300 = vmatmul.mubr.msk.f32.gmra.mrb[32].mxu1 %vm638_vm13, %v1175_v62 }
 0x705   :  { %10302 = vmatprep.mubr.msk.f32.mxu1 %vm638_vm13, %v1176_v43 }
 0x708   :  { %10303 = vmatmul.mubr.msk.f32.gmra.mrb[34].mxu1 %vm638_vm13, %v1177_v42  ;;  %vm5378_vm13 = vcmask 130048  }
 0x7c7   :  { %v10289_v6 = vpop.f32.mrb[24].mxu1 }
 0x7c8   :  { %v2082_v17 = vadd.f32 %v10289_v6, %v12102_v46  ;;  %v2022_v0 = vpop.f32.mrb[25].mxu1 }
 0x7c9   :  { %v2081_v52 = vadd.f32 %v2022_v0, %v12106_v49 }
 0x7ca   :  { %v2101_v22 = vadd.f32 %v9009_v10, %v2082_v17 }
 0x7cb   :  { %v2100_v4 = vadd.f32 %v9009_v10, %v2081_v52  ;;  %v10292_v48 = vpop.f32.mrb[26].mxu1 }
 0x7cc   :  { %v2084_v54 = vadd.f32 %v10292_v48, %v12122_v61  ;;  %v2032_v57 = vpop.f32.mrb[27].mxu1  ;;  %v2117_v56 = vsel %vm439_vm12, %v2101_v22, 0.0 }
 0x7cd   :  { %v2083_v60 = vadd.f32 %v2032_v57, %v12115_v55  ;;  %2118 = vadd.xlane.f32.xlu0 %v2117_v56  ;;  %v2114_v47 = vsel %vm439_vm12, %v2100_v4, 0.0 }
 0x7ce   :  { %v2103_v12 = vadd.f32 %v9009_v10, %v2084_v54  ;;  %2115 = vadd.xlane.f32.xlu1 %v2114_v47 }
 0x7cf   :  { %v2102_v36 = vadd.f32 %v9009_v10, %v2083_v60  ;;  %v10295_v46 = vpop.f32.mrb[28].mxu1 }
 0x7d0   :  { %v2086_v8 = vadd.f32 %v10295_v46, %v12136_v9  ;;  %v2042_v49 = vpop.f32.mrb[29].mxu1  ;;  %v2123_v20 = vsel %vm439_vm12, %v2103_v12, 0.0 }
 0x7d1   :  { %v2085_v59 = vadd.f32 %v2042_v49, %v12129_v3  ;;  %2124 = vadd.xlane.f32.xlu0 %v2123_v20  ;;  %v2120_v61 = vsel %vm439_vm12, %v2102_v36, 0.0 }
 0x7d2   :  { %v2105_v33 = vadd.f32 %v9009_v10, %v2086_v8  ;;  %2121 = vadd.xlane.f32.xlu1 %v2120_v61 }
 0x7d3   :  { %v2104_v55 = vadd.f32 %v9009_v10, %v2085_v59  ;;  %v10298_v24 = vpop.f32.mrb[30].mxu1 }
 0x7d4   :  { %v2088_v63 = vadd.f32 %v10298_v24, %v12150_v21  ;;  %v2052_v34 = vpop.f32.mrb[31].mxu1  ;;  %v2129_v44 = vsel %vm439_vm12, %v2105_v33, 0.0 }
 0x7d5   :  { %v2087_v58 = vadd.f32 %v2052_v34, %v12143_v15  ;;  %2130 = vadd.xlane.f32.xlu0 %v2129_v44  ;;  %v2126_v9 = vsel %vm439_vm12, %v2104_v55, 0.0 }
 0x7d6   :  { %v12772_v11 = vadd.f32 %v9009_v10, %v2088_v63  ;;  %2127 = vadd.xlane.f32.xlu1 %v2126_v9 }
 0x7d7   :  { %v12774_v3 = vadd.f32 %v9009_v10, %v2087_v58  ;;  %v10301_v37 = vpop.f32.mrb[32].mxu1 }
 0x7d8   :  { %v2090_v51 = vadd.f32 %v10301_v37, %v12164_v38  ;;  %v2062_v29 = vpop.f32.mrb[33].mxu1  ;;  %v2135_v21 = vsel %vm439_vm12, %v12772_v11, 0.0 }
 0x7d9   :  { %v2089_v40 = vadd.f32 %v2062_v29, %v12157_v27  ;;  %2136 = vadd.xlane.f32.xlu0 %v2135_v21  ;;  %v2132_v15 = vsel %vm439_vm12, %v12774_v3, 0.0 }
 0x7da   :  { %v12782_v39 = vadd.f32 %v9009_v10, %v2090_v51  ;;  %2133 = vadd.xlane.f32.xlu1 %v2132_v15 }
 0x7db   :  { %v12784_v45 = vadd.f32 %v9009_v10, %v2089_v40  ;;  %v10304_v18 = vpop.f32.mrb[34].mxu1 }
 0x7dc   :  { %v2092_v31 = vadd.f32 %v10304_v18, %v12177_v50  ;;  %v2072_v13 = vpop.f32.mrb[35].mxu1  ;;  %v2141_v38 = vsel %vm439_vm12, %v12782_v39, 0.0 }
 0x7dd   :  { %v2091_v19 = vadd.f32 %v2072_v13, %v14921_v14  ;;  %2142 = vadd.xlane.f32.xlu0 %v2141_v38  ;;  %v2138_v27 = vsel %vm439_vm12, %v12784_v45, 0.0 }
 0x7de   :  { %v12792_v30 = vadd.f32 %v9009_v10, %v2092_v31  ;;  %2139 = vadd.xlane.f32.xlu1 %v2138_v27 }
 0x7df   :  { %v12794_v28 = vadd.f32 %v9009_v10, %v2091_v19 }
 0x7e0   :  { %v2147_v26 = vsel %vm439_vm12, %v12792_v30, 0.0 }
 0x7e1   :  { %2148 = vadd.xlane.f32.xlu0 %v2147_v26  ;;  %v2144_v50 = vsel %vm439_vm12, %v12794_v28, 0.0  ;;  %v2310_v26 = vld [vmem:[%s12003_s30 + $0x18] sm:$0xff] }
 0x7e2   :  { %2145 = vadd.xlane.f32.xlu1 %v2144_v50  ;;  %2580 = vmatprep.subr.mxu1 %v2310_v26  ;;  %v2309_v50 = vld [vmem:[%s12003_s30 + $0x10] sm:$0xff] }
 0x7e3   :  { %2581 = vmatpush1.msra.mxu1 %v2309_v50 }
 0x85a   :  { %v2119_v2 = vpop.xlane.xlu0 %2118 }
 0x85b   :  { %v2152_v23 = vmul.f32 0.125, %v2119_v2  ;;  %v2116_v53 = vpop.xlane.xlu1 %2115  ;;  %v11786_v2 = vmov 0.0  }
 0x85c   :  { %v2151_v32 = vmul.f32 0.125, %v2116_v53  ;;  %2507 = vmatprep.mubr.f32.mxu0 %v11786_v2  ;;  %2644 = vmatprep.mubr.f32.mxu1 %v11786_v2  ;;  %v2314_v53 = vld [vmem:[%s12003_s30 + $0x38] sm:$0xff] }
 0x85d   :  { %v12800_v16 = vsub.f32 %v2101_v22, %v2152_v23  ;;  %v2312_v23 = vld [vmem:[%s12003_s30 + $0x28] sm:$0xff]  ;;  %2854 = vmatprep.subr.mxu1 %v2314_v53 }
 0x85e   :  { %v12802_v7 = vsub.f32 %v2100_v4, %v2151_v32  ;;  %v2125_v35 = vpop.xlane.xlu0 %2124 }
 0x85f   :  { %v2154_v25 = vmul.f32 0.125, %v2125_v35  ;;  %v2122_v1 = vpop.xlane.xlu1 %2121  ;;  %v2176_v5 = vmul.f32 %v12800_v16, %v12800_v16 }
 0x860   :  { %v2153_v62 = vmul.f32 0.125, %v2122_v1  ;;  %v2175_v41 = vmul.f32 %v12802_v7, %v12802_v7 }
 0x861   :  { %v12808_v43 = vsub.f32 %v2103_v12, %v2154_v25  ;;  %v2190_v42 = vsel %vm439_vm12, %v2176_v5, 0.0 }
 0x862   :  { %v12811_v6 = vsub.f32 %v2102_v36, %v2153_v62  ;;  %v2131_v10 = vpop.xlane.xlu0 %2130  ;;  %2191 = vadd.xlane.f32.xlu0 %v2190_v42  ;;  %v2187_v17 = vsel %vm439_vm12, %v2175_v41, 0.0 }
 0x863   :  { %v2156_v0 = vmul.f32 0.125, %v2131_v10  ;;  %v2128_v52 = vpop.xlane.xlu1 %2127  ;;  %2188 = vadd.xlane.f32.xlu1 %v2187_v17  ;;  %v2178_v22 = vmul.f32 %v12808_v43, %v12808_v43 }
 0x864   :  { %v2155_v4 = vmul.f32 0.125, %v2128_v52  ;;  %v2177_v48 = vmul.f32 %v12811_v6, %v12811_v6 }
 0x865   :  { %v12818_v54 = vsub.f32 %v2105_v33, %v2156_v0  ;;  %v2196_v57 = vsel %vm439_vm12, %v2178_v22, 0.0 }
 0x866   :  { %v12821_v56 = vsub.f32 %v2104_v55, %v2155_v4  ;;  %v2137_v60 = vpop.xlane.xlu0 %2136  ;;  %2197 = vadd.xlane.f32.xlu0 %v2196_v57  ;;  %v2193_v47 = vsel %vm439_vm12, %v2177_v48, 0.0 }
 0x867   :  { %v2158_v12 = vmul.f32 0.125, %v2137_v60  ;;  %v2134_v36 = vpop.xlane.xlu1 %2133  ;;  %2194 = vadd.xlane.f32.xlu1 %v2193_v47  ;;  %v2180_v46 = vmul.f32 %v12818_v54, %v12818_v54 }
 0x868   :  { %v2157_v8 = vmul.f32 0.125, %v2134_v36  ;;  %v2179_v49 = vmul.f32 %v12821_v56, %v12821_v56 }
 0x869   :  { %v12829_v20 = vsub.f32 %v12772_v11, %v2158_v12  ;;  %v2202_v59 = vsel %vm439_vm12, %v2180_v46, 0.0  ;;  %v12875_v46 = vld [vmem:[%s12023_s19] ss:$0 sm:$0xff]  ;;  %s14929_s19 = sld [smem:[#allocation19_spill]] }
 0x86a   :  { %v12833_v61 = vsub.f32 %v12774_v3, %v2157_v8  ;;  %v2143_v33 = vpop.xlane.xlu0 %2142  ;;  %2203 = vadd.xlane.f32.xlu0 %v2202_v59  ;;  %v2199_v55 = vsel %vm439_vm12, %v2179_v49, 0.0 }
 0x86b   :  { %v2160_v24 = vmul.f32 0.125, %v2143_v33  ;;  %v2140_v63 = vpop.xlane.xlu1 %2139  ;;  %2200 = vadd.xlane.f32.xlu1 %v2199_v55  ;;  %v2182_v34 = vmul.f32 %v12829_v20, %v12829_v20 }
 0x86c   :  { %v2159_v44 = vmul.f32 0.125, %v2140_v63  ;;  %v2181_v58 = vmul.f32 %v12833_v61, %v12833_v61 }
 0x86d   :  { %v12841_v9 = vsub.f32 %v12782_v39, %v2160_v24  ;;  %v2208_v11 = vsel %vm439_vm12, %v2182_v34, 0.0  ;;  %v12880_v24 = vld [vmem:[%s12018_s6] ss:$0 sm:$0xff]  ;;  %s11789_s6 = smov 88  }
 0x86e   :  { %v12845_v3 = vsub.f32 %v12784_v45, %v2159_v44  ;;  %2209 = vadd.xlane.f32.xlu0 %v2208_v11  ;;  %v2149_v37 = vpop.xlane.xlu0 %2148  ;;  %v2205_v51 = vsel %vm439_vm12, %v2181_v58, 0.0 }
 0x86f   :  { %v2162_v29 = vmul.f32 0.125, %v2149_v37  ;;  %2206 = vadd.xlane.f32.xlu1 %v2205_v51  ;;  %v2146_v21 = vpop.xlane.xlu1 %2145  ;;  %v2184_v40 = vmul.f32 %v12841_v9, %v12841_v9 }
 0x870   :  { %v2161_v15 = vmul.f32 0.125, %v2146_v21  ;;  %v2183_v39 = vmul.f32 %v12845_v3, %v12845_v3  ;;  %v2313_v21 = vld [vmem:[%s12003_s30 + $0x30] sm:$0xff] }
 0x871   :  { %v12853_v45 = vsub.f32 %v12792_v30, %v2162_v29  ;;  %v2214_v18 = vsel %vm439_vm12, %v2184_v40, 0.0  ;;  %v2308_v30 = vld [vmem:[%s12003_s30 + $0x8] sm:$0xff]  ;;  %v2311_v29 = vld [vmem:[%s12003_s30 + $0x20] sm:$0xff] }
 0x872   :  { %v12857_v31 = vsub.f32 %v12794_v28, %v2161_v15  ;;  %2215 = vadd.xlane.f32.xlu0 %v2214_v18  ;;  %v2211_v13 = vsel %vm439_vm12, %v2183_v39, 0.0  ;;  %v2307_v28 = vld [vmem:[%s12003_s30] sm:$0xff]  ;;  %2443 = vmatprep.subr.mxu0 %v2308_v30  ;;  %v2316_v40 = vld [vmem:[%s12003_s30 + $0x48] sm:$0xff]  ;;  %v2318_v15 = vld [vmem:[%s12003_s30 + $0x58] sm:$0xff] }
 0x873   :  { %2212 = vadd.xlane.f32.xlu1 %v2211_v13  ;;  %v2186_v38 = vmul.f32 %v12853_v45, %v12853_v45  ;;  %2444 = vmatpush1.msra.mxu0 %v2307_v28 }
 0x874   :  { %v2185_v14 = vmul.f32 %v12857_v31, %v12857_v31  ;;  %2717 = vmatprep.subr.mxu0 %v2312_v23 }
 0x875   :  { %v2220_v19 = vsel %vm439_vm12, %v2186_v38, 0.0 }
 0x876   :  { %2221 = vadd.xlane.f32.xlu0 %v2220_v19  ;;  %v2217_v27 = vsel %vm439_vm12, %v2185_v14, 0.0 }
 0x877   :  { %2218 = vadd.xlane.f32.xlu1 %v2217_v27 }
 0x8ef   :  { %v2192_v32 = vpop.xlane.xlu0 %2191 }
 0x8f0   :  { %v2224_v35 = vmul.f32 0.125, %v2192_v32  ;;  %v2189_v25 = vpop.xlane.xlu1 %2188 }
 0x8f1   :  { %v2223_v1 = vmul.f32 0.125, %v2189_v25 }
 0x8f2   :  { %v2236_v5 = vadd.f32 1e-05, %v2224_v35 }
 0x8f3   :  { %v2235_v62 = vadd.f32 1e-05, %v2223_v1  ;;  %v2198_v41 = vpop.xlane.xlu0 %2197 }
 0x8f4   :  { %11576 = vrsqrt.f32 %v2236_v5  ;;  %v2226_v42 = vmul.f32 0.125, %v2198_v41  ;;  %v2195_v10 = vpop.xlane.xlu1 %2194 }
 0x8f5   :  { %11578 = vrsqrt.f32 %v2235_v62  ;;  %v2225_v17 = vmul.f32 0.125, %v2195_v10 }
 0x8f6   :  { %v2238_v0 = vadd.f32 1e-05, %v2226_v42 }
 0x8f7   :  { %v2237_v52 = vadd.f32 1e-05, %v2225_v17  ;;  %v2204_v22 = vpop.xlane.xlu0 %2203 }
 0x8f8   :  { %v2201_v4 = vpop.xlane.xlu1 %2200  ;;  %v2228_v57 = vmul.f32 0.125, %v2204_v22 }
 0x8f9   :  { %11580 = vrsqrt.f32 %v2237_v52  ;;  %v2227_v48 = vmul.f32 0.125, %v2201_v4 }
 0x8fa   :  { %11582 = vrsqrt.f32 %v2238_v0  ;;  %v2240_v8 = vadd.f32 1e-05, %v2228_v57 }
 0x8fb   :  { %v2239_v60 = vadd.f32 1e-05, %v2227_v48  ;;  %v2210_v55 = vpop.xlane.xlu0 %2209 }
 0x8fc   :  { %v2207_v47 = vpop.xlane.xlu1 %2206  ;;  %v2230_v44 = vmul.f32 0.125, %v2210_v55 }
 0x8fd   :  { %11584 = vrsqrt.f32 %v2239_v60  ;;  %v2229_v49 = vmul.f32 0.125, %v2207_v47 }
 0x8fe   :  { %v11577_v12 = vpop.eup %11576  ;;  %11586 = vrsqrt.f32 %v2240_v8  ;;  %v2242_v39 = vadd.f32 1e-05, %v2230_v44  ;;  %v2317_v44 = vld [vmem:[%s12003_s30 + $0x50] sm:$0xff] }
 0x8ff   :  { %v11579_v36 = vpop.eup %11578  ;;  %v2260_v59 = vmul.f32 %v11577_v12, %v12800_v16  ;;  %v2241_v58 = vadd.f32 1e-05, %v2229_v49  ;;  %v2216_v14 = vpop.xlane.xlu0 %2215 }
 0x900   :  { %v2259_v33 = vmul.f32 %v11579_v36, %v12802_v7  ;;  %v2213_v51 = vpop.xlane.xlu1 %2212  ;;  %v2232_v27 = vmul.f32 0.125, %v2216_v14  ;;  %v3749_v14 = vld [vmem:[%s12013_s4 + $0x90] sm:$0xff] }
 0x901   :  { %v2278_v11 = vmul.f32 %v12875_v46, %v2260_v59  ;;  %11588 = vrsqrt.f32 %v2241_v58  ;;  %v2231_v18 = vmul.f32 0.125, %v2213_v51  ;;  %v2322_v58 = vld [vmem:[%s12003_s30 + $0x78] sm:$0xff]  ;;  %v3779_v51 = vld [vmem:[%s12013_s4 + $0x180] sm:$0xff] }
 0x902   :  { %v2277_v63 = vmul.f32 %v12875_v46, %v2259_v33  ;;  %11590 = vrsqrt.f32 %v2242_v39  ;;  %v2244_v53 = vadd.f32 1e-05, %v2232_v27  ;;  %v3731_v39 = vld [vmem:[%s12013_s4] sm:$0xff]  ;;  %v3781_v27 = vld [vmem:[%s12013_s4 + $0x190] sm:$0xff] }
 0x903   :  { %v11581_v34 = vpop.eup %11580  ;;  %v2243_v30 = vadd.f32 1e-05, %v2231_v18  ;;  %v2222_v1 = vpop.xlane.xlu0 %2221  ;;  %v3732_v18 = vld [vmem:[%s12013_s4 + $0x8] sm:$0xff] }
 0x904   :  { %v12885_v37 = vadd.f32 %v12880_v24, %v2277_v63  ;;  %v2261_v16 = vmul.f32 %v11581_v34, %v12811_v6  ;;  %v11583_v7 = vpop.eup %11582  ;;  %v12899_v6 = vadd.f32 %v12880_v24, %v2278_v11  ;;  %v2219_v50 = vpop.xlane.xlu1 %2218  ;;  %v2234_v62 = vmul.f32 0.125, %v2222_v1  ;;  %v3747_v11 = vld [vmem:[%s12013_s4 + $0x80] sm:$0xff] }
 0x905   :  { %v2262_v13 = vmul.f32 %v11583_v7, %v12808_v43  ;;  %11592 = vrsqrt.f32 %v2243_v30  ;;  %v2233_v32 = vmul.f32 0.125, %v2219_v50  ;;  %v3780_v7 = vld [vmem:[%s12013_s4 + $0x188] sm:$0xff]  ;;  %v3782_v30 = vld [vmem:[%s12013_s4 + $0x198] sm:$0xff]  ;;  %v3733_v50 = vld [vmem:[%s12013_s4 + $0x10] sm:$0xff] }
 0x906   :  { %9012 = vmatmul.mubr.msk.f32.vlgmr.msra.gmra.mrb[36].mxu0 %vm439_vm12, %v12885_v37  ;;  %9024 = vmatmul.mubr.msk.f32.vlgmr.msra.gmra.mrb[36].mxu1 %vm439_vm12, %v12885_v37  ;;  %v2279_v38 = vmul.f32 %v12875_v46, %v2261_v16  ;;  %11594 = vrsqrt.f32 %v2244_v53  ;;  %v2246_v0 = vadd.f32 1e-05, %v2234_v62  ;;  %v3748_v16 = vld [vmem:[%s12013_s4 + $0x88] sm:$0xff]  ;;  %v3751_v1 = vld [vmem:[%s12013_s4 + $0xa0] sm:$0xff] }
 0x907   :  { %2513 = vmatprep.mubr.f32.mxu0 %v11786_v2  ;;  %2650 = vmatprep.mubr.f32.mxu1 %v11786_v2  ;;  %v11585_v19 = vpop.eup %11584  ;;  %v2280_v43 = vmul.f32 %v12875_v46, %v2262_v13  ;;  %v2245_v41 = vadd.f32 1e-05, %v2233_v32  ;;  %v3763_v13 = vld [vmem:[%s12013_s4 + $0x100] sm:$0xff]  ;;  %v10757_v32 = vpack.c.bf16 %v3782_v30, %v3781_v27  ;;  %v3741_v30 = vld [vmem:[%s12013_s4 + $0x50] sm:$0xff] }
 0x908   :  { %2718 = vmatpush1.msra.mxu0 %v2311_v29  ;;  %2855 = vmatpush1.msra.mxu1 %v2313_v21  ;;  %v12911_v28 = vadd.f32 %v12880_v24, %v2279_v38  ;;  %v2263_v26 = vmul.f32 %v11585_v19, %v12821_v56  ;;  %v11587_v23 = vpop.eup %11586  ;;  %v2319_v29 = vld [vmem:[%s12003_s30 + $0x60] sm:$0xff]  ;;  %v2321_v21 = vld [vmem:[%s12003_s30 + $0x70] sm:$0xff]  ;;  %v3764_v38 = vld [vmem:[%s12013_s4 + $0x108] sm:$0xff] }
 0x909   :  { %2991 = vmatprep.subr.mxu0 %v2316_v40  ;;  %3128 = vmatprep.subr.mxu1 %v2318_v15  ;;  %v12921_v35 = vadd.f32 %v12880_v24, %v2280_v43  ;;  %v2264_v56 = vmul.f32 %v11587_v23, %v12818_v54  ;;  %11596 = vrsqrt.f32 %v2245_v41  ;;  %v10721_v40 = vpack.c.bf16 %v3748_v16, %v3747_v11  ;;  %v3750_v19 = vld [vmem:[%s12013_s4 + $0x98] sm:$0xff]  ;;  %v3783_v62 = vld [vmem:[%s12013_s4 + $0x1a0] sm:$0xff]  ;;  %v3784_v41 = vld [vmem:[%s12013_s4 + $0x1a8] sm:$0xff] }
 0x90a   :  { %9013 = vmatmul.mubr.msk.f32.gmra.mrb[38].mxu0 %vm439_vm12, %v12899_v6  ;;  %9025 = vmatmul.mubr.msk.f32.gmra.mrb[38].mxu1 %vm439_vm12, %v12899_v6  ;;  %v2281_v25 = vmul.f32 %v12875_v46, %v2263_v26  ;;  %11598 = vrsqrt.f32 %v2246_v0  ;;  %v10753_v15 = vpack.c.bf16 %v3780_v7, %v3779_v51  ;;  %v10723_v43 = vpack.c.bf16 %v3732_v18, %v3731_v39  ;;  %v3734_v23 = vld [vmem:[%s12013_s4 + $0x18] sm:$0xff]  ;;  %v3736_v0 = vld [vmem:[%s12013_s4 + $0x28] sm:$0xff]  ;;  %v3739_v7 = vld [vmem:[%s12013_s4 + $0x40] sm:$0xff] }
 0x90b   :  { %2519 = vmatprep.mubr.f32.mxu0 %v11786_v2  ;;  %2656 = vmatprep.mubr.f32.mxu1 %v11786_v2  ;;  %v11589_v5 = vpop.eup %11588  ;;  %v2282_v42 = vmul.f32 %v12875_v46, %v2264_v56  ;;  %v10755_v26 = vpack.c.bf16 %v3764_v38, %v3763_v13  ;;  %v10725_v53 = vpack.c.bf16 %v3750_v19, %v3749_v14  ;;  %v3765_v56 = vld [vmem:[%s12013_s4 + $0x110] sm:$0xff]  ;;  %v3788_v11 = vld [vmem:[%s12013_s4 + $0x1c8] sm:$0xff]  ;;  %v3758_v13 = vld [vmem:[%s12013_s4 + $0xd8] sm:$0xff] }
 0x90c   :  { %v12933_v54 = vadd.f32 %v12880_v24, %v2281_v25  ;;  %v2265_v10 = vmul.f32 %v11589_v5, %v12833_v61  ;;  %v11591_v17 = vpop.eup %11590  ;;  %v3766_v25 = vld [vmem:[%s12013_s4 + $0x118] sm:$0xff]  ;;  %v3752_v5 = vld [vmem:[%s12013_s4 + $0xa8] sm:$0xff]  ;;  %v3757_v18 = vld [vmem:[%s12013_s4 + $0xd0] sm:$0xff] }
 0x90d   :  { %v12943_v52 = vadd.f32 %v12880_v24, %v2282_v42  ;;  %v2266_v22 = vmul.f32 %v11591_v17, %v12829_v20  ;;  %v10727_v42 = vpack.c.bf16 %v3734_v23, %v3733_v50  ;;  %v3735_v17 = vld [vmem:[%s12013_s4 + $0x20] sm:$0xff]  ;;  %v3772_v39 = vld [vmem:[%s12013_s4 + $0x148] sm:$0xff]  ;;  %v3789_v38 = vld [vmem:[%s12013_s4 + $0x1d0] sm:$0xff] }
 0x90e   :  { %9014 = vmatmul.mubr.msk.f32.gmra.mrb[40].mxu0 %vm439_vm12, %v12911_v28  ;;  %9026 = vmatmul.mubr.msk.f32.gmra.mrb[40].mxu1 %vm439_vm12, %v12911_v28  ;;  %v2283_v61 = vmul.f32 %v12875_v46, %v2265_v10  ;;  %v10759_v10 = vpack.c.bf16 %v3766_v25, %v3765_v56  ;;  %v3790_v14 = vld [vmem:[%s12013_s4 + $0x1d8] sm:$0xff]  ;;  %v3773_v23 = vld [vmem:[%s12013_s4 + $0x150] sm:$0xff]  ;;  %v3760_v56 = vld [vmem:[%s12013_s4 + $0xe8] sm:$0xff] }
 0x90f   :  { %2525 = vmatprep.mubr.f32.mxu0 %v11786_v2  ;;  %2662 = vmatprep.mubr.f32.mxu1 %v11786_v2  ;;  %v11593_v4 = vpop.eup %11592  ;;  %v2284_v48 = vmul.f32 %v12875_v46, %v2266_v22  ;;  %v10729_v22 = vpack.c.bf16 %v3752_v5, %v3751_v1  ;;  %v10773_v50 = vpack.c.bf16 %v3790_v14, %v3789_v38  ;;  %v3791_v25 = vld [vmem:[%s12013_s4 + $0x1e0] sm:$0xff]  ;;  %v3792_v1 = vld [vmem:[%s12013_s4 + $0x1e8] sm:$0xff] }
 0x910   :  { %v12955_v57 = vadd.f32 %v12880_v24, %v2283_v61  ;;  %v2267_v20 = vmul.f32 %v11593_v4, %v12845_v3  ;;  %v11595_v60 = vpop.eup %11594  ;;  %v10761_v61 = vpack.c.bf16 %v3784_v41, %v3783_v62  ;;  %v3767_v4 = vld [vmem:[%s12013_s4 + $0x120] sm:$0xff] }
 0x911   :  { %v12965_v47 = vadd.f32 %v12880_v24, %v2284_v48  ;;  %v2268_v12 = vmul.f32 %v11595_v60, %v12841_v9  ;;  %v3768_v48 = vld [vmem:[%s12013_s4 + $0x128] sm:$0xff]  ;;  %v3754_v60 = vld [vmem:[%s12013_s4 + $0xb8] sm:$0xff]  ;;  %v3743_v41 = vld [vmem:[%s12013_s4 + $0x60] sm:$0xff] }
 0x912   :  { %9015 = vmatmul.mubr.msk.f32.gmra.mrb[42].mxu0 %vm439_vm12, %v12921_v35  ;;  %9027 = vmatmul.mubr.msk.f32.gmra.mrb[42].mxu1 %vm439_vm12, %v12921_v35  ;;  %v2285_v36 = vmul.f32 %v12875_v46, %v2267_v20  ;;  %v3753_v20 = vld [vmem:[%s12013_s4 + $0xb0] sm:$0xff]  ;;  %v3795_v14 = vld [vmem:[%s12013_s4 + $0x200] sm:$0xff] }
 0x913   :  { %2531 = vmatprep.mubr.f32.mxu0 %v11786_v2  ;;  %2668 = vmatprep.mubr.f32.mxu1 %v11786_v2  ;;  %v11597_v8 = vpop.eup %11596  ;;  %v2286_v3 = vmul.f32 %v12875_v46, %v2268_v12  ;;  %v3785_v12 = vld [vmem:[%s12013_s4 + $0x1b0] sm:$0xff] }
 0x914   :  { %v12977_v49 = vadd.f32 %v12880_v24, %v2285_v36  ;;  %v2269_v9 = vmul.f32 %v11597_v8, %v12857_v31  ;;  %v11599_v59 = vpop.eup %11598  ;;  %v3786_v36 = vld [vmem:[%s12013_s4 + $0x1b8] sm:$0xff]  ;;  %v10731_v8 = vpack.c.bf16 %v3736_v0, %v3735_v17  ;;  %v10777_v17 = vpack.c.bf16 %v3792_v1, %v3791_v25  ;;  %v3775_v0 = vld [vmem:[%s12013_s4 + $0x160] sm:$0xff]  ;;  %v3845_v1 = vld [vmem:[%s12013_s4 + $0x390] sm:$0xff] }
 0x915   :  { %v12987_v33 = vadd.f32 %v12880_v24, %v2286_v3  ;;  %v2270_v55 = vmul.f32 %v11599_v59, %v12853_v45  ;;  %v10763_v3 = vpack.c.bf16 %v3768_v48, %v3767_v4  ;;  %v3738_v59 = vld [vmem:[%s12013_s4 + $0x38] sm:$0xff]  ;;  %v3793_v48 = vld [vmem:[%s12013_s4 + $0x1f0] sm:$0xff] }
 0x916   :  { %9016 = vmatmul.mubr.msk.f32.gmra.mrb[44].mxu0 %vm439_vm12, %v12933_v54  ;;  %9028 = vmatmul.mubr.msk.f32.gmra.mrb[44].mxu1 %vm439_vm12, %v12933_v54  ;;  %v2287_v63 = vmul.f32 %v12875_v46, %v2269_v9  ;;  %v3737_v9 = vld [vmem:[%s12013_s4 + $0x30] sm:$0xff]  ;;  %v3762_v4 = vld [vmem:[%s12013_s4 + $0xf8] sm:$0xff] }
 0x917   :  { %2537 = vmatprep.mubr.f32.mxu0 %v11786_v2  ;;  %2674 = vmatprep.mubr.f32.mxu1 %v11786_v2  ;;  %v2288_v31 = vmul.f32 %v12875_v46, %v2270_v55  ;;  %v2315_v46 = vld [vmem:[%s12003_s30 + $0x40] sm:$0xff]  ;;  %v10733_v55 = vpack.c.bf16 %v3754_v60, %v3753_v20  ;;  %v10735_v16 = vpack.c.bf16 %v3738_v59, %v3737_v9  ;;  %v3794_v20 = vld [vmem:[%s12013_s4 + $0x1f8] sm:$0xff]  ;;  %v3777_v59 = vld [vmem:[%s12013_s4 + $0x170] sm:$0xff] }
 0x918   :  { %v12999_v45 = vadd.f32 %v12880_v24, %v2287_v63  ;;  %v10765_v63 = vpack.c.bf16 %v3786_v36, %v3785_v12  ;;  %v3745_v36 = vld [vmem:[%s12013_s4 + $0x70] sm:$0xff]  ;;  %v10781_v9 = vpack.c.bf16 %v3794_v20, %v3793_v48  ;;  %v3814_v25 = vld [vmem:[%s12013_s4 + $0x298] sm:$0xff] }
 0x919   :  { %v13008_v34 = vadd.f32 %v12880_v24, %v2288_v31  ;;  %v2320_v24 = vld [vmem:[%s12003_s30 + $0x68] sm:$0xff]  ;;  %v3769_v31 = vld [vmem:[%s12013_s4 + $0x130] sm:$0xff]  ;;  %s14930_s30 = sld [smem:[#allocation7_spill]] }
 0x91a   :  { %9017 = vmatmul.mubr.msk.f32.gmra.mrb[46].mxu0 %vm439_vm12, %v12943_v52  ;;  %9029 = vmatmul.mubr.msk.f32.gmra.mrb[46].mxu1 %vm439_vm12, %v12943_v52 }
 0x91b   :  { %2543 = vmatprep.mubr.f32.mxu0 %v11786_v2  ;;  %2680 = vmatprep.mubr.f32.mxu1 %v11786_v2 }
 0x91e   :  { %9018 = vmatmul.mubr.msk.f32.gmra.mrb[48].mxu0 %vm439_vm12, %v12955_v57  ;;  %9030 = vmatmul.mubr.msk.f32.gmra.mrb[48].mxu1 %vm439_vm12, %v12955_v57 }
 0x91f   :  { %2549 = vmatprep.mubr.f32.mxu0 %v11786_v2  ;;  %2686 = vmatprep.mubr.f32.mxu1 %v11786_v2 }
 0x922   :  { %9019 = vmatmul.mubr.msk.f32.gmra.mrb[50].mxu0 %vm439_vm12, %v12965_v47  ;;  %9031 = vmatmul.mubr.msk.f32.gmra.mrb[50].mxu1 %vm439_vm12, %v12965_v47 }
 0x923   :  { %2555 = vmatprep.mubr.f32.mxu0 %v11786_v2  ;;  %2692 = vmatprep.mubr.f32.mxu1 %v11786_v2 }
 0x926   :  { %9020 = vmatmul.mubr.msk.f32.gmra.mrb[52].mxu0 %vm439_vm12, %v12977_v49  ;;  %9032 = vmatmul.mubr.msk.f32.gmra.mrb[52].mxu1 %vm439_vm12, %v12977_v49 }
 0x927   :  { %2561 = vmatprep.mubr.f32.mxu0 %v11786_v2  ;;  %2698 = vmatprep.mubr.f32.mxu1 %v11786_v2 }
 0x92a   :  { %9021 = vmatmul.mubr.msk.f32.gmra.mrb[54].mxu0 %vm439_vm12, %v12987_v33  ;;  %9033 = vmatmul.mubr.msk.f32.gmra.mrb[54].mxu1 %vm439_vm12, %v12987_v33 }
 0x92b   :  { %2567 = vmatprep.mubr.f32.mxu0 %v11786_v2  ;;  %2704 = vmatprep.mubr.f32.mxu1 %v11786_v2 }
 0x92e   :  { %9022 = vmatmul.mubr.msk.f32.gmra.mrb[56].mxu0 %vm439_vm12, %v12999_v45  ;;  %9034 = vmatmul.mubr.msk.f32.gmra.mrb[56].mxu1 %vm439_vm12, %v12999_v45 }
 0x92f   :  { %2573 = vmatprep.mubr.f32.mxu0 %v11786_v2  ;;  %2710 = vmatprep.mubr.f32.mxu1 %v11786_v2 }
 0x932   :  { %9023 = vmatmul.mubr.msk.f32.gmra.mrb[58].mxu0 %vm439_vm12, %v13008_v34  ;;  %9035 = vmatmul.mubr.msk.f32.gmra.mrb[58].mxu1 %vm439_vm12, %v13008_v34 }
 0x933   :  { %2781 = vmatprep.mubr.f32.mxu0 %v11786_v2  ;;  %2918 = vmatprep.mubr.f32.mxu1 %v11786_v2 }
 0x936   :  { %9036 = vmatmul.mubr.msk.f32.vlgmr.msra.gmra.mrb[60].mxu0 %vm439_vm12, %v12885_v37  ;;  %9048 = vmatmul.mubr.msk.f32.vlgmr.msra.gmra.mrb[60].mxu1 %vm439_vm12, %v12885_v37 }
 0x937   :  { %2787 = vmatprep.mubr.f32.mxu0 %v11786_v2  ;;  %2924 = vmatprep.mubr.f32.mxu1 %v11786_v2 }
 0x938   :  { %2992 = vmatpush1.msra.mxu0 %v2315_v46  ;;  %3129 = vmatpush1.msra.mxu1 %v2317_v44  ;;  %v3770_v46 = vld [vmem:[%s12013_s4 + $0x138] sm:$0xff]  ;;  %v3755_v44 = vld [vmem:[%s12013_s4 + $0xc0] sm:$0xff] }
 0x939   :  { %3265 = vmatprep.subr.mxu0 %v2320_v24  ;;  %3402 = vmatprep.subr.mxu1 %v2322_v58  ;;  %v3756_v24 = vld [vmem:[%s12013_s4 + $0xc8] sm:$0xff]  ;;  %v3787_v58 = vld [vmem:[%s12013_s4 + $0x1c0] sm:$0xff]  ;;  %v10767_v51 = vpack.c.bf16 %v3770_v46, %v3769_v31 }
 0x93a   :  { %9037 = vmatmul.mubr.msk.f32.gmra.mrb[62].mxu0 %vm439_vm12, %v12899_v6  ;;  %9049 = vmatmul.mubr.msk.f32.gmra.mrb[62].mxu1 %vm439_vm12, %v12899_v6  ;;  %v3812_v31 = vld [vmem:[%s12013_s4 + $0x288] sm:$0xff]  ;;  %v3843_v46 = vld [vmem:[%s12013_s4 + $0x380] sm:$0xff] }
 0x93b   :  { %2793 = vmatprep.mubr.f32.mxu0 %v11786_v2  ;;  %2930 = vmatprep.mubr.f32.mxu1 %v11786_v2 }
 0x93e   :  { %9038 = vmatmul.mubr.msk.f32.gmra.mrb[64].mxu0 %vm439_vm12, %v12911_v28  ;;  %9050 = vmatmul.mubr.msk.f32.gmra.mrb[64].mxu1 %vm439_vm12, %v12911_v28 }
 0x93f   :  { %2799 = vmatprep.mubr.f32.mxu0 %v11786_v2  ;;  %2936 = vmatprep.mubr.f32.mxu1 %v11786_v2 }
 0x942   :  { %9039 = vmatmul.mubr.msk.f32.gmra.mrb[66].mxu0 %vm439_vm12, %v12921_v35  ;;  %9051 = vmatmul.mubr.msk.f32.gmra.mrb[66].mxu1 %vm439_vm12, %v12921_v35 }
 0x943   :  { %2805 = vmatprep.mubr.f32.mxu0 %v11786_v2  ;;  %2942 = vmatprep.mubr.f32.mxu1 %v11786_v2 }
 0x946   :  { %9040 = vmatmul.mubr.msk.f32.gmra.mrb[68].mxu0 %vm439_vm12, %v12933_v54  ;;  %9052 = vmatmul.mubr.msk.f32.gmra.mrb[68].mxu1 %vm439_vm12, %v12933_v54 }
 0x947   :  { %2811 = vmatprep.mubr.f32.mxu0 %v11786_v2  ;;  %2948 = vmatprep.mubr.f32.mxu1 %v11786_v2 }
 0x94a   :  { %9041 = vmatmul.mubr.msk.f32.gmra.mrb[70].mxu0 %vm439_vm12, %v12943_v52  ;;  %9053 = vmatmul.mubr.msk.f32.gmra.mrb[70].mxu1 %vm439_vm12, %v12943_v52 }
 0x94b   :  { %2817 = vmatprep.mubr.f32.mxu0 %v11786_v2  ;;  %2954 = vmatprep.mubr.f32.mxu1 %v11786_v2 }
 0x94e   :  { %9042 = vmatmul.mubr.msk.f32.gmra.mrb[72].mxu0 %vm439_vm12, %v12955_v57  ;;  %9054 = vmatmul.mubr.msk.f32.gmra.mrb[72].mxu1 %vm439_vm12, %v12955_v57 }
 0x94f   :  { %2823 = vmatprep.mubr.f32.mxu0 %v11786_v2  ;;  %2960 = vmatprep.mubr.f32.mxu1 %v11786_v2 }
 0x952   :  { %9043 = vmatmul.mubr.msk.f32.gmra.mrb[74].mxu0 %vm439_vm12, %v12965_v47  ;;  %9055 = vmatmul.mubr.msk.f32.gmra.mrb[74].mxu1 %vm439_vm12, %v12965_v47 }
 0x953   :  { %2829 = vmatprep.mubr.f32.mxu0 %v11786_v2  ;;  %2966 = vmatprep.mubr.f32.mxu1 %v11786_v2 }
 0x956   :  { %9044 = vmatmul.mubr.msk.f32.gmra.mrb[76].mxu0 %vm439_vm12, %v12977_v49  ;;  %9056 = vmatmul.mubr.msk.f32.gmra.mrb[76].mxu1 %vm439_vm12, %v12977_v49 }
 0x957   :  { %2835 = vmatprep.mubr.f32.mxu0 %v11786_v2  ;;  %2972 = vmatprep.mubr.f32.mxu1 %v11786_v2 }
 0x95a   :  { %9045 = vmatmul.mubr.msk.f32.gmra.mrb[78].mxu0 %vm439_vm12, %v12987_v33  ;;  %9057 = vmatmul.mubr.msk.f32.gmra.mrb[78].mxu1 %vm439_vm12, %v12987_v33 }
 0x95b   :  { %2841 = vmatprep.mubr.f32.mxu0 %v11786_v2  ;;  %2978 = vmatprep.mubr.f32.mxu1 %v11786_v2 }
 0x95e   :  { %9046 = vmatmul.mubr.msk.f32.gmra.mrb[80].mxu0 %vm439_vm12, %v12999_v45  ;;  %9058 = vmatmul.mubr.msk.f32.gmra.mrb[80].mxu1 %vm439_vm12, %v12999_v45 }
 0x95f   :  { %2847 = vmatprep.mubr.f32.mxu0 %v11786_v2  ;;  %2984 = vmatprep.mubr.f32.mxu1 %v11786_v2 }
 0x962   :  { %9047 = vmatmul.mubr.msk.f32.gmra.mrb[82].mxu0 %vm439_vm12, %v13008_v34  ;;  %9059 = vmatmul.mubr.msk.f32.gmra.mrb[82].mxu1 %vm439_vm12, %v13008_v34 }
 0x963   :  { %3055 = vmatprep.mubr.f32.mxu0 %v11786_v2  ;;  %3192 = vmatprep.mubr.f32.mxu1 %v11786_v2 }
 0x966   :  { %9060 = vmatmul.mubr.msk.f32.vlgmr.msra.gmra.mrb[84].mxu0 %vm439_vm12, %v12885_v37  ;;  %9072 = vmatmul.mubr.msk.f32.vlgmr.msra.gmra.mrb[84].mxu1 %vm439_vm12, %v12885_v37 }
 0x967   :  { %3061 = vmatprep.mubr.f32.mxu0 %v11786_v2  ;;  %3198 = vmatprep.mubr.f32.mxu1 %v11786_v2 }
 0x968   :  { %3266 = vmatpush1.msra.mxu0 %v2319_v29  ;;  %3403 = vmatpush1.msra.mxu1 %v2321_v21  ;;  %v3740_v29 = vld [vmem:[%s12013_s4 + $0x48] sm:$0xff]  ;;  %v10737_v21 = vpack.c.bf16 %v3756_v24, %v3755_v44 }
 0x969   :  { %10722 = vmatprep.subr.bf16.mxu0 %v10721_v40  ;;  %10754 = vmatprep.subr.bf16.mxu1 %v10753_v15  ;;  %v10769_v40 = vpack.c.bf16 %v3788_v11, %v3787_v58  ;;  %v3771_v15 = vld [vmem:[%s12013_s4 + $0x140] sm:$0xff]  ;;  %v10739_v19 = vpack.c.bf16 %v3740_v29, %v3739_v7  ;;  %v3844_v44 = vld [vmem:[%s12013_s4 + $0x388] sm:$0xff] }
 0x96a   :  { %9061 = vmatmul.mubr.msk.f32.gmra.mrb[86].mxu0 %vm439_vm12, %v12899_v6  ;;  %9073 = vmatmul.mubr.msk.f32.gmra.mrb[86].mxu1 %vm439_vm12, %v12899_v6  ;;  %v10771_v27 = vpack.c.bf16 %v3772_v39, %v3771_v15  ;;  %v13306_v29 = vld [vmem:[%s11998_s12] sm:$0xff] }
 0x96b   :  { %3067 = vmatprep.mubr.f32.mxu0 %v11786_v2  ;;  %3204 = vmatprep.mubr.f32.mxu1 %v11786_v2 }
 0x96e   :  { %9062 = vmatmul.mubr.msk.f32.gmra.mrb[88].mxu0 %vm439_vm12, %v12911_v28  ;;  %9074 = vmatmul.mubr.msk.f32.gmra.mrb[88].mxu1 %vm439_vm12, %v12911_v28 }
 0x96f   :  { %3073 = vmatprep.mubr.f32.mxu0 %v11786_v2  ;;  %3210 = vmatprep.mubr.f32.mxu1 %v11786_v2 }
 0x972   :  { %9063 = vmatmul.mubr.msk.f32.gmra.mrb[90].mxu0 %vm439_vm12, %v12921_v35  ;;  %9075 = vmatmul.mubr.msk.f32.gmra.mrb[90].mxu1 %vm439_vm12, %v12921_v35 }
 0x973   :  { %3079 = vmatprep.mubr.f32.mxu0 %v11786_v2  ;;  %3216 = vmatprep.mubr.f32.mxu1 %v11786_v2 }
 0x976   :  { %9064 = vmatmul.mubr.msk.f32.gmra.mrb[92].mxu0 %vm439_vm12, %v12933_v54  ;;  %9076 = vmatmul.mubr.msk.f32.gmra.mrb[92].mxu1 %vm439_vm12, %v12933_v54 }
 0x977   :  { %3085 = vmatprep.mubr.f32.mxu0 %v11786_v2  ;;  %3222 = vmatprep.mubr.f32.mxu1 %v11786_v2 }
 0x97a   :  { %9065 = vmatmul.mubr.msk.f32.gmra.mrb[94].mxu0 %vm439_vm12, %v12943_v52  ;;  %9077 = vmatmul.mubr.msk.f32.gmra.mrb[94].mxu1 %vm439_vm12, %v12943_v52 }
 0x97b   :  { %3091 = vmatprep.mubr.f32.mxu0 %v11786_v2  ;;  %3228 = vmatprep.mubr.f32.mxu1 %v11786_v2 }
 0x97e   :  { %9066 = vmatmul.mubr.msk.f32.gmra.mrb[96].mxu0 %vm439_vm12, %v12955_v57  ;;  %9078 = vmatmul.mubr.msk.f32.gmra.mrb[96].mxu1 %vm439_vm12, %v12955_v57 }
 0x97f   :  { %3097 = vmatprep.mubr.f32.mxu0 %v11786_v2  ;;  %3234 = vmatprep.mubr.f32.mxu1 %v11786_v2 }
 0x982   :  { %9067 = vmatmul.mubr.msk.f32.gmra.mrb[98].mxu0 %vm439_vm12, %v12965_v47  ;;  %9079 = vmatmul.mubr.msk.f32.gmra.mrb[98].mxu1 %vm439_vm12, %v12965_v47 }
 0x983   :  { %3103 = vmatprep.mubr.f32.mxu0 %v11786_v2  ;;  %3240 = vmatprep.mubr.f32.mxu1 %v11786_v2 }
 0x986   :  { %9068 = vmatmul.mubr.msk.f32.gmra.mrb[100].mxu0 %vm439_vm12, %v12977_v49  ;;  %9080 = vmatmul.mubr.msk.f32.gmra.mrb[100].mxu1 %vm439_vm12, %v12977_v49 }
 0x987   :  { %3109 = vmatprep.mubr.f32.mxu0 %v11786_v2  ;;  %3246 = vmatprep.mubr.f32.mxu1 %v11786_v2 }
 0x98a   :  { %9069 = vmatmul.mubr.msk.f32.gmra.mrb[102].mxu0 %vm439_vm12, %v12987_v33  ;;  %9081 = vmatmul.mubr.msk.f32.gmra.mrb[102].mxu1 %vm439_vm12, %v12987_v33 }
 0x98b   :  { %3115 = vmatprep.mubr.f32.mxu0 %v11786_v2  ;;  %3252 = vmatprep.mubr.f32.mxu1 %v11786_v2 }
 0x98e   :  { %9070 = vmatmul.mubr.msk.f32.gmra.mrb[104].mxu0 %vm439_vm12, %v12999_v45  ;;  %9082 = vmatmul.mubr.msk.f32.gmra.mrb[104].mxu1 %vm439_vm12, %v12999_v45 }
 0x98f   :  { %3121 = vmatprep.mubr.f32.mxu0 %v11786_v2  ;;  %3258 = vmatprep.mubr.f32.mxu1 %v11786_v2 }
 0x992   :  { %9071 = vmatmul.mubr.msk.f32.gmra.mrb[106].mxu0 %vm439_vm12, %v13008_v34  ;;  %9083 = vmatmul.mubr.msk.f32.gmra.mrb[106].mxu1 %vm439_vm12, %v13008_v34 }
 0x993   :  { %3329 = vmatprep.mubr.f32.mxu0 %v11786_v2  ;;  %3466 = vmatprep.mubr.f32.mxu1 %v11786_v2 }
 0x996   :  { %9084 = vmatmul.mubr.msk.f32.vlgmr.msra.gmra.mrb[108].mxu0 %vm439_vm12, %v12885_v37  ;;  %9096 = vmatmul.mubr.msk.f32.vlgmr.msra.gmra.mrb[108].mxu1 %vm439_vm12, %v12885_v37 }
 0x997   :  { %3335 = vmatprep.mubr.f32.mxu0 %v11786_v2  ;;  %3472 = vmatprep.mubr.f32.mxu1 %v11786_v2 }
 0x998   :  { %10724 = vmatpush3.bf16.msra.mxu0 %v10723_v43  ;;  %10756 = vmatpush3.bf16.msra.mxu1 %v10755_v26  ;;  %v3742_v43 = vld [vmem:[%s12013_s4 + $0x58] sm:$0xff]  ;;  %v10741_v26 = vpack.c.bf16 %v3758_v13, %v3757_v18 }
 0x999   :  { %10726 = vmatprep.subr.bf16.mxu0 %v10725_v53  ;;  %10758 = vmatprep.subr.bf16.mxu1 %v10757_v32  ;;  %v3774_v53 = vld [vmem:[%s12013_s4 + $0x158] sm:$0xff]  ;;  %v3759_v32 = vld [vmem:[%s12013_s4 + $0xe0] sm:$0xff]  ;;  %v10743_v5 = vpack.c.bf16 %v3742_v43, %v3741_v30 }
 0x99a   :  { %9085 = vmatmul.mubr.msk.f32.gmra.mrb[110].mxu0 %vm439_vm12, %v12899_v6  ;;  %9097 = vmatmul.mubr.msk.f32.gmra.mrb[110].mxu1 %vm439_vm12, %v12899_v6  ;;  %v10775_v62 = vpack.c.bf16 %v3774_v53, %v3773_v23  ;;  %v14924_v18 = vld [vmem:[#allocation41_spill] sm:$0xff]  ;;  %v3827_v43 = vld [vmem:[%s12013_s4 + $0x300] sm:$0xff] }
 0x99b   :  { %3341 = vmatprep.mubr.f32.mxu0 %v11786_v2  ;;  %3478 = vmatprep.mubr.f32.mxu1 %v11786_v2  ;;  %v13320_v13 = vrot.slane %v13306_v29, %v14924_v18 }
 0x99c   :  { %10728 = vmatpush3.bf16.msra.mxu0 %v10727_v42  ;;  %10760 = vmatpush3.bf16.msra.mxu1 %v10759_v10  ;;  %v3744_v42 = vld [vmem:[%s12013_s4 + $0x68] sm:$0xff]  ;;  %v10745_v10 = vpack.c.bf16 %v3760_v56, %v3759_v32 }
 0x99d   :  { %10730 = vmatprep.subr.bf16.mxu0 %v10729_v22  ;;  %10762 = vmatprep.subr.bf16.mxu1 %v10761_v61  ;;  %v3776_v22 = vld [vmem:[%s12013_s4 + $0x168] sm:$0xff]  ;;  %v3761_v61 = vld [vmem:[%s12013_s4 + $0xf0] sm:$0xff]  ;;  %v10747_v60 = vpack.c.bf16 %v3744_v42, %v3743_v41 }
 0x99e   :  { %9086 = vmatmul.mubr.msk.f32.gmra.mrb[112].mxu0 %vm439_vm12, %v12911_v28  ;;  %9098 = vmatmul.mubr.msk.f32.gmra.mrb[112].mxu1 %vm439_vm12, %v12911_v28  ;;  %v10779_v12 = vpack.c.bf16 %v3776_v22, %v3775_v0  ;;  %v13340_v42 = vld [vmem:[%s12013_s4 + $0x210] sm:$0xff]  ;;  %v13343_v0 = vld [vmem:[%s12013_s4 + $0x218] sm:$0xff] }
 0x99f   :  { %3347 = vmatprep.mubr.f32.mxu0 %v11786_v2  ;;  %3484 = vmatprep.mubr.f32.mxu1 %v11786_v2  ;;  %v13346_v22 = vld [vmem:[%s12013_s4 + $0x310] sm:$0xff] }
 0x9a0   :  { %10732 = vmatpush3.bf16.msra.mxu0 %v10731_v8  ;;  %10764 = vmatpush3.bf16.msra.mxu1 %v10763_v3  ;;  %v3746_v8 = vld [vmem:[%s12013_s4 + $0x78] sm:$0xff]  ;;  %v10749_v3 = vpack.c.bf16 %v3762_v4, %v3761_v61 }
 0x9a1   :  { %10734 = vmatprep.subr.bf16.mxu0 %v10733_v55  ;;  %10766 = vmatprep.subr.bf16.mxu1 %v10765_v63  ;;  %v3778_v55 = vld [vmem:[%s12013_s4 + $0x178] sm:$0xff]  ;;  %v3811_v63 = vld [vmem:[%s12013_s4 + $0x280] sm:$0xff]  ;;  %v10751_v24 = vpack.c.bf16 %v3746_v8, %v3745_v36 }
 0x9a2   :  { %9087 = vmatmul.mubr.msk.f32.gmra.mrb[114].mxu0 %vm439_vm12, %v12921_v35  ;;  %9099 = vmatmul.mubr.msk.f32.gmra.mrb[114].mxu1 %vm439_vm12, %v12921_v35  ;;  %v10783_v58 = vpack.c.bf16 %v3778_v55, %v3777_v59  ;;  %v10785_v11 = vpack.c.bf16 %v3812_v31, %v3811_v63  ;;  %v13349_v61 = vld [vmem:[%s12013_s4 + $0x318] sm:$0xff]  ;;  %v13352_v8 = vld [vmem:[%s12013_s4 + $0x2a0] sm:$0xff] }
 0x9a3   :  { %3353 = vmatprep.mubr.f32.mxu0 %v11786_v2  ;;  %3490 = vmatprep.mubr.f32.mxu1 %v11786_v2 }
 0x9a4   :  { %10736 = vmatpush3.bf16.msra.mxu0 %v10735_v16  ;;  %10768 = vmatpush3.bf16.msra.mxu1 %v10767_v51  ;;  %v10817_v16 = vpack.c.bf16 %v3844_v44, %v3843_v46  ;;  %v14922_v51 = vld [vmem:[#allocation39_spill] sm:$0xff] }
 0x9a5   :  { %10738 = vmatprep.subr.bf16.mxu0 %v10737_v21  ;;  %10770 = vmatprep.subr.bf16.mxu1 %v10769_v40  ;;  %v2337_v7 = vsub.s32 2, %v14922_v51  ;;  %v2341_v21 = vsub.s32 3, %v14922_v51  ;;  %v14923_v40 = vld [vmem:[#allocation40_spill] sm:$0xff]  ;;  %v13360_v44 = vld [vmem:[%s12013_s4 + $0x3a0] sm:$0xff] }
 0x9a6   :  { %9088 = vmatmul.mubr.msk.f32.gmra.mrb[116].mxu0 %vm439_vm12, %v12933_v54  ;;  %9100 = vmatmul.mubr.msk.f32.gmra.mrb[116].mxu1 %vm439_vm12, %v12933_v54  ;;  %v13311_v15 = vrot.slane %v13306_v29, %v14923_v40 }
 0x9a7   :  { %3359 = vmatprep.mubr.f32.mxu0 %v11786_v2  ;;  %3496 = vmatprep.mubr.f32.mxu1 %v11786_v2  ;;  %v13316_v39 = vrot.slane %v13306_v29, %v2337_v7  ;;  %v13325_v38 = vrot.slane %v13306_v29, %v2341_v21 }
 0x9a8   :  { %10740 = vmatpush3.bf16.msra.mxu0 %v10739_v19  ;;  %10772 = vmatpush3.bf16.msra.mxu1 %v10771_v27  ;;  %v3796_v19 = vld [vmem:[%s12013_s4 + $0x208] sm:$0xff] }
 0x9a9   :  { %10742 = vmatprep.subr.bf16.mxu0 %v10741_v26  ;;  %10774 = vmatprep.subr.bf16.mxu1 %v10773_v50  ;;  %v3828_v26 = vld [vmem:[%s12013_s4 + $0x308] sm:$0xff]  ;;  %v3813_v50 = vld [vmem:[%s12013_s4 + $0x290] sm:$0xff] }
 0x9aa   :  { %9089 = vmatmul.mubr.msk.f32.gmra.mrb[118].mxu0 %vm439_vm12, %v12943_v52  ;;  %9101 = vmatmul.mubr.msk.f32.gmra.mrb[118].mxu1 %vm439_vm12, %v12943_v52 }
 0x9ab   :  { %3365 = vmatprep.mubr.f32.mxu0 %v11786_v2  ;;  %3502 = vmatprep.mubr.f32.mxu1 %v11786_v2 }
 0x9ac   :  { %10744 = vmatpush3.bf16.msra.mxu0 %v10743_v5  ;;  %10776 = vmatpush3.bf16.msra.mxu1 %v10775_v62  ;;  %v3846_v5 = vld [vmem:[%s12013_s4 + $0x398] sm:$0xff] }
 0x9ad   :  { %10746 = vmatprep.subr.bf16.mxu0 %v10745_v10  ;;  %10778 = vmatprep.subr.bf16.mxu1 %v10777_v17  ;;  %v10787_v10 = vpack.c.bf16 %v3796_v19, %v3795_v14  ;;  %v10819_v17 = vpack.c.bf16 %v3828_v26, %v3827_v43  ;;  %v10821_v36 = vpack.c.bf16 %v3846_v5, %v3845_v1  ;;  %v13379_v43 = vld [vmem:[%s12013_s4 + $0x328] sm:$0xff]  ;;  %v13388_v1 = vld [vmem:[%s12013_s4 + $0x2b8] sm:$0xff] }
 0x9ae   :  { %9090 = vmatmul.mubr.msk.f32.gmra.mrb[120].mxu0 %vm439_vm12, %v12955_v57  ;;  %9102 = vmatmul.mubr.msk.f32.gmra.mrb[120].mxu1 %vm439_vm12, %v12955_v57  ;;  %v10791_v14 = vpack.c.bf16 %v13343_v0, %v13340_v42  ;;  %v10823_v19 = vpack.c.bf16 %v13349_v61, %v13346_v22  ;;  %v3850_v22 = vld [vmem:[%s12013_s4 + $0x3b8] sm:$0xff] }
 0x9af   :  { %3371 = vmatprep.mubr.f32.mxu0 %v11786_v2  ;;  %3508 = vmatprep.mubr.f32.mxu1 %v11786_v2 }
 0x9b0   :  { %10748 = vmatpush3.bf16.msra.mxu0 %v10747_v60  ;;  %10780 = vmatpush3.bf16.msra.mxu1 %v10779_v12  ;;  %v10789_v12 = vpack.c.bf16 %v3814_v25, %v3813_v50  ;;  %v13385_v25 = vld [vmem:[%s12013_s4 + $0x2b0] sm:$0xff] }
 0x9b1   :  { %10750 = vmatprep.subr.bf16.mxu0 %v10749_v3  ;;  %10782 = vmatprep.subr.bf16.mxu1 %v10781_v9  ;;  %v13355_v3 = vld [vmem:[%s12013_s4 + $0x2a8] sm:$0xff] }
 0x9b2   :  { %9091 = vmatmul.mubr.msk.f32.gmra.mrb[122].mxu0 %vm439_vm12, %v12965_v47  ;;  %9103 = vmatmul.mubr.msk.f32.gmra.mrb[122].mxu1 %vm439_vm12, %v12965_v47 }
 0x9b3   :  { %3377 = vmatprep.mubr.f32.mxu0 %v11786_v2  ;;  %3514 = vmatprep.mubr.f32.mxu1 %v11786_v2 }
 0x9b4   :  { %10752 = vmatpush3.bf16.msra.mxu0 %v10751_v24  ;;  %10784 = vmatpush3.bf16.msra.mxu1 %v10783_v58  ;;  %v3848_v24 = vld [vmem:[%s12013_s4 + $0x3a8] sm:$0xff] }
 0x9b5   :  { %10786 = vmatprep.subr.bf16.mxu0 %v10785_v11  ;;  %10818 = vmatprep.subr.bf16.mxu1 %v10817_v16  ;;  %v13366_v16 = vld [vmem:[%s12013_s4 + $0x220] sm:$0xff] }
 0x9b6   :  { %9092 = vmatmul.mubr.msk.f32.gmra.mrb[124].mxu0 %vm439_vm12, %v12977_v49  ;;  %9104 = vmatmul.mubr.msk.f32.gmra.mrb[124].mxu1 %vm439_vm12, %v12977_v49 }
 0x9b7   :  { %3383 = vmatprep.mubr.f32.mxu0 %v11786_v2  ;;  %3520 = vmatprep.mubr.f32.mxu1 %v11786_v2 }
 0x9ba   :  { %9093 = vmatmul.mubr.msk.f32.gmra.mrb[126].mxu0 %vm439_vm12, %v12987_v33  ;;  %9105 = vmatmul.mubr.msk.f32.gmra.mrb[126].mxu1 %vm439_vm12, %v12987_v33 }
 0x9bb   :  { %3389 = vmatprep.mubr.f32.mxu0 %v11786_v2  ;;  %3526 = vmatprep.mubr.f32.mxu1 %v11786_v2 }
 0x9be   :  { %9094 = vmatmul.mubr.msk.f32.gmra.mrb[128].mxu0 %vm439_vm12, %v12999_v45  ;;  %9106 = vmatmul.mubr.msk.f32.gmra.mrb[128].mxu1 %vm439_vm12, %v12999_v45 }
 0x9bf   :  { %3395 = vmatprep.mubr.f32.mxu0 %v11786_v2  ;;  %3532 = vmatprep.mubr.f32.mxu1 %v11786_v2 }
 0x9c2   :  { %9095 = vmatmul.mubr.msk.f32.gmra.mrb[130].mxu0 %vm439_vm12, %v13008_v34  ;;  %9107 = vmatmul.mubr.msk.f32.gmra.mrb[130].mxu1 %vm439_vm12, %v13008_v34 }
 0x9d9   :  { %v2509_v27 = vpop.f32.mrb[36].mxu0  ;;  %v2646_v30 = vpop.f32.mrb[36].mxu1 }
 0x9da   :  { %v2510_v23 = vadd.f32 %v2509_v27, %v13311_v15  ;;  %v2647_v53 = vadd.f32 %v2646_v30, %v13316_v39  ;;  %v2511_v32 = vpop.f32.mrb[37].mxu0  ;;  %v2648_v56 = vpop.f32.mrb[37].mxu1  ;;  %v13373_v27 = vld [vmem:[%s12013_s4 + $0x228] sm:$0xff]  ;;  %v13376_v30 = vld [vmem:[%s12013_s4 + $0x320] sm:$0xff] }
 0x9db   :  { %v2512_v62 = vadd.f32 %v2511_v32, %v13320_v13  ;;  %v2649_v41 = vadd.f32 %v2648_v56, %v13325_v38  ;;  %v10793_v32 = vpack.c.bf16 %v13355_v3, %v13352_v8  ;;  %v10825_v56 = vpack.c.bf16 %v3848_v24, %v13360_v44  ;;  %v13412_v8 = vld [vmem:[%s12013_s4 + $0x338] sm:$0xff]  ;;  %v13421_v44 = vld [vmem:[%s12013_s4 + $0x2c8] sm:$0xff] }
 0x9dc   :  { %v3539_v9 = vmax.f32 %v2510_v23, 0.0  ;;  %v3541_v59 = vmax.f32 %v2647_v53, 0.0 }
 0x9dd   :  { %v3540_v4 = vmax.f32 %v2512_v62, 0.0  ;;  %v3542_v48 = vmax.f32 %v2649_v41, 0.0  ;;  %v2515_v20 = vpop.f32.mrb[38].mxu0  ;;  %v2652_v60 = vpop.f32.mrb[38].mxu1 }
 0x9de   :  { %v2516_v55 = vadd.f32 %v2515_v20, %v13311_v15  ;;  %v2653_v63 = vadd.f32 %v2652_v60, %v13316_v39  ;;  %v2517_v31 = vpop.f32.mrb[39].mxu0  ;;  %v2654_v46 = vpop.f32.mrb[39].mxu1  ;;  %v10795_v20 = vpack.c.bf16 %v13373_v27, %v13366_v16  ;;  %v10827_v60 = vpack.c.bf16 %v13379_v43, %v13376_v30  ;;  %v3852_v30 = vld [vmem:[%s12013_s4 + $0x3c8] sm:$0xff] }
 0x9df   :  { %v2518_v58 = vadd.f32 %v2517_v31, %v13320_v13  ;;  %v2655_v11 = vadd.f32 %v2654_v46, %v13325_v38  ;;  %4058 = vmatprep.mubr.f32.mxu0 %v3540_v4  ;;  %4183 = vmatprep.mubr.f32.mxu1 %v3542_v48  ;;  %v13399_v48 = vld [vmem:[%s12013_s4 + $0x230] sm:$0xff]  ;;  %v13418_v46 = vld [vmem:[%s12013_s4 + $0x2c0] sm:$0xff] }
 0x9e0   :  { %4059 = vmatmul.mubr.f32.vlgmr.msra.gmra.mrb[132].mxu0 %v3539_v9  ;;  %4184 = vmatmul.mubr.f32.vlgmr.msra.gmra.mrb[132].mxu1 %v3541_v59  ;;  %v3555_v5 = vmax.f32 %v2516_v55, 0.0  ;;  %v3557_v62 = vmax.f32 %v2653_v63, 0.0  ;;  %v10797_v63 = vpack.c.bf16 %v13388_v1, %v13385_v25  ;;  %v13445_v25 = vld [vmem:[%s12013_s4 + $0x348] sm:$0xff] }
 0x9e1   :  { %v3556_v26 = vmax.f32 %v2518_v58, 0.0  ;;  %v3558_v50 = vmax.f32 %v2655_v11, 0.0  ;;  %v2521_v23 = vpop.f32.mrb[40].mxu0  ;;  %v2658_v53 = vpop.f32.mrb[40].mxu1  ;;  %10788 = vmatpush3.bf16.msra.mxu0 %v10787_v10  ;;  %10820 = vmatpush3.bf16.msra.mxu1 %v10819_v17  ;;  %v13393_v17 = vld [vmem:[%s12013_s4 + $0x3b0] sm:$0xff] }
 0x9e2   :  { %v2522_v41 = vadd.f32 %v2521_v23, %v13311_v15  ;;  %v2659_v42 = vadd.f32 %v2658_v53, %v13316_v39  ;;  %v2523_v0 = vpop.f32.mrb[41].mxu0  ;;  %v2660_v10 = vpop.f32.mrb[41].mxu1  ;;  %10790 = vmatprep.subr.bf16.mxu0 %v10789_v12  ;;  %10822 = vmatprep.subr.bf16.mxu1 %v10821_v36  ;;  %v13406_v12 = vld [vmem:[%s12013_s4 + $0x238] sm:$0xff]  ;;  %v13409_v36 = vld [vmem:[%s12013_s4 + $0x330] sm:$0xff]  ;;  %v10829_v31 = vpack.c.bf16 %v3850_v22, %v13393_v17 }
 0x9e3   :  { %v2524_v61 = vadd.f32 %v2523_v0, %v13320_v13  ;;  %v2661_v4 = vadd.f32 %v2660_v10, %v13325_v38  ;;  %4063 = vmatprep.mubr.f32.mxu0 %v3556_v26  ;;  %4188 = vmatprep.mubr.f32.mxu1 %v3558_v50  ;;  %v13432_v50 = vld [vmem:[%s12013_s4 + $0x240] sm:$0xff]  ;;  %v10799_v23 = vpack.c.bf16 %v13406_v12, %v13399_v48  ;;  %v13451_v10 = vld [vmem:[%s12013_s4 + $0x2d0] sm:$0xff]  ;;  %v13454_v17 = vld [vmem:[%s12013_s4 + $0x2d8] sm:$0xff] }
 0x9e4   :  { %4064 = vmatmul.mubr.f32.gmra.mrb[134].mxu0 %v3555_v5  ;;  %4189 = vmatmul.mubr.f32.gmra.mrb[134].mxu1 %v3557_v62  ;;  %v3571_v24 = vmax.f32 %v2522_v41, 0.0  ;;  %v3573_v58 = vmax.f32 %v2659_v42, 0.0  ;;  %v10831_v53 = vpack.c.bf16 %v13412_v8, %v13409_v36  ;;  %v10801_v42 = vpack.c.bf16 %v13421_v44, %v13418_v46  ;;  %v3854_v36 = vld [vmem:[%s12013_s4 + $0x3d8] sm:$0xff] }
 0x9e5   :  { %v3572_v3 = vmax.f32 %v2524_v61, 0.0  ;;  %v3574_v9 = vmax.f32 %v2661_v4, 0.0  ;;  %v2527_v59 = vpop.f32.mrb[42].mxu0  ;;  %v2664_v55 = vpop.f32.mrb[42].mxu1  ;;  %10792 = vmatpush3.bf16.msra.mxu0 %v10791_v14  ;;  %10824 = vmatpush3.bf16.msra.mxu1 %v10823_v19  ;;  %v13426_v19 = vld [vmem:[%s12013_s4 + $0x3c0] sm:$0xff]  ;;  %v13478_v46 = vld [vmem:[%s12013_s4 + $0x358] sm:$0xff] }
 0x9e6   :  { %v2528_v11 = vadd.f32 %v2527_v59, %v13311_v15  ;;  %v2665_v16 = vadd.f32 %v2664_v55, %v13316_v39  ;;  %v2529_v27 = vpop.f32.mrb[43].mxu0  ;;  %v2666_v14 = vpop.f32.mrb[43].mxu1  ;;  %10794 = vmatprep.subr.bf16.mxu0 %v10793_v32  ;;  %10826 = vmatprep.subr.bf16.mxu1 %v10825_v56  ;;  %v13439_v32 = vld [vmem:[%s12013_s4 + $0x248] sm:$0xff]  ;;  %v13442_v56 = vld [vmem:[%s12013_s4 + $0x340] sm:$0xff]  ;;  %v10833_v0 = vpack.c.bf16 %v3852_v30, %v13426_v19 }
 0x9e7   :  { %v2530_v43 = vadd.f32 %v2529_v27, %v13320_v13  ;;  %v2667_v26 = vadd.f32 %v2666_v14, %v13325_v38  ;;  %4068 = vmatprep.mubr.f32.mxu0 %v3572_v3  ;;  %4193 = vmatprep.mubr.f32.mxu1 %v3574_v9  ;;  %v13465_v9 = vld [vmem:[%s12013_s4 + $0x250] sm:$0xff]  ;;  %v10803_v59 = vpack.c.bf16 %v13439_v32, %v13432_v50  ;;  %v13484_v14 = vld [vmem:[%s12013_s4 + $0x2e0] sm:$0xff]  ;;  %v13487_v19 = vld [vmem:[%s12013_s4 + $0x2e8] sm:$0xff] }
 0x9e8   :  { %4069 = vmatmul.mubr.f32.gmra.mrb[136].mxu0 %v3571_v24  ;;  %4194 = vmatmul.mubr.f32.gmra.mrb[136].mxu1 %v3573_v58  ;;  %v3587_v22 = vmax.f32 %v2528_v11, 0.0  ;;  %v3589_v61 = vmax.f32 %v2665_v16, 0.0  ;;  %v10835_v55 = vpack.c.bf16 %v13445_v25, %v13442_v56  ;;  %v10805_v16 = vpack.c.bf16 %v13454_v17, %v13451_v10  ;;  %v3856_v56 = vld [vmem:[%s12013_s4 + $0x3e8] sm:$0xff] }
 0x9e9   :  { %v3588_v1 = vmax.f32 %v2530_v43, 0.0  ;;  %v3590_v5 = vmax.f32 %v2667_v26, 0.0  ;;  %v2533_v62 = vpop.f32.mrb[44].mxu0  ;;  %v2670_v41 = vpop.f32.mrb[44].mxu1  ;;  %10796 = vmatpush3.bf16.msra.mxu0 %v10795_v20  ;;  %10828 = vmatpush3.bf16.msra.mxu1 %v10827_v60  ;;  %v13459_v60 = vld [vmem:[%s12013_s4 + $0x3d0] sm:$0xff]  ;;  %v13511_v10 = vld [vmem:[%s12013_s4 + $0x368] sm:$0xff] }
 0x9ea   :  { %v2534_v4 = vadd.f32 %v2533_v62, %v13311_v15  ;;  %v2671_v48 = vadd.f32 %v2670_v41, %v13316_v39  ;;  %v2535_v12 = vpop.f32.mrb[45].mxu0  ;;  %v2672_v20 = vpop.f32.mrb[45].mxu1  ;;  %10798 = vmatprep.subr.bf16.mxu0 %v10797_v63  ;;  %10830 = vmatprep.subr.bf16.mxu1 %v10829_v31  ;;  %v13472_v63 = vld [vmem:[%s12013_s4 + $0x258] sm:$0xff]  ;;  %v13475_v31 = vld [vmem:[%s12013_s4 + $0x350] sm:$0xff]  ;;  %v10837_v27 = vpack.c.bf16 %v3854_v36, %v13459_v60 }
 0x9eb   :  { %v2536_v8 = vadd.f32 %v2535_v12, %v13320_v13  ;;  %v2673_v3 = vadd.f32 %v2672_v20, %v13325_v38  ;;  %4073 = vmatprep.mubr.f32.mxu0 %v3588_v1  ;;  %4198 = vmatprep.mubr.f32.mxu1 %v3590_v5  ;;  %v13498_v5 = vld [vmem:[%s12013_s4 + $0x260] sm:$0xff]  ;;  %v10807_v62 = vpack.c.bf16 %v13472_v63, %v13465_v9  ;;  %v13517_v20 = vld [vmem:[%s12013_s4 + $0x2f0] sm:$0xff]  ;;  %v13520_v60 = vld [vmem:[%s12013_s4 + $0x2f8] sm:$0xff] }
 0x9ec   :  { %4074 = vmatmul.mubr.f32.gmra.mrb[138].mxu0 %v3587_v22  ;;  %4199 = vmatmul.mubr.f32.gmra.mrb[138].mxu1 %v3589_v61  ;;  %v3603_v30 = vmax.f32 %v2534_v4, 0.0  ;;  %v3605_v43 = vmax.f32 %v2671_v48, 0.0  ;;  %v10839_v41 = vpack.c.bf16 %v13478_v46, %v13475_v31  ;;  %v10809_v48 = vpack.c.bf16 %v13487_v19, %v13484_v14  ;;  %v3858_v31 = vld [vmem:[%s12013_s4 + $0x3f8] sm:$0xff] }
 0x9ed   :  { %v3604_v44 = vmax.f32 %v2536_v8, 0.0  ;;  %v3606_v24 = vmax.f32 %v2673_v3, 0.0  ;;  %v2539_v58 = vpop.f32.mrb[46].mxu0  ;;  %v2676_v11 = vpop.f32.mrb[46].mxu1  ;;  %10800 = vmatpush3.bf16.msra.mxu0 %v10799_v23  ;;  %10832 = vmatpush3.bf16.msra.mxu1 %v10831_v53  ;;  %v13492_v53 = vld [vmem:[%s12013_s4 + $0x3e0] sm:$0xff]  ;;  %v3842_v14 = vld [vmem:[%s12013_s4 + $0x378] sm:$0xff] }
 0x9ee   :  { %v2540_v26 = vadd.f32 %v2539_v58, %v13311_v15  ;;  %v2677_v50 = vadd.f32 %v2676_v11, %v13316_v39  ;;  %v2541_v32 = vpop.f32.mrb[47].mxu0  ;;  %v2678_v23 = vpop.f32.mrb[47].mxu1  ;;  %10802 = vmatprep.subr.bf16.mxu0 %v10801_v42  ;;  %10834 = vmatprep.subr.bf16.mxu1 %v10833_v0  ;;  %v13505_v42 = vld [vmem:[%s12013_s4 + $0x268] sm:$0xff]  ;;  %v13508_v0 = vld [vmem:[%s12013_s4 + $0x360] sm:$0xff]  ;;  %v10841_v12 = vpack.c.bf16 %v3856_v56, %v13492_v53 }
 0x9ef   :  { %v2542_v25 = vadd.f32 %v2541_v32, %v13320_v13  ;;  %v2679_v1 = vadd.f32 %v2678_v23, %v13325_v38  ;;  %4078 = vmatprep.mubr.f32.mxu0 %v3604_v44  ;;  %4203 = vmatprep.mubr.f32.mxu1 %v3606_v24  ;;  %v3809_v24 = vld [vmem:[%s12013_s4 + $0x270] sm:$0xff]  ;;  %v10811_v58 = vpack.c.bf16 %v13505_v42, %v13498_v5  ;;  %v3875_v23 = vld [vmem:[%s12013_s4 + $0x480] sm:$0xff]  ;;  %v3876_v53 = vld [vmem:[%s12013_s4 + $0x488] sm:$0xff] }
 0x9f0   :  { %4079 = vmatmul.mubr.f32.gmra.mrb[140].mxu0 %v3603_v30  ;;  %4204 = vmatmul.mubr.f32.gmra.mrb[140].mxu1 %v3605_v43  ;;  %v3619_v36 = vmax.f32 %v2540_v26, 0.0  ;;  %v3621_v8 = vmax.f32 %v2677_v50, 0.0  ;;  %v10843_v11 = vpack.c.bf16 %v13511_v10, %v13508_v0  ;;  %v10813_v50 = vpack.c.bf16 %v13520_v60, %v13517_v20  ;;  %v3907_v10 = vld [vmem:[%s12013_s4 + $0x580] sm:$0xff] }
 0x9f1   :  { %v3620_v17 = vmax.f32 %v2542_v25, 0.0  ;;  %v3622_v22 = vmax.f32 %v2679_v1, 0.0  ;;  %v2545_v61 = vpop.f32.mrb[48].mxu0  ;;  %v2682_v4 = vpop.f32.mrb[48].mxu1  ;;  %10804 = vmatpush3.bf16.msra.mxu0 %v10803_v59  ;;  %10836 = vmatpush3.bf16.msra.mxu1 %v10835_v55  ;;  %v3857_v55 = vld [vmem:[%s12013_s4 + $0x3f0] sm:$0xff] }
 0x9f2   :  { %v2546_v3 = vadd.f32 %v2545_v61, %v13311_v15  ;;  %v2683_v9 = vadd.f32 %v2682_v4, %v13316_v39  ;;  %v2547_v63 = vpop.f32.mrb[49].mxu0  ;;  %v2684_v59 = vpop.f32.mrb[49].mxu1  ;;  %10806 = vmatprep.subr.bf16.mxu0 %v10805_v16  ;;  %10838 = vmatprep.subr.bf16.mxu1 %v10837_v27  ;;  %v3810_v16 = vld [vmem:[%s12013_s4 + $0x278] sm:$0xff]  ;;  %v3841_v27 = vld [vmem:[%s12013_s4 + $0x370] sm:$0xff]  ;;  %v10845_v32 = vpack.c.bf16 %v3858_v31, %v3857_v55 }
 0x9f3   :  { %v2548_v46 = vadd.f32 %v2547_v63, %v13320_v13  ;;  %v2685_v44 = vadd.f32 %v2684_v59, %v13325_v38  ;;  %4083 = vmatprep.mubr.f32.mxu0 %v3620_v17  ;;  %4208 = vmatprep.mubr.f32.mxu1 %v3622_v22  ;;  %v3908_v17 = vld [vmem:[%s12013_s4 + $0x588] sm:$0xff]  ;;  %v10815_v22 = vpack.c.bf16 %v3810_v16, %v3809_v24 }
 0x9f4   :  { %4084 = vmatmul.mubr.f32.gmra.mrb[142].mxu0 %v3619_v36  ;;  %4209 = vmatmul.mubr.f32.gmra.mrb[142].mxu1 %v3621_v8  ;;  %v3635_v56 = vmax.f32 %v2546_v3, 0.0  ;;  %v3637_v25 = vmax.f32 %v2683_v9, 0.0  ;;  %v10847_v61 = vpack.c.bf16 %v3842_v14, %v3841_v27 }
 0x9f5   :  { %v3636_v19 = vmax.f32 %v2548_v46, 0.0  ;;  %v3638_v30 = vmax.f32 %v2685_v44, 0.0  ;;  %v2551_v43 = vpop.f32.mrb[50].mxu0  ;;  %v2688_v26 = vpop.f32.mrb[50].mxu1  ;;  %10808 = vmatpush3.bf16.msra.mxu0 %v10807_v62  ;;  %10840 = vmatpush3.bf16.msra.mxu1 %v10839_v41 }
 0x9f6   :  { %v2552_v1 = vadd.f32 %v2551_v43, %v13311_v15  ;;  %v2689_v5 = vadd.f32 %v2688_v26, %v13316_v39  ;;  %v2553_v42 = vpop.f32.mrb[51].mxu0  ;;  %v2690_v0 = vpop.f32.mrb[51].mxu1  ;;  %10810 = vmatprep.subr.bf16.mxu0 %v10809_v48  ;;  %10842 = vmatprep.subr.bf16.mxu1 %v10841_v12  ;;  %v10849_v48 = vpack.c.bf16 %v3876_v53, %v3875_v23 }
 0x9f7   :  { %v2554_v62 = vadd.f32 %v2553_v42, %v13320_v13  ;;  %v2691_v41 = vadd.f32 %v2690_v0, %v13325_v38  ;;  %4088 = vmatprep.mubr.f32.mxu0 %v3636_v19  ;;  %4213 = vmatprep.mubr.f32.mxu1 %v3638_v30  ;;  %v10881_v12 = vpack.c.bf16 %v3908_v17, %v3907_v10 }
 0x9f8   :  { %4089 = vmatmul.mubr.f32.gmra.mrb[144].mxu0 %v3635_v56  ;;  %4214 = vmatmul.mubr.f32.gmra.mrb[144].mxu1 %v3637_v25  ;;  %v3651_v8 = vmax.f32 %v2552_v1, 0.0  ;;  %v3653_v3 = vmax.f32 %v2689_v5, 0.0  ;;  %v2353_v1 = vsub.s32 6, %v14922_v51  ;;  %v2349_v5 = vsub.s32 5, %v14922_v51 }
 0x9f9   :  { %v3652_v4 = vmax.f32 %v2554_v62, 0.0  ;;  %v3654_v20 = vmax.f32 %v2691_v41, 0.0  ;;  %v2557_v60 = vpop.f32.mrb[52].mxu0  ;;  %v2694_v36 = vpop.f32.mrb[52].mxu1  ;;  %10812 = vmatpush3.bf16.msra.mxu0 %v10811_v58  ;;  %10844 = vmatpush3.bf16.msra.mxu1 %v10843_v11 }
 0x9fa   :  { %v2558_v9 = vadd.f32 %v2557_v60, %v13311_v15  ;;  %v2695_v63 = vadd.f32 %v2694_v36, %v13316_v39  ;;  %v2559_v59 = vpop.f32.mrb[53].mxu0  ;;  %v2696_v55 = vpop.f32.mrb[53].mxu1  ;;  %10814 = vmatprep.subr.bf16.mxu0 %v10813_v50  ;;  %10846 = vmatprep.subr.bf16.mxu1 %v10845_v32  ;;  %v2345_v32 = vsub.s32 4, %v14922_v51 }
 0x9fb   :  { %v2560_v31 = vadd.f32 %v2559_v59, %v13320_v13  ;;  %v2697_v46 = vadd.f32 %v2696_v55, %v13325_v38  ;;  %4093 = vmatprep.mubr.f32.mxu0 %v3652_v4  ;;  %4218 = vmatprep.mubr.f32.mxu1 %v3654_v20  ;;  %v2357_v4 = vsub.s32 7, %v14922_v51 }
 0x9fc   :  { %4094 = vmatmul.mubr.f32.gmra.mrb[146].mxu0 %v3651_v8  ;;  %4219 = vmatmul.mubr.f32.gmra.mrb[146].mxu1 %v3653_v3  ;;  %v3667_v16 = vmax.f32 %v2558_v9, 0.0  ;;  %v3669_v27 = vmax.f32 %v2695_v63, 0.0  ;;  %v13565_v20 = vrot.slane %v13306_v29, %v2345_v32  ;;  %v13570_v8 = vrot.slane %v13306_v29, %v2353_v1 }
 0x9fd   :  { %v3668_v44 = vmax.f32 %v2560_v31, 0.0  ;;  %v3670_v24 = vmax.f32 %v2697_v46, 0.0  ;;  %v2563_v58 = vpop.f32.mrb[54].mxu0  ;;  %v2700_v11 = vpop.f32.mrb[54].mxu1  ;;  %10816 = vmatpush3.bf16.msra.mxu0 %v10815_v22  ;;  %10848 = vmatpush3.bf16.msra.mxu1 %v10847_v61  ;;  %v13575_v3 = vrot.slane %v13306_v29, %v2349_v5 }
 0x9fe   :  { %v2564_v14 = vadd.f32 %v2563_v58, %v13311_v15  ;;  %v2701_v19 = vadd.f32 %v2700_v11, %v13316_v39  ;;  %v2565_v30 = vpop.f32.mrb[55].mxu0  ;;  %v2702_v43 = vpop.f32.mrb[55].mxu1  ;;  %10850 = vmatprep.subr.bf16.mxu0 %v10849_v48  ;;  %10882 = vmatprep.subr.bf16.mxu1 %v10881_v12  ;;  %v13584_v58 = vrot.slane %v13306_v29, %v2357_v4  ;;  %v13587_v11 = vld [vmem:[%s12013_s4 + $0x400] sm:$0xff] }
 0x9ff   :  { %v2566_v26 = vadd.f32 %v2565_v30, %v13320_v13  ;;  %v2703_v50 = vadd.f32 %v2702_v43, %v13325_v38  ;;  %4098 = vmatprep.mubr.f32.mxu0 %v3668_v44  ;;  %4223 = vmatprep.mubr.f32.mxu1 %v3670_v24  ;;  %v13596_v30 = vld [vmem:[%s12013_s4 + $0x498] sm:$0xff] }
 0xa00   :  { %4099 = vmatmul.mubr.f32.gmra.mrb[148].mxu0 %v3667_v16  ;;  %4224 = vmatmul.mubr.f32.gmra.mrb[148].mxu1 %v3669_v27  ;;  %v3683_v42 = vmax.f32 %v2564_v14, 0.0  ;;  %v3685_v0 = vmax.f32 %v2701_v19, 0.0  ;;  %v3892_v16 = vld [vmem:[%s12013_s4 + $0x508] sm:$0xff]  ;;  %v13593_v19 = vld [vmem:[%s12013_s4 + $0x490] sm:$0xff] }
 0xa01   :  { %v3684_v23 = vmax.f32 %v2566_v26, 0.0  ;;  %v3686_v53 = vmax.f32 %v2703_v50, 0.0  ;;  %v2569_v56 = vpop.f32.mrb[56].mxu0  ;;  %v2706_v25 = vpop.f32.mrb[56].mxu1 }
 0xa02   :  { %v2570_v10 = vadd.f32 %v2569_v56, %v13311_v15  ;;  %v2707_v17 = vadd.f32 %v2706_v25, %v13316_v39  ;;  %v2571_v62 = vpop.f32.mrb[57].mxu0  ;;  %v2708_v41 = vpop.f32.mrb[57].mxu1  ;;  %v3909_v56 = vld [vmem:[%s12013_s4 + $0x590] sm:$0xff]  ;;  %v3910_v25 = vld [vmem:[%s12013_s4 + $0x598] sm:$0xff] }
 0xa03   :  { %v2572_v22 = vadd.f32 %v2571_v62, %v13320_v13  ;;  %v2709_v61 = vadd.f32 %v2708_v41, %v13325_v38  ;;  %4103 = vmatprep.mubr.f32.mxu0 %v3684_v23  ;;  %4228 = vmatprep.mubr.f32.mxu1 %v3686_v53  ;;  %v13609_v41 = vld [vmem:[%s12013_s4 + $0x418] sm:$0xff] }
 0xa04   :  { %4104 = vmatmul.mubr.f32.gmra.mrb[150].mxu0 %v3683_v42  ;;  %4229 = vmatmul.mubr.f32.gmra.mrb[150].mxu1 %v3685_v0  ;;  %v3699_v9 = vmax.f32 %v2570_v10, 0.0  ;;  %v3701_v63 = vmax.f32 %v2707_v17, 0.0  ;;  %v13605_v10 = vld [vmem:[%s12013_s4 + $0x410] sm:$0xff] }
 0xa05   :  { %v3700_v60 = vmax.f32 %v2572_v22, 0.0  ;;  %v3702_v36 = vmax.f32 %v2709_v61, 0.0  ;;  %v2575_v48 = vpop.f32.mrb[58].mxu0  ;;  %v2712_v12 = vpop.f32.mrb[58].mxu1  ;;  %v13612_v22 = vld [vmem:[%s12013_s4 + $0x510] sm:$0xff]  ;;  %v13615_v61 = vld [vmem:[%s12013_s4 + $0x518] sm:$0xff] }
 0xa06   :  { %v2576_v59 = vadd.f32 %v2575_v48, %v13311_v15  ;;  %v2713_v55 = vadd.f32 %v2712_v12, %v13316_v39  ;;  %v2577_v31 = vpop.f32.mrb[59].mxu0  ;;  %v2714_v46 = vpop.f32.mrb[59].mxu1  ;;  %v3860_v15 = vld [vmem:[%s12013_s4 + $0x408] sm:$0xff]  ;;  %v3891_v39 = vld [vmem:[%s12013_s4 + $0x500] sm:$0xff] }
 0xa07   :  { %v2578_v44 = vadd.f32 %v2577_v31, %v13320_v13  ;;  %v2715_v24 = vadd.f32 %v2714_v46, %v13325_v38  ;;  %4108 = vmatprep.mubr.f32.mxu0 %v3700_v60  ;;  %4233 = vmatprep.mubr.f32.mxu1 %v3702_v36  ;;  %v10851_v17 = vpack.c.bf16 %v3860_v15, %v13587_v11 }
 0xa08   :  { %4109 = vmatmul.mubr.f32.gmra.mrb[152].mxu0 %v3699_v9  ;;  %4234 = vmatmul.mubr.f32.gmra.mrb[152].mxu1 %v3701_v63  ;;  %v3715_v29 = vmax.f32 %v2576_v59, 0.0  ;;  %v3717_v43 = vmax.f32 %v2713_v55, 0.0  ;;  %v10883_v62 = vpack.c.bf16 %v3892_v16, %v3891_v39  ;;  %v10853_v9 = vpack.c.bf16 %v13596_v30, %v13593_v19  ;;  %v13620_v59 = vld [vmem:[%s12013_s4 + $0x4a0] sm:$0xff]  ;;  %v13623_v55 = vld [vmem:[%s12013_s4 + $0x4a8] sm:$0xff] }
 0xa09   :  { %v3716_v13 = vmax.f32 %v2578_v44, 0.0  ;;  %v3718_v27 = vmax.f32 %v2715_v24, 0.0  ;;  %v2783_v14 = vpop.f32.mrb[60].mxu0  ;;  %v2920_v38 = vpop.f32.mrb[60].mxu1  ;;  %v10885_v63 = vpack.c.bf16 %v3910_v25, %v3909_v56  ;;  %v13628_v39 = vld [vmem:[%s12013_s4 + $0x5a0] sm:$0xff]  ;;  %v3912_v16 = vld [vmem:[%s12013_s4 + $0x5a8] sm:$0xff]  ;;  %v10887_v19 = vpack.c.bf16 %v13615_v61, %v13612_v22 }
 0xa0a   :  { %v2784_v26 = vadd.f32 %v2783_v14, %v13565_v20  ;;  %v2921_v50 = vadd.f32 %v2920_v38, %v13570_v8  ;;  %v2785_v23 = vpop.f32.mrb[61].mxu0  ;;  %v2922_v53 = vpop.f32.mrb[61].mxu1  ;;  %v13634_v14 = vld [vmem:[%s12013_s4 + $0x420] sm:$0xff]  ;;  %v10855_v38 = vpack.c.bf16 %v13609_v41, %v13605_v10  ;;  %v13641_v30 = vld [vmem:[%s12013_s4 + $0x428] sm:$0xff]  ;;  %v10857_v56 = vpack.c.bf16 %v13623_v55, %v13620_v59  ;;  %v13667_v59 = vld [vmem:[%s12013_s4 + $0x430] sm:$0xff] }
 0xa0b   :  { %v2786_v42 = vadd.f32 %v2785_v23, %v13575_v3  ;;  %v2923_v0 = vadd.f32 %v2922_v53, %v13584_v58  ;;  %4113 = vmatprep.mubr.f32.mxu0 %v3716_v13  ;;  %4238 = vmatprep.mubr.f32.mxu1 %v3718_v27  ;;  %v10889_v25 = vpack.c.bf16 %v3912_v16, %v13628_v39 }
 0xa0c   :  { %4114 = vmatmul.mubr.f32.gmra.mrb[154].mxu0 %v3715_v29  ;;  %4239 = vmatmul.mubr.f32.gmra.mrb[154].mxu1 %v3717_v43  ;;  %v3543_v31 = vmax.f32 %v2784_v26, 0.0  ;;  %v3545_v46 = vmax.f32 %v2921_v50, 0.0  ;;  %v13644_v29 = vld [vmem:[%s12013_s4 + $0x520] sm:$0xff]  ;;  %v13647_v43 = vld [vmem:[%s12013_s4 + $0x528] sm:$0xff]  ;;  %v10859_v55 = vpack.c.bf16 %v13641_v30, %v13634_v14 }
 0xa0d   :  { %v3544_v60 = vmax.f32 %v2786_v42, 0.0  ;;  %v3546_v36 = vmax.f32 %v2923_v0, 0.0  ;;  %v2789_v48 = vpop.f32.mrb[62].mxu0  ;;  %v2926_v12 = vpop.f32.mrb[62].mxu1  ;;  %v13653_v42 = vld [vmem:[%s12013_s4 + $0x4b0] sm:$0xff]  ;;  %v13656_v0 = vld [vmem:[%s12013_s4 + $0x4b8] sm:$0xff] }
 0xa0e   :  { %v2790_v44 = vadd.f32 %v2789_v48, %v13565_v20  ;;  %v2927_v24 = vadd.f32 %v2926_v12, %v13570_v8  ;;  %v2791_v11 = vpop.f32.mrb[63].mxu0  ;;  %v2928_v15 = vpop.f32.mrb[63].mxu1  ;;  %v10861_v39 = vpack.c.bf16 %v13656_v0, %v13653_v42  ;;  %v13700_v42 = vld [vmem:[%s12013_s4 + $0x440] sm:$0xff] }
 0xa0f   :  { %v2792_v13 = vadd.f32 %v2791_v11, %v13575_v3  ;;  %v2929_v27 = vadd.f32 %v2928_v15, %v13584_v58  ;;  %4308 = vmatprep.mubr.f32.mxu0 %v3544_v60  ;;  %4433 = vmatprep.mubr.f32.mxu1 %v3546_v36  ;;  %v3914_v36 = vld [vmem:[%s12013_s4 + $0x5b8] sm:$0xff] }
 0xa10   :  { %4309 = vmatmul.mubr.f32.vlgmr.msra.gmra.mrb[156].mxu0 %v3543_v31  ;;  %4434 = vmatmul.mubr.f32.vlgmr.msra.gmra.mrb[156].mxu1 %v3545_v46  ;;  %v3559_v10 = vmax.f32 %v2790_v44, 0.0  ;;  %v3561_v41 = vmax.f32 %v2927_v24, 0.0  ;;  %v13677_v31 = vld [vmem:[%s12013_s4 + $0x530] sm:$0xff]  ;;  %v13680_v46 = vld [vmem:[%s12013_s4 + $0x538] sm:$0xff] }
 0xa11   :  { %v3560_v26 = vmax.f32 %v2792_v13, 0.0  ;;  %v3562_v50 = vmax.f32 %v2929_v27, 0.0  ;;  %v2795_v23 = vpop.f32.mrb[64].mxu0  ;;  %v2932_v53 = vpop.f32.mrb[64].mxu1  ;;  %10852 = vmatpush3.bf16.msra.mxu0 %v10851_v17  ;;  %10884 = vmatpush3.bf16.msra.mxu1 %v10883_v62  ;;  %v13661_v62 = vld [vmem:[%s12013_s4 + $0x5b0] sm:$0xff]  ;;  %v13686_v13 = vld [vmem:[%s12013_s4 + $0x4c0] sm:$0xff] }
 0xa12   :  { %v2796_v22 = vadd.f32 %v2795_v23, %v13565_v20  ;;  %v2933_v61 = vadd.f32 %v2932_v53, %v13570_v8  ;;  %v2797_v60 = vpop.f32.mrb[65].mxu0  ;;  %v2934_v17 = vpop.f32.mrb[65].mxu1  ;;  %10854 = vmatprep.subr.bf16.mxu0 %v10853_v9  ;;  %10886 = vmatprep.subr.bf16.mxu1 %v10885_v63  ;;  %v10891_v9 = vpack.c.bf16 %v13647_v43, %v13644_v29  ;;  %v13674_v63 = vld [vmem:[%s12013_s4 + $0x438] sm:$0xff]  ;;  %v13689_v27 = vld [vmem:[%s12013_s4 + $0x4c8] sm:$0xff] }
 0xa13   :  { %v2798_v48 = vadd.f32 %v2797_v60, %v13575_v3  ;;  %v2935_v12 = vadd.f32 %v2934_v17, %v13584_v58  ;;  %4313 = vmatprep.mubr.f32.mxu0 %v3560_v26  ;;  %4438 = vmatprep.mubr.f32.mxu1 %v3562_v50  ;;  %v10893_v16 = vpack.c.bf16 %v3914_v36, %v13661_v62  ;;  %v3916_v50 = vld [vmem:[%s12013_s4 + $0x5c8] sm:$0xff] }
 0xa14   :  { %4314 = vmatmul.mubr.f32.gmra.mrb[158].mxu0 %v3559_v10  ;;  %4439 = vmatmul.mubr.f32.gmra.mrb[158].mxu1 %v3561_v41  ;;  %v3575_v14 = vmax.f32 %v2796_v22, 0.0  ;;  %v3577_v30 = vmax.f32 %v2933_v61, 0.0  ;;  %v10863_v0 = vpack.c.bf16 %v13674_v63, %v13667_v59  ;;  %v13710_v10 = vld [vmem:[%s12013_s4 + $0x540] sm:$0xff]  ;;  %v13713_v41 = vld [vmem:[%s12013_s4 + $0x548] sm:$0xff]  ;;  %v10865_v62 = vpack.c.bf16 %v13689_v27, %v13686_v13  ;;  %v13733_v13 = vld [vmem:[%s12013_s4 + $0x450] sm:$0xff] }
 0xa15   :  { %v3576_v44 = vmax.f32 %v2798_v48, 0.0  ;;  %v3578_v24 = vmax.f32 %v2935_v12, 0.0  ;;  %v2801_v11 = vpop.f32.mrb[66].mxu0  ;;  %v2938_v15 = vpop.f32.mrb[66].mxu1  ;;  %10856 = vmatpush3.bf16.msra.mxu0 %v10855_v38  ;;  %10888 = vmatpush3.bf16.msra.mxu1 %v10887_v19  ;;  %v13694_v19 = vld [vmem:[%s12013_s4 + $0x5c0] sm:$0xff]  ;;  %v13719_v48 = vld [vmem:[%s12013_s4 + $0x4d0] sm:$0xff] }
 0xa16   :  { %v2802_v29 = vadd.f32 %v2801_v11, %v13565_v20  ;;  %v2939_v43 = vadd.f32 %v2938_v15, %v13570_v8  ;;  %v2803_v26 = vpop.f32.mrb[67].mxu0  ;;  %v2940_v38 = vpop.f32.mrb[67].mxu1  ;;  %10858 = vmatprep.subr.bf16.mxu0 %v10857_v56  ;;  %10890 = vmatprep.subr.bf16.mxu1 %v10889_v25  ;;  %v10895_v56 = vpack.c.bf16 %v13680_v46, %v13677_v31  ;;  %v13707_v25 = vld [vmem:[%s12013_s4 + $0x448] sm:$0xff]  ;;  %v13722_v12 = vld [vmem:[%s12013_s4 + $0x4d8] sm:$0xff] }
 0xa17   :  { %v2804_v23 = vadd.f32 %v2803_v26, %v13575_v3  ;;  %v2941_v53 = vadd.f32 %v2940_v38, %v13584_v58  ;;  %4318 = vmatprep.mubr.f32.mxu0 %v3576_v44  ;;  %4443 = vmatprep.mubr.f32.mxu1 %v3578_v24  ;;  %v10897_v36 = vpack.c.bf16 %v3916_v50, %v13694_v19  ;;  %v3918_v24 = vld [vmem:[%s12013_s4 + $0x5d8] sm:$0xff] }
 0xa18   :  { %4319 = vmatmul.mubr.f32.gmra.mrb[160].mxu0 %v3575_v14  ;;  %4444 = vmatmul.mubr.f32.gmra.mrb[160].mxu1 %v3577_v30  ;;  %v3591_v59 = vmax.f32 %v2802_v29, 0.0  ;;  %v3593_v63 = vmax.f32 %v2939_v43, 0.0  ;;  %v10867_v27 = vpack.c.bf16 %v13707_v25, %v13700_v42  ;;  %v13743_v14 = vld [vmem:[%s12013_s4 + $0x550] sm:$0xff]  ;;  %v13746_v30 = vld [vmem:[%s12013_s4 + $0x558] sm:$0xff]  ;;  %v10869_v19 = vpack.c.bf16 %v13722_v12, %v13719_v48  ;;  %v13766_v48 = vld [vmem:[%s12013_s4 + $0x460] sm:$0xff] }
 0xa19   :  { %v3592_v22 = vmax.f32 %v2804_v23, 0.0  ;;  %v3594_v61 = vmax.f32 %v2941_v53, 0.0  ;;  %v2807_v60 = vpop.f32.mrb[68].mxu0  ;;  %v2944_v17 = vpop.f32.mrb[68].mxu1  ;;  %10860 = vmatpush3.bf16.msra.mxu0 %v10859_v55  ;;  %10892 = vmatpush3.bf16.msra.mxu1 %v10891_v9  ;;  %v13727_v9 = vld [vmem:[%s12013_s4 + $0x5d0] sm:$0xff]  ;;  %v13752_v23 = vld [vmem:[%s12013_s4 + $0x4e0] sm:$0xff] }
 0xa1a   :  { %v2808_v31 = vadd.f32 %v2807_v60, %v13565_v20  ;;  %v2945_v46 = vadd.f32 %v2944_v17, %v13570_v8  ;;  %v2809_v44 = vpop.f32.mrb[69].mxu0  ;;  %v2946_v55 = vpop.f32.mrb[69].mxu1  ;;  %10862 = vmatprep.subr.bf16.mxu0 %v10861_v39  ;;  %10894 = vmatprep.subr.bf16.mxu1 %v10893_v16  ;;  %v10899_v39 = vpack.c.bf16 %v13713_v41, %v13710_v10  ;;  %v13740_v16 = vld [vmem:[%s12013_s4 + $0x458] sm:$0xff]  ;;  %v13755_v53 = vld [vmem:[%s12013_s4 + $0x4e8] sm:$0xff] }
 0xa1b   :  { %v2810_v11 = vadd.f32 %v2809_v44, %v13575_v3  ;;  %v2947_v15 = vadd.f32 %v2946_v55, %v13584_v58  ;;  %4323 = vmatprep.mubr.f32.mxu0 %v3592_v22  ;;  %4448 = vmatprep.mubr.f32.mxu1 %v3594_v61  ;;  %v10901_v50 = vpack.c.bf16 %v3918_v24, %v13727_v9  ;;  %v3920_v61 = vld [vmem:[%s12013_s4 + $0x5e8] sm:$0xff] }
 0xa1c   :  { %4324 = vmatmul.mubr.f32.gmra.mrb[162].mxu0 %v3591_v59  ;;  %4449 = vmatmul.mubr.f32.gmra.mrb[162].mxu1 %v3593_v63  ;;  %v3607_v42 = vmax.f32 %v2808_v31, 0.0  ;;  %v3609_v25 = vmax.f32 %v2945_v46, 0.0  ;;  %v10871_v12 = vpack.c.bf16 %v13740_v16, %v13733_v13  ;;  %v13776_v59 = vld [vmem:[%s12013_s4 + $0x560] sm:$0xff]  ;;  %v13779_v63 = vld [vmem:[%s12013_s4 + $0x568] sm:$0xff]  ;;  %v10873_v9 = vpack.c.bf16 %v13755_v53, %v13752_v23  ;;  %v3873_v23 = vld [vmem:[%s12013_s4 + $0x470] sm:$0xff] }
 0xa1d   :  { %v3608_v29 = vmax.f32 %v2810_v11, 0.0  ;;  %v3610_v43 = vmax.f32 %v2947_v15, 0.0  ;;  %v2813_v26 = vpop.f32.mrb[70].mxu0  ;;  %v2950_v38 = vpop.f32.mrb[70].mxu1  ;;  %10864 = vmatpush3.bf16.msra.mxu0 %v10863_v0  ;;  %10896 = vmatpush3.bf16.msra.mxu1 %v10895_v56  ;;  %v13760_v56 = vld [vmem:[%s12013_s4 + $0x5e0] sm:$0xff]  ;;  %v13785_v11 = vld [vmem:[%s12013_s4 + $0x4f0] sm:$0xff] }
 0xa1e   :  { %v2814_v10 = vadd.f32 %v2813_v26, %v13565_v20  ;;  %v2951_v41 = vadd.f32 %v2950_v38, %v13570_v8  ;;  %v2815_v22 = vpop.f32.mrb[71].mxu0  ;;  %v2952_v0 = vpop.f32.mrb[71].mxu1  ;;  %10866 = vmatprep.subr.bf16.mxu0 %v10865_v62  ;;  %10898 = vmatprep.subr.bf16.mxu1 %v10897_v36  ;;  %v10903_v62 = vpack.c.bf16 %v13746_v30, %v13743_v14  ;;  %v13773_v36 = vld [vmem:[%s12013_s4 + $0x468] sm:$0xff]  ;;  %v13788_v15 = vld [vmem:[%s12013_s4 + $0x4f8] sm:$0xff] }
 0xa1f   :  { %v2816_v60 = vadd.f32 %v2815_v22, %v13575_v3  ;;  %v2953_v17 = vadd.f32 %v2952_v0, %v13584_v58  ;;  %4328 = vmatprep.mubr.f32.mxu0 %v3608_v29  ;;  %4453 = vmatprep.mubr.f32.mxu1 %v3610_v43  ;;  %v10905_v24 = vpack.c.bf16 %v3920_v61, %v13760_v56  ;;  %v3922_v43 = vld [vmem:[%s12013_s4 + $0x5f8] sm:$0xff] }
 0xa20   :  { %4329 = vmatmul.mubr.f32.gmra.mrb[164].mxu0 %v3607_v42  ;;  %4454 = vmatmul.mubr.f32.gmra.mrb[164].mxu1 %v3609_v25  ;;  %v3623_v13 = vmax.f32 %v2814_v10, 0.0  ;;  %v3625_v16 = vmax.f32 %v2951_v41, 0.0  ;;  %v10875_v53 = vpack.c.bf16 %v13773_v36, %v13766_v48  ;;  %v3905_v42 = vld [vmem:[%s12013_s4 + $0x570] sm:$0xff]  ;;  %v3906_v25 = vld [vmem:[%s12013_s4 + $0x578] sm:$0xff]  ;;  %v10877_v56 = vpack.c.bf16 %v13788_v15, %v13785_v11 }
 0xa21   :  { %v3624_v31 = vmax.f32 %v2816_v60, 0.0  ;;  %v3626_v46 = vmax.f32 %v2953_v17, 0.0  ;;  %v2819_v44 = vpop.f32.mrb[72].mxu0  ;;  %v2956_v55 = vpop.f32.mrb[72].mxu1  ;;  %10868 = vmatpush3.bf16.msra.mxu0 %v10867_v27  ;;  %10900 = vmatpush3.bf16.msra.mxu1 %v10899_v39  ;;  %v3921_v39 = vld [vmem:[%s12013_s4 + $0x5f0] sm:$0xff]  ;;  %v3939_v60 = vld [vmem:[%s12013_s4 + $0x680] sm:$0xff]  ;;  %v10911_v15 = vpack.c.bf16 %v3906_v25, %v3905_v42 }
 0xa22   :  { %v2820_v14 = vadd.f32 %v2819_v44, %v13565_v20  ;;  %v2957_v30 = vadd.f32 %v2956_v55, %v13570_v8  ;;  %v2821_v29 = vpop.f32.mrb[73].mxu0  ;;  %v2958_v27 = vpop.f32.mrb[73].mxu1  ;;  %10870 = vmatprep.subr.bf16.mxu0 %v10869_v19  ;;  %10902 = vmatprep.subr.bf16.mxu1 %v10901_v50  ;;  %v10907_v19 = vpack.c.bf16 %v13779_v63, %v13776_v59  ;;  %v3874_v50 = vld [vmem:[%s12013_s4 + $0x478] sm:$0xff]  ;;  %v3940_v17 = vld [vmem:[%s12013_s4 + $0x688] sm:$0xff]  ;;  %v3971_v44 = vld [vmem:[%s12013_s4 + $0x780] sm:$0xff] }
 0xa23   :  { %v2822_v26 = vadd.f32 %v2821_v29, %v13575_v3  ;;  %v2959_v38 = vadd.f32 %v2958_v27, %v13584_v58  ;;  %4333 = vmatprep.mubr.f32.mxu0 %v3624_v31  ;;  %4458 = vmatprep.mubr.f32.mxu1 %v3626_v46  ;;  %v10909_v61 = vpack.c.bf16 %v3922_v43, %v3921_v39  ;;  %v3972_v55 = vld [vmem:[%s12013_s4 + $0x788] sm:$0xff] }
 0xa24   :  { %4334 = vmatmul.mubr.f32.gmra.mrb[166].mxu0 %v3623_v13  ;;  %4459 = vmatmul.mubr.f32.gmra.mrb[166].mxu1 %v3625_v16  ;;  %v3639_v48 = vmax.f32 %v2820_v14, 0.0  ;;  %v3641_v36 = vmax.f32 %v2957_v30, 0.0  ;;  %v10879_v11 = vpack.c.bf16 %v3874_v50, %v3873_v23 }
 0xa25   :  { %v3640_v10 = vmax.f32 %v2822_v26, 0.0  ;;  %v3642_v41 = vmax.f32 %v2959_v38, 0.0  ;;  %v2825_v22 = vpop.f32.mrb[74].mxu0  ;;  %v2962_v0 = vpop.f32.mrb[74].mxu1  ;;  %10872 = vmatpush3.bf16.msra.mxu0 %v10871_v12  ;;  %10904 = vmatpush3.bf16.msra.mxu1 %v10903_v62 }
 0xa26   :  { %v2826_v59 = vadd.f32 %v2825_v22, %v13565_v20  ;;  %v2963_v63 = vadd.f32 %v2962_v0, %v13570_v8  ;;  %v2827_v31 = vpop.f32.mrb[75].mxu0  ;;  %v2964_v46 = vpop.f32.mrb[75].mxu1  ;;  %10874 = vmatprep.subr.bf16.mxu0 %v10873_v9  ;;  %10906 = vmatprep.subr.bf16.mxu1 %v10905_v24  ;;  %v10913_v9 = vpack.c.bf16 %v3940_v17, %v3939_v60 }
 0xa27   :  { %v2828_v12 = vadd.f32 %v2827_v31, %v13575_v3  ;;  %v2965_v62 = vadd.f32 %v2964_v46, %v13584_v58  ;;  %4338 = vmatprep.mubr.f32.mxu0 %v3640_v10  ;;  %4463 = vmatprep.mubr.f32.mxu1 %v3642_v41  ;;  %v10945_v24 = vpack.c.bf16 %v3972_v55, %v3971_v44  ;;  %v13823_v31 = vld [vmem:[%s11998_s12 + $0x8] sm:$0xff]  ;;  %s11790_s12 = smov 80  }
 0xa28   :  { %4339 = vmatmul.mubr.f32.gmra.mrb[168].mxu0 %v3639_v48  ;;  %4464 = vmatmul.mubr.f32.gmra.mrb[168].mxu1 %v3641_v36  ;;  %v3655_v29 = vmax.f32 %v2826_v59, 0.0  ;;  %v3657_v27 = vmax.f32 %v2963_v63, 0.0 }
 0xa29   :  { %v3656_v13 = vmax.f32 %v2828_v12, 0.0  ;;  %v3658_v16 = vmax.f32 %v2965_v62, 0.0  ;;  %v2831_v14 = vpop.f32.mrb[76].mxu0  ;;  %v2968_v30 = vpop.f32.mrb[76].mxu1  ;;  %10876 = vmatpush3.bf16.msra.mxu0 %v10875_v53  ;;  %10908 = vmatpush3.bf16.msra.mxu1 %v10907_v19 }
 0xa2a   :  { %v2832_v39 = vadd.f32 %v2831_v14, %v13565_v20  ;;  %v2969_v43 = vadd.f32 %v2968_v30, %v13570_v8  ;;  %v2833_v26 = vpop.f32.mrb[77].mxu0  ;;  %v2970_v38 = vpop.f32.mrb[77].mxu1  ;;  %10878 = vmatprep.subr.bf16.mxu0 %v10877_v56  ;;  %10910 = vmatprep.subr.bf16.mxu1 %v10909_v61 }
 0xa2b   :  { %v2834_v23 = vadd.f32 %v2833_v26, %v13575_v3  ;;  %v2971_v50 = vadd.f32 %v2970_v38, %v13584_v58  ;;  %4343 = vmatprep.mubr.f32.mxu0 %v3656_v13  ;;  %4468 = vmatprep.mubr.f32.mxu1 %v3658_v16  ;;  %v13831_v16 = vrot.slane %v13823_v31, %v14923_v40 }
 0xa2c   :  { %4344 = vmatmul.mubr.f32.gmra.mrb[170].mxu0 %v3655_v29  ;;  %4469 = vmatmul.mubr.f32.gmra.mrb[170].mxu1 %v3657_v27  ;;  %v3671_v10 = vmax.f32 %v2832_v39, 0.0  ;;  %v3673_v41 = vmax.f32 %v2969_v43, 0.0  ;;  %v13836_v29 = vrot.slane %v13823_v31, %v2337_v7  ;;  %v13840_v27 = vrot.slane %v13823_v31, %v14924_v18 }
 0xa2d   :  { %v3672_v53 = vmax.f32 %v2834_v23, 0.0  ;;  %v3674_v19 = vmax.f32 %v2971_v50, 0.0  ;;  %v2837_v42 = vpop.f32.mrb[78].mxu0  ;;  %v2974_v25 = vpop.f32.mrb[78].mxu1  ;;  %10880 = vmatpush3.bf16.msra.mxu0 %v10879_v11  ;;  %10912 = vmatpush3.bf16.msra.mxu1 %v10911_v15  ;;  %v13849_v18 = vrot.slane %v13823_v31, %v2341_v21 }
 0xa2e   :  { %v2838_v22 = vadd.f32 %v2837_v42, %v13565_v20  ;;  %v2975_v0 = vadd.f32 %v2974_v25, %v13570_v8  ;;  %v2839_v56 = vpop.f32.mrb[79].mxu0  ;;  %v2976_v61 = vpop.f32.mrb[79].mxu1  ;;  %10914 = vmatprep.subr.bf16.mxu0 %v10913_v9  ;;  %10946 = vmatprep.subr.bf16.mxu1 %v10945_v24 }
 0xa2f   :  { %v2840_v60 = vadd.f32 %v2839_v56, %v13575_v3  ;;  %v2977_v17 = vadd.f32 %v2976_v61, %v13584_v58  ;;  %4348 = vmatprep.mubr.f32.mxu0 %v3672_v53  ;;  %4473 = vmatprep.mubr.f32.mxu1 %v3674_v19  ;;  %v13852_v53 = vld [vmem:[%s12013_s4 + $0x600] sm:$0xff]  ;;  %v3956_v19 = vld [vmem:[%s12013_s4 + $0x708] sm:$0xff] }
 0xa30   :  { %4349 = vmatmul.mubr.f32.gmra.mrb[172].mxu0 %v3671_v10  ;;  %4474 = vmatmul.mubr.f32.gmra.mrb[172].mxu1 %v3673_v41  ;;  %v3687_v46 = vmax.f32 %v2838_v22, 0.0  ;;  %v3689_v44 = vmax.f32 %v2975_v0, 0.0  ;;  %v13858_v10 = vld [vmem:[%s12013_s4 + $0x690] sm:$0xff]  ;;  %v13861_v41 = vld [vmem:[%s12013_s4 + $0x698] sm:$0xff] }
 0xa31   :  { %v3688_v48 = vmax.f32 %v2840_v60, 0.0  ;;  %v3690_v36 = vmax.f32 %v2977_v17, 0.0  ;;  %v2843_v59 = vpop.f32.mrb[80].mxu0  ;;  %v2980_v63 = vpop.f32.mrb[80].mxu1  ;;  %v3973_v17 = vld [vmem:[%s12013_s4 + $0x790] sm:$0xff] }
 0xa32   :  { %v2844_v55 = vadd.f32 %v2843_v59, %v13565_v20  ;;  %v2981_v12 = vadd.f32 %v2980_v63, %v13570_v8  ;;  %v2845_v62 = vpop.f32.mrb[81].mxu0  ;;  %v2982_v11 = vpop.f32.mrb[81].mxu1  ;;  %v13870_v63 = vld [vmem:[%s12013_s4 + $0x610] sm:$0xff] }
 0xa33   :  { %v2846_v15 = vadd.f32 %v2845_v62, %v13575_v3  ;;  %v2983_v13 = vadd.f32 %v2982_v11, %v13584_v58  ;;  %4353 = vmatprep.mubr.f32.mxu0 %v3688_v48  ;;  %4478 = vmatprep.mubr.f32.mxu1 %v3690_v36  ;;  %v3974_v48 = vld [vmem:[%s12013_s4 + $0x798] sm:$0xff] }
 0xa34   :  { %4354 = vmatmul.mubr.f32.gmra.mrb[174].mxu0 %v3687_v46  ;;  %4479 = vmatmul.mubr.f32.gmra.mrb[174].mxu1 %v3689_v44  ;;  %v3703_v39 = vmax.f32 %v2844_v55, 0.0  ;;  %v3705_v40 = vmax.f32 %v2981_v12, 0.0  ;;  %v13874_v55 = vld [vmem:[%s12013_s4 + $0x618] sm:$0xff]  ;;  %v13877_v12 = vld [vmem:[%s12013_s4 + $0x710] sm:$0xff] }
 0xa35   :  { %v3704_v14 = vmax.f32 %v2846_v15, 0.0  ;;  %v3706_v30 = vmax.f32 %v2983_v13, 0.0  ;;  %v2849_v9 = vpop.f32.mrb[82].mxu0  ;;  %v2986_v24 = vpop.f32.mrb[82].mxu1  ;;  %v13880_v62 = vld [vmem:[%s12013_s4 + $0x718] sm:$0xff] }
 0xa36   :  { %v2850_v43 = vadd.f32 %v2849_v9, %v13565_v20  ;;  %v2987_v26 = vadd.f32 %v2986_v24, %v13570_v8  ;;  %v2851_v38 = vpop.f32.mrb[83].mxu0  ;;  %v2988_v23 = vpop.f32.mrb[83].mxu1  ;;  %v3924_v20 = vld [vmem:[%s12013_s4 + $0x608] sm:$0xff]  ;;  %v3955_v8 = vld [vmem:[%s12013_s4 + $0x700] sm:$0xff]  ;;  %v10949_v9 = vpack.c.bf16 %v3974_v48, %v3973_v17  ;;  %v13921_v17 = vld [vmem:[%s12013_s4 + $0x6b8] sm:$0xff] }
 0xa37   :  { %v2852_v50 = vadd.f32 %v2851_v38, %v13575_v3  ;;  %v2989_v7 = vadd.f32 %v2988_v23, %v13584_v58  ;;  %4358 = vmatprep.mubr.f32.mxu0 %v3704_v14  ;;  %4483 = vmatprep.mubr.f32.mxu1 %v3706_v30  ;;  %v10915_v46 = vpack.c.bf16 %v3924_v20, %v13852_v53  ;;  %v13885_v24 = vld [vmem:[%s12013_s4 + $0x6a0] sm:$0xff]  ;;  %v3976_v53 = vld [vmem:[%s12013_s4 + $0x7a8] sm:$0xff] }
 0xa38   :  { %4359 = vmatmul.mubr.f32.gmra.mrb[176].mxu0 %v3703_v39  ;;  %4484 = vmatmul.mubr.f32.gmra.mrb[176].mxu1 %v3705_v40  ;;  %v3719_v21 = vmax.f32 %v2850_v43, 0.0  ;;  %v3721_v22 = vmax.f32 %v2987_v26, 0.0  ;;  %v10947_v44 = vpack.c.bf16 %v3956_v19, %v3955_v8  ;;  %v10917_v30 = vpack.c.bf16 %v13861_v41, %v13858_v10  ;;  %v13888_v39 = vld [vmem:[%s12013_s4 + $0x6a8] sm:$0xff]  ;;  %v13899_v19 = vld [vmem:[%s12013_s4 + $0x620] sm:$0xff] }
 0xa39   :  { %v3720_v3 = vmax.f32 %v2852_v50, 0.0  ;;  %v3722_v42 = vmax.f32 %v2989_v7, 0.0  ;;  %v3057_v25 = vpop.f32.mrb[84].mxu0  ;;  %v3194_v58 = vpop.f32.mrb[84].mxu1  ;;  %v13893_v7 = vld [vmem:[%s12013_s4 + $0x7a0] sm:$0xff]  ;;  %v13912_v10 = vld [vmem:[%s12013_s4 + $0x728] sm:$0xff] }
 0xa3a   :  { %v3058_v0 = vadd.f32 %v3057_v25, %v13831_v16  ;;  %v3195_v56 = vadd.f32 %v3194_v58, %v13836_v29  ;;  %v3059_v61 = vpop.f32.mrb[85].mxu0  ;;  %v3196_v60 = vpop.f32.mrb[85].mxu1  ;;  %v13906_v25 = vld [vmem:[%s12013_s4 + $0x628] sm:$0xff]  ;;  %v13909_v58 = vld [vmem:[%s12013_s4 + $0x720] sm:$0xff] }
 0xa3b   :  { %v3060_v36 = vadd.f32 %v3059_v61, %v13840_v27  ;;  %v3197_v59 = vadd.f32 %v3196_v60, %v13849_v18  ;;  %4363 = vmatprep.mubr.f32.mxu0 %v3720_v3  ;;  %4488 = vmatprep.mubr.f32.mxu1 %v3722_v42  ;;  %v10919_v3 = vpack.c.bf16 %v13874_v55, %v13870_v63  ;;  %v13918_v60 = vld [vmem:[%s12013_s4 + $0x6b0] sm:$0xff] }
 0xa3c   :  { %4364 = vmatmul.mubr.f32.gmra.mrb[178].mxu0 %v3719_v21  ;;  %4489 = vmatmul.mubr.f32.gmra.mrb[178].mxu1 %v3721_v22  ;;  %v3547_v40 = vmax.f32 %v3058_v0, 0.0  ;;  %v3549_v43 = vmax.f32 %v3195_v56, 0.0  ;;  %v10951_v42 = vpack.c.bf16 %v13880_v62, %v13877_v12  ;;  %v10921_v56 = vpack.c.bf16 %v13888_v39, %v13885_v24  ;;  %v3978_v12 = vld [vmem:[%s12013_s4 + $0x7b8] sm:$0xff] }
 0xa3d   :  { %v3548_v11 = vmax.f32 %v3060_v36, 0.0  ;;  %v3550_v15 = vmax.f32 %v3197_v59, 0.0  ;;  %v3063_v13 = vpop.f32.mrb[86].mxu0  ;;  %v3200_v14 = vpop.f32.mrb[86].mxu1  ;;  %v10953_v61 = vpack.c.bf16 %v3976_v53, %v13893_v7  ;;  %v13945_v24 = vld [vmem:[%s12013_s4 + $0x738] sm:$0xff]  ;;  %v13954_v7 = vld [vmem:[%s12013_s4 + $0x6c8] sm:$0xff] }
 0xa3e   :  { %v3064_v26 = vadd.f32 %v3063_v13, %v13831_v16  ;;  %v3201_v38 = vadd.f32 %v3200_v14, %v13836_v29  ;;  %v3065_v23 = vpop.f32.mrb[87].mxu0  ;;  %v3202_v50 = vpop.f32.mrb[87].mxu1  ;;  %v10923_v13 = vpack.c.bf16 %v13906_v25, %v13899_v19  ;;  %v10955_v14 = vpack.c.bf16 %v13912_v10, %v13909_v58  ;;  %v3980_v58 = vld [vmem:[%s12013_s4 + $0x7c8] sm:$0xff] }
 0xa3f   :  { %v3066_v20 = vadd.f32 %v3065_v23, %v13840_v27  ;;  %v3203_v8 = vadd.f32 %v3202_v50, %v13849_v18  ;;  %4558 = vmatprep.mubr.f32.mxu0 %v3548_v11  ;;  %4683 = vmatprep.mubr.f32.mxu1 %v3550_v15  ;;  %v13932_v15 = vld [vmem:[%s12013_s4 + $0x630] sm:$0xff]  ;;  %v13951_v50 = vld [vmem:[%s12013_s4 + $0x6c0] sm:$0xff] }
 0xa40   :  { %4559 = vmatmul.mubr.f32.vlgmr.msra.gmra.mrb[180].mxu0 %v3547_v40  ;;  %4684 = vmatmul.mubr.f32.vlgmr.msra.gmra.mrb[180].mxu1 %v3549_v43  ;;  %v3563_v48 = vmax.f32 %v3064_v26, 0.0  ;;  %v3565_v36 = vmax.f32 %v3201_v38, 0.0  ;;  %v10925_v38 = vpack.c.bf16 %v13921_v17, %v13918_v60  ;;  %v13978_v60 = vld [vmem:[%s12013_s4 + $0x748] sm:$0xff] }
 0xa41   :  { %v3564_v41 = vmax.f32 %v3066_v20, 0.0  ;;  %v3566_v21 = vmax.f32 %v3203_v8, 0.0  ;;  %v3069_v22 = vpop.f32.mrb[88].mxu0  ;;  %v3206_v0 = vpop.f32.mrb[88].mxu1  ;;  %10916 = vmatpush3.bf16.msra.mxu0 %v10915_v46  ;;  %10948 = vmatpush3.bf16.msra.mxu1 %v10947_v44  ;;  %v13926_v44 = vld [vmem:[%s12013_s4 + $0x7b0] sm:$0xff] }
 0xa42   :  { %v3070_v59 = vadd.f32 %v3069_v22, %v13831_v16  ;;  %v3207_v63 = vadd.f32 %v3206_v0, %v13836_v29  ;;  %v3071_v55 = vpop.f32.mrb[89].mxu0  ;;  %v3208_v46 = vpop.f32.mrb[89].mxu1  ;;  %10918 = vmatprep.subr.bf16.mxu0 %v10917_v30  ;;  %10950 = vmatprep.subr.bf16.mxu1 %v10949_v9  ;;  %v13939_v30 = vld [vmem:[%s12013_s4 + $0x638] sm:$0xff]  ;;  %v13942_v9 = vld [vmem:[%s12013_s4 + $0x730] sm:$0xff]  ;;  %v10957_v23 = vpack.c.bf16 %v3978_v12, %v13926_v44 }
 0xa43   :  { %v3072_v62 = vadd.f32 %v3071_v55, %v13840_v27  ;;  %v3209_v11 = vadd.f32 %v3208_v46, %v13849_v18  ;;  %4563 = vmatprep.mubr.f32.mxu0 %v3564_v41  ;;  %4688 = vmatprep.mubr.f32.mxu1 %v3566_v21  ;;  %v13965_v21 = vld [vmem:[%s12013_s4 + $0x640] sm:$0xff]  ;;  %v10927_v22 = vpack.c.bf16 %v13939_v30, %v13932_v15  ;;  %v13984_v46 = vld [vmem:[%s12013_s4 + $0x6d0] sm:$0xff]  ;;  %v13987_v44 = vld [vmem:[%s12013_s4 + $0x6d8] sm:$0xff] }
 0xa44   :  { %4564 = vmatmul.mubr.f32.gmra.mrb[182].mxu0 %v3563_v48  ;;  %4689 = vmatmul.mubr.f32.gmra.mrb[182].mxu1 %v3565_v36  ;;  %v3579_v53 = vmax.f32 %v3070_v59, 0.0  ;;  %v3581_v20 = vmax.f32 %v3207_v63, 0.0  ;;  %v10959_v0 = vpack.c.bf16 %v13945_v24, %v13942_v9  ;;  %v10929_v63 = vpack.c.bf16 %v13954_v7, %v13951_v50  ;;  %v3982_v9 = vld [vmem:[%s12013_s4 + $0x7d8] sm:$0xff] }
 0xa45   :  { %v3580_v39 = vmax.f32 %v3072_v62, 0.0  ;;  %v3582_v40 = vmax.f32 %v3209_v11, 0.0  ;;  %v3075_v43 = vpop.f32.mrb[90].mxu0  ;;  %v3212_v26 = vpop.f32.mrb[90].mxu1  ;;  %10920 = vmatpush3.bf16.msra.mxu0 %v10919_v3  ;;  %10952 = vmatpush3.bf16.msra.mxu1 %v10951_v42  ;;  %v13959_v42 = vld [vmem:[%s12013_s4 + $0x7c0] sm:$0xff]  ;;  %v14011_v50 = vld [vmem:[%s12013_s4 + $0x758] sm:$0xff] }
 0xa46   :  { %v3076_v8 = vadd.f32 %v3075_v43, %v13831_v16  ;;  %v3213_v19 = vadd.f32 %v3212_v26, %v13836_v29  ;;  %v3077_v25 = vpop.f32.mrb[91].mxu0  ;;  %v3214_v3 = vpop.f32.mrb[91].mxu1  ;;  %10922 = vmatprep.subr.bf16.mxu0 %v10921_v56  ;;  %10954 = vmatprep.subr.bf16.mxu1 %v10953_v61  ;;  %v13972_v56 = vld [vmem:[%s12013_s4 + $0x648] sm:$0xff]  ;;  %v13975_v61 = vld [vmem:[%s12013_s4 + $0x740] sm:$0xff]  ;;  %v10961_v55 = vpack.c.bf16 %v3980_v58, %v13959_v42 }
 0xa47   :  { %v3078_v10 = vadd.f32 %v3077_v25, %v13840_v27  ;;  %v3215_v41 = vadd.f32 %v3214_v3, %v13849_v18  ;;  %4568 = vmatprep.mubr.f32.mxu0 %v3580_v39  ;;  %4693 = vmatprep.mubr.f32.mxu1 %v3582_v40  ;;  %v13998_v40 = vld [vmem:[%s12013_s4 + $0x650] sm:$0xff]  ;;  %v10931_v43 = vpack.c.bf16 %v13972_v56, %v13965_v21  ;;  %v14017_v3 = vld [vmem:[%s12013_s4 + $0x6e0] sm:$0xff]  ;;  %v14020_v42 = vld [vmem:[%s12013_s4 + $0x6e8] sm:$0xff] }
 0xa48   :  { %4569 = vmatmul.mubr.f32.gmra.mrb[184].mxu0 %v3579_v53  ;;  %4694 = vmatmul.mubr.f32.gmra.mrb[184].mxu1 %v3581_v20  ;;  %v3595_v12 = vmax.f32 %v3076_v8, 0.0  ;;  %v3597_v62 = vmax.f32 %v3213_v19, 0.0  ;;  %v10963_v26 = vpack.c.bf16 %v13978_v60, %v13975_v61  ;;  %v10933_v19 = vpack.c.bf16 %v13987_v44, %v13984_v46  ;;  %v3984_v61 = vld [vmem:[%s12013_s4 + $0x7e8] sm:$0xff] }
 0xa49   :  { %v3596_v17 = vmax.f32 %v3078_v10, 0.0  ;;  %v3598_v48 = vmax.f32 %v3215_v41, 0.0  ;;  %v3081_v36 = vpop.f32.mrb[92].mxu0  ;;  %v3218_v59 = vpop.f32.mrb[92].mxu1  ;;  %10924 = vmatpush3.bf16.msra.mxu0 %v10923_v13  ;;  %10956 = vmatpush3.bf16.msra.mxu1 %v10955_v14  ;;  %v13992_v14 = vld [vmem:[%s12013_s4 + $0x7d0] sm:$0xff]  ;;  %v3968_v46 = vld [vmem:[%s12013_s4 + $0x768] sm:$0xff] }
 0xa4a   :  { %v3082_v11 = vadd.f32 %v3081_v36, %v13831_v16  ;;  %v3219_v15 = vadd.f32 %v3218_v59, %v13836_v29  ;;  %v3083_v30 = vpop.f32.mrb[93].mxu0  ;;  %v3220_v13 = vpop.f32.mrb[93].mxu1  ;;  %10926 = vmatprep.subr.bf16.mxu0 %v10925_v38  ;;  %10958 = vmatprep.subr.bf16.mxu1 %v10957_v23  ;;  %v14005_v38 = vld [vmem:[%s12013_s4 + $0x658] sm:$0xff]  ;;  %v14008_v23 = vld [vmem:[%s12013_s4 + $0x750] sm:$0xff]  ;;  %v10965_v25 = vpack.c.bf16 %v3982_v9, %v13992_v14 }
 0xa4b   :  { %v3084_v24 = vadd.f32 %v3083_v30, %v13840_v27  ;;  %v3221_v39 = vadd.f32 %v3220_v13, %v13849_v18  ;;  %4573 = vmatprep.mubr.f32.mxu0 %v3596_v17  ;;  %4698 = vmatprep.mubr.f32.mxu1 %v3598_v48  ;;  %v14029_v48 = vld [vmem:[%s12013_s4 + $0x660] sm:$0xff]  ;;  %v10935_v36 = vpack.c.bf16 %v14005_v38, %v13998_v40  ;;  %v3953_v13 = vld [vmem:[%s12013_s4 + $0x6f0] sm:$0xff]  ;;  %v3954_v14 = vld [vmem:[%s12013_s4 + $0x6f8] sm:$0xff] }
 0xa4c   :  { %4574 = vmatmul.mubr.f32.gmra.mrb[186].mxu0 %v3595_v12  ;;  %4699 = vmatmul.mubr.f32.gmra.mrb[186].mxu1 %v3597_v62  ;;  %v3611_v58 = vmax.f32 %v3082_v11, 0.0  ;;  %v3613_v10 = vmax.f32 %v3219_v15, 0.0  ;;  %v10967_v59 = vpack.c.bf16 %v14011_v50, %v14008_v23  ;;  %v10937_v15 = vpack.c.bf16 %v14020_v42, %v14017_v3  ;;  %v3985_v50 = vld [vmem:[%s12013_s4 + $0x7f0] sm:$0xff] }
 0xa4d   :  { %v3612_v7 = vmax.f32 %v3084_v24, 0.0  ;;  %v3614_v53 = vmax.f32 %v3221_v39, 0.0  ;;  %v3087_v20 = vpop.f32.mrb[94].mxu0  ;;  %v3224_v8 = vpop.f32.mrb[94].mxu1  ;;  %10928 = vmatpush3.bf16.msra.mxu0 %v10927_v22  ;;  %10960 = vmatpush3.bf16.msra.mxu1 %v10959_v0  ;;  %v3983_v0 = vld [vmem:[%s12013_s4 + $0x7e0] sm:$0xff] }
 0xa4e   :  { %v3088_v41 = vadd.f32 %v3087_v20, %v13831_v16  ;;  %v3225_v21 = vadd.f32 %v3224_v8, %v13836_v29  ;;  %v3089_v56 = vpop.f32.mrb[95].mxu0  ;;  %v3226_v22 = vpop.f32.mrb[95].mxu1  ;;  %10930 = vmatprep.subr.bf16.mxu0 %v10929_v63  ;;  %10962 = vmatprep.subr.bf16.mxu1 %v10961_v55  ;;  %v3936_v63 = vld [vmem:[%s12013_s4 + $0x668] sm:$0xff]  ;;  %v3967_v55 = vld [vmem:[%s12013_s4 + $0x760] sm:$0xff]  ;;  %v10969_v30 = vpack.c.bf16 %v3984_v61, %v3983_v0 }
 0xa4f   :  { %v3090_v60 = vadd.f32 %v3089_v56, %v13840_v27  ;;  %v3227_v17 = vadd.f32 %v3226_v22, %v13849_v18  ;;  %4578 = vmatprep.mubr.f32.mxu0 %v3612_v7  ;;  %4703 = vmatprep.mubr.f32.mxu1 %v3614_v53  ;;  %v3986_v7 = vld [vmem:[%s12013_s4 + $0x7f8] sm:$0xff]  ;;  %v10939_v53 = vpack.c.bf16 %v3936_v63, %v14029_v48 }
 0xa50   :  { %4579 = vmatmul.mubr.f32.gmra.mrb[188].mxu0 %v3611_v58  ;;  %4704 = vmatmul.mubr.f32.gmra.mrb[188].mxu1 %v3613_v10  ;;  %v3627_v9 = vmax.f32 %v3088_v41, 0.0  ;;  %v3629_v24 = vmax.f32 %v3225_v21, 0.0  ;;  %v10971_v20 = vpack.c.bf16 %v3968_v46, %v3967_v55  ;;  %v10973_v58 = vpack.c.bf16 %v3986_v7, %v3985_v50  ;;  %v3937_v10 = vld [vmem:[%s12013_s4 + $0x670] sm:$0xff]  ;;  %v3938_v41 = vld [vmem:[%s12013_s4 + $0x678] sm:$0xff] }
 0xa51   :  { %v3628_v44 = vmax.f32 %v3090_v60, 0.0  ;;  %v3630_v12 = vmax.f32 %v3227_v17, 0.0  ;;  %v3093_v62 = vpop.f32.mrb[96].mxu0  ;;  %v3230_v11 = vpop.f32.mrb[96].mxu1  ;;  %10932 = vmatpush3.bf16.msra.mxu0 %v10931_v43  ;;  %10964 = vmatpush3.bf16.msra.mxu1 %v10963_v26  ;;  %v3969_v17 = vld [vmem:[%s12013_s4 + $0x770] sm:$0xff]  ;;  %v3970_v48 = vld [vmem:[%s12013_s4 + $0x778] sm:$0xff] }
 0xa52   :  { %v3094_v39 = vadd.f32 %v3093_v62, %v13831_v16  ;;  %v3231_v40 = vadd.f32 %v3230_v11, %v13836_v29  ;;  %v3095_v38 = vpop.f32.mrb[97].mxu0  ;;  %v3232_v23 = vpop.f32.mrb[97].mxu1  ;;  %10934 = vmatprep.subr.bf16.mxu0 %v10933_v19  ;;  %10966 = vmatprep.subr.bf16.mxu1 %v10965_v25  ;;  %v10941_v25 = vpack.c.bf16 %v3954_v14, %v3953_v13  ;;  %s11793_s4 = smov 104  }
 0xa53   :  { %v3096_v43 = vadd.f32 %v3095_v38, %v13840_v27  ;;  %v3233_v26 = vadd.f32 %v3232_v23, %v13849_v18  ;;  %4583 = vmatprep.mubr.f32.mxu0 %v3628_v44  ;;  %4708 = vmatprep.mubr.f32.mxu1 %v3630_v12  ;;  %v10943_v12 = vpack.c.bf16 %v3938_v41, %v3937_v10 }
 0xa54   :  { %4584 = vmatmul.mubr.f32.gmra.mrb[190].mxu0 %v3627_v9  ;;  %4709 = vmatmul.mubr.f32.gmra.mrb[190].mxu1 %v3629_v24  ;;  %v3643_v21 = vmax.f32 %v3094_v39, 0.0  ;;  %v3645_v56 = vmax.f32 %v3231_v40, 0.0  ;;  %v10975_v62 = vpack.c.bf16 %v3970_v48, %v3969_v17  ;;  %v14072_v48 = vrot.slane %v13823_v31, %v2345_v32 }
 0xa55   :  { %v3644_v8 = vmax.f32 %v3096_v43, 0.0  ;;  %v3646_v3 = vmax.f32 %v3233_v26, 0.0  ;;  %v3099_v42 = vpop.f32.mrb[98].mxu0  ;;  %v3236_v19 = vpop.f32.mrb[98].mxu1  ;;  %10936 = vmatpush3.bf16.msra.mxu0 %v10935_v36  ;;  %10968 = vmatpush3.bf16.msra.mxu1 %v10967_v59 }
 0xa56   :  { %v3100_v22 = vadd.f32 %v3099_v42, %v13831_v16  ;;  %v3237_v0 = vadd.f32 %v3236_v19, %v13836_v29  ;;  %v3101_v61 = vpop.f32.mrb[99].mxu0  ;;  %v3238_v60 = vpop.f32.mrb[99].mxu1  ;;  %10938 = vmatprep.subr.bf16.mxu0 %v10937_v15  ;;  %10970 = vmatprep.subr.bf16.mxu1 %v10969_v30 }
 0xa57   :  { %v3102_v63 = vadd.f32 %v3101_v61, %v13840_v27  ;;  %v3239_v36 = vadd.f32 %v3238_v60, %v13849_v18  ;;  %4588 = vmatprep.mubr.f32.mxu0 %v3644_v8  ;;  %4713 = vmatprep.mubr.f32.mxu1 %v3646_v3 }
 0xa58   :  { %4589 = vmatmul.mubr.f32.gmra.mrb[192].mxu0 %v3643_v21  ;;  %4714 = vmatmul.mubr.f32.gmra.mrb[192].mxu1 %v3645_v56  ;;  %v3659_v11 = vmax.f32 %v3100_v22, 0.0  ;;  %v3661_v15 = vmax.f32 %v3237_v0, 0.0 }
 0xa59   :  { %v3660_v59 = vmax.f32 %v3102_v63, 0.0  ;;  %v3662_v55 = vmax.f32 %v3239_v36, 0.0  ;;  %v3105_v46 = vpop.f32.mrb[100].mxu0  ;;  %v3242_v44 = vpop.f32.mrb[100].mxu1  ;;  %10940 = vmatpush3.bf16.msra.mxu0 %v10939_v53  ;;  %10972 = vmatpush3.bf16.msra.mxu1 %v10971_v20 }
 0xa5a   :  { %v3106_v30 = vadd.f32 %v3105_v46, %v13831_v16  ;;  %v3243_v13 = vadd.f32 %v3242_v44, %v13836_v29  ;;  %v3107_v14 = vpop.f32.mrb[101].mxu0  ;;  %v3244_v9 = vpop.f32.mrb[101].mxu1  ;;  %10942 = vmatprep.subr.bf16.mxu0 %v10941_v25  ;;  %10974 = vmatprep.subr.bf16.mxu1 %v10973_v58  ;;  %v14077_v46 = vrot.slane %v13823_v31, %v2353_v1 }
 0xa5b   :  { %v3108_v24 = vadd.f32 %v3107_v14, %v13840_v27  ;;  %v3245_v39 = vadd.f32 %v3244_v9, %v13849_v18  ;;  %4593 = vmatprep.mubr.f32.mxu0 %v3660_v59  ;;  %4718 = vmatprep.mubr.f32.mxu1 %v3662_v55  ;;  %v14082_v44 = vrot.slane %v13823_v31, %v2349_v5 }
 0xa5c   :  { %4594 = vmatmul.mubr.f32.gmra.mrb[194].mxu0 %v3659_v11  ;;  %4719 = vmatmul.mubr.f32.gmra.mrb[194].mxu1 %v3661_v15  ;;  %v3675_v7 = vmax.f32 %v3106_v30, 0.0  ;;  %v3677_v43 = vmax.f32 %v3243_v13, 0.0  ;;  %v14091_v1 = vrot.slane %v13823_v31, %v2357_v4 }
 0xa5d   :  { %v3676_v40 = vmax.f32 %v3108_v24, 0.0  ;;  %v3678_v38 = vmax.f32 %v3245_v39, 0.0  ;;  %v3111_v23 = vpop.f32.mrb[102].mxu0  ;;  %v3248_v50 = vpop.f32.mrb[102].mxu1  ;;  %10944 = vmatpush3.bf16.msra.mxu0 %v10943_v12  ;;  %10976 = vmatpush3.bf16.msra.mxu1 %v10975_v62 }
 0xa5e   :  { %v3112_v26 = vadd.f32 %v3111_v23, %v13831_v16  ;;  %v3249_v53 = vadd.f32 %v3248_v50, %v13836_v29  ;;  %v3113_v20 = vpop.f32.mrb[103].mxu0  ;;  %v3250_v8 = vpop.f32.mrb[103].mxu1 }
 0xa5f   :  { %v3114_v3 = vadd.f32 %v3113_v20, %v13840_v27  ;;  %v3251_v42 = vadd.f32 %v3250_v8, %v13849_v18  ;;  %4598 = vmatprep.mubr.f32.mxu0 %v3676_v40  ;;  %4723 = vmatprep.mubr.f32.mxu1 %v3678_v38 }
 0xa60   :  { %4599 = vmatmul.mubr.f32.gmra.mrb[196].mxu0 %v3675_v7  ;;  %4724 = vmatmul.mubr.f32.gmra.mrb[196].mxu1 %v3677_v43  ;;  %v3691_v41 = vmax.f32 %v3112_v26, 0.0  ;;  %v3693_v21 = vmax.f32 %v3249_v53, 0.0 }
 0xa61   :  { %v3692_v19 = vmax.f32 %v3114_v3, 0.0  ;;  %v3694_v25 = vmax.f32 %v3251_v42, 0.0  ;;  %v3117_v58 = vpop.f32.mrb[104].mxu0  ;;  %v3254_v10 = vpop.f32.mrb[104].mxu1 }
 0xa62   :  { %v3118_v56 = vadd.f32 %v3117_v58, %v13831_v16  ;;  %v3255_v22 = vadd.f32 %v3254_v10, %v13836_v29  ;;  %v3119_v0 = vpop.f32.mrb[105].mxu0  ;;  %v3256_v61 = vpop.f32.mrb[105].mxu1 }
 0xa63   :  { %v3120_v60 = vadd.f32 %v3119_v0, %v13840_v27  ;;  %v3257_v17 = vadd.f32 %v3256_v61, %v13849_v18  ;;  %4603 = vmatprep.mubr.f32.mxu0 %v3692_v19  ;;  %4728 = vmatprep.mubr.f32.mxu1 %v3694_v25 }
 0xa64   :  { %4604 = vmatmul.mubr.f32.gmra.mrb[198].mxu0 %v3691_v41  ;;  %4729 = vmatmul.mubr.f32.gmra.mrb[198].mxu1 %v3693_v21  ;;  %v3707_v12 = vmax.f32 %v3118_v56, 0.0  ;;  %v3709_v62 = vmax.f32 %v3255_v22, 0.0 }
 0xa65   :  { %v3708_v63 = vmax.f32 %v3120_v60, 0.0  ;;  %v3710_v36 = vmax.f32 %v3257_v17, 0.0  ;;  %v3123_v59 = vpop.f32.mrb[106].mxu0  ;;  %v3260_v55 = vpop.f32.mrb[106].mxu1 }
 0xa66   :  { %v3124_v11 = vadd.f32 %v3123_v59, %v13831_v16  ;;  %v3261_v32 = vadd.f32 %v3260_v55, %v13836_v29  ;;  %v3125_v15 = vpop.f32.mrb[107].mxu0  ;;  %v3262_v30 = vpop.f32.mrb[107].mxu1 }
 0xa67   :  { %v3126_v13 = vadd.f32 %v3125_v15, %v13840_v27  ;;  %v3263_v14 = vadd.f32 %v3262_v30, %v13849_v18  ;;  %4608 = vmatprep.mubr.f32.mxu0 %v3708_v63  ;;  %4733 = vmatprep.mubr.f32.mxu1 %v3710_v36 }
 0xa68   :  { %4609 = vmatmul.mubr.f32.gmra.mrb[200].mxu0 %v3707_v12  ;;  %4734 = vmatmul.mubr.f32.gmra.mrb[200].mxu1 %v3709_v62  ;;  %v3723_v29 = vmax.f32 %v3124_v11, 0.0  ;;  %v3725_v39 = vmax.f32 %v3261_v32, 0.0 }
 0xa69   :  { %v3724_v5 = vmax.f32 %v3126_v13, 0.0  ;;  %v3726_v9 = vmax.f32 %v3263_v14, 0.0  ;;  %v3331_v16 = vpop.f32.mrb[108].mxu0  ;;  %v3468_v24 = vpop.f32.mrb[108].mxu1 }
 0xa6a   :  { %v3332_v40 = vadd.f32 %v3331_v16, %v14072_v48  ;;  %v3469_v27 = vadd.f32 %v3468_v24, %v14077_v46  ;;  %v3333_v18 = vpop.f32.mrb[109].mxu0  ;;  %v3470_v38 = vpop.f32.mrb[109].mxu1 }
 0xa6b   :  { %v3334_v23 = vadd.f32 %v3333_v18, %v14082_v44  ;;  %v3471_v51 = vadd.f32 %v3470_v38, %v14091_v1  ;;  %4613 = vmatprep.mubr.f32.mxu0 %v3724_v5  ;;  %4738 = vmatprep.mubr.f32.mxu1 %v3726_v9 }
 0xa6c   :  { %4614 = vmatmul.mubr.f32.gmra.mrb[202].mxu0 %v3723_v29  ;;  %4739 = vmatmul.mubr.f32.gmra.mrb[202].mxu1 %v3725_v39  ;;  %v3551_v43 = vmax.f32 %v3332_v40, 0.0  ;;  %v3553_v26 = vmax.f32 %v3469_v27, 0.0 }
 0xa6d   :  { %v3552_v4 = vmax.f32 %v3334_v23, 0.0  ;;  %v3554_v31 = vmax.f32 %v3471_v51, 0.0  ;;  %v3337_v50 = vpop.f32.mrb[110].mxu0  ;;  %v3474_v7 = vpop.f32.mrb[110].mxu1 }
 0xa6e   :  { %v3338_v53 = vadd.f32 %v3337_v50, %v14072_v48  ;;  %v3475_v20 = vadd.f32 %v3474_v7, %v14077_v46  ;;  %v3339_v8 = vpop.f32.mrb[111].mxu0  ;;  %v3476_v3 = vpop.f32.mrb[111].mxu1 }
 0xa6f   :  { %v3340_v42 = vadd.f32 %v3339_v8, %v14082_v44  ;;  %v3477_v19 = vadd.f32 %v3476_v3, %v14091_v1  ;;  %4808 = vmatprep.mubr.f32.mxu0 %v3552_v4  ;;  %4933 = vmatprep.mubr.f32.mxu1 %v3554_v31 }
 0xa70   :  { %4809 = vmatmul.mubr.f32.vlgmr.msra.gmra.mrb[204].mxu0 %v3551_v43  ;;  %4934 = vmatmul.mubr.f32.vlgmr.msra.gmra.mrb[204].mxu1 %v3553_v26  ;;  %v3567_v21 = vmax.f32 %v3338_v53, 0.0  ;;  %v3569_v56 = vmax.f32 %v3475_v20, 0.0 }
 0xa71   :  { %v3568_v25 = vmax.f32 %v3340_v42, 0.0  ;;  %v3570_v58 = vmax.f32 %v3477_v19, 0.0  ;;  %v3343_v10 = vpop.f32.mrb[112].mxu0  ;;  %v3480_v41 = vpop.f32.mrb[112].mxu1 }
 0xa72   :  { %v3344_v22 = vadd.f32 %v3343_v10, %v14072_v48  ;;  %v3481_v0 = vadd.f32 %v3480_v41, %v14077_v46  ;;  %v3345_v61 = vpop.f32.mrb[113].mxu0  ;;  %v3482_v60 = vpop.f32.mrb[113].mxu1 }
 0xa73   :  { %v3346_v17 = vadd.f32 %v3345_v61, %v14082_v44  ;;  %v3483_v63 = vadd.f32 %v3482_v60, %v14091_v1  ;;  %4813 = vmatprep.mubr.f32.mxu0 %v3568_v25  ;;  %4938 = vmatprep.mubr.f32.mxu1 %v3570_v58 }
 0xa74   :  { %4814 = vmatmul.mubr.f32.gmra.mrb[206].mxu0 %v3567_v21  ;;  %4939 = vmatmul.mubr.f32.gmra.mrb[206].mxu1 %v3569_v56  ;;  %v3583_v62 = vmax.f32 %v3344_v22, 0.0  ;;  %v3585_v11 = vmax.f32 %v3481_v0, 0.0 }
 0xa75   :  { %v3584_v36 = vmax.f32 %v3346_v17, 0.0  ;;  %v3586_v59 = vmax.f32 %v3483_v63, 0.0  ;;  %v3349_v55 = vpop.f32.mrb[114].mxu0  ;;  %v3486_v12 = vpop.f32.mrb[114].mxu1 }
 0xa76   :  { %v3350_v32 = vadd.f32 %v3349_v55, %v14072_v48  ;;  %v3487_v15 = vadd.f32 %v3486_v12, %v14077_v46  ;;  %v3351_v30 = vpop.f32.mrb[115].mxu0  ;;  %v3488_v13 = vpop.f32.mrb[115].mxu1 }
 0xa77   :  { %v3352_v14 = vadd.f32 %v3351_v30, %v14082_v44  ;;  %v3489_v5 = vadd.f32 %v3488_v13, %v14091_v1  ;;  %4818 = vmatprep.mubr.f32.mxu0 %v3584_v36  ;;  %4943 = vmatprep.mubr.f32.mxu1 %v3586_v59 }
 0xa78   :  { %4819 = vmatmul.mubr.f32.gmra.mrb[208].mxu0 %v3583_v62  ;;  %4944 = vmatmul.mubr.f32.gmra.mrb[208].mxu1 %v3585_v11  ;;  %v3599_v39 = vmax.f32 %v3350_v32, 0.0  ;;  %v3601_v40 = vmax.f32 %v3487_v15, 0.0 }
 0xa79   :  { %v3600_v9 = vmax.f32 %v3352_v14, 0.0  ;;  %v3602_v16 = vmax.f32 %v3489_v5, 0.0  ;;  %v3355_v24 = vpop.f32.mrb[116].mxu0  ;;  %v3492_v29 = vpop.f32.mrb[116].mxu1 }
 0xa7a   :  { %v3356_v27 = vadd.f32 %v3355_v24, %v14072_v48  ;;  %v3493_v18 = vadd.f32 %v3492_v29, %v14077_v46  ;;  %v3357_v38 = vpop.f32.mrb[117].mxu0  ;;  %v3494_v23 = vpop.f32.mrb[117].mxu1 }
 0xa7b   :  { %v3358_v51 = vadd.f32 %v3357_v38, %v14082_v44  ;;  %v3495_v4 = vadd.f32 %v3494_v23, %v14091_v1  ;;  %4823 = vmatprep.mubr.f32.mxu0 %v3600_v9  ;;  %4948 = vmatprep.mubr.f32.mxu1 %v3602_v16 }
 0xa7c   :  { %4824 = vmatmul.mubr.f32.gmra.mrb[210].mxu0 %v3599_v39  ;;  %4949 = vmatmul.mubr.f32.gmra.mrb[210].mxu1 %v3601_v40  ;;  %v3615_v26 = vmax.f32 %v3356_v27, 0.0  ;;  %v3617_v53 = vmax.f32 %v3493_v18, 0.0 }
 0xa7d   :  { %v3616_v31 = vmax.f32 %v3358_v51, 0.0  ;;  %v3618_v50 = vmax.f32 %v3495_v4, 0.0  ;;  %v3361_v7 = vpop.f32.mrb[118].mxu0  ;;  %v3498_v43 = vpop.f32.mrb[118].mxu1 }
 0xa7e   :  { %v3362_v20 = vadd.f32 %v3361_v7, %v14072_v48  ;;  %v3499_v8 = vadd.f32 %v3498_v43, %v14077_v46  ;;  %v3363_v3 = vpop.f32.mrb[119].mxu0  ;;  %v3500_v42 = vpop.f32.mrb[119].mxu1 }
 0xa7f   :  { %v3364_v19 = vadd.f32 %v3363_v3, %v14082_v44  ;;  %v3501_v25 = vadd.f32 %v3500_v42, %v14091_v1  ;;  %4828 = vmatprep.mubr.f32.mxu0 %v3616_v31  ;;  %4953 = vmatprep.mubr.f32.mxu1 %v3618_v50 }
 0xa80   :  { %4829 = vmatmul.mubr.f32.gmra.mrb[212].mxu0 %v3615_v26  ;;  %4954 = vmatmul.mubr.f32.gmra.mrb[212].mxu1 %v3617_v53  ;;  %v3631_v56 = vmax.f32 %v3362_v20, 0.0  ;;  %v3633_v22 = vmax.f32 %v3499_v8, 0.0 }
 0xa81   :  { %v3632_v58 = vmax.f32 %v3364_v19, 0.0  ;;  %v3634_v10 = vmax.f32 %v3501_v25, 0.0  ;;  %v3367_v41 = vpop.f32.mrb[120].mxu0  ;;  %v3504_v21 = vpop.f32.mrb[120].mxu1 }
 0xa82   :  { %v3368_v0 = vadd.f32 %v3367_v41, %v14072_v48  ;;  %v3505_v61 = vadd.f32 %v3504_v21, %v14077_v46  ;;  %v3369_v60 = vpop.f32.mrb[121].mxu0  ;;  %v3506_v17 = vpop.f32.mrb[121].mxu1 }
 0xa83   :  { %v3370_v63 = vadd.f32 %v3369_v60, %v14082_v44  ;;  %v3507_v36 = vadd.f32 %v3506_v17, %v14091_v1  ;;  %4833 = vmatprep.mubr.f32.mxu0 %v3632_v58  ;;  %4958 = vmatprep.mubr.f32.mxu1 %v3634_v10 }
 0xa84   :  { %4834 = vmatmul.mubr.f32.gmra.mrb[214].mxu0 %v3631_v56  ;;  %4959 = vmatmul.mubr.f32.gmra.mrb[214].mxu1 %v3633_v22  ;;  %v3647_v11 = vmax.f32 %v3368_v0, 0.0  ;;  %v3649_v32 = vmax.f32 %v3505_v61, 0.0 }
 0xa85   :  { %v3648_v59 = vmax.f32 %v3370_v63, 0.0  ;;  %v3650_v55 = vmax.f32 %v3507_v36, 0.0  ;;  %v3373_v12 = vpop.f32.mrb[122].mxu0  ;;  %v3510_v62 = vpop.f32.mrb[122].mxu1 }
 0xa86   :  { %v3374_v15 = vadd.f32 %v3373_v12, %v14072_v48  ;;  %v3511_v30 = vadd.f32 %v3510_v62, %v14077_v46  ;;  %v3375_v13 = vpop.f32.mrb[123].mxu0  ;;  %v3512_v14 = vpop.f32.mrb[123].mxu1 }
 0xa87   :  { %v3376_v5 = vadd.f32 %v3375_v13, %v14082_v44  ;;  %v3513_v9 = vadd.f32 %v3512_v14, %v14091_v1  ;;  %4838 = vmatprep.mubr.f32.mxu0 %v3648_v59  ;;  %4963 = vmatprep.mubr.f32.mxu1 %v3650_v55 }
 0xa88   :  { %4839 = vmatmul.mubr.f32.gmra.mrb[216].mxu0 %v3647_v11  ;;  %4964 = vmatmul.mubr.f32.gmra.mrb[216].mxu1 %v3649_v32  ;;  %v3663_v40 = vmax.f32 %v3374_v15, 0.0  ;;  %v3665_v27 = vmax.f32 %v3511_v30, 0.0 }
 0xa89   :  { %v3664_v16 = vmax.f32 %v3376_v5, 0.0  ;;  %v3666_v24 = vmax.f32 %v3513_v9, 0.0  ;;  %v3379_v29 = vpop.f32.mrb[124].mxu0  ;;  %v3516_v39 = vpop.f32.mrb[124].mxu1 }
 0xa8a   :  { %v3380_v18 = vadd.f32 %v3379_v29, %v14072_v48  ;;  %v3517_v38 = vadd.f32 %v3516_v39, %v14077_v46  ;;  %v3381_v23 = vpop.f32.mrb[125].mxu0  ;;  %v3518_v51 = vpop.f32.mrb[125].mxu1 }
 0xa8b   :  { %v3382_v4 = vadd.f32 %v3381_v23, %v14082_v44  ;;  %v3519_v31 = vadd.f32 %v3518_v51, %v14091_v1  ;;  %4843 = vmatprep.mubr.f32.mxu0 %v3664_v16  ;;  %4968 = vmatprep.mubr.f32.mxu1 %v3666_v24 }
 0xa8c   :  { %4844 = vmatmul.mubr.f32.gmra.mrb[218].mxu0 %v3663_v40  ;;  %4969 = vmatmul.mubr.f32.gmra.mrb[218].mxu1 %v3665_v27  ;;  %v3679_v53 = vmax.f32 %v3380_v18, 0.0  ;;  %v3681_v20 = vmax.f32 %v3517_v38, 0.0  ;;  %v14142_v27 = vld [vmem:[%s12008_s20] ss:$0 sm:$0xff]  ;;  %s11791_s20 = smov 72  }
 0xa8d   :  { %v3680_v50 = vmax.f32 %v3382_v4, 0.0  ;;  %v3682_v7 = vmax.f32 %v3519_v31, 0.0  ;;  %v3385_v43 = vpop.f32.mrb[126].mxu0  ;;  %v3522_v26 = vpop.f32.mrb[126].mxu1 }
 0xa8e   :  { %v3386_v8 = vadd.f32 %v3385_v43, %v14072_v48  ;;  %v3523_v3 = vadd.f32 %v3522_v26, %v14077_v46  ;;  %v3387_v42 = vpop.f32.mrb[127].mxu0  ;;  %v3524_v19 = vpop.f32.mrb[127].mxu1 }
 0xa8f   :  { %v3388_v25 = vadd.f32 %v3387_v42, %v14082_v44  ;;  %v3525_v58 = vadd.f32 %v3524_v19, %v14091_v1  ;;  %4848 = vmatprep.mubr.f32.mxu0 %v3680_v50  ;;  %4973 = vmatprep.mubr.f32.mxu1 %v3682_v7 }
 0xa90   :  { %4849 = vmatmul.mubr.f32.gmra.mrb[220].mxu0 %v3679_v53  ;;  %4974 = vmatmul.mubr.f32.gmra.mrb[220].mxu1 %v3681_v20  ;;  %v3695_v22 = vmax.f32 %v3386_v8, 0.0  ;;  %v3697_v0 = vmax.f32 %v3523_v3, 0.0 }
 0xa91   :  { %v3696_v10 = vmax.f32 %v3388_v25, 0.0  ;;  %v3698_v41 = vmax.f32 %v3525_v58, 0.0  ;;  %v3391_v21 = vpop.f32.mrb[128].mxu0  ;;  %v3528_v56 = vpop.f32.mrb[128].mxu1 }
 0xa92   :  { %v3392_v61 = vadd.f32 %v3391_v21, %v14072_v48  ;;  %v3529_v60 = vadd.f32 %v3528_v56, %v14077_v46  ;;  %v3393_v17 = vpop.f32.mrb[129].mxu0  ;;  %v3530_v63 = vpop.f32.mrb[129].mxu1 }
 0xa93   :  { %v3394_v36 = vadd.f32 %v3393_v17, %v14082_v44  ;;  %v3531_v59 = vadd.f32 %v3530_v63, %v14091_v1  ;;  %4853 = vmatprep.mubr.f32.mxu0 %v3696_v10  ;;  %4978 = vmatprep.mubr.f32.mxu1 %v3698_v41 }
 0xa94   :  { %4854 = vmatmul.mubr.f32.gmra.mrb[222].mxu0 %v3695_v22  ;;  %4979 = vmatmul.mubr.f32.gmra.mrb[222].mxu1 %v3697_v0  ;;  %v3711_v32 = vmax.f32 %v3392_v61, 0.0  ;;  %v3713_v15 = vmax.f32 %v3529_v60, 0.0 }
 0xa95   :  { %v3712_v55 = vmax.f32 %v3394_v36, 0.0  ;;  %v3714_v12 = vmax.f32 %v3531_v59, 0.0  ;;  %v3397_v62 = vpop.f32.mrb[130].mxu0  ;;  %v3534_v11 = vpop.f32.mrb[130].mxu1 }
 0xa96   :  { %v3398_v30 = vadd.f32 %v3397_v62, %v14072_v48  ;;  %v3535_v13 = vadd.f32 %v3534_v11, %v14077_v46  ;;  %v3399_v14 = vpop.f32.mrb[131].mxu0  ;;  %v3536_v5 = vpop.f32.mrb[131].mxu1 }
 0xa97   :  { %v3400_v9 = vadd.f32 %v3399_v14, %v14082_v44  ;;  %v3537_v16 = vadd.f32 %v3536_v5, %v14091_v1  ;;  %4858 = vmatprep.mubr.f32.mxu0 %v3712_v55  ;;  %4983 = vmatprep.mubr.f32.mxu1 %v3714_v12 }
 0xa98   :  { %4859 = vmatmul.mubr.f32.gmra.mrb[224].mxu0 %v3711_v32  ;;  %4984 = vmatmul.mubr.f32.gmra.mrb[224].mxu1 %v3713_v15  ;;  %v3727_v39 = vmax.f32 %v3398_v30, 0.0  ;;  %v3729_v40 = vmax.f32 %v3535_v13, 0.0 }
 0xa99   :  { %v3728_v24 = vmax.f32 %v3400_v9, 0.0  ;;  %v3730_v29 = vmax.f32 %v3537_v16, 0.0 }
 0xa9b   :  { %4863 = vmatprep.mubr.f32.mxu0 %v3728_v24  ;;  %4988 = vmatprep.mubr.f32.mxu1 %v3730_v29 }
 0xa9c   :  { %4864 = vmatmul.mubr.f32.gmra.mrb[226].mxu0 %v3727_v39  ;;  %4989 = vmatmul.mubr.f32.gmra.mrb[226].mxu1 %v3729_v40 }
 0xab3   :  { %v9402_v48 = vpop.f32.mrb[132].mxu0  ;;  %v9470_v46 = vpop.f32.mrb[132].mxu1 }
 0xab4   :  { %v9403_v44 = vpop.f32.mrb[133].mxu0  ;;  %v9471_v18 = vpop.f32.mrb[133].mxu1 }
 0xab5   :  { %v9404_v38 = vadd.f32 %v9403_v44, %v9402_v48  ;;  %v9472_v1 = vadd.f32 %v9471_v18, %v9470_v46 }
 0xab7   :  { %v4061_v23 = vadd.f32 %v9404_v38, %v14142_v27  ;;  %v9405_v51 = vpop.f32.mrb[134].mxu0  ;;  %v9473_v4 = vpop.f32.mrb[134].mxu1 }
 0xab8   :  { %v9406_v31 = vpop.f32.mrb[135].mxu0  ;;  %v9474_v50 = vpop.f32.mrb[135].mxu1 }
 0xab9   :  { %v14145_v7 = vadd.f32 %v9472_v1, %v4061_v23  ;;  %v9407_v43 = vadd.f32 %v9406_v31, %v9405_v51  ;;  %v9475_v26 = vadd.f32 %v9474_v50, %v9473_v4 }
 0xabb   :  { %v4066_v53 = vadd.f32 %v9407_v43, %v14142_v27  ;;  %v9408_v20 = vpop.f32.mrb[136].mxu0  ;;  %v9476_v8 = vpop.f32.mrb[136].mxu1 }
 0xabc   :  { %v9409_v3 = vpop.f32.mrb[137].mxu0  ;;  %v9477_v42 = vpop.f32.mrb[137].mxu1 }
 0xabd   :  { %v14148_v19 = vadd.f32 %v9475_v26, %v4066_v53  ;;  %v9410_v25 = vadd.f32 %v9409_v3, %v9408_v20  ;;  %v9478_v58 = vadd.f32 %v9477_v42, %v9476_v8 }
 0xabf   :  { %v4071_v10 = vadd.f32 %v9410_v25, %v14142_v27  ;;  %v9411_v41 = vpop.f32.mrb[138].mxu0  ;;  %v9479_v21 = vpop.f32.mrb[138].mxu1 }
 0xac0   :  { %v9412_v56 = vpop.f32.mrb[139].mxu0  ;;  %v9480_v22 = vpop.f32.mrb[139].mxu1 }
 0xac1   :  { %v14151_v0 = vadd.f32 %v9478_v58, %v4071_v10  ;;  %v9413_v61 = vadd.f32 %v9412_v56, %v9411_v41  ;;  %v9481_v60 = vadd.f32 %v9480_v22, %v9479_v21 }
 0xac3   :  { %v4076_v17 = vadd.f32 %v9413_v61, %v14142_v27  ;;  %v9414_v63 = vpop.f32.mrb[140].mxu0  ;;  %v9482_v36 = vpop.f32.mrb[140].mxu1 }
 0xac4   :  { %v9415_v59 = vpop.f32.mrb[141].mxu0  ;;  %v9483_v55 = vpop.f32.mrb[141].mxu1 }
 0xac5   :  { %v14154_v12 = vadd.f32 %v9481_v60, %v4076_v17  ;;  %v9416_v62 = vadd.f32 %v9415_v59, %v9414_v63  ;;  %v9484_v11 = vadd.f32 %v9483_v55, %v9482_v36 }
 0xac7   :  { %v4081_v32 = vadd.f32 %v9416_v62, %v14142_v27  ;;  %v9417_v15 = vpop.f32.mrb[142].mxu0  ;;  %v9485_v30 = vpop.f32.mrb[142].mxu1 }
 0xac8   :  { %v9418_v13 = vpop.f32.mrb[143].mxu0  ;;  %v9486_v14 = vpop.f32.mrb[143].mxu1 }
 0xac9   :  { %v14157_v5 = vadd.f32 %v9484_v11, %v4081_v32  ;;  %v9419_v9 = vadd.f32 %v9418_v13, %v9417_v15  ;;  %v9487_v16 = vadd.f32 %v9486_v14, %v9485_v30 }
 0xacb   :  { %v4086_v24 = vadd.f32 %v9419_v9, %v14142_v27  ;;  %v9420_v29 = vpop.f32.mrb[144].mxu0  ;;  %v9488_v39 = vpop.f32.mrb[144].mxu1 }
 0xacc   :  { %v9421_v40 = vpop.f32.mrb[145].mxu0  ;;  %v9489_v48 = vpop.f32.mrb[145].mxu1 }
 0xacd   :  { %v14160_v46 = vadd.f32 %v9487_v16, %v4086_v24  ;;  %v9422_v44 = vadd.f32 %v9421_v40, %v9420_v29  ;;  %v9490_v18 = vadd.f32 %v9489_v48, %v9488_v39 }
 0xacf   :  { %v4091_v38 = vadd.f32 %v9422_v44, %v14142_v27  ;;  %v9423_v1 = vpop.f32.mrb[146].mxu0  ;;  %v9491_v23 = vpop.f32.mrb[146].mxu1 }
 0xad0   :  { %v9424_v51 = vpop.f32.mrb[147].mxu0  ;;  %v9492_v4 = vpop.f32.mrb[147].mxu1 }
 0xad1   :  { %v14163_v31 = vadd.f32 %v9490_v18, %v4091_v38  ;;  %v9425_v50 = vadd.f32 %v9424_v51, %v9423_v1  ;;  %v9493_v43 = vadd.f32 %v9492_v4, %v9491_v23 }
 0xad3   :  { %v4096_v26 = vadd.f32 %v9425_v50, %v14142_v27  ;;  %v9426_v53 = vpop.f32.mrb[148].mxu0  ;;  %v9494_v20 = vpop.f32.mrb[148].mxu1 }
 0xad4   :  { %v9427_v8 = vpop.f32.mrb[149].mxu0  ;;  %v9495_v3 = vpop.f32.mrb[149].mxu1 }
 0xad5   :  { %v14166_v42 = vadd.f32 %v9493_v43, %v4096_v26  ;;  %v9428_v25 = vadd.f32 %v9427_v8, %v9426_v53  ;;  %v9496_v58 = vadd.f32 %v9495_v3, %v9494_v20 }
 0xad7   :  { %v4101_v10 = vadd.f32 %v9428_v25, %v14142_v27  ;;  %v9429_v41 = vpop.f32.mrb[150].mxu0  ;;  %v9497_v21 = vpop.f32.mrb[150].mxu1 }
 0xad8   :  { %v9430_v56 = vpop.f32.mrb[151].mxu0  ;;  %v9498_v22 = vpop.f32.mrb[151].mxu1 }
 0xad9   :  { %v14169_v61 = vadd.f32 %v9496_v58, %v4101_v10  ;;  %v9431_v60 = vadd.f32 %v9430_v56, %v9429_v41  ;;  %v9499_v17 = vadd.f32 %v9498_v22, %v9497_v21 }
 0xadb   :  { %v4106_v63 = vadd.f32 %v9431_v60, %v14142_v27  ;;  %v9432_v36 = vpop.f32.mrb[152].mxu0  ;;  %v9500_v59 = vpop.f32.mrb[152].mxu1 }
 0xadc   :  { %v9433_v55 = vpop.f32.mrb[153].mxu0  ;;  %v9501_v62 = vpop.f32.mrb[153].mxu1 }
 0xadd   :  { %v14172_v11 = vadd.f32 %v9499_v17, %v4106_v63  ;;  %v9434_v32 = vadd.f32 %v9433_v55, %v9432_v36  ;;  %v9502_v15 = vadd.f32 %v9501_v62, %v9500_v59 }
 0xadf   :  { %v4111_v30 = vadd.f32 %v9434_v32, %v14142_v27  ;;  %v9435_v13 = vpop.f32.mrb[154].mxu0  ;;  %v9503_v14 = vpop.f32.mrb[154].mxu1 }
 0xae0   :  { %v9436_v9 = vpop.f32.mrb[155].mxu0  ;;  %v9504_v16 = vpop.f32.mrb[155].mxu1 }
 0xae1   :  { %v14175_v24 = vadd.f32 %v9502_v15, %v4111_v30  ;;  %v9437_v29 = vadd.f32 %v9436_v9, %v9435_v13  ;;  %v9505_v39 = vadd.f32 %v9504_v16, %v9503_v14 }
 0xae3   :  { %v4116_v40 = vadd.f32 %v9437_v29, %v14142_v27  ;;  %v9538_v48 = vpop.f32.mrb[156].mxu0  ;;  %v9606_v44 = vpop.f32.mrb[156].mxu1 }
 0xae4   :  { %v9539_v18 = vpop.f32.mrb[157].mxu0  ;;  %v9607_v38 = vpop.f32.mrb[157].mxu1 }
 0xae5   :  { %v14178_v1 = vadd.f32 %v9505_v39, %v4116_v40  ;;  %v9540_v23 = vadd.f32 %v9539_v18, %v9538_v48  ;;  %v9608_v51 = vadd.f32 %v9607_v38, %v9606_v44 }
 0xae7   :  { %v4311_v4 = vadd.f32 %v9540_v23, %v14145_v7  ;;  %v9541_v50 = vpop.f32.mrb[158].mxu0  ;;  %v9609_v43 = vpop.f32.mrb[158].mxu1 }
 0xae8   :  { %v9542_v26 = vpop.f32.mrb[159].mxu0  ;;  %v9610_v53 = vpop.f32.mrb[159].mxu1 }
 0xae9   :  { %v14181_v20 = vadd.f32 %v9608_v51, %v4311_v4  ;;  %v9543_v8 = vadd.f32 %v9542_v26, %v9541_v50  ;;  %v9611_v3 = vadd.f32 %v9610_v53, %v9609_v43 }
 0xaeb   :  { %v4316_v27 = vadd.f32 %v9543_v8, %v14148_v19  ;;  %v9544_v25 = vpop.f32.mrb[160].mxu0  ;;  %v9612_v58 = vpop.f32.mrb[160].mxu1 }
 0xaec   :  { %v9545_v10 = vpop.f32.mrb[161].mxu0  ;;  %v9613_v41 = vpop.f32.mrb[161].mxu1 }
 0xaed   :  { %v14184_v21 = vadd.f32 %v9611_v3, %v4316_v27  ;;  %v9546_v56 = vadd.f32 %v9545_v10, %v9544_v25  ;;  %v9614_v22 = vadd.f32 %v9613_v41, %v9612_v58 }
 0xaef   :  { %v4321_v7 = vadd.f32 %v9546_v56, %v14151_v0  ;;  %v9547_v60 = vpop.f32.mrb[162].mxu0  ;;  %v9615_v17 = vpop.f32.mrb[162].mxu1 }
 0xaf0   :  { %v9548_v63 = vpop.f32.mrb[163].mxu0  ;;  %v9616_v36 = vpop.f32.mrb[163].mxu1 }
 0xaf1   :  { %v14187_v59 = vadd.f32 %v9614_v22, %v4321_v7  ;;  %v9549_v55 = vadd.f32 %v9548_v63, %v9547_v60  ;;  %v9617_v62 = vadd.f32 %v9616_v36, %v9615_v17 }
 0xaf3   :  { %v4326_v19 = vadd.f32 %v9549_v55, %v14154_v12  ;;  %v9550_v32 = vpop.f32.mrb[164].mxu0  ;;  %v9618_v15 = vpop.f32.mrb[164].mxu1 }
 0xaf4   :  { %v9551_v30 = vpop.f32.mrb[165].mxu0  ;;  %v9619_v13 = vpop.f32.mrb[165].mxu1 }
 0xaf5   :  { %v14190_v14 = vadd.f32 %v9617_v62, %v4326_v19  ;;  %v9552_v9 = vadd.f32 %v9551_v30, %v9550_v32  ;;  %v9620_v16 = vadd.f32 %v9619_v13, %v9618_v15 }
 0xaf7   :  { %v4331_v0 = vadd.f32 %v9552_v9, %v14157_v5  ;;  %v9553_v29 = vpop.f32.mrb[166].mxu0  ;;  %v9621_v39 = vpop.f32.mrb[166].mxu1 }
 0xaf8   :  { %v9554_v40 = vpop.f32.mrb[167].mxu0  ;;  %v9622_v48 = vpop.f32.mrb[167].mxu1 }
 0xaf9   :  { %v14193_v44 = vadd.f32 %v9620_v16, %v4331_v0  ;;  %v9555_v18 = vadd.f32 %v9554_v40, %v9553_v29  ;;  %v9623_v38 = vadd.f32 %v9622_v48, %v9621_v39 }
 0xafb   :  { %v4336_v12 = vadd.f32 %v9555_v18, %v14160_v46  ;;  %v9556_v23 = vpop.f32.mrb[168].mxu0  ;;  %v9624_v51 = vpop.f32.mrb[168].mxu1 }
 0xafc   :  { %v9557_v4 = vpop.f32.mrb[169].mxu0  ;;  %v9625_v50 = vpop.f32.mrb[169].mxu1 }
 0xafd   :  { %v14196_v43 = vadd.f32 %v9623_v38, %v4336_v12  ;;  %v9558_v26 = vadd.f32 %v9557_v4, %v9556_v23  ;;  %v9626_v53 = vadd.f32 %v9625_v50, %v9624_v51 }
 0xaff   :  { %v4341_v5 = vadd.f32 %v9558_v26, %v14163_v31  ;;  %v9559_v8 = vpop.f32.mrb[170].mxu0  ;;  %v9627_v3 = vpop.f32.mrb[170].mxu1 }
 0xb00   :  { %v9560_v27 = vpop.f32.mrb[171].mxu0  ;;  %v9628_v25 = vpop.f32.mrb[171].mxu1 }
 0xb01   :  { %v14199_v58 = vadd.f32 %v9626_v53, %v4341_v5  ;;  %v9561_v10 = vadd.f32 %v9560_v27, %v9559_v8  ;;  %v9629_v41 = vadd.f32 %v9628_v25, %v9627_v3 }
 0xb03   :  { %v4346_v46 = vadd.f32 %v9561_v10, %v14166_v42  ;;  %v9562_v56 = vpop.f32.mrb[172].mxu0  ;;  %v9630_v22 = vpop.f32.mrb[172].mxu1 }
 0xb04   :  { %v9563_v7 = vpop.f32.mrb[173].mxu0  ;;  %v9631_v60 = vpop.f32.mrb[173].mxu1 }
 0xb05   :  { %v14202_v17 = vadd.f32 %v9629_v41, %v4346_v46  ;;  %v9564_v63 = vadd.f32 %v9563_v7, %v9562_v56  ;;  %v9632_v36 = vadd.f32 %v9631_v60, %v9630_v22 }
 0xb07   :  { %v4351_v31 = vadd.f32 %v9564_v63, %v14169_v61  ;;  %v9565_v55 = vpop.f32.mrb[174].mxu0  ;;  %v9633_v62 = vpop.f32.mrb[174].mxu1 }
 0xb08   :  { %v9566_v19 = vpop.f32.mrb[175].mxu0  ;;  %v9634_v32 = vpop.f32.mrb[175].mxu1 }
 0xb09   :  { %v14205_v15 = vadd.f32 %v9632_v36, %v4351_v31  ;;  %v9567_v30 = vadd.f32 %v9566_v19, %v9565_v55  ;;  %v9635_v13 = vadd.f32 %v9634_v32, %v9633_v62 }
 0xb0b   :  { %v4356_v42 = vadd.f32 %v9567_v30, %v14172_v11  ;;  %v9568_v9 = vpop.f32.mrb[176].mxu0  ;;  %v9636_v16 = vpop.f32.mrb[176].mxu1 }
 0xb0c   :  { %v9569_v0 = vpop.f32.mrb[177].mxu0  ;;  %v9637_v29 = vpop.f32.mrb[177].mxu1 }
 0xb0d   :  { %v14208_v39 = vadd.f32 %v9635_v13, %v4356_v42  ;;  %v9570_v40 = vadd.f32 %v9569_v0, %v9568_v9  ;;  %v9638_v48 = vadd.f32 %v9637_v29, %v9636_v16 }
 0xb0f   :  { %v4361_v61 = vadd.f32 %v9570_v40, %v14175_v24  ;;  %v9571_v18 = vpop.f32.mrb[178].mxu0  ;;  %v9639_v38 = vpop.f32.mrb[178].mxu1 }
 0xb10   :  { %v9572_v12 = vpop.f32.mrb[179].mxu0  ;;  %v9640_v23 = vpop.f32.mrb[179].mxu1 }
 0xb11   :  { %v14211_v51 = vadd.f32 %v9638_v48, %v4361_v61  ;;  %v9573_v4 = vadd.f32 %v9572_v12, %v9571_v18  ;;  %v9641_v50 = vadd.f32 %v9640_v23, %v9639_v38 }
 0xb13   :  { %v4366_v11 = vadd.f32 %v9573_v4, %v14178_v1  ;;  %v9674_v26 = vpop.f32.mrb[180].mxu0  ;;  %v9742_v53 = vpop.f32.mrb[180].mxu1 }
 0xb14   :  { %v9675_v5 = vpop.f32.mrb[181].mxu0  ;;  %v9743_v8 = vpop.f32.mrb[181].mxu1 }
 0xb15   :  { %v14214_v3 = vadd.f32 %v9641_v50, %v4366_v11  ;;  %v9676_v27 = vadd.f32 %v9675_v5, %v9674_v26  ;;  %v9744_v25 = vadd.f32 %v9743_v8, %v9742_v53 }
 0xb17   :  { %v4561_v24 = vadd.f32 %v9676_v27, %v14181_v20  ;;  %v9677_v10 = vpop.f32.mrb[182].mxu0  ;;  %v9745_v41 = vpop.f32.mrb[182].mxu1 }
 0xb18   :  { %v9678_v46 = vpop.f32.mrb[183].mxu0  ;;  %v9746_v56 = vpop.f32.mrb[183].mxu1 }
 0xb19   :  { %v14217_v22 = vadd.f32 %v9744_v25, %v4561_v24  ;;  %v9679_v7 = vadd.f32 %v9678_v46, %v9677_v10  ;;  %v9747_v60 = vadd.f32 %v9746_v56, %v9745_v41 }
 0xb1b   :  { %v4566_v1 = vadd.f32 %v9679_v7, %v14184_v21  ;;  %v9680_v63 = vpop.f32.mrb[184].mxu0  ;;  %v9748_v36 = vpop.f32.mrb[184].mxu1 }
 0xb1c   :  { %v9681_v31 = vpop.f32.mrb[185].mxu0  ;;  %v9749_v55 = vpop.f32.mrb[185].mxu1 }
 0xb1d   :  { %v14220_v62 = vadd.f32 %v9747_v60, %v4566_v1  ;;  %v9682_v19 = vadd.f32 %v9681_v31, %v9680_v63  ;;  %v9750_v32 = vadd.f32 %v9749_v55, %v9748_v36 }
 0xb1f   :  { %v4571_v20 = vadd.f32 %v9682_v19, %v14187_v59  ;;  %v9683_v30 = vpop.f32.mrb[186].mxu0  ;;  %v9751_v13 = vpop.f32.mrb[186].mxu1 }
 0xb20   :  { %v9684_v42 = vpop.f32.mrb[187].mxu0  ;;  %v9752_v9 = vpop.f32.mrb[187].mxu1 }
 0xb21   :  { %v14223_v16 = vadd.f32 %v9750_v32, %v4571_v20  ;;  %v9685_v0 = vadd.f32 %v9684_v42, %v9683_v30  ;;  %v9753_v29 = vadd.f32 %v9752_v9, %v9751_v13 }
 0xb23   :  { %v4576_v21 = vadd.f32 %v9685_v0, %v14190_v14  ;;  %v9686_v40 = vpop.f32.mrb[188].mxu0  ;;  %v9754_v48 = vpop.f32.mrb[188].mxu1 }
 0xb24   :  { %v9687_v61 = vpop.f32.mrb[189].mxu0  ;;  %v9755_v18 = vpop.f32.mrb[189].mxu1 }
 0xb25   :  { %v14226_v38 = vadd.f32 %v9753_v29, %v4576_v21  ;;  %v9688_v12 = vadd.f32 %v9687_v61, %v9686_v40  ;;  %v9756_v23 = vadd.f32 %v9755_v18, %v9754_v48 }
 0xb27   :  { %v4581_v59 = vadd.f32 %v9688_v12, %v14193_v44  ;;  %v9689_v4 = vpop.f32.mrb[190].mxu0  ;;  %v9757_v50 = vpop.f32.mrb[190].mxu1 }
 0xb28   :  { %v9690_v11 = vpop.f32.mrb[191].mxu0  ;;  %v9758_v26 = vpop.f32.mrb[191].mxu1 }
 0xb29   :  { %v14229_v53 = vadd.f32 %v9756_v23, %v4581_v59  ;;  %v9691_v5 = vadd.f32 %v9690_v11, %v9689_v4  ;;  %v9759_v8 = vadd.f32 %v9758_v26, %v9757_v50 }
 0xb2b   :  { %v4586_v14 = vadd.f32 %v9691_v5, %v14196_v43  ;;  %v9692_v27 = vpop.f32.mrb[192].mxu0  ;;  %v9760_v25 = vpop.f32.mrb[192].mxu1 }
 0xb2c   :  { %v9693_v24 = vpop.f32.mrb[193].mxu0  ;;  %v9761_v10 = vpop.f32.mrb[193].mxu1 }
 0xb2d   :  { %v14232_v41 = vadd.f32 %v9759_v8, %v4586_v14  ;;  %v9694_v46 = vadd.f32 %v9693_v24, %v9692_v27  ;;  %v9762_v56 = vadd.f32 %v9761_v10, %v9760_v25 }
 0xb2f   :  { %v4591_v44 = vadd.f32 %v9694_v46, %v14199_v58  ;;  %v9695_v7 = vpop.f32.mrb[194].mxu0  ;;  %v9763_v60 = vpop.f32.mrb[194].mxu1 }
 0xb30   :  { %v9696_v1 = vpop.f32.mrb[195].mxu0  ;;  %v9764_v63 = vpop.f32.mrb[195].mxu1 }
 0xb31   :  { %v14235_v36 = vadd.f32 %v9762_v56, %v4591_v44  ;;  %v9697_v31 = vadd.f32 %v9696_v1, %v9695_v7  ;;  %v9765_v55 = vadd.f32 %v9764_v63, %v9763_v60 }
 0xb33   :  { %v4596_v43 = vadd.f32 %v9697_v31, %v14202_v17  ;;  %v9698_v19 = vpop.f32.mrb[196].mxu0  ;;  %v9766_v32 = vpop.f32.mrb[196].mxu1 }
 0xb34   :  { %v9699_v20 = vpop.f32.mrb[197].mxu0  ;;  %v9767_v30 = vpop.f32.mrb[197].mxu1 }
 0xb35   :  { %v14238_v13 = vadd.f32 %v9765_v55, %v4596_v43  ;;  %v9700_v42 = vadd.f32 %v9699_v20, %v9698_v19  ;;  %v9768_v9 = vadd.f32 %v9767_v30, %v9766_v32 }
 0xb37   :  { %v4601_v58 = vadd.f32 %v9700_v42, %v14205_v15  ;;  %v9701_v0 = vpop.f32.mrb[198].mxu0  ;;  %v9769_v29 = vpop.f32.mrb[198].mxu1 }
 0xb38   :  { %v9702_v21 = vpop.f32.mrb[199].mxu0  ;;  %v9770_v40 = vpop.f32.mrb[199].mxu1 }
 0xb39   :  { %v14241_v48 = vadd.f32 %v9768_v9, %v4601_v58  ;;  %v9703_v61 = vadd.f32 %v9702_v21, %v9701_v0  ;;  %v9771_v18 = vadd.f32 %v9770_v40, %v9769_v29 }
 0xb3b   :  { %v4606_v17 = vadd.f32 %v9703_v61, %v14208_v39  ;;  %v9704_v12 = vpop.f32.mrb[200].mxu0  ;;  %v9772_v23 = vpop.f32.mrb[200].mxu1 }
 0xb3c   :  { %v9705_v59 = vpop.f32.mrb[201].mxu0  ;;  %v9773_v4 = vpop.f32.mrb[201].mxu1 }
 0xb3d   :  { %v14244_v50 = vadd.f32 %v9771_v18, %v4606_v17  ;;  %v9706_v11 = vadd.f32 %v9705_v59, %v9704_v12  ;;  %v9774_v26 = vadd.f32 %v9773_v4, %v9772_v23 }
 0xb3f   :  { %v4611_v15 = vadd.f32 %v9706_v11, %v14211_v51  ;;  %v9707_v5 = vpop.f32.mrb[202].mxu0  ;;  %v9775_v8 = vpop.f32.mrb[202].mxu1 }
 0xb40   :  { %v9708_v14 = vpop.f32.mrb[203].mxu0  ;;  %v9776_v27 = vpop.f32.mrb[203].mxu1 }
 0xb41   :  { %v14247_v25 = vadd.f32 %v9774_v26, %v4611_v15  ;;  %v9709_v24 = vadd.f32 %v9708_v14, %v9707_v5  ;;  %v9777_v10 = vadd.f32 %v9776_v27, %v9775_v8 }
 0xb43   :  { %v4616_v39 = vadd.f32 %v9709_v24, %v14214_v3  ;;  %v9810_v46 = vpop.f32.mrb[204].mxu0  ;;  %v9878_v56 = vpop.f32.mrb[204].mxu1 }
 0xb44   :  { %v9811_v44 = vpop.f32.mrb[205].mxu0  ;;  %v9879_v7 = vpop.f32.mrb[205].mxu1 }
 0xb45   :  { %v14250_v60 = vadd.f32 %v9777_v10, %v4616_v39  ;;  %v9812_v1 = vadd.f32 %v9811_v44, %v9810_v46  ;;  %v9880_v63 = vadd.f32 %v9879_v7, %v9878_v56 }
 0xb47   :  { %v4811_v51 = vadd.f32 %v9812_v1, %v14217_v22  ;;  %v9813_v31 = vpop.f32.mrb[206].mxu0  ;;  %v9881_v55 = vpop.f32.mrb[206].mxu1 }
 0xb48   :  { %v9814_v43 = vpop.f32.mrb[207].mxu0  ;;  %v9882_v19 = vpop.f32.mrb[207].mxu1 }
 0xb49   :  { %v4936_v32 = vadd.f32 %v9880_v63, %v4811_v51  ;;  %v9815_v20 = vadd.f32 %v9814_v43, %v9813_v31  ;;  %v9883_v30 = vadd.f32 %v9882_v19, %v9881_v55 }
 0xb4b   :  { %v4816_v42 = vadd.f32 %v9815_v20, %v14220_v62  ;;  %v9816_v3 = vpop.f32.mrb[208].mxu0  ;;  %v9884_v9 = vpop.f32.mrb[208].mxu1  ;;  %v14255_v58 = vadd.f32 %v4936_v32, %v12885_v37 }
 0xb4c   :  { %v9817_v0 = vpop.f32.mrb[209].mxu0  ;;  %v9885_v29 = vpop.f32.mrb[209].mxu1 }
 0xb4d   :  { %v4941_v21 = vadd.f32 %v9883_v30, %v4816_v42  ;;  %v9818_v40 = vadd.f32 %v9817_v0, %v9816_v3  ;;  %v9886_v61 = vadd.f32 %v9885_v29, %v9884_v9  ;;  %v5008_v22 = vsel %vm439_vm12, %v14255_v58, 0.0 }
 0xb4e   :  { %5009 = vadd.xlane.f32.xlu1 %v5008_v22 }
 0xb4f   :  { %v4821_v18 = vadd.f32 %v9818_v40, %v14223_v16  ;;  %v9819_v17 = vpop.f32.mrb[210].mxu0  ;;  %v9887_v12 = vpop.f32.mrb[210].mxu1  ;;  %v14261_v62 = vadd.f32 %v4941_v21, %v12899_v6 }
 0xb50   :  { %v9820_v23 = vpop.f32.mrb[211].mxu0  ;;  %v9888_v59 = vpop.f32.mrb[211].mxu1 }
 0xb51   :  { %v4946_v37 = vadd.f32 %v9886_v61, %v4821_v18  ;;  %v9821_v4 = vadd.f32 %v9820_v23, %v9819_v17  ;;  %v9889_v11 = vadd.f32 %v9888_v59, %v9887_v12  ;;  %v5011_v26 = vsel %vm439_vm12, %v14261_v62, 0.0 }
 0xb52   :  { %5012 = vadd.xlane.f32.xlu0 %v5011_v26 }
 0xb53   :  { %v4826_v15 = vadd.f32 %v9821_v4, %v14226_v38  ;;  %v9822_v5 = vpop.f32.mrb[212].mxu0  ;;  %v9890_v8 = vpop.f32.mrb[212].mxu1  ;;  %v14267_v16 = vadd.f32 %v4946_v37, %v12911_v28 }
 0xb54   :  { %v9823_v14 = vpop.f32.mrb[213].mxu0  ;;  %v9891_v27 = vpop.f32.mrb[213].mxu1 }
 0xb55   :  { %v4951_v6 = vadd.f32 %v9889_v11, %v4826_v15  ;;  %v9824_v24 = vadd.f32 %v9823_v14, %v9822_v5  ;;  %v9892_v10 = vadd.f32 %v9891_v27, %v9890_v8  ;;  %v5014_v39 = vsel %vm439_vm12, %v14267_v16, 0.0 }
 0xb56   :  { %5015 = vadd.xlane.f32.xlu1 %v5014_v39 }
 0xb57   :  { %v4831_v46 = vadd.f32 %v9824_v24, %v14229_v53  ;;  %v9825_v56 = vpop.f32.mrb[214].mxu0  ;;  %v9893_v44 = vpop.f32.mrb[214].mxu1  ;;  %v14273_v38 = vadd.f32 %v4951_v6, %v12921_v35 }
 0xb58   :  { %v9826_v7 = vpop.f32.mrb[215].mxu0  ;;  %v9894_v1 = vpop.f32.mrb[215].mxu1 }
 0xb59   :  { %v4956_v28 = vadd.f32 %v9892_v10, %v4831_v46  ;;  %v9827_v63 = vadd.f32 %v9826_v7, %v9825_v56  ;;  %v9895_v51 = vadd.f32 %v9894_v1, %v9893_v44  ;;  %v5017_v31 = vsel %vm439_vm12, %v14273_v38, 0.0 }
 0xb5a   :  { %5018 = vadd.xlane.f32.xlu0 %v5017_v31 }
 0xb5b   :  { %v4836_v55 = vadd.f32 %v9827_v63, %v14232_v41  ;;  %v9828_v43 = vpop.f32.mrb[216].mxu0  ;;  %v9896_v19 = vpop.f32.mrb[216].mxu1  ;;  %v14279_v53 = vadd.f32 %v4956_v28, %v12933_v54 }
 0xb5c   :  { %v9829_v32 = vpop.f32.mrb[217].mxu0  ;;  %v9897_v20 = vpop.f32.mrb[217].mxu1 }
 0xb5d   :  { %v4961_v35 = vadd.f32 %v9895_v51, %v4836_v55  ;;  %v9830_v30 = vadd.f32 %v9829_v32, %v9828_v43  ;;  %v9898_v42 = vadd.f32 %v9897_v20, %v9896_v19  ;;  %v5020_v3 = vsel %vm439_vm12, %v14279_v53, 0.0 }
 0xb5e   :  { %5021 = vadd.xlane.f32.xlu1 %v5020_v3 }
 0xb5f   :  { %v4841_v9 = vadd.f32 %v9830_v30, %v14235_v36  ;;  %v9831_v0 = vpop.f32.mrb[218].mxu0  ;;  %v9899_v29 = vpop.f32.mrb[218].mxu1  ;;  %v14285_v41 = vadd.f32 %v4961_v35, %v12943_v52 }
 0xb60   :  { %v9832_v21 = vpop.f32.mrb[219].mxu0  ;;  %v9900_v40 = vpop.f32.mrb[219].mxu1 }
 0xb61   :  { %v4966_v54 = vadd.f32 %v9898_v42, %v4841_v9  ;;  %v9833_v61 = vadd.f32 %v9832_v21, %v9831_v0  ;;  %v9901_v22 = vadd.f32 %v9900_v40, %v9899_v29  ;;  %v5023_v18 = vsel %vm439_vm12, %v14285_v41, 0.0  ;;  %v5202_v0 = vld [vmem:[%s11823_s17] sm:$0xff]  ;;  %v5203_v29 = vld [vmem:[%s11823_s17 + $0x8] sm:$0xff] }
 0xb62   :  { %5024 = vadd.xlane.f32.xlu0 %v5023_v18  ;;  %v5206_v21 = vld [vmem:[%s11823_s17 + $0x20] sm:$0xff]  ;;  %v5207_v40 = vld [vmem:[%s11823_s17 + $0x28] sm:$0xff] }
 0xb63   :  { %v4846_v17 = vadd.f32 %v9833_v61, %v14238_v13  ;;  %v9834_v12 = vpop.f32.mrb[220].mxu0  ;;  %v9902_v23 = vpop.f32.mrb[220].mxu1  ;;  %v14291_v36 = vadd.f32 %v4966_v54, %v12955_v57  ;;  %v5209_v54 = vld [vmem:[%s11823_s17 + $0x38] sm:$0xff]  ;;  %v5210_v61 = vld [vmem:[%s11823_s17 + $0x40] sm:$0xff] }
 0xb64   :  { %v9835_v59 = vpop.f32.mrb[221].mxu0  ;;  %v9903_v37 = vpop.f32.mrb[221].mxu1 }
 0xb65   :  { %v4971_v52 = vadd.f32 %v9901_v22, %v4846_v17  ;;  %v9836_v4 = vadd.f32 %v9835_v59, %v9834_v12  ;;  %v9904_v11 = vadd.f32 %v9903_v37, %v9902_v23  ;;  %v5026_v26 = vsel %vm439_vm12, %v14291_v36, 0.0  ;;  %v5211_v22 = vld [vmem:[%s11823_s17 + $0x48] sm:$0xff] }
 0xb66   :  { %5027 = vadd.xlane.f32.xlu1 %v5026_v26 }
 0xb67   :  { %v4851_v15 = vadd.f32 %v9836_v4, %v14241_v48  ;;  %v9837_v5 = vpop.f32.mrb[222].mxu0  ;;  %v9905_v8 = vpop.f32.mrb[222].mxu1  ;;  %v14297_v13 = vadd.f32 %v4971_v52, %v12965_v47 }
 0xb68   :  { %v9838_v14 = vpop.f32.mrb[223].mxu0  ;;  %v9906_v27 = vpop.f32.mrb[223].mxu1 }
 0xb69   :  { %v4976_v57 = vadd.f32 %v9904_v11, %v4851_v15  ;;  %v9839_v6 = vadd.f32 %v9838_v14, %v9837_v5  ;;  %v9907_v24 = vadd.f32 %v9906_v27, %v9905_v8  ;;  %v5029_v10 = vsel %vm439_vm12, %v14297_v13, 0.0 }
 0xb6a   :  { %5030 = vadd.xlane.f32.xlu0 %v5029_v10 }
 0xb6b   :  { %v4856_v39 = vadd.f32 %v9839_v6, %v14244_v50  ;;  %v9840_v46 = vpop.f32.mrb[224].mxu0  ;;  %v9908_v56 = vpop.f32.mrb[224].mxu1  ;;  %v14303_v48 = vadd.f32 %v4976_v57, %v12977_v49 }
 0xb6c   :  { %v9841_v44 = vpop.f32.mrb[225].mxu0  ;;  %v9909_v7 = vpop.f32.mrb[225].mxu1 }
 0xb6d   :  { %v4981_v47 = vadd.f32 %v9907_v24, %v4856_v39  ;;  %v9842_v1 = vadd.f32 %v9841_v44, %v9840_v46  ;;  %v9910_v28 = vadd.f32 %v9909_v7, %v9908_v56  ;;  %v5032_v63 = vsel %vm439_vm12, %v14303_v48, 0.0 }
 0xb6e   :  { %5033 = vadd.xlane.f32.xlu1 %v5032_v63 }
 0xb6f   :  { %v4861_v51 = vadd.f32 %v9842_v1, %v14247_v25  ;;  %v9843_v31 = vpop.f32.mrb[226].mxu0  ;;  %v9911_v55 = vpop.f32.mrb[226].mxu1  ;;  %v14309_v50 = vadd.f32 %v4981_v47, %v12987_v33 }
 0xb70   :  { %v9844_v43 = vpop.f32.mrb[227].mxu0  ;;  %v9912_v49 = vpop.f32.mrb[227].mxu1 }
 0xb71   :  { %v4986_v19 = vadd.f32 %v9910_v28, %v4861_v51  ;;  %v9845_v32 = vadd.f32 %v9844_v43, %v9843_v31  ;;  %v9913_v20 = vadd.f32 %v9912_v49, %v9911_v55  ;;  %v5035_v35 = vsel %vm439_vm12, %v14309_v50, 0.0 }
 0xb72   :  { %5036 = vadd.xlane.f32.xlu0 %v5035_v35 }
 0xb73   :  { %v4866_v25 = vadd.f32 %v9845_v32, %v14250_v60  ;;  %v14315_v30 = vadd.f32 %v4986_v19, %v12999_v45  ;;  %v5204_v45 = vld [vmem:[%s11823_s17 + $0x10] sm:$0xff]  ;;  %v5205_v60 = vld [vmem:[%s11823_s17 + $0x18] sm:$0xff] }
 0xb75   :  { %v4991_v33 = vadd.f32 %v9913_v20, %v4866_v25  ;;  %v5038_v42 = vsel %vm439_vm12, %v14315_v30, 0.0 }
 0xb76   :  { %5039 = vadd.xlane.f32.xlu1 %v5038_v42 }
 0xb77   :  { %v14320_v3 = vadd.f32 %v4991_v33, %v13008_v34  ;;  %v5208_v34 = vld [vmem:[%s11823_s17 + $0x30] sm:$0xff] }
 0xb79   :  { %v5041_v9 = vsel %vm439_vm12, %v14320_v3, 0.0 }
 0xb7a   :  { %5042 = vadd.xlane.f32.xlu0 %v5041_v9 }
 0xb87   :  { %5216 = vperm.xlu1 %11278, %v5202_v0  }
 0xb8b   :  { %5226 = vperm.xlu1 %11278, %v5204_v45  }
 0xb8f   :  { %5231 = vperm.xlu1 %11278, %v5205_v60  }
 0xb90   :  { %5221 = vperm.xlu0 %11399, %v5203_v29  }
 0xb93   :  { %5236 = vperm.xlu1 %11278, %v5206_v21  }
 0xb97   :  { %5241 = vperm.xlu1 %11278, %v5207_v40  }
 0xb9b   :  { %5246 = vperm.xlu1 %11278, %v5208_v34  }
 0xb9f   :  { %5251 = vperm.xlu1 %11278, %v5209_v54  }
 0xba3   :  { %5256 = vperm.xlu1 %11278, %v5210_v61   ;;  %v5213_v61 = vld [vmem:[%s11823_s17 + $0x58] sm:$0xff] }
 0xba7   :  { %5261 = vperm.xlu1 %11278, %v5211_v22   ;;  %v5212_v22 = vld [vmem:[%s11823_s17 + $0x50] sm:$0xff]  ;;  %s14926_s17 = sld [smem:[#allocation37_spill]] }
 0xbdb   :  { %v5010_v18 = vpop.xlane.xlu1 %5009 }
 0xbdc   :  { %v5044_v17 = vmul.f32 0.125, %v5010_v18  ;;  %v5200_v18 = vld [vmem:[%s11828_s21] sm:$0xff] }
 0xbdd   :  { %10329 = vmatprep.mubr.msk.f32.mxu0 %vm848_vm0, %v5200_v18 }
 0xbde   :  { %v14335_v12 = vsub.f32 %v14255_v58, %v5044_v17 }
 0xbdf   :  { %v5013_v23 = vpop.xlane.xlu0 %5012 }
 0xbe0   :  { %v5045_v59 = vmul.f32 0.125, %v5013_v23  ;;  %v5068_v37 = vmul.f32 %v14335_v12, %v14335_v12 }
 0xbe2   :  { %v14340_v52 = vsub.f32 %v14261_v62, %v5045_v59  ;;  %v5080_v4 = vsel %vm439_vm12, %v5068_v37, 0.0 }
 0xbe3   :  { %v5016_v11 = vpop.xlane.xlu1 %5015  ;;  %5081 = vadd.xlane.f32.xlu1 %v5080_v4 }
 0xbe4   :  { %v5046_v26 = vmul.f32 0.125, %v5016_v11  ;;  %v5069_v15 = vmul.f32 %v14340_v52, %v14340_v52 }
 0xbe6   :  { %v14346_v5 = vsub.f32 %v14267_v16, %v5046_v26  ;;  %v5083_v58 = vsel %vm439_vm12, %v5069_v15, 0.0 }
 0xbe7   :  { %v5019_v8 = vpop.xlane.xlu0 %5018  ;;  %5084 = vadd.xlane.f32.xlu0 %v5083_v58 }
 0xbe8   :  { %v5047_v14 = vmul.f32 0.125, %v5019_v8  ;;  %v5070_v62 = vmul.f32 %v14346_v5, %v14346_v5 }
 0xbea   :  { %v14352_v27 = vsub.f32 %v14273_v38, %v5047_v14  ;;  %v5086_v57 = vsel %vm439_vm12, %v5070_v62, 0.0 }
 0xbeb   :  { %v5022_v6 = vpop.xlane.xlu1 %5021  ;;  %5087 = vadd.xlane.f32.xlu1 %v5086_v57 }
 0xbec   :  { %v5048_v24 = vmul.f32 0.125, %v5022_v6  ;;  %v5071_v16 = vmul.f32 %v14352_v27, %v14352_v27 }
 0xbee   :  { %v14358_v10 = vsub.f32 %v14279_v53, %v5048_v24  ;;  %v5089_v39 = vsel %vm439_vm12, %v5071_v16, 0.0 }
 0xbef   :  { %v5025_v46 = vpop.xlane.xlu0 %5024  ;;  %5090 = vadd.xlane.f32.xlu0 %v5089_v39 }
 0xbf0   :  { %v5049_v56 = vmul.f32 0.125, %v5025_v46  ;;  %v5072_v38 = vmul.f32 %v14358_v10, %v14358_v10 }
 0xbf2   :  { %v14364_v44 = vsub.f32 %v14285_v41, %v5049_v56  ;;  %v5092_v7 = vsel %vm439_vm12, %v5072_v38, 0.0 }
 0xbf3   :  { %v5028_v47 = vpop.xlane.xlu1 %5027  ;;  %5093 = vadd.xlane.f32.xlu1 %v5092_v7 }
 0xbf4   :  { %v5050_v1 = vmul.f32 0.125, %v5028_v47  ;;  %v5073_v53 = vmul.f32 %v14364_v44, %v14364_v44 }
 0xbf6   :  { %v14370_v28 = vsub.f32 %v14291_v36, %v5050_v1  ;;  %v5095_v63 = vsel %vm439_vm12, %v5073_v53, 0.0  ;;  %v14427_v1 = vld [vmem:[%s14925_s13] ss:$0 sm:$0xff]  ;;  %s14950_s13 = sld [smem:[#allocation25_spill]] }
 0xbf7   :  { %v5031_v51 = vpop.xlane.xlu0 %5030  ;;  %5096 = vadd.xlane.f32.xlu0 %v5095_v63 }
 0xbf8   :  { %v5051_v31 = vmul.f32 0.125, %v5031_v51  ;;  %v5074_v41 = vmul.f32 %v14370_v28, %v14370_v28 }
 0xbfa   :  { %v14376_v55 = vsub.f32 %v14297_v13, %v5051_v31  ;;  %v5098_v43 = vsel %vm439_vm12, %v5074_v41, 0.0 }
 0xbfb   :  { %v5034_v49 = vpop.xlane.xlu1 %5033  ;;  %5099 = vadd.xlane.f32.xlu1 %v5098_v43 }
 0xbfc   :  { %v5052_v19 = vmul.f32 0.125, %v5034_v49  ;;  %v5075_v36 = vmul.f32 %v14376_v55, %v14376_v55  ;;  %v14432_v49 = vld [vmem:[%s14926_s17] ss:$0 sm:$0xff]  ;;  %s14951_s17 = sld [smem:[#allocation27_spill]] }
 0xbfe   :  { %v14382_v32 = vsub.f32 %v14303_v48, %v5052_v19  ;;  %v5101_v20 = vsel %vm439_vm12, %v5075_v36, 0.0 }
 0xbff   :  { %v5037_v35 = vpop.xlane.xlu0 %5036  ;;  %5102 = vadd.xlane.f32.xlu0 %v5101_v20 }
 0xc00   :  { %v5053_v25 = vmul.f32 0.125, %v5037_v35  ;;  %v5076_v13 = vmul.f32 %v14382_v32, %v14382_v32 }
 0xc02   :  { %v14388_v33 = vsub.f32 %v14309_v50, %v5053_v25  ;;  %v5104_v42 = vsel %vm439_vm12, %v5076_v13, 0.0 }
 0xc03   :  { %5105 = vadd.xlane.f32.xlu1 %v5104_v42  ;;  %v5040_v9 = vpop.xlane.xlu1 %5039 }
 0xc04   :  { %v5054_v0 = vmul.f32 0.125, %v5040_v9  ;;  %v5077_v48 = vmul.f32 %v14388_v33, %v14388_v33 }
 0xc06   :  { %v14394_v45 = vsub.f32 %v14315_v30, %v5054_v0  ;;  %v5107_v60 = vsel %vm439_vm12, %v5077_v48, 0.0 }
 0xc07   :  { %5108 = vadd.xlane.f32.xlu0 %v5107_v60  ;;  %v5043_v29 = vpop.xlane.xlu0 %5042  ;;  %v5217_v17 = vpop.permute.xlu1 %5216 }
 0xc08   :  { %v5055_v50 = vmul.f32 0.125, %v5043_v29  ;;  %v5078_v21 = vmul.f32 %v14394_v45, %v14394_v45 }
 0xc0a   :  { %v14400_v40 = vsub.f32 %v14320_v3, %v5055_v50  ;;  %v5110_v34 = vsel %vm439_vm12, %v5078_v21, 0.0 }
 0xc0b   :  { %5111 = vadd.xlane.f32.xlu1 %v5110_v34  ;;  %v14410_v23 = vpop.permute.xlu1 %5226 }
 0xc0c   :  { %v5079_v54 = vmul.f32 %v14400_v40, %v14400_v40 }
 0xc0e   :  { %v5113_v30 = vsel %vm439_vm12, %v5079_v54, 0.0 }
 0xc0f   :  { %5114 = vadd.xlane.f32.xlu0 %v5113_v30  ;;  %v14412_v3 = vpop.permute.xlu1 %5231  ;;  %v5222_v58 = vpop.permute.xlu0 %5221 }
 0xc13   :  { %v14414_v59 = vpop.permute.xlu1 %5236 }
 0xc17   :  { %v14416_v37 = vpop.permute.xlu1 %5241 }
 0xc1b   :  { %v14418_v4 = vpop.permute.xlu1 %5246 }
 0xc1c   :  { %5271 = vperm.xlu1 %11278, %v5213_v61  }
 0xc1f   :  { %v14420_v11 = vpop.permute.xlu1 %5251 }
 0xc23   :  { %v14422_v26 = vpop.permute.xlu1 %5256 }
 0xc25   :  { %5266 = vperm.xlu0 %11399, %v5212_v22  }
 0xc27   :  { %v14424_v15 = vpop.permute.xlu1 %5261 }
 0xc70   :  { %v5082_v8 = vpop.xlane.xlu1 %5081 }
 0xc71   :  { %v5116_v14 = vmul.f32 0.125, %v5082_v8 }
 0xc73   :  { %v5128_v62 = vadd.f32 1e-05, %v5116_v14 }
 0xc74   :  { %v5085_v57 = vpop.xlane.xlu0 %5084 }
 0xc75   :  { %11600 = vrsqrt.f32 %v5128_v62  ;;  %v5117_v6 = vmul.f32 0.125, %v5085_v57 }
 0xc77   :  { %v5129_v24 = vadd.f32 1e-05, %v5117_v6 }
 0xc78   :  { %v5088_v16 = vpop.xlane.xlu1 %5087 }
 0xc79   :  { %11602 = vrsqrt.f32 %v5129_v24  ;;  %v5118_v39 = vmul.f32 0.125, %v5088_v16 }
 0xc7b   :  { %v5130_v46 = vadd.f32 1e-05, %v5118_v39 }
 0xc7c   :  { %v5091_v56 = vpop.xlane.xlu0 %5090 }
 0xc7d   :  { %11604 = vrsqrt.f32 %v5130_v46  ;;  %v5119_v38 = vmul.f32 0.125, %v5091_v56 }
 0xc7f   :  { %v11601_v7 = vpop.eup %11600  ;;  %v5131_v47 = vadd.f32 1e-05, %v5119_v38 }
 0xc80   :  { %v5094_v53 = vpop.xlane.xlu1 %5093  ;;  %v5152_v63 = vmul.f32 %v11601_v7, %v14335_v12 }
 0xc81   :  { %11606 = vrsqrt.f32 %v5131_v47  ;;  %v5120_v51 = vmul.f32 0.125, %v5094_v53 }
 0xc82   :  { %v5170_v31 = vmul.f32 %v14427_v1, %v5152_v63 }
 0xc83   :  { %v11603_v41 = vpop.eup %11602  ;;  %v5132_v43 = vadd.f32 1e-05, %v5120_v51 }
 0xc84   :  { %v5097_v19 = vpop.xlane.xlu0 %5096  ;;  %v5153_v36 = vmul.f32 %v11603_v41, %v14340_v52  ;;  %v5188_v25 = vadd.f32 %v14432_v49, %v5170_v31 }
 0xc85   :  { %11608 = vrsqrt.f32 %v5132_v43  ;;  %v5121_v20 = vmul.f32 0.125, %v5097_v19 }
 0xc86   :  { %v5171_v35 = vmul.f32 %v14427_v1, %v5153_v36  ;;  %v5274_v60 = vmul.f32 %v5217_v17, %v5188_v25 }
 0xc87   :  { %v11605_v13 = vpop.eup %11604  ;;  %v5133_v42 = vadd.f32 1e-05, %v5121_v20 }
 0xc88   :  { %v5100_v12 = vpop.xlane.xlu1 %5099  ;;  %v5189_v9 = vadd.f32 %v14432_v49, %v5171_v35  ;;  %v5154_v0 = vmul.f32 %v11605_v13, %v14346_v5 }
 0xc89   :  { %11610 = vrsqrt.f32 %v5133_v42  ;;  %v5122_v48 = vmul.f32 0.125, %v5100_v12 }
 0xc8a   :  { %v5275_v29 = vmul.f32 %v5222_v58, %v5189_v9  ;;  %v5172_v50 = vmul.f32 %v14427_v1, %v5154_v0 }
 0xc8b   :  { %v11607_v52 = vpop.eup %11606  ;;  %v5134_v21 = vadd.f32 1e-05, %v5122_v48 }
 0xc8c   :  { %v5103_v34 = vpop.xlane.xlu0 %5102  ;;  %v10977_v54 = vpack.c.bf16 %v5275_v29, %v5274_v60  ;;  %v5155_v30 = vmul.f32 %v11607_v52, %v14352_v27  ;;  %v5190_v18 = vadd.f32 %v14432_v49, %v5172_v50 }
 0xc8d   :  { %11612 = vrsqrt.f32 %v5134_v21  ;;  %v5123_v61 = vmul.f32 0.125, %v5103_v34 }
 0xc8e   :  { %10978 = vmatprep.subr.bf16.mxu0 %v10977_v54  ;;  %v5173_v22 = vmul.f32 %v14427_v1, %v5155_v30  ;;  %v5276_v57 = vmul.f32 %v14410_v23, %v5190_v18 }
 0xc8f   :  { %v11609_v5 = vpop.eup %11608  ;;  %v5135_v8 = vadd.f32 1e-05, %v5123_v61  ;;  %10980 = vmatpush3.bf16.msra.mxu0 %v10977_v54 }
 0xc90   :  { %v5106_v17 = vpop.xlane.xlu1 %5105  ;;  %v5191_v58 = vadd.f32 %v14432_v49, %v5173_v22  ;;  %v5156_v14 = vmul.f32 %v11609_v5, %v14358_v10 }
 0xc91   :  { %11614 = vrsqrt.f32 %v5135_v8  ;;  %v5124_v62 = vmul.f32 0.125, %v5106_v17 }
 0xc92   :  { %v5277_v27 = vmul.f32 %v14412_v3, %v5191_v58  ;;  %v5174_v6 = vmul.f32 %v14427_v1, %v5156_v14 }
 0xc93   :  { %v11611_v24 = vpop.eup %11610  ;;  %v5136_v16 = vadd.f32 1e-05, %v5124_v62  ;;  %v5367_v62 = vld [vmem:[%s14928_s14] sm:$0xff] }
 0xc94   :  { %v5109_v39 = vpop.xlane.xlu0 %5108  ;;  %v10981_v46 = vpack.c.bf16 %v5277_v27, %v5276_v57  ;;  %v5157_v56 = vmul.f32 %v11611_v24, %v14364_v44  ;;  %v5192_v10 = vadd.f32 %v14432_v49, %v5174_v6  ;;  %v5460_v57 = vld [vmem:[%s12056_s24] sm:$0xff]  ;;  %v5547_v6 = vld [vmem:[%s14929_s19 + $0x8] sm:$0xff]  ;;  %s11788_s24 = smov 96  }
 0xc95   :  { %11616 = vrsqrt.f32 %v5136_v16  ;;  %v5125_v38 = vmul.f32 0.125, %v5109_v39  ;;  %v5546_v27 = vld [vmem:[%s14929_s19] sm:$0xff] }
 0xc96   :  { %10982 = vmatprep.subr.bf16.mxu0 %v10981_v46  ;;  %v5175_v7 = vmul.f32 %v14427_v1, %v5157_v56  ;;  %v5278_v31 = vmul.f32 %v14414_v59, %v5192_v10  ;;  %v11005_v24 = vpack.c.bf16 %v5547_v6, %v5546_v27  ;;  %v5549_v56 = vld [vmem:[%s14929_s19 + $0x18] sm:$0xff]  ;;  %v14560_v27 = vld [vmem:[%s14935_s23] sm:$0xff] }
 0xc97   :  { %v11613_v47 = vpop.eup %11612  ;;  %v5137_v53 = vadd.f32 1e-05, %v5125_v38  ;;  %10984 = vmatpush3.bf16.msra.mxu0 %v10981_v46  ;;  %v5548_v46 = vld [vmem:[%s14929_s19 + $0x10] sm:$0xff]  ;;  %s14954_s19 = sld [smem:[#allocation24_spill]] }
 0xc98   :  { %v5112_v23 = vpop.xlane.xlu1 %5111  ;;  %v5193_v3 = vadd.f32 %v14432_v49, %v5175_v7  ;;  %v5158_v63 = vmul.f32 %v11613_v47, %v14370_v28  ;;  %v11009_v38 = vpack.c.bf16 %v5549_v56, %v5548_v46  ;;  %v9113_v7 = vld [vmem:[%s14930_s30] ss:$0 sm:$0xff]  ;;  %s14955_s30 = sld [smem:[#allocation32_spill]] }
 0xc99   :  { %11618 = vrsqrt.f32 %v5137_v53  ;;  %v5126_v51 = vmul.f32 0.125, %v5112_v23 }
 0xc9a   :  { %v5279_v44 = vmul.f32 %v14416_v37, %v5193_v3  ;;  %v5176_v41 = vmul.f32 %v14427_v1, %v5158_v63 }
 0xc9b   :  { %v11615_v43 = vpop.eup %11614  ;;  %v5138_v19 = vadd.f32 1e-05, %v5126_v51 }
 0xc9c   :  { %v5115_v36 = vpop.xlane.xlu0 %5114  ;;  %v10985_v20 = vpack.c.bf16 %v5279_v44, %v5278_v31  ;;  %v5159_v35 = vmul.f32 %v11615_v43, %v14376_v55  ;;  %v5194_v28 = vadd.f32 %v14432_v49, %v5176_v41  ;;  %v5272_v5 = vpop.permute.xlu1 %5271 }
 0xc9d   :  { %11620 = vrsqrt.f32 %v5138_v19  ;;  %v5127_v25 = vmul.f32 0.125, %v5115_v36 }
 0xc9e   :  { %10986 = vmatprep.subr.bf16.mxu0 %v10985_v20  ;;  %v5177_v13 = vmul.f32 %v14427_v1, %v5159_v35  ;;  %v5280_v9 = vmul.f32 %v14418_v4, %v5194_v28 }
 0xc9f   :  { %v11617_v42 = vpop.eup %11616  ;;  %v5139_v12 = vadd.f32 1e-05, %v5127_v25  ;;  %10988 = vmatpush3.bf16.msra.mxu0 %v10985_v20 }
 0xca0   :  { %v5195_v59 = vadd.f32 %v14432_v49, %v5177_v13  ;;  %v5160_v37 = vmul.f32 %v11617_v42, %v14382_v32 }
 0xca1   :  { %11622 = vrsqrt.f32 %v5139_v12 }
 0xca2   :  { %v5281_v0 = vmul.f32 %v14420_v11, %v5195_v59  ;;  %v5178_v55 = vmul.f32 %v14427_v1, %v5160_v37 }
 0xca3   :  { %v11619_v48 = vpop.eup %11618 }
 0xca4   :  { %v10989_v60 = vpack.c.bf16 %v5281_v0, %v5280_v9  ;;  %v5161_v29 = vmul.f32 %v11619_v48, %v14388_v33  ;;  %v5196_v52 = vadd.f32 %v14432_v49, %v5178_v55  ;;  %v5267_v8 = vpop.permute.xlu0 %5266 }
 0xca6   :  { %10990 = vmatprep.subr.bf16.mxu0 %v10989_v60  ;;  %v5179_v50 = vmul.f32 %v14427_v1, %v5161_v29  ;;  %v5282_v34 = vmul.f32 %v14422_v26, %v5196_v52  ;;  %v5369_v26 = vld [vmem:[%s14927_s8] sm:$0xff] }
 0xca7   :  { %v11621_v21 = vpop.eup %11620  ;;  %10992 = vmatpush3.bf16.msra.mxu0 %v10989_v60 }
 0xca8   :  { %v5162_v32 = vmul.f32 %v11621_v21, %v14394_v45  ;;  %v5197_v4 = vadd.f32 %v14432_v49, %v5179_v50 }
 0xcaa   :  { %v5180_v11 = vmul.f32 %v14427_v1, %v5162_v32  ;;  %v5283_v54 = vmul.f32 %v14424_v15, %v5197_v4  ;;  %v5370_v15 = vld [vmem:[%s14927_s8 + $0x8] sm:$0xff]  ;;  %s14952_s8 = sld [smem:[#allocation26_spill]] }
 0xcab   :  { %v11623_v33 = vpop.eup %11622  ;;  %v11001_v14 = vpack.c.bf16 %v5370_v15, %v5369_v26 }
 0xcac   :  { %v5163_v30 = vmul.f32 %v11623_v33, %v14400_v40  ;;  %v10993_v61 = vpack.c.bf16 %v5283_v54, %v5282_v34  ;;  %v5198_v18 = vadd.f32 %v14432_v49, %v5180_v11 }
 0xcae   :  { %v5181_v22 = vmul.f32 %v14427_v1, %v5163_v30  ;;  %10994 = vmatprep.subr.bf16.mxu0 %v10993_v61  ;;  %v5284_v58 = vmul.f32 %v5267_v8, %v5198_v18  ;;  %v5201_v1 = vld [vmem:[%s11828_s21 + $0x8] sm:$0xf]  ;;  %s11787_s21 = smov 64  }
 0xcaf   :  { %10996 = vmatpush3.bf16.msra.mxu0 %v10993_v61 }
 0xcb0   :  { %v5199_v45 = vadd.f32 %v14432_v49, %v5181_v22  ;;  %v5368_v49 = vld [vmem:[%s14928_s14 + $0x8] sm:$0xf]  ;;  %s14953_s14 = sld [smem:[#allocation22_spill]] }
 0xcb2   :  { %v5285_v17 = vmul.f32 %v5272_v5, %v5199_v45 }
 0xcb4   :  { %v10997_v40 = vpack.c.bf16 %v5285_v17, %v5284_v58 }
 0xcb6   :  { %10998 = vmatprep.subr.bf16.mxu0 %v10997_v40 }
 0xcb7   :  { %11000 = vmatpush3.bf16.msra.mxu0 %v10997_v40 }
 0xcb8   :  { %11002 = vmatprep.subr.bf16.mxu0 %v11001_v14 }
 0xcba   :  { %10330 = vmatmul.mubr.msk.f32.vlgmr.msra.gmra.mrb[228].mxu0 %vm848_vm0, %v5201_v1  ;;  %vm14525_vm0 = vmpackc.low %vm439_vm12, %vm439_vm12 }
 0xcbb   :  { %11004 = vmatpush3.bf16.msra.mxu0 %v11001_v14  ;;  %10336 = vmatprep.mubr.msk.f32.mxu0 %vm5378_vm13, %v5367_v62 }
 0xcbc   :  { %10339 = vmatprep.subr.mxu0 %v5460_v57 }
 0xcbe   :  { %10337 = vmatmul.mubr.msk.f32.vlgmr.msra.gmra.mrb[230].mxu0 %vm5378_vm13, %v5368_v49 }
 0xcbf   :  { %10340 = vmatpush3.msra.mxu0 %v5460_v57 }
 0xcc0   :  { %11006 = vmatprep.subr.bf16.mxu0 %v11005_v24 }
 0xd8d   :  { %v10331_v16 = vpop.f32.mrb[228].mxu0 }
 0xd8e   :  { %v5358_v39 = vpop.f32.mrb[229].mxu0 }
 0xd8f   :  { %10341 = vmatprep.mubr.msk.f32.mxu0 %vm439_vm12, %v5358_v39 }
 0xd90   :  { %10342 = vmatmul.mubr.msk.f32.vlgmr.msra.gmra.mrb[230].mxu0 %vm439_vm12, %v10331_v16 }
 0xd91   :  { %11008 = vmatpush3.bf16.msra.mxu0 %v11005_v24  ;;  %v14563_v24 = vld [vmem:[%s14935_s23 + $0x8] sm:$0xf] }
 0xd92   :  { %11010 = vmatprep.subr.bf16.mxu0 %v11009_v38 }
 0xd95   :  { %11012 = vmatpush3.bf16.msra.mxu0 %v11009_v38 }
 0xe63   :  { %v10343_v10 = vpop.f32.mrb[230].mxu0 }
 0xe64   :  { %v5533_v47 = vpop.f32.mrb[231].mxu0  ;;  %v14494_v23 = vadd.f32 %v10343_v10, %v9113_v7 }
 0xe65   :  { %v14492_v53 = vadd.f32 %v9113_v7, %v5533_v47 }
 0xe67   :  { %10352 = vmatprep.mubr.msk.f32.mxu0 %vm5550_vm15, %v14492_v53 }
 0xe68   :  { %10353 = vmatmul.mubr.msk.f32.vlgmr.msra.gmra.mrb[232].mxu0 %vm5550_vm15, %v14494_v23 }
 0xf3b   :  { %v10354_v3 = vpop.f32.mrb[232].mxu0 }
 0xf3c   :  { %v5623_v63 = vpop.f32.mrb[233].mxu0 }
 0xf3d   :  { %10359 = vmatprep.mubr.msk.f32.mxu0 %vm439_vm12, %v5623_v63  ;;  %v14501_v51 = vpack.i.bf16 %v10354_v3, %v5623_v63 }
 0xf3f   :  { %11406 = vrot.lane.b32.xlu1 %v14501_v51, %s11787_s21  ;;  %11401 = vrot.lane.b32.xlu0 %v14501_v51, %s11788_s24 }
 0xf43   :  { %11416 = vrot.lane.b32.xlu1 %v14501_v51, %s11789_s6  ;;  %11411 = vrot.lane.b32.xlu0 %v14501_v51, %s11790_s12 }
 0xf47   :  { %6206 = vrot.lane.b32.xlu1 %v10354_v3, %s11782_s5  ;;  %6204 = vrot.lane.b32.xlu0 %v5623_v63, %s11782_s5 }
 0xf4b   :  { %5841 = vrot.lane.b32.xlu1 %v10354_v3, %s11781_s0  ;;  %5839 = vrot.lane.b32.xlu0 %v5623_v63, %s11781_s0 }
 0xf4f   :  { %11426 = vrot.lane.b32.xlu1 %v14501_v51, %s11791_s20  ;;  %11421 = vrot.lane.b32.xlu0 %v14501_v51, %s11792_s27 }
 0xf53   :  { %6490 = vrot.lane.b32.xlu1 %v5623_v63, %s11793_s4  ;;  %11431 = vrot.lane.b32.xlu0 %v14501_v51, %s11794_s22 }
 0xf57   :  { %6492 = vrot.lane.b32.xlu0 %v10354_v3, %s11793_s4 }
 0xfb1   :  { %v11407_v31 = vpop.permute.xlu1 %11406  ;;  %v11402_v44 = vpop.permute.xlu0 %11401 }
 0xfb2   :  { %v11409_v41 = vunpack.i.h.bf16 %v11407_v31  ;;  %v11408_v43 = vunpack.i.l.bf16 %v11407_v31  ;;  %v11404_v19 = vunpack.i.h.bf16 %v11402_v44  ;;  %v11403_v36 = vunpack.i.l.bf16 %v11402_v44 }
 0xfb4   :  { %v11013_v35 = vpack.c.bf16 %v11404_v19, %v11403_v36  ;;  %v11019_v42 = vpack.c.bf16 %v11409_v41, %v11408_v43 }
 0xfb5   :  { %v11417_v13 = vpop.permute.xlu1 %11416  ;;  %v11412_v28 = vpop.permute.xlu0 %11411 }
 0xfb6   :  { %v11414_v12 = vunpack.i.h.bf16 %v11412_v28  ;;  %v11413_v59 = vunpack.i.l.bf16 %v11412_v28  ;;  %11015 = vmatprep.subr.msk.bf16.mxu0 %vm14525_vm0, %v11013_v35  ;;  %v11419_v55 = vunpack.i.h.bf16 %v11417_v13  ;;  %v11418_v48 = vunpack.i.l.bf16 %v11417_v13 }
 0xfb7   :  { %11018 = vmatpush3.bf16.xpose.msk.msra.mxu0 %vm14525_vm0, %v11013_v35 }
 0xfb8   :  { %v11037_v37 = vpack.c.bf16 %v11414_v12, %v11413_v59  ;;  %11021 = vmatprep.subr.msk.bf16.mxu0 %vm14530_vm2, %v11019_v42  ;;  %v11025_v50 = vpack.c.bf16 %v11419_v55, %v11418_v48 }
 0xfb9   :  { %v6207_v9 = vpop.permute.xlu1 %6206  ;;  %v6205_v0 = vpop.permute.xlu0 %6204 }
 0xfba   :  { %11039 = vmatprep.subr.msk.bf16.mxu1 %vm14525_vm0, %v11037_v37  ;;  %10397 = vmatprep.mubr.msk.f32.mxu1 %vm439_vm12, %v6205_v0 }
 0xfbb   :  { %11042 = vmatpush3.bf16.xpose.msk.msra.mxu1 %vm14525_vm0, %v11037_v37 }
 0xfbd   :  { %v14545_v60 = vpop.permute.xlu1 %5841  ;;  %v5840_v29 = vpop.permute.xlu0 %5839 }
 0xfbe   :  { %10360 = vmatmul.mubr.msk.f32.vlgmr.msra.gmra.mrb[234].mxu0 %vm439_vm12, %v10354_v3 }
 0xfbf   :  { %11024 = vmatpush3.bf16.msk.msra.mxu0 %vm14530_vm2, %v11019_v42 }
 0xfc0   :  { %11027 = vmatprep.subr.msk.bf16.mxu0 %vm14525_vm0, %v11025_v50 }
 0xfc1   :  { %v11427_v52 = vpop.permute.xlu1 %11426  ;;  %v11422_v21 = vpop.permute.xlu0 %11421 }
 0xfc2   :  { %v11429_v32 = vunpack.i.h.bf16 %v11427_v52  ;;  %v11428_v4 = vunpack.i.l.bf16 %v11427_v52  ;;  %v11424_v11 = vunpack.i.h.bf16 %v11422_v21  ;;  %v11423_v34 = vunpack.i.l.bf16 %v11422_v21  ;;  %10398 = vmatmul.mubr.msk.f32.vlgmr.msra.gmra.mrb[228].mxu1 %vm439_vm12, %v6207_v9 }
 0xfc4   :  { %v11043_v54 = vpack.c.bf16 %v11424_v11, %v11423_v34  ;;  %v11049_v33 = vpack.c.bf16 %v11429_v32, %v11428_v4 }
 0xfc5   :  { %v11432_v49 = vpop.permute.xlu0 %11431  ;;  %v6491_v31 = vpop.permute.xlu1 %6490 }
 0xfc6   :  { %11045 = vmatprep.subr.msk.bf16.mxu1 %vm14530_vm2, %v11043_v54  ;;  %v11434_v39 = vunpack.i.h.bf16 %v11432_v49  ;;  %v11433_v46 = vunpack.i.l.bf16 %v11432_v49 }
 0xfc7   :  { %11048 = vmatpush3.bf16.msk.msra.mxu1 %vm14530_vm2, %v11043_v54 }
 0xfc8   :  { %11051 = vmatprep.subr.msk.bf16.mxu1 %vm14525_vm0, %v11049_v33  ;;  %v11031_v47 = vpack.c.bf16 %v11434_v39, %v11433_v46 }
 0xfc9   :  { %v6493_v44 = vpop.permute.xlu0 %6492 }
0x1091   :  { %v10361_v30 = vpop.f32.mrb[234].mxu0 }
0x1092   :  { %v5726_v61 = vmul.f32 0.35355338, %v10361_v30  ;;  %v5716_v22 = vpop.f32.mrb[235].mxu0 }
0x1093   :  { %v5725_v18 = vmul.f32 0.35355338, %v5716_v22 }
0x1094   :  { %v9125_v45 = vclamps-f32 %v5726_v61, 5.0 }
0x1095   :  { %v9124_v5 = vclamps-f32 %v5725_v18, 5.0  ;;  %v10399_v8 = vpop.f32.mrb[228].mxu1 }
0x1096   :  { %v5733_v26 = vmul.f32 1.442695, %v9125_v45  ;;  %v6296_v15 = vmul.f32 0.35355338, %v10399_v8  ;;  %v6286_v17 = vpop.f32.mrb[229].mxu1 }
0x1097   :  { %v5731_v58 = vmul.f32 1.442695, %v9124_v5  ;;  %v6295_v40 = vmul.f32 0.35355338, %v6286_v17 }
0x1098   :  { %11624 = vpow2.f32 %v5733_v26  ;;  %v9147_v14 = vclamps-f32 %v6296_v15, 5.0 }
0x1099   :  { %11626 = vpow2.f32 %v5731_v58  ;;  %v9146_v1 = vclamps-f32 %v6295_v40, 5.0  ;;  %v5633_v58 = vld [vmem:[%s14936_s26 + $0x8] sm:$0xff]  ;;  %v5632_v40 = vld [vmem:[%s14936_s26] sm:$0xff] }
0x109a   :  { %v6303_v62 = vmul.f32 1.442695, %v9147_v14 }
0x109b   :  { %v6301_v57 = vmul.f32 1.442695, %v9146_v1 }
0x109c   :  { %11628 = vpow2.f32 %v6303_v62 }
0x109d   :  { %11630 = vpow2.f32 %v6301_v57 }
0x10a2   :  { %v11625_v6 = vpop.eup %11624 }
0x10a3   :  { %v11627_v16 = vpop.eup %11626  ;;  %v5736_v38 = vmul.f32 %v11625_v6, %v14563_v24 }
0x10a4   :  { %v5735_v56 = vmul.f32 %v11627_v16, %v14560_v27 }
0x10a5   :  { %v5742_v61 = vsel %vm5741_vm4, %v5736_v38, 0.0 }
0x10a6   :  { %v11629_v7 = vpop.eup %11628  ;;  %10366 = vmatprep.mubr.msk.f32.mxu0 %vm5737_vm3, %v5735_v56  ;;  %v5738_v30 = vsel %vm5737_vm3, %v5735_v56, 0.0 }
0x10a7   :  { %v11631_v10 = vpop.eup %11630  ;;  %10367 = vmatmul.mubr.msk.f32.vlgmr.msra.gmra.mrb[236].mxu0 %vm5737_vm3, %v5736_v38  ;;  %v6306_v63 = vmul.f32 %v11629_v7, %v14563_v24 }
0x10a8   :  { %11030 = vmatpush3.bf16.xpose.msk.msra.mxu0 %vm14525_vm0, %v11025_v50  ;;  %10373 = vmatprep.mubr.msk.f32.mxu0 %vm439_vm12, %v5840_v29  ;;  %v6305_v3 = vmul.f32 %v11631_v10, %v14560_v27 }
0x10a9   :  { %11033 = vmatprep.subr.msk.bf16.mxu0 %vm14530_vm2, %v11031_v47  ;;  %v6310_v45 = vsel %vm5741_vm4, %v6306_v63, 0.0 }
0x10aa   :  { %10404 = vmatprep.mubr.msk.f32.mxu1 %vm5737_vm3, %v6305_v3  ;;  %v6307_v18 = vsel %vm5737_vm3, %v6305_v3, 0.0 }
0x10ab   :  { %10405 = vmatmul.mubr.msk.f32.vlgmr.msra.gmra.mrb[230].mxu1 %vm5737_vm3, %v6306_v63 }
0x10ac   :  { %11054 = vmatpush3.bf16.xpose.msk.msra.mxu1 %vm14525_vm0, %v11049_v33  ;;  %10416 = vmatprep.mubr.msk.f32.mxu1 %vm439_vm12, %v6491_v31 }
0x10af   :  { %10374 = vmatmul.mubr.msk.f32.vlgmr.msra.gmra.mrb[238].mxu0 %vm439_vm12, %v14545_v60 }
0x10b0   :  { %11036 = vmatpush3.bf16.msk.msra.mxu0 %vm14530_vm2, %v11031_v47 }
0x10b1   :  { %10383 = vmatprep.subr.mxu0 %v5633_v58 }
0x10b3   :  { %10417 = vmatmul.mubr.msk.f32.vlgmr.msra.gmra.mrb[232].mxu1 %vm439_vm12, %v6493_v44 }
0x117a   :  { %v14586_v41 = vpop.f32.mrb[236].mxu0 }
0x117b   :  { %v14588_v43 = vpop.f32.mrb[237].mxu0 }
0x117e   :  { %v14590_v19 = vpop.f32.mrb[230].mxu1 }
0x117f   :  { %v14592_v36 = vpop.f32.mrb[231].mxu1 }
0x1182   :  { %v10375_v35 = vpop.f32.mrb[238].mxu0 }
0x1183   :  { %v5931_v13 = vmul.f32 0.35355338, %v10375_v35  ;;  %v5921_v28 = vpop.f32.mrb[239].mxu0 }
0x1184   :  { %v5930_v42 = vmul.f32 0.35355338, %v5921_v28 }
0x1185   :  { %v9134_v12 = vclamps-f32 %v5931_v13, 5.0  ;;  %v5634_v13 = vld [vmem:[%s14936_s26 + $0x10] sm:$0xff] }
0x1186   :  { %v9133_v59 = vclamps-f32 %v5930_v42, 5.0  ;;  %v10418_v37 = vpop.f32.mrb[232].mxu1 }
0x1187   :  { %v5938_v9 = vmul.f32 1.442695, %v9134_v12  ;;  %v6572_v0 = vpop.f32.mrb[233].mxu1  ;;  %v6582_v60 = vmul.f32 0.35355338, %v10418_v37 }
0x1188   :  { %v5936_v55 = vmul.f32 1.442695, %v9133_v59  ;;  %v6581_v48 = vmul.f32 0.35355338, %v6572_v0 }
0x1189   :  { %11632 = vpow2.f32 %v5938_v9  ;;  %v9158_v50 = vclamps-f32 %v6582_v60, 5.0 }
0x118a   :  { %11634 = vpow2.f32 %v5936_v55  ;;  %v9157_v29 = vclamps-f32 %v6581_v48, 5.0 }
0x118b   :  { %v6589_v21 = vmul.f32 1.442695, %v9158_v50 }
0x118c   :  { %v6587_v52 = vmul.f32 1.442695, %v9157_v29 }
0x118e   :  { %11636 = vpow2.f32 %v6587_v52 }
0x118f   :  { %11638 = vpow2.f32 %v6589_v21 }
0x1193   :  { %v11633_v32 = vpop.eup %11632 }
0x1194   :  { %v11635_v4 = vpop.eup %11634  ;;  %v5941_v11 = vmul.f32 %v11633_v32, %v14563_v24 }
0x1195   :  { %v5940_v34 = vmul.f32 %v11635_v4, %v14560_v27 }
0x1196   :  { %v5945_v54 = vsel %vm5741_vm4, %v5941_v11, 0.0 }
0x1197   :  { %5946 = vadd.xlane.f32.xlu0 %v5945_v54  ;;  %10380 = vmatprep.mubr.msk.f32.mxu0 %vm5737_vm3, %v5940_v34  ;;  %v5942_v33 = vsel %vm5737_vm3, %v5940_v34, 0.0  ;;  %v9164_v54 = vld [vmem:[%s14937_s1] ss:$0 sm:$0xff] }
0x1198   :  { %10381 = vmatmul.mubr.msk.f32.vlgmr.msra.gmra.mrb[240].mxu0 %vm5737_vm3, %v5941_v11  ;;  %5943 = vadd.xlane.f32.xlu1 %v5942_v33  ;;  %v11637_v22 = vpop.eup %11636 }
0x1199   :  { %v14605_v5 = vmul.f32 %v11637_v22, %v14560_v27  ;;  %v11639_v8 = vpop.eup %11638  ;;  %10384 = vmatpush3.msra.mxu0 %v5633_v58 }
0x119a   :  { %v6592_v15 = vmul.f32 %v11639_v8, %v14563_v24  ;;  %10388 = vmatprep.subr.mxu0 %v5632_v40 }
0x119b   :  { %5739 = vadd.xlane.f32.xlu0 %v5738_v30  ;;  %v6593_v26 = vsel %vm5737_vm3, %v14605_v5, 0.0 }
0x119c   :  { %5743 = vadd.xlane.f32.xlu1 %v5742_v61  ;;  %v6596_v17 = vsel %vm5741_vm4, %v6592_v15, 0.0 }
0x119f   :  { %6308 = vadd.xlane.f32.xlu0 %v6307_v18 }
0x11a0   :  { %6311 = vadd.xlane.f32.xlu1 %v6310_v45 }
0x11a4   :  { %6594 = vadd.xlane.f32.xlu1 %v6593_v26 }
0x11a8   :  { %6597 = vadd.xlane.f32.xlu1 %v6596_v17 }
0x11b5   :  { %11436 = vrot.lane.b32.xlu0 %v14501_v51, %s11796_s28 }
0x1224   :  { %v5947_v14 = vpop.xlane.xlu0 %5946 }
0x1225   :  { %v5944_v1 = vpop.xlane.xlu1 %5943  ;;  %v5949_v6 = vadd.f32 1e-06, %v5947_v14 }
0x1226   :  { %v5948_v57 = vadd.f32 1e-06, %v5944_v1 }
0x1228   :  { %v5740_v62 = vpop.xlane.xlu0 %5739  ;;  %11640 = vrcp.f32 %v5948_v57  ;;  %v6834_v57 = vld [vmem:[%s14938_s2 + $0x8] sm:$0xff] }
0x1229   :  { %v5745_v49 = vadd.f32 1e-06, %v5740_v62  ;;  %v5744_v16 = vpop.xlane.xlu1 %5743  ;;  %v6833_v62 = vld [vmem:[%s14938_s2] sm:$0xff] }
0x122a   :  { %v5746_v46 = vadd.f32 1e-06, %v5744_v16  ;;  %v6836_v16 = vld [vmem:[%s14938_s2 + $0x18] sm:$0xff] }
0x122b   :  { %11642 = vrcp.f32 %v5745_v49  ;;  %v11061_v49 = vpack.c.bf16 %v6834_v57, %v6833_v62  ;;  %v7070_v57 = vld [vmem:[%s14944_s18] sm:$0xff] }
0x122c   :  { %11644 = vrcp.f32 %v5949_v6  ;;  %v6309_v39 = vpop.xlane.xlu0 %6308  ;;  %v6835_v6 = vld [vmem:[%s14938_s2 + $0x10] sm:$0xff] }
0x122d   :  { %v6313_v56 = vadd.f32 1e-06, %v6309_v39  ;;  %11646 = vrcp.f32 %v5746_v46  ;;  %v6312_v51 = vpop.xlane.xlu1 %6311  ;;  %11062 = vmatprep.subr.bf16.mxu1 %v11061_v49  ;;  %v11065_v39 = vpack.c.bf16 %v6836_v16, %v6835_v6  ;;  %v6927_v46 = vld [vmem:[%s14939_s10] sm:$0xff]  ;;  %v7072_v16 = vld [vmem:[%s14944_s18 + $0x10] sm:$0xff] }
0x122e   :  { %v6314_v63 = vadd.f32 1e-06, %v6312_v51  ;;  %11064 = vmatpush3.bf16.msra.mxu1 %v11061_v49  ;;  %v6929_v51 = vld [vmem:[%s14939_s10 + $0x10] sm:$0xff]  ;;  %v7071_v49 = vld [vmem:[%s14944_s18 + $0x8] sm:$0xff] }
0x122f   :  { %11648 = vrcp.f32 %v6313_v56  ;;  %11066 = vmatprep.subr.bf16.mxu1 %v11065_v39  ;;  %v6928_v56 = vld [vmem:[%s14939_s10 + $0x8] sm:$0xff]  ;;  %v11085_v6 = vpack.c.bf16 %v7071_v49, %v7070_v57 }
0x1230   :  { %11650 = vrcp.f32 %v6314_v63  ;;  %v11437_v28 = vpop.permute.xlu0 %11436 }
0x1231   :  { %v11439_v59 = vunpack.i.h.bf16 %v11437_v28  ;;  %v11438_v37 = vunpack.i.l.bf16 %v11437_v28 }
0x1232   :  { %v11641_v38 = vpop.eup %11640  ;;  %11068 = vmatpush3.bf16.msra.mxu1 %v11065_v39  ;;  %v7073_v39 = vld [vmem:[%s14944_s18 + $0x18] sm:$0xff] }
0x1233   :  { %v11055_v55 = vpack.c.bf16 %v11439_v59, %v11438_v37  ;;  %v9165_v59 = vld [vmem:[%s14940_s7] ss:$0 sm:$0xff]  ;;  %11086 = vmatprep.subr.bf16.mxu1 %v11085_v6 }
0x1235   :  { %v11643_v10 = vpop.eup %11642 }
0x1236   :  { %v11645_v3 = vpop.eup %11644  ;;  %v5837_v35 = vmul.f32 %v11643_v10, %v14588_v43 }
0x1237   :  { %v11647_v42 = vpop.eup %11646 }
0x1238   :  { %v5838_v9 = vmul.f32 %v11647_v42, %v14586_v41  ;;  %v5635_v41 = vld [vmem:[%s14936_s26 + $0x18] sm:$0xff] }
0x1239   :  { %v11649_v12 = vpop.eup %11648 }
0x123a   :  { %v6405_v0 = vmul.f32 %v11649_v12, %v14592_v36  ;;  %v11651_v43 = vpop.eup %11650  ;;  %v6595_v36 = vpop.xlane.xlu1 %6594 }
0x123b   :  { %v6406_v48 = vmul.f32 %v11651_v43, %v14590_v19  ;;  %v6599_v29 = vadd.f32 1e-06, %v6595_v36 }
0x123d   :  { %11652 = vrcp.f32 %v6599_v29  ;;  %v6934_v29 = vld [vmem:[%s14939_s10 + $0x38] sm:$0xff] }
0x123e   :  { %v6598_v60 = vpop.xlane.xlu1 %6597 }
0x123f   :  { %v6600_v50 = vadd.f32 1e-06, %v6598_v60  ;;  %v6933_v60 = vld [vmem:[%s14939_s10 + $0x30] sm:$0xff] }
0x1241   :  { %11654 = vrcp.f32 %v6600_v50  ;;  %v11081_v50 = vpack.c.bf16 %v6934_v29, %v6933_v60 }
0x1247   :  { %v11653_v52 = vpop.eup %11652 }
0x124b   :  { %v11655_v32 = vpop.eup %11654 }
0x126b   :  { %v10382_v7 = vpop.f32.mrb[240].mxu0 }
0x126c   :  { %v6031_v47 = vpop.f32.mrb[241].mxu0  ;;  %v6041_v44 = vmul.f32 %v11645_v3, %v10382_v7  ;;  %v6930_v7 = vld [vmem:[%s14939_s10 + $0x18] sm:$0xff]  ;;  %v6932_v3 = vld [vmem:[%s14939_s10 + $0x28] sm:$0xff] }
0x126d   :  { %v6040_v31 = vmul.f32 %v11641_v38, %v6031_v47  ;;  %v11069_v38 = vpack.c.bf16 %v6928_v56, %v6927_v46  ;;  %v11073_v10 = vpack.c.bf16 %v6930_v7, %v6929_v51  ;;  %v6931_v47 = vld [vmem:[%s14939_s10 + $0x20] sm:$0xff]  ;;  %v11089_v46 = vpack.c.bf16 %v7073_v39, %v7072_v16 }
0x126e   :  { %v11077_v63 = vpack.c.bf16 %v6932_v3, %v6931_v47 }
0x126f   :  { %10385 = vmatprep.mubr.msk.f32.mxu0 %vm439_vm12, %v6040_v31 }
0x1270   :  { %10386 = vmatmul.mubr.msk.f32.vlgmr.msra.gmra.mrb[242].mxu0 %vm439_vm12, %v6041_v44 }
0x1271   :  { %10390 = vmatprep.mubr.msk.f32.mxu0 %vm439_vm12, %v5837_v35  ;;  %10389 = vmatpush3.msra.mxu0 %v5632_v40 }
0x1272   :  { %10407 = vmatprep.subr.mxu0 %v5634_v13 }
0x1278   :  { %10391 = vmatmul.mubr.msk.f32.vlgmr.msra.gmra.mrb[242].mxu0 %vm439_vm12, %v5838_v9  ;;  %v9166_v9 = vld [vmem:[%s14941_s11] ss:$0 sm:$0xff] }
0x1279   :  { %10408 = vmatpush3.msra.mxu0 %v5634_v13  ;;  %10409 = vmatprep.mubr.msk.f32.mxu0 %vm439_vm12, %v6405_v0 }
0x127a   :  { %11057 = vmatprep.subr.msk.bf16.mxu0 %vm14530_vm2, %v11055_v55 }
0x1280   :  { %10410 = vmatmul.mubr.msk.f32.vlgmr.msra.gmra.mrb[242].mxu0 %vm439_vm12, %v6406_v48 }
0x1281   :  { %11060 = vmatpush3.bf16.msk.msra.mxu0 %vm14530_vm2, %v11055_v55  ;;  %10423 = vmatprep.mubr.msk.f32.mxu0 %vm5737_vm3, %v14605_v5 }
0x1282   :  { %10426 = vmatprep.subr.mxu0 %v5635_v41 }
0x1284   :  { %10424 = vmatmul.mubr.msk.f32.vlgmr.msra.gmra.mrb[244].mxu0 %vm5737_vm3, %v6592_v15 }
0x1285   :  { %10427 = vmatpush3.msra.mxu0 %v5635_v41 }
0x1286   :  { %11070 = vmatprep.subr.bf16.mxu0 %v11069_v38 }
0x1357   :  { %v10425_v19 = vpop.f32.mrb[244].mxu0 }
0x1358   :  { %v6682_v21 = vpop.f32.mrb[245].mxu0  ;;  %v6692_v11 = vmul.f32 %v11655_v32, %v10425_v19  ;;  %v9167_v19 = vld [vmem:[%s14942_s16] ss:$0 sm:$0xff] }
0x1359   :  { %v6691_v4 = vmul.f32 %v11653_v52, %v6682_v21 }
0x135b   :  { %10428 = vmatprep.mubr.msk.f32.mxu0 %vm439_vm12, %v6691_v4 }
0x135c   :  { %10429 = vmatmul.mubr.msk.f32.vlgmr.msra.gmra.mrb[242].mxu0 %vm439_vm12, %v6692_v11 }
0x135d   :  { %11072 = vmatpush3.bf16.msra.mxu0 %v11069_v38 }
0x135e   :  { %11074 = vmatprep.subr.bf16.mxu0 %v11073_v10 }
0x1361   :  { %11076 = vmatpush3.bf16.msra.mxu0 %v11073_v10 }
0x1362   :  { %11078 = vmatprep.subr.bf16.mxu0 %v11077_v63 }
0x1365   :  { %11080 = vmatpush3.bf16.msra.mxu0 %v11077_v63  ;;  %v9173_v63 = vld [vmem:[%s14945_s9] ss:$0 sm:$0xff] }
0x1366   :  { %11082 = vmatprep.subr.bf16.mxu0 %v11081_v50 }
0x1369   :  { %11084 = vmatpush3.bf16.msra.mxu0 %v11081_v50 }
0x142f   :  { %v10430_v34 = vpop.f32.mrb[242].mxu0 }
0x1430   :  { %v6765_v33 = vpop.f32.mrb[243].mxu0  ;;  %v6777_v30 = vadd.f32 %v14494_v23, %v10430_v34 }
0x1431   :  { %v6776_v61 = vadd.f32 %v14492_v53, %v6765_v33 }
0x1432   :  { %v6786_v18 = vadd.f32 %v9164_v54, %v6777_v30 }
0x1433   :  { %v6785_v22 = vadd.f32 %v9164_v54, %v6776_v61  ;;  %v9170_v54 = vld [vmem:[%s14943_s15] ss:$0 sm:$0xff] }
0x1434   :  { %v6793_v5 = vsel %vm6792_vm5, %v6786_v18, 0.0 }
0x1435   :  { %v6789_v45 = vsel %vm5550_vm15, %v6785_v22, 0.0 }
0x1436   :  { %6790 = vadd.xlane.f32.xlu1 %v6789_v45 }
0x143a   :  { %6794 = vadd.xlane.f32.xlu1 %v6793_v5 }
0x14c3   :  { %v6791_v8 = vpop.xlane.xlu1 %6790 }
0x14c4   :  { %v6797_v26 = vmul.f32 0.03125, %v6791_v8 }
0x14c6   :  { %v6799_v15 = vsub.f32 %v6785_v22, %v6797_v26 }
0x14c7   :  { %v6795_v17 = vpop.xlane.xlu1 %6794 }
0x14c8   :  { %v6798_v23 = vmul.f32 0.03125, %v6795_v17  ;;  %v6801_v58 = vmul.f32 %v6799_v15, %v6799_v15 }
0x14ca   :  { %v6800_v53 = vsub.f32 %v6786_v18, %v6798_v23  ;;  %v6803_v40 = vsel %vm5550_vm15, %v6801_v58, 0.0 }
0x14cb   :  { %6804 = vadd.xlane.f32.xlu1 %v6803_v40 }
0x14cc   :  { %v6802_v14 = vmul.f32 %v6800_v53, %v6800_v53 }
0x14ce   :  { %v6806_v1 = vsel %vm6792_vm5, %v6802_v14, 0.0 }
0x14cf   :  { %6807 = vadd.xlane.f32.xlu0 %v6806_v1 }
0x1558   :  { %v6805_v31 = vpop.xlane.xlu1 %6804 }
0x1559   :  { %v6809_v44 = vmul.f32 0.03125, %v6805_v31 }
0x155b   :  { %v6811_v35 = vadd.f32 1e-05, %v6809_v44  ;;  %v9174_v44 = vld [vmem:[%s14946_s29] ss:$0 sm:$0xff] }
0x155c   :  { %v6808_v13 = vpop.xlane.xlu0 %6807 }
0x155d   :  { %11656 = vrsqrt.f32 %v6811_v35  ;;  %v6810_v28 = vmul.f32 0.03125, %v6808_v13 }
0x155f   :  { %v6812_v42 = vadd.f32 1e-05, %v6810_v28 }
0x1561   :  { %11658 = vrsqrt.f32 %v6812_v42 }
0x1567   :  { %v11657_v12 = vpop.eup %11656 }
0x1568   :  { %v6815_v37 = vmul.f32 %v11657_v12, %v6799_v15 }
0x156a   :  { %v6823_v0 = vmul.f32 %v9165_v59, %v6815_v37 }
0x156b   :  { %v11659_v55 = vpop.eup %11658 }
0x156c   :  { %v6816_v43 = vmul.f32 %v11659_v55, %v6800_v53  ;;  %v6831_v48 = vadd.f32 %v9166_v9, %v6823_v0 }
0x156e   :  { %v6824_v41 = vmul.f32 %v9165_v59, %v6816_v43  ;;  %10439 = vmatprep.mubr.msk.f32.mxu1 %vm5550_vm15, %v6831_v48 }
0x1570   :  { %v6832_v36 = vadd.f32 %v9166_v9, %v6824_v41 }
0x1572   :  { %10440 = vmatmul.mubr.msk.f32.vlgmr.msra.gmra.mrb[234].mxu1 %vm5550_vm15, %v6832_v36 }
0x1573   :  { %11088 = vmatpush3.bf16.msra.mxu1 %v11085_v6 }
0x1574   :  { %11090 = vmatprep.subr.bf16.mxu1 %v11089_v46 }
0x1577   :  { %11092 = vmatpush3.bf16.msra.mxu1 %v11089_v46 }
0x1645   :  { %v10441_v52 = vpop.f32.mrb[234].mxu1 }
0x1646   :  { %v6922_v21 = vadd.f32 %v10441_v52, %v9167_v19  ;;  %v6916_v32 = vpop.f32.mrb[235].mxu1 }
0x1647   :  { %v6917_v4 = vadd.f32 %v9167_v19, %v6916_v32 }
0x1648   :  { %v6926_v34 = vmax.f32 %v6922_v21, 0.0 }
0x1649   :  { %v6925_v11 = vmax.f32 %v6917_v4, 0.0 }
0x164b   :  { %10458 = vmatprep.mubr.msk.f32.mxu0 %vm6942_vm6, %v6925_v11 }
0x164c   :  { %10459 = vmatmul.mubr.msk.f32.vlgmr.msra.gmra.mrb[246].mxu0 %vm6942_vm6, %v6926_v34 }
0x171f   :  { %v10460_v33 = vpop.f32.mrb[246].mxu0 }
0x1720   :  { %v7015_v30 = vpop.f32.mrb[247].mxu0  ;;  %v7021_v61 = vadd.f32 %v10460_v33, %v9170_v54 }
0x1721   :  { %v7016_v22 = vadd.f32 %v9170_v54, %v7015_v30 }
0x1722   :  { %v7025_v45 = vadd.f32 %v7021_v61, %v6832_v36 }
0x1723   :  { %v7024_v18 = vadd.f32 %v7016_v22, %v6831_v48 }
0x1724   :  { %v7031_v8 = vsel %vm6792_vm5, %v7025_v45, 0.0 }
0x1725   :  { %v7028_v5 = vsel %vm5550_vm15, %v7024_v18, 0.0 }
0x1726   :  { %7029 = vadd.xlane.f32.xlu1 %v7028_v5 }
0x172a   :  { %7032 = vadd.xlane.f32.xlu1 %v7031_v8 }
0x17b3   :  { %v7030_v26 = vpop.xlane.xlu1 %7029 }
0x17b4   :  { %v7034_v15 = vmul.f32 0.03125, %v7030_v26 }
0x17b6   :  { %v7036_v17 = vsub.f32 %v7024_v18, %v7034_v15 }
0x17b7   :  { %v7033_v23 = vpop.xlane.xlu1 %7032 }
0x17b8   :  { %v7035_v58 = vmul.f32 0.03125, %v7033_v23  ;;  %v7038_v53 = vmul.f32 %v7036_v17, %v7036_v17 }
0x17ba   :  { %v7037_v40 = vsub.f32 %v7025_v45, %v7035_v58  ;;  %v7040_v14 = vsel %vm5550_vm15, %v7038_v53, 0.0 }
0x17bb   :  { %7041 = vadd.xlane.f32.xlu1 %v7040_v14 }
0x17bc   :  { %v7039_v1 = vmul.f32 %v7037_v40, %v7037_v40 }
0x17be   :  { %v7043_v62 = vsel %vm6792_vm5, %v7039_v1, 0.0 }
0x17bf   :  { %7044 = vadd.xlane.f32.xlu1 %v7043_v62 }
0x1848   :  { %v7042_v56 = vpop.xlane.xlu1 %7041 }
0x1849   :  { %v7046_v51 = vmul.f32 0.03125, %v7042_v56 }
0x184b   :  { %v7048_v38 = vadd.f32 1e-05, %v7046_v51 }
0x184c   :  { %v7045_v7 = vpop.xlane.xlu1 %7044 }
0x184d   :  { %11660 = vrsqrt.f32 %v7048_v38  ;;  %v7047_v10 = vmul.f32 0.03125, %v7045_v7 }
0x184f   :  { %v7049_v47 = vadd.f32 1e-05, %v7047_v10 }
0x1851   :  { %11662 = vrsqrt.f32 %v7049_v47 }
0x1857   :  { %v11661_v3 = vpop.eup %11660 }
0x1858   :  { %v7052_v31 = vmul.f32 %v11661_v3, %v7036_v17 }
0x185a   :  { %v7060_v35 = vmul.f32 %v9173_v63, %v7052_v31 }
0x185b   :  { %v11663_v13 = vpop.eup %11662 }
0x185c   :  { %v7053_v28 = vmul.f32 %v11663_v13, %v7037_v40  ;;  %v14673_v42 = vadd.f32 %v9174_v44, %v7060_v35 }
0x185e   :  { %v7061_v12 = vmul.f32 %v9173_v63, %v7053_v28  ;;  %10469 = vmatprep.mubr.msk.f32.mxu1 %vm5550_vm15, %v14673_v42 }
0x1860   :  { %v14677_v59 = vadd.f32 %v9174_v44, %v7061_v12 }
0x1862   :  { %10470 = vmatmul.mubr.msk.f32.vlgmr.msra.gmra.mrb[236].mxu1 %vm5550_vm15, %v14677_v59 }
0x1935   :  { %v14681_v37 = vpop.f32.mrb[236].mxu1 }
0x1936   :  { %v14683_v9 = vpop.f32.mrb[237].mxu1 }
0x1937   :  { %10476 = vmatprep.mubr.msk.f32.mxu1 %vm439_vm12, %v14683_v9  ;;  %v14689_v0 = vpack.i.bf16 %v14681_v37, %v14683_v9 }
0x1939   :  { %11446 = vrot.lane.b32.xlu0 %v14689_v0, %s11787_s21  ;;  %11441 = vrot.lane.b32.xlu1 %v14689_v0, %s11788_s24  ;;  %s14956_s21 = sld [smem:[#allocation29_spill]]  ;;  %s14957_s24 = sld [smem:[#allocation28_spill]] }
0x193d   :  { %7725 = vrot.lane.b32.xlu0 %v14683_v9, %s11782_s5  ;;  %11451 = vrot.lane.b32.xlu1 %v14689_v0, %s11789_s6  ;;  %s14958_s6 = sld [smem:[#allocation34_spill]] }
0x1941   :  { %7360 = vrot.lane.b32.xlu1 %v14683_v9, %s11781_s0 }
0x1945   :  { %7362 = vrot.lane.b32.xlu1 %v14681_v37, %s11781_s0  ;;  %s14947_s0 = sld [smem:[#allocation21_spill]] }
0x1949   :  { %11456 = vrot.lane.b32.xlu1 %v14689_v0, %s11790_s12  ;;  %s14959_s12 = sld [smem:[#allocation31_spill]] }
0x194d   :  { %11461 = vrot.lane.b32.xlu1 %v14689_v0, %s11794_s22  ;;  %s11799_s22 = smov [#allocation2]  }
0x194e   :  { %s8838_s23 = sshll.u32 %s11799_s22, 4  ;;  %s8839_s23 = int_to_ptr.vmem [resolvable:$true] %s8838_s23 }
0x194f   :  { %s11704_s26 = scalar_lea.vmem %s8839_s23, 16  ;;  %p11709_p1 = scmp.lt.s32.totalorder %s8839_s23, %s8839_s23 }
0x1950   :  { %p11705_p0 = scmp.ne.s32.totalorder %s8839_s23, %s11704_s26 }
0x1951   :  { %7727 = vrot.lane.b32.xlu1 %v14681_v37, %s11782_s5  ;;  %s14948_s5 = sld [smem:[#allocation20_spill]] }
0x1955   :  { %11466 = vrot.lane.b32.xlu1 %v14689_v0, %s11791_s20  ;;  %s14960_s20 = sld [smem:[#allocation36_spill]] }
0x19ab   :  { %v11447_v55 = vpop.permute.xlu0 %11446  ;;  %v11442_v43 = vpop.permute.xlu1 %11441 }
0x19ac   :  { %v11449_v48 = vunpack.i.h.bf16 %v11447_v55  ;;  %v11448_v41 = vunpack.i.l.bf16 %v11447_v55  ;;  %v11444_v36 = vunpack.i.h.bf16 %v11442_v43  ;;  %v11443_v60 = vunpack.i.l.bf16 %v11442_v43 }
0x19ae   :  { %v11099_v29 = vpack.c.bf16 %v11449_v48, %v11448_v41  ;;  %v11093_v50 = vpack.c.bf16 %v11444_v36, %v11443_v60 }
0x19af   :  { %v11452_v19 = vpop.permute.xlu1 %11451  ;;  %v7726_v56 = vpop.permute.xlu0 %7725 }
0x19b0   :  { %v11454_v52 = vunpack.i.h.bf16 %v11452_v19  ;;  %v11453_v21 = vunpack.i.l.bf16 %v11452_v19  ;;  %11095 = vmatprep.subr.msk.bf16.mxu1 %vm14525_vm0, %v11093_v50  ;;  %11101 = vmatprep.subr.msk.bf16.mxu0 %vm14530_vm2, %v11099_v29 }
0x19b1   :  { %11098 = vmatpush3.bf16.xpose.msk.msra.mxu1 %vm14525_vm0, %v11093_v50  ;;  %11104 = vmatpush3.bf16.msk.msra.mxu0 %vm14530_vm2, %v11099_v29 }
0x19b2   :  { %v11105_v32 = vpack.c.bf16 %v11454_v52, %v11453_v21 }
0x19b3   :  { %v7361_v4 = vpop.permute.xlu1 %7360 }
0x19b4   :  { %11107 = vmatprep.subr.msk.bf16.mxu0 %vm14525_vm0, %v11105_v32 }
0x19b7   :  { %v7363_v11 = vpop.permute.xlu1 %7362 }
0x19b8   :  { %10477 = vmatmul.mubr.msk.f32.vlgmr.msra.gmra.mrb[238].mxu1 %vm439_vm12, %v14681_v37 }
0x19bb   :  { %v11457_v34 = vpop.permute.xlu1 %11456 }
0x19bc   :  { %v11459_v40 = vunpack.i.h.bf16 %v11457_v34  ;;  %v11458_v14 = vunpack.i.l.bf16 %v11457_v34 }
0x19be   :  { %v11117_v49 = vpack.c.bf16 %v11459_v40, %v11458_v14 }
0x19bf   :  { %v11462_v54 = vpop.permute.xlu1 %11461 }
0x19c0   :  { %v11464_v33 = vunpack.i.h.bf16 %v11462_v54  ;;  %v11463_v30 = vunpack.i.l.bf16 %v11462_v54 }
0x19c2   :  { %v11111_v61 = vpack.c.bf16 %v11464_v33, %v11463_v30 }
0x19c3   :  { %v7728_v58 = vpop.permute.xlu1 %7727 }
0x19c4   :  { %11113 = vmatprep.subr.msk.bf16.mxu1 %vm14530_vm2, %v11111_v61 }
0x19c5   :  { %11116 = vmatpush3.bf16.msk.msra.mxu1 %vm14530_vm2, %v11111_v61 }
0x19c7   :  { %v11467_v6 = vpop.permute.xlu1 %11466 }
0x19c8   :  { %v11469_v39 = vunpack.i.h.bf16 %v11467_v6  ;;  %v11468_v46 = vunpack.i.l.bf16 %v11467_v6 }
0x19ca   :  { %v11129_v51 = vpack.c.bf16 %v11469_v39, %v11468_v46 }
0x1a8b   :  { %v10478_v22 = vpop.f32.mrb[238].mxu1 }
0x1a8c   :  { %v7249_v18 = vmul.f32 0.35355338, %v10478_v22  ;;  %v7239_v45 = vpop.f32.mrb[239].mxu1 }
0x1a8d   :  { %v7248_v5 = vmul.f32 0.35355338, %v7239_v45 }
0x1a8e   :  { %v9182_v8 = vclamps-f32 %v7249_v18, 5.0 }
0x1a8f   :  { %v9181_v26 = vclamps-f32 %v7248_v5, 5.0 }
0x1a90   :  { %v7256_v15 = vmul.f32 1.442695, %v9182_v8  ;;  %v7156_v8 = vld [vmem:[%s14947_s0 + $0x8] sm:$0xff] }
0x1a91   :  { %v7254_v17 = vmul.f32 1.442695, %v9181_v26  ;;  %10500 = vmatprep.subr.mxu1 %v7156_v8  ;;  %v7155_v26 = vld [vmem:[%s14947_s0] sm:$0xff] }
0x1a92   :  { %11664 = vpow2.f32 %v7256_v15 }
0x1a93   :  { %11666 = vpow2.f32 %v7254_v17 }
0x1a9c   :  { %v11665_v23 = vpop.eup %11664 }
0x1a9d   :  { %v11667_v53 = vpop.eup %11666  ;;  %v7259_v1 = vmul.f32 %v11665_v23, %v14563_v24 }
0x1a9e   :  { %v7258_v62 = vmul.f32 %v11667_v53, %v14560_v27 }
0x1a9f   :  { %v7263_v57 = vsel %vm5741_vm4, %v7259_v1, 0.0 }
0x1aa0   :  { %7264 = vadd.xlane.f32.xlu0 %v7263_v57  ;;  %10483 = vmatprep.mubr.msk.f32.mxu0 %vm5737_vm3, %v7258_v62  ;;  %v7260_v16 = vsel %vm5737_vm3, %v7258_v62, 0.0 }
0x1aa1   :  { %10484 = vmatmul.mubr.msk.f32.vlgmr.msra.gmra.mrb[248].mxu0 %vm5737_vm3, %v7259_v1 }
0x1aa2   :  { %11110 = vmatpush3.bf16.xpose.msk.msra.mxu0 %vm14525_vm0, %v11105_v32  ;;  %10490 = vmatprep.mubr.msk.f32.mxu0 %vm439_vm12, %v7361_v4 }
0x1aa3   :  { %11119 = vmatprep.subr.msk.bf16.mxu0 %vm14525_vm0, %v11117_v49 }
0x1aa4   :  { %7261 = vadd.xlane.f32.xlu0 %v7260_v16 }
0x1aa9   :  { %10491 = vmatmul.mubr.msk.f32.vlgmr.msra.gmra.mrb[250].mxu0 %vm439_vm12, %v7363_v11 }
0x1aaa   :  { %11122 = vmatpush3.bf16.xpose.msk.msra.mxu0 %vm14525_vm0, %v11117_v49  ;;  %10514 = vmatprep.mubr.msk.f32.mxu0 %vm439_vm12, %v7726_v56 }
0x1aab   :  { %11131 = vmatprep.subr.msk.bf16.mxu0 %vm14525_vm0, %v11129_v51 }
0x1ab1   :  { %10515 = vmatmul.mubr.msk.f32.vlgmr.msra.gmra.mrb[252].mxu0 %vm439_vm12, %v7728_v58 }
0x1ab2   :  { %11134 = vmatpush3.bf16.xpose.msk.msra.mxu0 %vm14525_vm0, %v11129_v51 }
0x1b2d   :  { %v7265_v38 = vpop.xlane.xlu0 %7264 }
0x1b2e   :  { %v7267_v10 = vadd.f32 1e-06, %v7265_v38  ;;  %v7157_v38 = vld [vmem:[%s14947_s0 + $0x10] sm:$0xff] }
0x1b30   :  { %11668 = vrcp.f32 %v7267_v10 }
0x1b31   :  { %v7262_v7 = vpop.xlane.xlu0 %7261 }
0x1b32   :  { %v7266_v47 = vadd.f32 1e-06, %v7262_v7 }
0x1b34   :  { %11670 = vrcp.f32 %v7266_v47 }
0x1b3a   :  { %v11669_v3 = vpop.eup %11668 }
0x1b3e   :  { %v11671_v31 = vpop.eup %11670 }
0x1b74   :  { %v10485_v63 = vpop.f32.mrb[248].mxu0 }
0x1b75   :  { %v14747_v44 = vmul.f32 %v11669_v3, %v10485_v63  ;;  %v7349_v35 = vpop.f32.mrb[249].mxu0 }
0x1b76   :  { %v14749_v13 = vmul.f32 %v11671_v31, %v7349_v35 }
0x1b7c   :  { %v10492_v28 = vpop.f32.mrb[250].mxu0 }
0x1b7d   :  { %v7452_v12 = vmul.f32 0.35355338, %v10492_v28  ;;  %v7442_v55 = vpop.f32.mrb[251].mxu0 }
0x1b7e   :  { %v7451_v43 = vmul.f32 0.35355338, %v7442_v55 }
0x1b7f   :  { %v9191_v20 = vclamps-f32 %v7452_v12, 5.0 }
0x1b80   :  { %v9190_v48 = vclamps-f32 %v7451_v43, 5.0 }
0x1b81   :  { %v7459_v41 = vmul.f32 1.442695, %v9191_v20 }
0x1b82   :  { %v7457_v36 = vmul.f32 1.442695, %v9190_v48 }
0x1b83   :  { %11672 = vpow2.f32 %v7459_v41 }
0x1b84   :  { %11674 = vpow2.f32 %v7457_v36  ;;  %v10516_v60 = vpop.f32.mrb[252].mxu0 }
0x1b85   :  { %v7807_v29 = vpop.f32.mrb[253].mxu0  ;;  %v7817_v34 = vmul.f32 0.35355338, %v10516_v60 }
0x1b86   :  { %v7816_v11 = vmul.f32 0.35355338, %v7807_v29 }
0x1b87   :  { %v9204_v33 = vclamps-f32 %v7817_v34, 5.0 }
0x1b88   :  { %v9203_v54 = vclamps-f32 %v7816_v11, 5.0 }
0x1b89   :  { %v7824_v61 = vmul.f32 1.442695, %v9204_v33 }
0x1b8a   :  { %v7822_v30 = vmul.f32 1.442695, %v9203_v54 }
0x1b8c   :  { %11676 = vpow2.f32 %v7822_v30 }
0x1b8d   :  { %v11673_v50 = vpop.eup %11672  ;;  %11678 = vpow2.f32 %v7824_v61 }
0x1b8e   :  { %v11675_v19 = vpop.eup %11674  ;;  %v7462_v52 = vmul.f32 %v11673_v50, %v14563_v24 }
0x1b8f   :  { %v7461_v21 = vmul.f32 %v11675_v19, %v14560_v27 }
0x1b90   :  { %v7466_v32 = vsel %vm5741_vm4, %v7462_v52, 0.0 }
0x1b91   :  { %7467 = vadd.xlane.f32.xlu1 %v7466_v32  ;;  %10497 = vmatprep.mubr.msk.f32.mxu1 %vm5737_vm3, %v7461_v21  ;;  %v7463_v4 = vsel %vm5737_vm3, %v7461_v21, 0.0 }
0x1b92   :  { %10498 = vmatmul.mubr.msk.f32.vlgmr.msra.gmra.mrb[240].mxu1 %vm5737_vm3, %v7462_v52  ;;  %7464 = vadd.xlane.f32.xlu0 %v7463_v4 }
0x1b93   :  { %10501 = vmatpush3.msra.mxu1 %v7156_v8 }
0x1b94   :  { %10505 = vmatprep.subr.mxu1 %v7155_v26 }
0x1b96   :  { %v11677_v22 = vpop.eup %11676 }
0x1b97   :  { %v11679_v18 = vpop.eup %11678 }
0x1b98   :  { %v7827_v45 = vmul.f32 %v11679_v18, %v14563_v24 }
0x1ba2   :  { %8013 = vrot.lane.b32.xlu1 %v14681_v37, %s11793_s4  ;;  %v7826_v37 = vmul.f32 %v11677_v22, %v14560_v27 }
0x1ba4   :  { %v7828_v5 = vsel %vm5737_vm3, %v7826_v37, 0.0 }
0x1ba6   :  { %11471 = vrot.lane.b32.xlu1 %v14689_v0, %s11792_s27  ;;  %s14961_s27 = sld [smem:[#allocation33_spill]] }
0x1ba8   :  { %8011 = vrot.lane.b32.xlu0 %v14683_v9, %s11793_s4  ;;  %v7831_v9 = vsel %vm5741_vm4, %v7827_v45, 0.0  ;;  %s14962_s4 = sld [smem:[#allocation35_spill]] }
0x1bc7   :  { %7829 = vadd.xlane.f32.xlu0 %v7828_v5  ;;  %v9221_v5 = vld [vmem:[%s14948_s5] ss:$0 sm:$0xff] }
0x1bca   :  { %7832 = vadd.xlane.f32.xlu1 %v7831_v9 }
0x1bdd   :  { %11476 = vrot.lane.b32.xlu0 %v14689_v0, %s11796_s28  ;;  %s11708_s28 = scalar_lea.vmem %s8839_s23, 32 }
0x1bde   :  { %p11710_p2 = scmp.lt.s32.totalorder %s11708_s28, %s11704_s26 }
0x1be0   :  { %p11711_p3 = por %p11710_p2, %p11709_p1 }
0x1be2   :  { %p11712_p4 = pnand %p11711_p3, %p11705_p0 }
0x1c1e   :  { %v7468_v15 = vpop.xlane.xlu1 %7467 }
0x1c1f   :  { %v7465_v17 = vpop.xlane.xlu0 %7464  ;;  %v7470_v40 = vadd.f32 1e-06, %v7468_v15 }
0x1c20   :  { %v7469_v53 = vadd.f32 1e-06, %v7465_v17 }
0x1c22   :  { %v8014_v58 = vpop.permute.xlu1 %8013  ;;  %11680 = vrcp.f32 %v7469_v53 }
0x1c23   :  { %v8012_v23 = vpop.permute.xlu0 %8011  ;;  %11682 = vrcp.f32 %v7470_v40 }
0x1c24   :  { %10533 = vmatprep.mubr.msk.f32.mxu0 %vm439_vm12, %v8012_v23 }
0x1c25   :  { %10534 = vmatmul.mubr.msk.f32.vlgmr.msra.gmra.mrb[254].mxu0 %vm439_vm12, %v8014_v58 }
0x1c26   :  { %v11472_v14 = vpop.permute.xlu1 %11471 }
0x1c27   :  { %v11474_v62 = vunpack.i.h.bf16 %v11472_v14  ;;  %v11473_v57 = vunpack.i.l.bf16 %v11472_v14 }
0x1c29   :  { %v11123_v56 = vpack.c.bf16 %v11474_v62, %v11473_v57 }
0x1c2c   :  { %v11681_v0 = vpop.eup %11680 }
0x1c2d   :  { %v11683_v6 = vpop.eup %11682 }
0x1c54   :  { %v7830_v46 = vpop.xlane.xlu0 %7829 }
0x1c55   :  { %v7834_v29 = vadd.f32 1e-06, %v7830_v46  ;;  %v8354_v46 = vld [vmem:[%s14949_s3 + $0x10] sm:$0xff] }
0x1c57   :  { %v7833_v60 = vpop.xlane.xlu1 %7832 }
0x1c58   :  { %v11477_v51 = vpop.permute.xlu0 %11476  ;;  %v7835_v50 = vadd.f32 1e-06, %v7833_v60  ;;  %v9223_v60 = vld [vmem:[%s14952_s8] ss:$0 sm:$0xff] }
0x1c59   :  { %v11479_v7 = vunpack.i.h.bf16 %v11477_v51  ;;  %v11478_v10 = vunpack.i.l.bf16 %v11477_v51 }
0x1c5b   :  { %v11135_v47 = vpack.c.bf16 %v11479_v7, %v11478_v10  ;;  %v8447_v7 = vld [vmem:[%s14950_s13 + $0x8] sm:$0xff]  ;;  %v8448_v10 = vld [vmem:[%s14950_s13 + $0x10] sm:$0xff] }
0x1c65   :  { %v10499_v1 = vpop.f32.mrb[240].mxu1 }
0x1c66   :  { %v7552_v49 = vpop.f32.mrb[241].mxu1  ;;  %v7562_v39 = vmul.f32 %v11683_v6, %v10499_v1  ;;  %v8352_v6 = vld [vmem:[%s14949_s3] sm:$0xff] }
0x1c67   :  { %v7561_v16 = vmul.f32 %v11681_v0, %v7552_v49 }
0x1c69   :  { %10502 = vmatprep.mubr.msk.f32.mxu1 %vm439_vm12, %v7561_v16  ;;  %v8353_v16 = vld [vmem:[%s14949_s3 + $0x8] sm:$0xff] }
0x1c6a   :  { %10503 = vmatmul.mubr.msk.f32.vlgmr.msra.gmra.mrb[242].mxu1 %vm439_vm12, %v7562_v39  ;;  %v11141_v39 = vpack.c.bf16 %v8353_v16, %v8352_v6  ;;  %v11797_v6 = vmov 0.0|0.0   ;;  %v8601_v16 = vld [vmem:[%s14955_s30 + $0x10] sm:$0xff] }
0x1c6b   :  { %10506 = vmatpush3.msra.mxu1 %v7155_v26  ;;  %10507 = vmatprep.mubr.msk.f32.mxu1 %vm439_vm12, %v14749_v13 }
0x1c6c   :  { %11125 = vmatprep.subr.msk.bf16.mxu1 %vm14530_vm2, %v11123_v56  ;;  %11142 = vmatprep.subr.bf16.mxu0 %v11141_v39 }
0x1c6d   :  { %11144 = vmatpush3.bf16.msra.mxu0 %v11141_v39  ;;  %v8602_v39 = vld [vmem:[%s14955_s30 + $0x18] sm:$0xff] }
0x1c72   :  { %10508 = vmatmul.mubr.msk.f32.vlgmr.msra.gmra.mrb[242].mxu1 %vm439_vm12, %v14747_v44 }
0x1c73   :  { %11128 = vmatpush3.bf16.msk.msra.mxu1 %vm14530_vm2, %v11123_v56  ;;  %10521 = vmatprep.mubr.msk.f32.mxu1 %vm5737_vm3, %v7826_v37  ;;  %v8355_v56 = vld [vmem:[%s14949_s3 + $0x18] sm:$0xff] }
0x1c74   :  { %10524 = vmatprep.subr.mxu1 %v7157_v38  ;;  %v11145_v51 = vpack.c.bf16 %v8355_v56, %v8354_v46  ;;  %v11169_v46 = vpack.c.bf16 %v8602_v39, %v8601_v16 }
0x1c76   :  { %10522 = vmatmul.mubr.msk.f32.vlgmr.msra.gmra.mrb[244].mxu1 %vm5737_vm3, %v7827_v45  ;;  %11146 = vmatprep.subr.bf16.mxu0 %v11145_v51 }
0x1c77   :  { %10525 = vmatpush3.msra.mxu1 %v7157_v38  ;;  %11148 = vmatpush3.bf16.msra.mxu0 %v11145_v51  ;;  %v8446_v38 = vld [vmem:[%s14950_s13] sm:$0xff] }
0x1c78   :  { %11137 = vmatprep.subr.msk.bf16.mxu1 %vm14530_vm2, %v11135_v47  ;;  %11165 = vmatprep.subr.bf16.mxu0 %v11797_v6 }
0x1cf8   :  { %v10535_v3 = vpop.f32.mrb[254].mxu0 }
0x1cf9   :  { %v8103_v63 = vmul.f32 0.35355338, %v10535_v3  ;;  %v8093_v31 = vpop.f32.mrb[255].mxu0  ;;  %v8449_v3 = vld [vmem:[%s14950_s13 + $0x18] sm:$0xff] }
0x1cfa   :  { %v8102_v35 = vmul.f32 0.35355338, %v8093_v31  ;;  %v8450_v31 = vld [vmem:[%s14950_s13 + $0x20] sm:$0xff] }
0x1cfb   :  { %v9215_v13 = vclamps-f32 %v8103_v63, 5.0  ;;  %v11153_v63 = vpack.c.bf16 %v8449_v3, %v8448_v10 }
0x1cfc   :  { %v9214_v28 = vclamps-f32 %v8102_v35, 5.0  ;;  %v8451_v35 = vld [vmem:[%s14950_s13 + $0x28] sm:$0xff] }
0x1cfd   :  { %v8110_v44 = vmul.f32 1.442695, %v9215_v13  ;;  %v11157_v13 = vpack.c.bf16 %v8451_v35, %v8450_v31 }
0x1cfe   :  { %v8108_v12 = vmul.f32 1.442695, %v9214_v28 }
0x1cff   :  { %11684 = vpow2.f32 %v8110_v44 }
0x1d00   :  { %11686 = vpow2.f32 %v8108_v12 }
0x1d01   :  { %11688 = vrcp.f32 %v7834_v29 }
0x1d02   :  { %11690 = vrcp.f32 %v7835_v50 }
0x1d09   :  { %v11685_v55 = vpop.eup %11684 }
0x1d0a   :  { %v11687_v43 = vpop.eup %11686  ;;  %v8113_v41 = vmul.f32 %v11685_v55, %v14563_v24  ;;  %v7158_v24 = vld [vmem:[%s14947_s0 + $0x18] sm:$0xff] }
0x1d0b   :  { %v8112_v20 = vmul.f32 %v11687_v43, %v14560_v27  ;;  %v11689_v52 = vpop.eup %11688 }
0x1d0c   :  { %v8117_v36 = vsel %vm5741_vm4, %v8113_v41, 0.0  ;;  %v11691_v32 = vpop.eup %11690 }
0x1d0d   :  { %v8114_v48 = vsel %vm5737_vm3, %v8112_v20, 0.0 }
0x1d0e   :  { %8115 = vadd.xlane.f32.xlu1 %v8114_v48 }
0x1d12   :  { %8118 = vadd.xlane.f32.xlu1 %v8117_v36 }
0x1d49   :  { %v10523_v19 = vpop.f32.mrb[244].mxu1 }
0x1d4a   :  { %v7917_v21 = vpop.f32.mrb[245].mxu1  ;;  %v7927_v27 = vmul.f32 %v11691_v32, %v10523_v19 }
0x1d4b   :  { %v7926_v4 = vmul.f32 %v11689_v52, %v7917_v21 }
0x1d4d   :  { %10526 = vmatprep.mubr.msk.f32.mxu1 %vm439_vm12, %v7926_v4  ;;  %v8452_v4 = vld [vmem:[%s14950_s13 + $0x30] sm:$0xff] }
0x1d4e   :  { %10527 = vmatmul.mubr.msk.f32.vlgmr.msra.gmra.mrb[242].mxu1 %vm439_vm12, %v7927_v27  ;;  %v8453_v27 = vld [vmem:[%s14950_s13 + $0x38] sm:$0xff] }
0x1d4f   :  { %11140 = vmatpush3.bf16.msk.msra.mxu1 %vm14530_vm2, %v11135_v47  ;;  %10540 = vmatprep.mubr.msk.f32.mxu1 %vm5737_vm3, %v8112_v20  ;;  %v11149_v47 = vpack.c.bf16 %v8447_v7, %v8446_v38 }
0x1d50   :  { %10543 = vmatprep.subr.mxu1 %v7158_v24 }
0x1d52   :  { %10541 = vmatmul.mubr.msk.f32.vlgmr.msra.gmra.mrb[246].mxu1 %vm5737_vm3, %v8113_v41  ;;  %v9222_v41 = vld [vmem:[%s14951_s17] ss:$0 sm:$0xff] }
0x1d53   :  { %10544 = vmatpush3.msra.mxu1 %v7158_v24  ;;  %v11161_v24 = vpack.c.bf16 %v8453_v27, %v8452_v4  ;;  %v8679_v4 = vld [vmem:[%s14958_s6 + $0x8] sm:$0xff] }
0x1d54   :  { %11150 = vmatprep.subr.bf16.mxu1 %v11149_v47 }
0x1d9b   :  { %v8116_v11 = vpop.xlane.xlu1 %8115 }
0x1d9c   :  { %v8120_v54 = vadd.f32 1e-06, %v8116_v11  ;;  %v9224_v11 = vld [vmem:[%s14953_s14] ss:$0 sm:$0xff] }
0x1d9e   :  { %11692 = vrcp.f32 %v8120_v54 }
0x1d9f   :  { %v8119_v34 = vpop.xlane.xlu1 %8118 }
0x1da0   :  { %v8121_v33 = vadd.f32 1e-06, %v8119_v34 }
0x1da2   :  { %11694 = vrcp.f32 %v8121_v33 }
0x1da8   :  { %v11693_v61 = vpop.eup %11692 }
0x1dac   :  { %v11695_v18 = vpop.eup %11694 }
0x1e25   :  { %v10542_v30 = vpop.f32.mrb[246].mxu1 }
0x1e26   :  { %v8203_v22 = vpop.f32.mrb[247].mxu1  ;;  %v8213_v37 = vmul.f32 %v11695_v18, %v10542_v30  ;;  %v9227_v18 = vld [vmem:[%s14954_s19] ss:$0 sm:$0xff] }
0x1e27   :  { %v8212_v25 = vmul.f32 %v11693_v61, %v8203_v22 }
0x1e29   :  { %10545 = vmatprep.mubr.msk.f32.mxu1 %vm439_vm12, %v8212_v25 }
0x1e2a   :  { %10546 = vmatmul.mubr.msk.f32.vlgmr.msra.gmra.mrb[242].mxu1 %vm439_vm12, %v8213_v37 }
0x1e2b   :  { %11152 = vmatpush3.bf16.msra.mxu1 %v11149_v47 }
0x1e2c   :  { %11154 = vmatprep.subr.bf16.mxu1 %v11153_v63 }
0x1e2f   :  { %11156 = vmatpush3.bf16.msra.mxu1 %v11153_v63  ;;  %v9230_v63 = vld [vmem:[%s14956_s21] ss:$0 sm:$0xff] }
0x1e30   :  { %11158 = vmatprep.subr.bf16.mxu1 %v11157_v13 }
0x1e33   :  { %11160 = vmatpush3.bf16.msra.mxu1 %v11157_v13 }
0x1e34   :  { %11162 = vmatprep.subr.bf16.mxu1 %v11161_v24 }
0x1e37   :  { %11164 = vmatpush3.bf16.msra.mxu1 %v11161_v24  ;;  %v8603_v24 = vld [vmem:[%s14959_s12] sm:$0x1] }
0x1efd   :  { %v10547_v45 = vpop.f32.mrb[242].mxu1 }
0x1efe   :  { %v8286_v9 = vpop.f32.mrb[243].mxu1  ;;  %v8298_v8 = vadd.f32 %v10547_v45, %v14677_v59 }
0x1eff   :  { %v8297_v26 = vadd.f32 %v8286_v9, %v14673_v42 }
0x1f00   :  { %v8307_v17 = vadd.f32 %v9221_v5, %v8298_v8 }
0x1f01   :  { %v8306_v15 = vadd.f32 %v9221_v5, %v8297_v26 }
0x1f02   :  { %v8313_v58 = vsel %vm6792_vm5, %v8307_v17, 0.0 }
0x1f03   :  { %v8310_v23 = vsel %vm5550_vm15, %v8306_v15, 0.0 }
0x1f04   :  { %8311 = vadd.xlane.f32.xlu1 %v8310_v23 }
0x1f08   :  { %8314 = vadd.xlane.f32.xlu1 %v8313_v58 }
0x1f91   :  { %v8312_v53 = vpop.xlane.xlu1 %8311 }
0x1f92   :  { %v8316_v40 = vmul.f32 0.03125, %v8312_v53 }
0x1f94   :  { %v8318_v14 = vsub.f32 %v8306_v15, %v8316_v40 }
0x1f95   :  { %v8315_v1 = vpop.xlane.xlu1 %8314 }
0x1f96   :  { %v8317_v0 = vmul.f32 0.03125, %v8315_v1  ;;  %v8320_v59 = vmul.f32 %v8318_v14, %v8318_v14 }
0x1f98   :  { %v8319_v62 = vsub.f32 %v8307_v17, %v8317_v0  ;;  %v8322_v42 = vsel %vm5550_vm15, %v8320_v59, 0.0 }
0x1f99   :  { %8323 = vadd.xlane.f32.xlu1 %v8322_v42  ;;  %v8599_v42 = vld [vmem:[%s14955_s30] sm:$0xff] }
0x1f9a   :  { %v8321_v57 = vmul.f32 %v8319_v62, %v8319_v62 }
0x1f9c   :  { %v8325_v49 = vsel %vm6792_vm5, %v8321_v57, 0.0  ;;  %v8600_v57 = vld [vmem:[%s14955_s30 + $0x8] sm:$0xff] }
0x1f9d   :  { %8326 = vadd.xlane.f32.xlu0 %v8325_v49  ;;  %v11166_v49 = vpack.c.bf16 %v8600_v57, %v8599_v42 }
0x2026   :  { %v8324_v28 = vpop.xlane.xlu1 %8323 }
0x2027   :  { %v8328_v44 = vmul.f32 0.03125, %v8324_v28  ;;  %v9231_v28 = vld [vmem:[%s14957_s24] ss:$0 sm:$0xff] }
0x2029   :  { %v8330_v12 = vadd.f32 1e-05, %v8328_v44 }
0x202a   :  { %v8327_v55 = vpop.xlane.xlu0 %8326 }
0x202b   :  { %11696 = vrsqrt.f32 %v8330_v12  ;;  %v8329_v43 = vmul.f32 0.03125, %v8327_v55 }
0x202d   :  { %v8331_v20 = vadd.f32 1e-05, %v8329_v43 }
0x202f   :  { %11698 = vrsqrt.f32 %v8331_v20 }
0x2035   :  { %v11697_v48 = vpop.eup %11696 }
0x2036   :  { %v8334_v36 = vmul.f32 %v11697_v48, %v8318_v14 }
0x2038   :  { %v8342_v29 = vmul.f32 %v9222_v41, %v8334_v36 }
0x2039   :  { %v11699_v50 = vpop.eup %11698 }
0x203a   :  { %v8335_v19 = vmul.f32 %v11699_v50, %v8319_v62  ;;  %v8350_v52 = vadd.f32 %v9223_v60, %v8342_v29 }
0x203c   :  { %v8343_v21 = vmul.f32 %v9222_v41, %v8335_v19  ;;  %10556 = vmatprep.mubr.msk.f32.mxu0 %vm5550_vm15, %v8350_v52 }
0x203e   :  { %v8351_v32 = vadd.f32 %v9223_v60, %v8343_v21 }
0x2040   :  { %10557 = vmatmul.mubr.msk.f32.vlgmr.msra.gmra.mrb[0].mxu0 %vm5550_vm15, %v8351_v32 }
0x2041   :  { %11167 = vmatpush3.bf16.msra.mxu0 %v11166_v49  ;;  %10586 = vmatprep.mubr.msk.f32.mxu0 %vm11798_vm7, %v11786_v2 }
0x2042   :  { %11168 = vmatprep.subr.bf16.mxu0 %v11797_v6 }
0x2045   :  { %11170 = vmatpush3.bf16.msra.mxu0 %v11169_v46 }
0x2046   :  { %11171 = vmatprep.subr.bf16.mxu0 %v11797_v6 }
0x2113   :  { %v10558_v34 = vpop.f32.mrb[0].mxu0 }
0x2114   :  { %v8441_v54 = vadd.f32 %v10558_v34, %v9224_v11  ;;  %v8435_v33 = vpop.f32.mrb[1].mxu0 }
0x2115   :  { %v8436_v30 = vadd.f32 %v9224_v11, %v8435_v33 }
0x2116   :  { %v8445_v22 = vmax.f32 %v8441_v54, 0.0 }
0x2117   :  { %v8444_v61 = vmax.f32 %v8436_v30, 0.0  ;;  %v8755_v30 = vld [vmem:[%s14960_s20] sm:$0xff] }
0x2119   :  { %10575 = vmatprep.mubr.msk.f32.mxu1 %vm6942_vm6, %v8444_v61  ;;  %v8680_v61 = vld [vmem:[%s14961_s27] sm:$0x1] }
0x211a   :  { %10576 = vmatmul.mubr.msk.f32.vlgmr.msra.gmra.mrb[248].mxu1 %vm6942_vm6, %v8445_v22 }
0x21ed   :  { %v10577_v25 = vpop.f32.mrb[248].mxu1 }
0x21ee   :  { %v8533_v37 = vpop.f32.mrb[249].mxu1  ;;  %v8539_v45 = vadd.f32 %v10577_v25, %v9227_v18 }
0x21ef   :  { %v8534_v5 = vadd.f32 %v9227_v18, %v8533_v37 }
0x21f0   :  { %v8543_v8 = vadd.f32 %v8539_v45, %v8351_v32  ;;  %v8678_v32 = vld [vmem:[%s14958_s6] sm:$0xff] }
0x21f1   :  { %v8542_v9 = vadd.f32 %v8534_v5, %v8350_v52  ;;  %v11172_v27 = vpack.c.bf16 %v8679_v4, %v8678_v32  ;;  %v8756_v45 = vld [vmem:[%s14962_s4] sm:$0x1] }
0x21f2   :  { %v8549_v15 = vsel %vm6792_vm5, %v8543_v8, 0.0 }
0x21f3   :  { %v8546_v26 = vsel %vm5550_vm15, %v8542_v9, 0.0 }
0x21f4   :  { %8547 = vadd.xlane.f32.xlu1 %v8546_v26 }
0x21f8   :  { %8550 = vadd.xlane.f32.xlu1 %v8549_v15 }
0x2281   :  { %v8548_v17 = vpop.xlane.xlu1 %8547 }
0x2282   :  { %v8552_v23 = vmul.f32 0.03125, %v8548_v17 }
0x2284   :  { %v8554_v58 = vsub.f32 %v8542_v9, %v8552_v23 }
0x2285   :  { %v8551_v53 = vpop.xlane.xlu1 %8550 }
0x2286   :  { %v8553_v40 = vmul.f32 0.03125, %v8551_v53  ;;  %v8556_v14 = vmul.f32 %v8554_v58, %v8554_v58 }
0x2288   :  { %v8555_v1 = vsub.f32 %v8543_v8, %v8553_v40  ;;  %v8558_v0 = vsel %vm5550_vm15, %v8556_v14, 0.0 }
0x2289   :  { %8559 = vadd.xlane.f32.xlu1 %v8558_v0 }
0x228a   :  { %v8557_v59 = vmul.f32 %v8555_v1, %v8555_v1 }
0x228c   :  { %v8561_v62 = vsel %vm6792_vm5, %v8557_v59, 0.0 }
0x228d   :  { %8562 = vadd.xlane.f32.xlu1 %v8561_v62 }
0x2316   :  { %v8560_v56 = vpop.xlane.xlu1 %8559 }
0x2317   :  { %v8564_v51 = vmul.f32 0.03125, %v8560_v56 }
0x2319   :  { %v8566_v38 = vadd.f32 1e-05, %v8564_v51 }
0x231a   :  { %v8563_v7 = vpop.xlane.xlu1 %8562 }
0x231b   :  { %11700 = vrsqrt.f32 %v8566_v38  ;;  %v8565_v10 = vmul.f32 0.03125, %v8563_v7 }
0x231d   :  { %v8567_v47 = vadd.f32 1e-05, %v8565_v10 }
0x231f   :  { %11702 = vrsqrt.f32 %v8567_v47 }
0x2325   :  { %v11701_v3 = vpop.eup %11700 }
0x2326   :  { %v8570_v31 = vmul.f32 %v11701_v3, %v8554_v58 }
0x2328   :  { %v8578_v35 = vmul.f32 %v9230_v63, %v8570_v31 }
0x2329   :  { %v11703_v13 = vpop.eup %11702 }
0x232a   :  { %v8571_v44 = vmul.f32 %v11703_v13, %v8555_v1  ;;  %v8586_v12 = vadd.f32 %v9231_v28, %v8578_v35 }
0x232c   :  { %v8579_v55 = vmul.f32 %v9230_v63, %v8571_v44  ;;  %v8588_v20 = vsel %vm5550_vm15, %v8586_v12, 0.0 }
0x232e   :  { %v8587_v43 = vadd.f32 %v9231_v28, %v8579_v55 }
0x2330   :  { %v8589_v48 = vsel %vm6792_vm5, %v8587_v43, 0.0 }
0x2331   :  { %v8590_v41 = vadd.f32 %v8589_v48, %v8588_v20 }
0x2333   :  { %v8591_v36 = vrot.slane %v8590_v41, 4 }
0x2335   :  { %v8592_v60 = vadd.f32 %v8591_v36, %v8590_v41 }
0x2337   :  { %v8593_v29 = vrot.slane %v8592_v60, 2 }
0x2339   :  { %v8594_v50 = vadd.f32 %v8593_v29, %v8592_v60 }
0x233b   :  { %v8595_v19 = vrot.slane %v8594_v50, 1 }
0x233d   :  { %v8596_v52 = vadd.f32 %v8595_v19, %v8594_v50 }
0x233f   :  { %v8598_v21 = vmul.f32 0.083333336, %v8596_v52 }
0x2341   :  { %10587 = vmatmul.mubr.msk.f32.vlgmr.msra.gmra.mrb[2].mxu0 %vm5550_vm15, %v8598_v21 }
0x2342   :  { %10593 = vmatprep.mubr.msk.f32.mxu0 %vm11798_vm7, %v11786_v2  ;;  %11173 = vmatpush3.bf16.msra.mxu0 %v11172_v27 }
0x2343   :  { %10596 = vmatprep.subr.mxu0 %v11786_v2 }
0x2414   :  { %v8673_v11 = vpop.f32.mrb[2].mxu0 }
0x2415   :  { %v8674_v34 = vadd.f32 %v8673_v11, %v8603_v24  ;;  %v10588_v54 = vpop.f32.mrb[3].mxu0 }
0x2417   :  { %v8677_v33 = vmax.f32 %v8674_v34, 0.0 }
0x2419   :  { %10594 = vmatmul.mubr.msk.f32.vlgmr.msra.gmra.mrb[4].mxu0 %vm5378_vm13, %v8677_v33 }
0x241a   :  { %10598 = vmatprep.mubr.msk.f32.mxu0 %vm11798_vm7, %v11786_v2  ;;  %10597 = vmatpush3.msra.mxu0 %v8755_v30 }
0x24ec   :  { %v8750_v22 = vpop.f32.mrb[4].mxu0 }
0x24ed   :  { %v8751_v18 = vadd.f32 %v8750_v22, %v8680_v61  ;;  %v10595_v25 = vpop.f32.mrb[5].mxu0 }
0x24ef   :  { %v8754_v37 = vmax.f32 %v8751_v18, 0.0 }
0x24f1   :  { %10599 = vmatmul.mubr.msk.f32.vlgmr.msra.gmra.mrb[6].mxu0 %vm439_vm12, %v8754_v37 }
0x25c4   :  { %v8826_v5 = vpop.f32.mrb[6].mxu0 }
0x25c5   :  { %v8827_v9 = vadd.f32 %v8826_v5, %v8756_v45  ;;  %v10600_v8 = vpop.f32.mrb[7].mxu0 }
0x25c7   :  { %8831 = vst.msk [vmem:[#allocation2] sm:$0x1] %vm8830_vm8, %v8827_v9 }
0x25c8   :  { %11715 = shalt.err (!%p11712_p4)
}
0x25c9   :  { %s11716_s1 = scalar_lea.hbm %s12061_s25, 16 }
0x25ca   :  { %p11717_p5 = scmp.ne.s32.totalorder %s12061_s25, %s11716_s1  ;;  %p11720_p6 = scmp.lt.u32.totalorder %s11716_s1, %s12061_s25 }
0x25cc   :  { %p11722_p7 = pnand %p11720_p6, %p11717_p5 }
0x25ce   :  { %11725 = shalt.err (!%p11722_p7)
}
0x25cf   :  { %8841 = dma.vmem_to_hbm [thread:$0]  %s8839_s23, 16, %s12061_s25, [#allocation3]  }
0x25d0   :  { %11726 = dma.done.wait [#allocation3], 16  }
0x25d1   :  { %11727 = vsyncadd [#allocation3], 4294967280 }
0x25d2   :  { %8845 = vsyncpa [#allocation3], 1 }

</bundles_post_ra>
